<compile_context>
chip_gen: v7x
topology: tpu7x:2x2x1
jax: 0.10.0
libtpu: 0.0.40
codegen_flags: <defaults>
</compile_context>

<pallas_src>
import functools

import jax
import jax.numpy as jnp
import numpy as np
from jax.experimental import pallas as pl
from jax.experimental.pallas import tpu as pltpu

X_DIM = 3
H_DIM = 32
MSG_DIM = 2
NEG_SLOPE = 0.01  # nn.LeakyReLU default

# Rows of the small f32 parameter slab S [_S_ROWS, H]:
#   0..X_DIM-1  w_in
#   3           b_in
#   4           bm1' (= bm1 + b_enc @ C : encoder bias folded through wm1 chunk)
#   5           bm2
#   6           bn1
#   7           bn2
#   8           bu
#   9,10        wm1_y (= w_enc[:MSG_DIM] @ C) -- applied as a VPU FMA, not a K=2 matmul
_S_ROWS = X_DIM + 6 + MSG_DIM

# Column blocks of the bf16 MXU weight slab W [H, 8H]:
_W_I, _W_J, _W_N1, _W_N2, _W_MH, _W_M2, _W_U1, _W_U2 = range(8)


def _leaky(v):
    return jnp.where(v > 0, v, NEG_SLOPE * v)


def mpnn_kernel(
    # inputs
    src_ref, tgt_ref, hmsg_ref, ymsg_ref, x_ref, w_ref, s_ref,
    # outputs
    hmsg_out_ref, hnew_out_ref,
    # scratch (persists across edge tiles)
    gath_sc, hnode_sc, aggr_sc,
):
    f32 = jnp.float32
    bf16 = jnp.bfloat16
    H = H_DIM
    n_nodes = hnode_sc.shape[0]
    tile_e = hmsg_ref.shape[0]
    e = pl.program_id(0)

    def w_blk(i):  # static [H, H] bf16 slice of the packed weight slab
        return w_ref[:, i * H:(i + 1) * H]

    # ---- first edge tile: per-node precompute.  All per-edge linear work that
    #      commutes with the gather (row select) is hoisted to O(N) work here. ----
    @pl.when(e == 0)
    def _init():
        h_node = (jnp.dot(x_ref[...], s_ref[0:X_DIM, :], preferred_element_type=f32)
                  + s_ref[X_DIM:X_DIM + 1, :])                          # lin_in
        hb = h_node.astype(bf16)
        hnode_sc[...] = hb                                              # cached bf16 once
        a = jnp.dot(hb, w_blk(_W_I), preferred_element_type=f32)        # h_node @ wm1_i
        b = jnp.dot(hb, w_blk(_W_J), preferred_element_type=f32)        # h_node @ wm1_j
        n1 = _leaky(jnp.dot(hb, w_blk(_W_N1), preferred_element_type=f32) + s_ref[6:7, :])
        n_all = _leaky(jnp.dot(n1.astype(bf16), w_blk(_W_N2),
                               preferred_element_type=f32) + s_ref[7:8, :])
        # Fused gather table:
        #   rows [0, N)  -> [ A | 0     ]  selected by tgt (h_i side)
        #   rows [N, 2N) -> [ B | n_all ]  selected by src (h_j side)
        top = jnp.concatenate([a, jnp.zeros_like(a)], axis=1)
        bot = jnp.concatenate([b, n_all], axis=1)
        gath_sc[...] = jnp.concatenate([top, bot], axis=0).astype(bf16)
        aggr_sc[...] = jnp.zeros_like(aggr_sc)

    src = src_ref[...]        # [tile_e, 1] int32 (edge_index[0], source j)
    tgt = tgt_ref[...]        # [tile_e, 1] int32 (edge_index[1], target i)

    # ---- fused gather: one [tile_e, 2N] one-hot picks both the tgt- and the
    #      src-side per-node precomputes in a single MXU matmul.  Padded edges
    #      carry index 2N, so both compares miss -> all-zero rows. ----
    colc = jax.lax.broadcasted_iota(jnp.int32, (tile_e, 2 * n_nodes), 1)
    # tgt hits cols [0, N), src+N hits cols [N, 2N): disjoint, so add == logical-or.
    oh = (colc == tgt).astype(bf16) + (colc == (src + n_nodes)).astype(bf16)
    gath = jnp.dot(oh, gath_sc[...], preferred_element_type=f32)        # [tile_e, 2H]

    # encoder contribution of y_msg: exact f32 VPU FMA instead of a K=2 MXU matmul
    y_msg = ymsg_ref[...]
    y_fma = y_msg[:, 0:1] * s_ref[9:10, :] + y_msg[:, 1:2] * s_ref[10:11, :]

    # encoder contribution of h_msg (encoder folded into wm1's third chunk offline)
    hm = jnp.dot(hmsg_ref[...], w_blk(_W_MH), preferred_element_type=f32)

    # ---- M(cat([h_i, h_j, encoded]))  (first layer pre-activation already summed) ----
    m = _leaky(gath[:, 0:H] + hm + y_fma + s_ref[4:5, :])
    m = _leaky(jnp.dot(m.astype(bf16), w_blk(_W_M2), preferred_element_type=f32)
               + s_ref[5:6, :])

    # per-edge message: N_node(h_j) + M(...)  == new h_msg
    aggr_msg = gath[:, H:2 * H] + m
    hmsg_out_ref[...] = aggr_msg

    # ---- scatter-add over target node.  The narrow tgt one-hot is rebuilt here
    #      (cheap iota compare) to keep its live range short.  Contract axis 0
    #      of both operands (no materialized transpose). ----
    coln = jax.lax.broadcasted_iota(jnp.int32, (tile_e, n_nodes), 1)
    tgt_oh = (coln == tgt).astype(bf16)
    aggr_sc[...] += jax.lax.dot_general(
        tgt_oh, aggr_msg.astype(bf16),
        dimension_numbers=(((0,), (0,)), ((), ())),
        preferred_element_type=f32)

    # ---- last edge tile: U update.  The 2-class decoders (message + beliefs,
    #      tiny N_out=2 matmuls + softmax) run outside the kernel in plain XLA,
    #      so the kernel emits lane-denser [*, H] outputs only. ----
    # TODO(synk): on v7x, split the edge axis across the 2 TensorCores with
    # per-core partial [N, H] aggregators merged here (core_barrier / follow-up call).
    @pl.when(e == pl.num_programs(0) - 1)
    def _finalize():
        h_new = _leaky(
            jnp.dot(hnode_sc[...], w_blk(_W_U1), preferred_element_type=f32)
            + jnp.dot(aggr_sc[...].astype(bf16), w_blk(_W_U2), preferred_element_type=f32)
            + s_ref[8:9, :])
        hnew_out_ref[...] = h_new


def init_params(key):
    ks = jax.random.split(key, 9)

    def lin(k, fan_in, fan_out):
        kw, kb = jax.random.split(k)
        bound = 1.0 / np.sqrt(fan_in)
        w = jax.random.uniform(kw, (fan_in, fan_out), jnp.float32, -bound, bound)
        b = jax.random.uniform(kb, (1, fan_out), jnp.float32, -bound, bound)
        return w, b

    p = {}
    p["w_in"], p["b_in"] = lin(ks[0], X_DIM, H_DIM)                 # lin_in
    p["w_enc"], p["b_enc"] = lin(ks[1], MSG_DIM + H_DIM, H_DIM)     # EncoderLayer.lin
    p["wm1"], p["bm1"] = lin(ks[2], 3 * H_DIM, H_DIM)               # processor.M[0]
    p["wm2"], p["bm2"] = lin(ks[3], H_DIM, H_DIM)                   # processor.M[2]
    p["wn1"], p["bn1"] = lin(ks[4], H_DIM, H_DIM)                   # processor.N_node[0]
    p["wn2"], p["bn2"] = lin(ks[5], H_DIM, H_DIM)                   # processor.N_node[2]
    p["wu"], p["bu"] = lin(ks[6], 2 * H_DIM, H_DIM)                 # processor.U[0]
    p["wd"], p["bd"] = lin(ks[7], H_DIM, MSG_DIM)                   # MessageDecoderLayer.lin
    p["wb"], p["bb"] = lin(ks[8], H_DIM, MSG_DIM)                   # BeliefsDecoderLayer.lin
    return p


def _prep_params(params):
    """Fold encoder into M weights; pack everything into 2 resident slabs."""
    H = H_DIM
    C = params["wm1"][2 * H:3 * H]                       # [H, H] third chunk of wm1
    wm1_y = params["w_enc"][:MSG_DIM] @ C                # [MSG_DIM, H]
    wm1_h = params["w_enc"][MSG_DIM:] @ C                # [H, H]
    bm1_f = params["bm1"] + params["b_enc"] @ C          # fold b_enc through C

    # bf16 MXU weight slab [H, 8H]; column-block order must match _W_* indices.
    w_slab = jnp.concatenate([
        params["wm1"][0:H],        # _W_I   : tgt / h_i projection (hoisted per-node)
        params["wm1"][H:2 * H],    # _W_J   : src / h_j projection (hoisted per-node)
        params["wn1"],             # _W_N1  : N_node layer 1 (hoisted per-node)
        params["wn2"],             # _W_N2  : N_node layer 2 (hoisted per-node)
        wm1_h,                     # _W_MH  : per-tile h_msg projection (encoder folded)
        params["wm2"],             # _W_M2  : per-tile M layer 2
        params["wu"][:H],          # _W_U1  : finalize
        params["wu"][H:],          # _W_U2  : finalize
    ], axis=1).astype(jnp.bfloat16)

    # small f32 slab [_S_ROWS, H]; row order documented at the top of the file.
    s_slab = jnp.concatenate([
        params["w_in"],            # rows 0..X_DIM-1
        params["b_in"],            # 3
        bm1_f,                     # 4
        params["bm2"],             # 5
        params["bn1"],             # 6
        params["bn2"],             # 7
        params["bu"],              # 8
        wm1_y,                     # 9, 10
    ], axis=0).astype(jnp.float32)

    dec = (params["wd"].astype(jnp.float32), params["bd"].astype(jnp.float32),
           params["wb"].astype(jnp.float32), params["bb"].astype(jnp.float32))
    return w_slab, s_slab, dec


def _pick_tile_e(E, N):
    # Run the whole (padded) edge set in one grid step when small; otherwise big
    # tiles so the ~0.35 us/step grid overhead is amortized.  Multiple of 256
    # keeps the MXU M-dim well fed on all generations (incl. v5e).
    tile = min(pl.cdiv(max(E, 1), 256) * 256, 2048)
    # Keep the in-kernel [tile, 2N] bf16 one-hot bounded (v7x has 64 MiB VMEM).
    # TODO(synk): for N beyond a few thousand, switch the gather/scatter to
    # scalar-prefetch / pl.Element row gather instead of one-hot matmuls.
    while tile > 256 and tile * (2 * N) * 2 > 4 * 1024 * 1024:
        tile //= 2
    return tile


@functools.partial(jax.jit, static_argnames=("tile_e",))
def mpnn_pallas(x, edge_index, h_msg, y_msg, params, *, tile_e=None):
    N = x.shape[0]
    E = edge_index.shape[1]
    if tile_e is None:
        tile_e = _pick_tile_e(E, N)
    e_pad = pl.cdiv(E, tile_e) * tile_e
    pad = e_pad - E

    # Padded edges use index 2*N: out of range of BOTH halves of the combined
    # one-hot (tgt hits cols [0,N), src+N hits cols [N,2N)) and of the scatter
    # one-hot, so they gather zeros and contribute nothing.  Do NOT change this
    # constant to 0 or N — that would silently corrupt node aggregation.
    pad_idx = 2 * N
    src = jnp.pad(edge_index[0].astype(jnp.int32), (0, pad),
                  constant_values=pad_idx).reshape(e_pad, 1)
    tgt = jnp.pad(edge_index[1].astype(jnp.int32), (0, pad),
                  constant_values=pad_idx).reshape(e_pad, 1)
    # h_msg only feeds a bf16 MXU matmul in-kernel -> carry the input stream in
    # bf16 (halves its DMA traffic); outputs stay f32.
    h_msg_p = jnp.pad(h_msg, ((0, pad), (0, 0))).astype(jnp.bfloat16)
    y_msg_p = jnp.pad(y_msg, ((0, pad), (0, 0))).astype(jnp.float32)

    w_slab, s_slab, (wd, bd, wb, bb) = _prep_params(params)

    res = lambda shape: pl.BlockSpec(shape, lambda e: (0, 0))            # resident
    tile = lambda cols: pl.BlockSpec((tile_e, cols), lambda e: (e, 0))   # edge-tiled

    hmsg_out, h_new = pl.pallas_call(
        mpnn_kernel,
        grid=(e_pad // tile_e,),
        in_specs=[
            tile(1), tile(1),                        # src, tgt indices
            tile(H_DIM),                             # h_msg (bf16)
            tile(MSG_DIM),                           # y_msg
            res((N, X_DIM)),                         # x
            res((H_DIM, 8 * H_DIM)),                 # packed bf16 weight slab
            res((_S_ROWS, H_DIM)),                   # packed f32 small slab
        ],
        out_specs=(
            pl.BlockSpec((tile_e, H_DIM), lambda e: (e, 0)),   # new h_msg
            pl.BlockSpec((N, H_DIM), lambda e: (0, 0)),        # updated h_node
        ),
        out_shape=(
            jax.ShapeDtypeStruct((e_pad, H_DIM), jnp.float32),
            jax.ShapeDtypeStruct((N, H_DIM), jnp.float32),
        ),
        scratch_shapes=[
            pltpu.VMEM((2 * N, 2 * H_DIM), jnp.bfloat16),  # gather table [A|0 ; B|n_all]
            pltpu.VMEM((N, H_DIM), jnp.bfloat16),          # h_node (bf16, cast once)
            pltpu.VMEM((N, H_DIM), jnp.float32),           # scatter-add accumulator
        ],
        compiler_params=pltpu.CompilerParams(
            # Edge axis accumulates into aggr_sc / resident outputs -> arbitrary.
            # (No vmem_limit override: real footprint is ~1-2 MiB; 64 MiB would
            #  equal the full physical VMEM on v7x.)
            dimension_semantics=("arbitrary",),
        ),
    )(src, tgt, h_msg_p, y_msg_p, x, w_slab, s_slab)

    hmsg_new = hmsg_out[:E]
    # Tiny 2-class decoders in plain XLA (review: lane-dense kernel outputs,
    # no N_out=2 MXU matmuls per tile).
    y_msg_new = jax.nn.softmax(hmsg_new @ wd + bd, axis=-1)
    beliefs_all = jax.nn.softmax(h_new @ wb + bb, axis=-1)
    return hmsg_new, y_msg_new, beliefs_all


def mpnn_reference(x, edge_index, h_msg, y_msg, params):
    """Pure-JAX reference matching the PyTorch MPNN.forward semantics."""
    leaky = lambda v: jnp.where(v > 0, v, NEG_SLOPE * v)
    sm = lambda z: jax.nn.softmax(z, axis=-1)

    h_node = x @ params["w_in"] + params["b_in"]
    encoded = jnp.concatenate([y_msg, h_msg], axis=-1) @ params["w_enc"] + params["b_enc"]
    src, tgt = edge_index[0], edge_index[1]
    h_j = h_node[src]
    h_i = h_node[tgt]
    cat = jnp.concatenate([h_i, h_j, encoded], axis=-1)
    m = leaky(cat @ params["wm1"] + params["bm1"])
    m = leaky(m @ params["wm2"] + params["bm2"])
    n = leaky(h_j @ params["wn1"] + params["bn1"])
    n = leaky(n @ params["wn2"] + params["bn2"])
    aggr_msg = n + m
    aggr_out = jnp.zeros_like(h_node).at[tgt].add(aggr_msg)
    h_new = leaky(jnp.concatenate([h_node, aggr_out], axis=-1) @ params["wu"] + params["bu"])
    y_msg_new = sm(aggr_msg @ params["wd"] + params["bd"])
    beliefs_all = sm(h_new @ params["wb"] + params["bb"])
    return aggr_msg, y_msg_new, beliefs_all


if __name__ == "__main__":
    key = jax.random.PRNGKey(0)
    k_param, k_x, k_mask, k_edge, k_msg, k_ymsg = jax.random.split(key, 6)

    N = 64     # graph nodes
    E = 500    # directed edges (not a tile multiple -> exercises padding)

    params = init_params(k_param)

    # data.x: [N, 3]; column 0 is the 0/1 "is-variable-node" flag (belief mask)
    x_rest = jax.random.normal(k_x, (N, X_DIM - 1), jnp.float32)
    flag = jax.random.bernoulli(k_mask, 0.5, (N, 1)).astype(jnp.float32)
    x = jnp.concatenate([flag, x_rest], axis=-1)

    edge_index = jax.random.randint(k_edge, (2, E), 0, N, dtype=jnp.int32)
    h_msg = jax.random.normal(k_msg, (E, H_DIM), jnp.float32)
    y_msg = jax.nn.softmax(jax.random.normal(k_ymsg, (E, MSG_DIM), jnp.float32), axis=-1)

    h_msg_out, y_msg_out, beliefs_all = mpnn_pallas(x, edge_index, h_msg, y_msg, params)
    jax.block_until_ready((h_msg_out, y_msg_out, beliefs_all))

    # TODO(synk): BeliefsDecoderLayer's boolean mask (x[:,0]==1) is dynamic-shape;
    # beliefs are computed for all nodes and the rows are selected here.
    mask = np.asarray(x[:, 0] == 1.0)
    y_beliefs = np.asarray(beliefs_all)[mask]

    # Sanity check vs f32 pure-JAX reference (kernel uses bf16 MXU operands with
    # f32 accumulation -> relaxed tolerances).
    ref_hmsg, ref_ymsg, ref_beliefs_all = mpnn_reference(x, edge_index, h_msg, y_msg, params)
    np.testing.assert_allclose(np.asarray(h_msg_out), np.asarray(ref_hmsg), atol=3e-2, rtol=3e-2)
    np.testing.assert_allclose(np.asarray(y_msg_out), np.asarray(ref_ymsg), atol=3e-2, rtol=3e-2)
    np.testing.assert_allclose(y_beliefs, np.asarray(ref_beliefs_all)[mask], atol=3e-2, rtol=3e-2)

    print("KERNEL_OK")
</pallas_src>

<mosaic_0001>
module attributes {stable_mosaic.version = 11 : i64} {
  func.func @mpnn_kernel(%arg0: i32, %arg1: memref<512x1xi32, #tpu.memory_space<vmem>>, %arg2: memref<512x1xi32, #tpu.memory_space<vmem>>, %arg3: memref<512x32xbf16, #tpu.memory_space<vmem>>, %arg4: memref<512x2xf32, #tpu.memory_space<vmem>>, %arg5: memref<64x3xf32, #tpu.memory_space<vmem>>, %arg6: memref<32x256xbf16, #tpu.memory_space<vmem>>, %arg7: memref<11x32xf32, #tpu.memory_space<vmem>>, %arg8: memref<512x32xf32, #tpu.memory_space<vmem>>, %arg9: memref<64x32xf32, #tpu.memory_space<vmem>>, %arg10: memref<128x64xbf16, #tpu.memory_space<vmem>>, %arg11: memref<64x32xbf16, #tpu.memory_space<vmem>>, %arg12: memref<64x32xf32, #tpu.memory_space<vmem>>) attributes {dimension_semantics = [#tpu.dimension_semantics<arbitrary>], iteration_bounds = array<i64: 1>, scalar_prefetch = 0 : i64, scratch_operands = 3 : i64, tpu.core_type = #tpu.core_type<tc>, window_params = [{transform_indices = @transform_0, window_bounds = array<i64: 512, 1>}, {transform_indices = @transform_1, window_bounds = array<i64: 512, 1>}, {transform_indices = @transform_2, window_bounds = array<i64: 512, 32>}, {transform_indices = @transform_3, window_bounds = array<i64: 512, 2>}, {pipeline_mode = #tpu.pipeline_mode<synchronous>, transform_indices = @transform_4, window_bounds = array<i64: 64, 3>}, {pipeline_mode = #tpu.pipeline_mode<synchronous>, transform_indices = @transform_5, window_bounds = array<i64: 32, 256>}, {pipeline_mode = #tpu.pipeline_mode<synchronous>, transform_indices = @transform_6, window_bounds = array<i64: 11, 32>}, {transform_indices = @transform_7, window_bounds = array<i64: 512, 32>}, {pipeline_mode = #tpu.pipeline_mode<synchronous>, transform_indices = @transform_8, window_bounds = array<i64: 64, 32>}]} {
    %c0_i32 = arith.constant 0 : i32
    %0 = arith.cmpi eq, %arg0, %c0_i32 : i32
    %1 = arith.extui %0 : i1 to i32
    %c0_i32_0 = arith.constant 0 : i32
    %2 = arith.cmpi ne, %1, %c0_i32_0 : i32
    scf.if %2 {
      %c0_31 = arith.constant 0 : index
      %c0_32 = arith.constant 0 : index
      %75 = vector.load %arg5[%c0_31, %c0_32] : memref<64x3xf32, #tpu.memory_space<vmem>>, vector<64x3xf32>
      %c0_33 = arith.constant 0 : index
      %c0_34 = arith.constant 0 : index
      %76 = vector.load %arg7[%c0_33, %c0_34] : memref<11x32xf32, #tpu.memory_space<vmem>>, vector<3x32xf32>
      %cst_35 = arith.constant dense<0.000000e+00> : vector<64x32xf32>
      %77 = tpu.matmul %75, %76, %cst_35 {dimension_numbers = #tpu.dot_dimension_numbers<[1], [0], [0], [1], [0, 0, 1, 1], [], []>} : vector<64x3xf32>, vector<3x32xf32>, vector<64x32xf32> -> vector<64x32xf32>
      %c3 = arith.constant 3 : index
      %c0_36 = arith.constant 0 : index
      %78 = vector.load %arg7[%c3, %c0_36] : memref<11x32xf32, #tpu.memory_space<vmem>>, vector<1x32xf32>
      %79 = vector.broadcast %78 : vector<1x32xf32> to vector<64x32xf32>
      %80 = arith.addf %77, %79 : vector<64x32xf32>
      %81 = arith.truncf %80 : vector<64x32xf32> to vector<64x32xbf16>
      %c0_37 = arith.constant 0 : index
      %c0_38 = arith.constant 0 : index
      %82 = vector.load %arg11[%c0_37, %c0_38] : memref<64x32xbf16, #tpu.memory_space<vmem>>, vector<64x32xbf16>
      tpu.vector_store %arg11[%c0_37, %c0_38], %81 {strides = array<i32>} : memref<64x32xbf16, #tpu.memory_space<vmem>>, vector<64x32xbf16>,
      %c0_39 = arith.constant 0 : index
      %c0_40 = arith.constant 0 : index
      %83 = vector.load %arg6[%c0_39, %c0_40] : memref<32x256xbf16, #tpu.memory_space<vmem>>, vector<32x32xbf16>
      %cst_41 = arith.constant dense<0.000000e+00> : vector<64x32xf32>
      %84 = tpu.matmul %81, %83, %cst_41 {dimension_numbers = #tpu.dot_dimension_numbers<[1], [0], [0], [1], [0, 0, 1, 1], [], []>} : vector<64x32xbf16>, vector<32x32xbf16>, vector<64x32xf32> -> vector<64x32xf32>
      %c0_42 = arith.constant 0 : index
      %c32 = arith.constant 32 : index
      %85 = vector.load %arg6[%c0_42, %c32] : memref<32x256xbf16, #tpu.memory_space<vmem>>, vector<32x32xbf16>
      %cst_43 = arith.constant dense<0.000000e+00> : vector<64x32xf32>
      %86 = tpu.matmul %81, %85, %cst_43 {dimension_numbers = #tpu.dot_dimension_numbers<[1], [0], [0], [1], [0, 0, 1, 1], [], []>} : vector<64x32xbf16>, vector<32x32xbf16>, vector<64x32xf32> -> vector<64x32xf32>
      %c0_44 = arith.constant 0 : index
      %c64 = arith.constant 64 : index
      %87 = vector.load %arg6[%c0_44, %c64] : memref<32x256xbf16, #tpu.memory_space<vmem>>, vector<32x32xbf16>
      %cst_45 = arith.constant dense<0.000000e+00> : vector<64x32xf32>
      %88 = tpu.matmul %81, %87, %cst_45 {dimension_numbers = #tpu.dot_dimension_numbers<[1], [0], [0], [1], [0, 0, 1, 1], [], []>} : vector<64x32xbf16>, vector<32x32xbf16>, vector<64x32xf32> -> vector<64x32xf32>
      %c6 = arith.constant 6 : index
      %c0_46 = arith.constant 0 : index
      %89 = vector.load %arg7[%c6, %c0_46] : memref<11x32xf32, #tpu.memory_space<vmem>>, vector<1x32xf32>
      %90 = vector.broadcast %89 : vector<1x32xf32> to vector<64x32xf32>
      %91 = arith.addf %88, %90 : vector<64x32xf32>
      %cst_47 = arith.constant 0.000000e+00 : f32
      %92 = vector.broadcast %cst_47 : f32 to vector<64x32xf32>
      %93 = arith.cmpf ogt, %91, %92 : vector<64x32xf32>
      %cst_48 = arith.constant 0.00999999977 : f32
      %94 = vector.broadcast %cst_48 : f32 to vector<64x32xf32>
      %95 = arith.mulf %94, %91 : vector<64x32xf32>
      %96 = arith.select %93, %91, %95 : vector<64x32xi1>, vector<64x32xf32>
      %97 = arith.truncf %96 : vector<64x32xf32> to vector<64x32xbf16>
      %c0_49 = arith.constant 0 : index
      %c96 = arith.constant 96 : index
      %98 = vector.load %arg6[%c0_49, %c96] : memref<32x256xbf16, #tpu.memory_space<vmem>>, vector<32x32xbf16>
      %cst_50 = arith.constant dense<0.000000e+00> : vector<64x32xf32>
      %99 = tpu.matmul %97, %98, %cst_50 {dimension_numbers = #tpu.dot_dimension_numbers<[1], [0], [0], [1], [0, 0, 1, 1], [], []>} : vector<64x32xbf16>, vector<32x32xbf16>, vector<64x32xf32> -> vector<64x32xf32>
      %c7 = arith.constant 7 : index
      %c0_51 = arith.constant 0 : index
      %100 = vector.load %arg7[%c7, %c0_51] : memref<11x32xf32, #tpu.memory_space<vmem>>, vector<1x32xf32>
      %101 = vector.broadcast %100 : vector<1x32xf32> to vector<64x32xf32>
      %102 = arith.addf %99, %101 : vector<64x32xf32>
      %cst_52 = arith.constant 0.000000e+00 : f32
      %103 = vector.broadcast %cst_52 : f32 to vector<64x32xf32>
      %104 = arith.cmpf ogt, %102, %103 : vector<64x32xf32>
      %cst_53 = arith.constant 0.00999999977 : f32
      %105 = vector.broadcast %cst_53 : f32 to vector<64x32xf32>
      %106 = arith.mulf %105, %102 : vector<64x32xf32>
      %107 = arith.select %104, %102, %106 : vector<64x32xi1>, vector<64x32xf32>
      %cst_54 = arith.constant 0.000000e+00 : f32
      %108 = vector.broadcast %cst_54 : f32 to vector<64x32xf32>
      %109 = tpu.concatenate %84, %108 in 1 : vector<64x32xf32>, vector<64x32xf32> -> vector<64x64xf32>
      %110 = tpu.concatenate %86, %107 in 1 : vector<64x32xf32>, vector<64x32xf32> -> vector<64x64xf32>
      %111 = tpu.concatenate %109, %110 in 0 : vector<64x64xf32>, vector<64x64xf32> -> vector<128x64xf32>
      %112 = arith.truncf %111 : vector<128x64xf32> to vector<128x64xbf16>
      %c0_55 = arith.constant 0 : index
      %c0_56 = arith.constant 0 : index
      %113 = vector.load %arg10[%c0_55, %c0_56] : memref<128x64xbf16, #tpu.memory_space<vmem>>, vector<128x64xbf16>
      tpu.vector_store %arg10[%c0_55, %c0_56], %112 {strides = array<i32>} : memref<128x64xbf16, #tpu.memory_space<vmem>>, vector<128x64xbf16>,
      %cst_57 = arith.constant 0.000000e+00 : f32
      %114 = vector.broadcast %cst_57 : f32 to vector<64x32xf32>
      %c0_58 = arith.constant 0 : index
      %c0_59 = arith.constant 0 : index
      %115 = vector.load %arg12[%c0_58, %c0_59] : memref<64x32xf32, #tpu.memory_space<vmem>>, vector<64x32xf32>
      tpu.vector_store %arg12[%c0_58, %c0_59], %114 {strides = array<i32>} : memref<64x32xf32, #tpu.memory_space<vmem>>, vector<64x32xf32>,
    } else {
    }
    %c0 = arith.constant 0 : index
    %c0_1 = arith.constant 0 : index
    %3 = vector.load %arg1[%c0, %c0_1] : memref<512x1xi32, #tpu.memory_space<vmem>>, vector<512x1xi32>
    %c0_2 = arith.constant 0 : index
    %c0_3 = arith.constant 0 : index
    %4 = vector.load %arg2[%c0_2, %c0_3] : memref<512x1xi32, #tpu.memory_space<vmem>>, vector<512x1xi32>
    %5 = tpu.iota {dimensions = array<i32: 1>} : vector<512x128xi32>
    %6 = vector.broadcast %4 : vector<512x1xi32> to vector<512x128xi32>
    %7 = arith.cmpi eq, %5, %6 : vector<512x128xi32>
    %8 = arith.extui %7 : vector<512x128xi1> to vector<512x128xi32>
    %9 = arith.sitofp %8 : vector<512x128xi32> to vector<512x128xf32>
    %10 = arith.truncf %9 : vector<512x128xf32> to vector<512x128xbf16>
    %c64_i32 = arith.constant 64 : i32
    %11 = vector.broadcast %c64_i32 : i32 to vector<512x1xi32>
    %12 = arith.addi %3, %11 : vector<512x1xi32>
    %13 = vector.broadcast %12 : vector<512x1xi32> to vector<512x128xi32>
    %14 = arith.cmpi eq, %5, %13 : vector<512x128xi32>
    %15 = arith.extui %14 : vector<512x128xi1> to vector<512x128xi32>
    %16 = arith.sitofp %15 : vector<512x128xi32> to vector<512x128xf32>
    %17 = arith.truncf %16 : vector<512x128xf32> to vector<512x128xbf16>
    %18 = arith.addf %10, %17 : vector<512x128xbf16>
    %c0_4 = arith.constant 0 : index
    %c0_5 = arith.constant 0 : index
    %19 = vector.load %arg10[%c0_4, %c0_5] : memref<128x64xbf16, #tpu.memory_space<vmem>>, vector<128x64xbf16>
    %cst = arith.constant dense<0.000000e+00> : vector<512x64xf32>
    %20 = tpu.matmul %18, %19, %cst {dimension_numbers = #tpu.dot_dimension_numbers<[1], [0], [0], [1], [0, 0, 1, 1], [], []>} : vector<512x128xbf16>, vector<128x64xbf16>, vector<512x64xf32> -> vector<512x64xf32>
    %c0_6 = arith.constant 0 : index
    %c0_7 = arith.constant 0 : index
    %21 = vector.load %arg4[%c0_6, %c0_7] : memref<512x2xf32, #tpu.memory_space<vmem>>, vector<512x2xf32>
    %22 = vector.extract_strided_slice %21 {offsets = [0, 0], sizes = [512, 1], strides = [1, 1]} : vector<512x2xf32> to vector<512x1xf32>
    %c9 = arith.constant 9 : index
    %c0_8 = arith.constant 0 : index
    %23 = vector.load %arg7[%c9, %c0_8] : memref<11x32xf32, #tpu.memory_space<vmem>>, vector<1x32xf32>
    %24 = vector.broadcast %22 : vector<512x1xf32> to vector<512x32xf32>
    %25 = vector.broadcast %23 : vector<1x32xf32> to vector<512x32xf32>
    %26 = arith.mulf %24, %25 : vector<512x32xf32>
    %27 = vector.extract_strided_slice %21 {offsets = [0, 1], sizes = [512, 1], strides = [1, 1]} : vector<512x2xf32> to vector<512x1xf32>
    %c10 = arith.constant 10 : index
    %c0_9 = arith.constant 0 : index
    %28 = vector.load %arg7[%c10, %c0_9] : memref<11x32xf32, #tpu.memory_space<vmem>>, vector<1x32xf32>
    %29 = vector.broadcast %27 : vector<512x1xf32> to vector<512x32xf32>
    %30 = vector.broadcast %28 : vector<1x32xf32> to vector<512x32xf32>
    %31 = arith.mulf %29, %30 : vector<512x32xf32>
    %32 = arith.addf %26, %31 : vector<512x32xf32>
    %c0_10 = arith.constant 0 : index
    %c0_11 = arith.constant 0 : index
    %33 = vector.load %arg3[%c0_10, %c0_11] : memref<512x32xbf16, #tpu.memory_space<vmem>>, vector<512x32xbf16>
    %c0_12 = arith.constant 0 : index
    %c128 = arith.constant 128 : index
    %34 = vector.load %arg6[%c0_12, %c128] : memref<32x256xbf16, #tpu.memory_space<vmem>>, vector<32x32xbf16>
    %cst_13 = arith.constant dense<0.000000e+00> : vector<512x32xf32>
    %35 = tpu.matmul %33, %34, %cst_13 {dimension_numbers = #tpu.dot_dimension_numbers<[1], [0], [0], [1], [0, 0, 1, 1], [], []>} : vector<512x32xbf16>, vector<32x32xbf16>, vector<512x32xf32> -> vector<512x32xf32>
    %36 = vector.extract_strided_slice %20 {offsets = [0, 0], sizes = [512, 32], strides = [1, 1]} : vector<512x64xf32> to vector<512x32xf32>
    %37 = arith.addf %36, %35 : vector<512x32xf32>
    %38 = arith.addf %37, %32 : vector<512x32xf32>
    %c4 = arith.constant 4 : index
    %c0_14 = arith.constant 0 : index
    %39 = vector.load %arg7[%c4, %c0_14] : memref<11x32xf32, #tpu.memory_space<vmem>>, vector<1x32xf32>
    %40 = vector.broadcast %39 : vector<1x32xf32> to vector<512x32xf32>
    %41 = arith.addf %38, %40 : vector<512x32xf32>
    %cst_15 = arith.constant 0.000000e+00 : f32
    %42 = vector.broadcast %cst_15 : f32 to vector<512x32xf32>
    %43 = arith.cmpf ogt, %41, %42 : vector<512x32xf32>
    %cst_16 = arith.constant 0.00999999977 : f32
    %44 = vector.broadcast %cst_16 : f32 to vector<512x32xf32>
    %45 = arith.mulf %44, %41 : vector<512x32xf32>
    %46 = arith.select %43, %41, %45 : vector<512x32xi1>, vector<512x32xf32>
    %47 = arith.truncf %46 : vector<512x32xf32> to vector<512x32xbf16>
    %c0_17 = arith.constant 0 : index
    %c160 = arith.constant 160 : index
    %48 = vector.load %arg6[%c0_17, %c160] : memref<32x256xbf16, #tpu.memory_space<vmem>>, vector<32x32xbf16>
    %cst_18 = arith.constant dense<0.000000e+00> : vector<512x32xf32>
    %49 = tpu.matmul %47, %48, %cst_18 {dimension_numbers = #tpu.dot_dimension_numbers<[1], [0], [0], [1], [0, 0, 1, 1], [], []>} : vector<512x32xbf16>, vector<32x32xbf16>, vector<512x32xf32> -> vector<512x32xf32>
    %c5 = arith.constant 5 : index
    %c0_19 = arith.constant 0 : index
    %50 = vector.load %arg7[%c5, %c0_19] : memref<11x32xf32, #tpu.memory_space<vmem>>, vector<1x32xf32>
    %51 = vector.broadcast %50 : vector<1x32xf32> to vector<512x32xf32>
    %52 = arith.addf %49, %51 : vector<512x32xf32>
    %cst_20 = arith.constant 0.000000e+00 : f32
    %53 = vector.broadcast %cst_20 : f32 to vector<512x32xf32>
    %54 = arith.cmpf ogt, %52, %53 : vector<512x32xf32>
    %cst_21 = arith.constant 0.00999999977 : f32
    %55 = vector.broadcast %cst_21 : f32 to vector<512x32xf32>
    %56 = arith.mulf %55, %52 : vector<512x32xf32>
    %57 = arith.select %54, %52, %56 : vector<512x32xi1>, vector<512x32xf32>
    %58 = vector.extract_strided_slice %20 {offsets = [0, 32], sizes = [512, 32], strides = [1, 1]} : vector<512x64xf32> to vector<512x32xf32>
    %59 = arith.addf %58, %57 : vector<512x32xf32>
    %c0_22 = arith.constant 0 : index
    %c0_23 = arith.constant 0 : index
    %60 = vector.load %arg8[%c0_22, %c0_23] : memref<512x32xf32, #tpu.memory_space<vmem>>, vector<512x32xf32>
    tpu.vector_store %arg8[%c0_22, %c0_23], %59 {strides = array<i32>} : memref<512x32xf32, #tpu.memory_space<vmem>>, vector<512x32xf32>,
    %61 = tpu.iota {dimensions = array<i32: 1>} : vector<512x64xi32>
    %62 = vector.broadcast %4 : vector<512x1xi32> to vector<512x64xi32>
    %63 = arith.cmpi eq, %61, %62 : vector<512x64xi32>
    %64 = arith.extui %63 : vector<512x64xi1> to vector<512x64xi32>
    %65 = arith.sitofp %64 : vector<512x64xi32> to vector<512x64xf32>
    %66 = arith.truncf %65 : vector<512x64xf32> to vector<512x64xbf16>
    %c0_24 = arith.constant 0 : index
    %c0_25 = arith.constant 0 : index
    %67 = vector.load %arg12[%c0_24, %c0_25] : memref<64x32xf32, #tpu.memory_space<vmem>>, vector<64x32xf32>
    %68 = arith.truncf %59 : vector<512x32xf32> to vector<512x32xbf16>
    %cst_26 = arith.constant dense<0.000000e+00> : vector<64x32xf32>
    %69 = tpu.matmul %66, %68, %cst_26 {dimension_numbers = #tpu.dot_dimension_numbers<[0], [0], [1], [1], [0, 1, 1, 1], [], []>} : vector<512x64xbf16>, vector<512x32xbf16>, vector<64x32xf32> -> vector<64x32xf32>
    %70 = arith.addf %67, %69 : vector<64x32xf32>
    %c0_27 = arith.constant 0 : index
    %c0_28 = arith.constant 0 : index
    %71 = vector.load %arg12[%c0_27, %c0_28] : memref<64x32xf32, #tpu.memory_space<vmem>>, vector<64x32xf32>
    tpu.vector_store %arg12[%c0_27, %c0_28], %70 {strides = array<i32>} : memref<64x32xf32, #tpu.memory_space<vmem>>, vector<64x32xf32>,
    %c0_i32_29 = arith.constant 0 : i32
    %72 = arith.cmpi eq, %arg0, %c0_i32_29 : i32
    %73 = arith.extui %72 : i1 to i32
    %c0_i32_30 = arith.constant 0 : i32
    %74 = arith.cmpi ne, %73, %c0_i32_30 : i32
    scf.if %74 {
      %c0_31 = arith.constant 0 : index
      %c0_32 = arith.constant 0 : index
      %75 = vector.load %arg11[%c0_31, %c0_32] : memref<64x32xbf16, #tpu.memory_space<vmem>>, vector<64x32xbf16>
      %c0_33 = arith.constant 0 : index
      %c192 = arith.constant 192 : index
      %76 = vector.load %arg6[%c0_33, %c192] : memref<32x256xbf16, #tpu.memory_space<vmem>>, vector<32x32xbf16>
      %cst_34 = arith.constant dense<0.000000e+00> : vector<64x32xf32>
      %77 = tpu.matmul %75, %76, %cst_34 {dimension_numbers = #tpu.dot_dimension_numbers<[1], [0], [0], [1], [0, 0, 1, 1], [], []>} : vector<64x32xbf16>, vector<32x32xbf16>, vector<64x32xf32> -> vector<64x32xf32>
      %c0_35 = arith.constant 0 : index
      %c0_36 = arith.constant 0 : index
      %78 = vector.load %arg12[%c0_35, %c0_36] : memref<64x32xf32, #tpu.memory_space<vmem>>, vector<64x32xf32>
      %79 = arith.truncf %78 : vector<64x32xf32> to vector<64x32xbf16>
      %c0_37 = arith.constant 0 : index
      %c224 = arith.constant 224 : index
      %80 = vector.load %arg6[%c0_37, %c224] : memref<32x256xbf16, #tpu.memory_space<vmem>>, vector<32x32xbf16>
      %cst_38 = arith.constant dense<0.000000e+00> : vector<64x32xf32>
      %81 = tpu.matmul %79, %80, %cst_38 {dimension_numbers = #tpu.dot_dimension_numbers<[1], [0], [0], [1], [0, 0, 1, 1], [], []>} : vector<64x32xbf16>, vector<32x32xbf16>, vector<64x32xf32> -> vector<64x32xf32>
      %82 = arith.addf %77, %81 : vector<64x32xf32>
      %c8 = arith.constant 8 : index
      %c0_39 = arith.constant 0 : index
      %83 = vector.load %arg7[%c8, %c0_39] : memref<11x32xf32, #tpu.memory_space<vmem>>, vector<1x32xf32>
      %84 = vector.broadcast %83 : vector<1x32xf32> to vector<64x32xf32>
      %85 = arith.addf %82, %84 : vector<64x32xf32>
      %cst_40 = arith.constant 0.000000e+00 : f32
      %86 = vector.broadcast %cst_40 : f32 to vector<64x32xf32>
      %87 = arith.cmpf ogt, %85, %86 : vector<64x32xf32>
      %cst_41 = arith.constant 0.00999999977 : f32
      %88 = vector.broadcast %cst_41 : f32 to vector<64x32xf32>
      %89 = arith.mulf %88, %85 : vector<64x32xf32>
      %90 = arith.select %87, %85, %89 : vector<64x32xi1>, vector<64x32xf32>
      %c0_42 = arith.constant 0 : index
      %c0_43 = arith.constant 0 : index
      %91 = vector.load %arg9[%c0_42, %c0_43] : memref<64x32xf32, #tpu.memory_space<vmem>>, vector<64x32xf32>
      tpu.vector_store %arg9[%c0_42, %c0_43], %90 {strides = array<i32>} : memref<64x32xf32, #tpu.memory_space<vmem>>, vector<64x32xf32>,
    } else {
    }
    return
  }
  func.func @transform_0(%arg0: i32) -> (i32, i32) {
    %c0_i32 = arith.constant 0 : i32
    %c0_i32_0 = arith.constant 0 : i32
    return %arg0, %c0_i32 : i32, i32
  }
  func.func @transform_1(%arg0: i32) -> (i32, i32) {
    %c0_i32 = arith.constant 0 : i32
    %c0_i32_0 = arith.constant 0 : i32
    return %arg0, %c0_i32 : i32, i32
  }
  func.func @transform_2(%arg0: i32) -> (i32, i32) {
    %c0_i32 = arith.constant 0 : i32
    %c0_i32_0 = arith.constant 0 : i32
    return %arg0, %c0_i32 : i32, i32
  }
  func.func @transform_3(%arg0: i32) -> (i32, i32) {
    %c0_i32 = arith.constant 0 : i32
    %c0_i32_0 = arith.constant 0 : i32
    return %arg0, %c0_i32 : i32, i32
  }
  func.func @transform_4(%arg0: i32) -> (i32, i32) {
    %c0_i32 = arith.constant 0 : i32
    %c0_i32_0 = arith.constant 0 : i32
    %c0_i32_1 = arith.constant 0 : i32
    return %c0_i32, %c0_i32_0 : i32, i32
  }
  func.func @transform_5(%arg0: i32) -> (i32, i32) {
    %c0_i32 = arith.constant 0 : i32
    %c0_i32_0 = arith.constant 0 : i32
    %c0_i32_1 = arith.constant 0 : i32
    return %c0_i32, %c0_i32_0 : i32, i32
  }
  func.func @transform_6(%arg0: i32) -> (i32, i32) {
    %c0_i32 = arith.constant 0 : i32
    %c0_i32_0 = arith.constant 0 : i32
    %c0_i32_1 = arith.constant 0 : i32
    return %c0_i32, %c0_i32_0 : i32, i32
  }
  func.func @transform_7(%arg0: i32) -> (i32, i32) {
    %c0_i32 = arith.constant 0 : i32
    %c0_i32_0 = arith.constant 0 : i32
    return %arg0, %c0_i32 : i32, i32
  }
  func.func @transform_8(%arg0: i32) -> (i32, i32) {
    %c0_i32 = arith.constant 0 : i32
    %c0_i32_0 = arith.constant 0 : i32
    %c0_i32_1 = arith.constant 0 : i32
    return %c0_i32, %c0_i32_0 : i32, i32
  }
}

</mosaic_0001>

<bundles_post_ra>
// kernel: mpnn_pallas.1
= control target key start
LH: loop header
LB: loop body
LE: loop exit
PB: predicated region body
PF: predicated region fallthrough
CT: control target
= control target key end

     0   :  { %vm72_vm0 = vcmask 1042432   ;;  %vm47_vm1 = vcmask 23552   ;;  %s6708_s23 = smov 96   ;;  %s6709_s24 = smov 64   ;;  %v10718_v13 = vmov 0   ;;  %vm185_vm2 = vcmask 261120   ;;  %s10709_s6 = inlined_call_operand.vmem [shape: f32[11,32], index: 6, kind: input, shape index: {}]   ;;  %s10710_s4 = inlined_call_operand.vmem [shape: f32[64,3], index: 4, kind: input, shape index: {}]   ;;  %s10711_s5 = inlined_call_operand.vmem [shape: bf16[32,256], index: 5, kind: input, shape index: {}]   ;;  %s10712_s1 = inlined_call_operand.vmem [shape: s32[512,1], index: 1, kind: input, shape index: {}]   ;;  %s10713_s0 = inlined_call_operand.vmem [shape: s32[512,1], index: 0, kind: input, shape index: {}]   ;;  %s10714_s2 = inlined_call_operand.vmem [shape: bf16[512,32], index: 2, kind: input, shape index: {}]   ;;  %s10715_s3 = inlined_call_operand.vmem [shape: f32[512,2], index: 3, kind: input, shape index: {}]   ;;  %s10716_s7 = inlined_call_operand.vmem [shape: f32[512,32], index: 7, kind: output, shape index: {0}]   ;;  %s10717_s8 = inlined_call_operand.vmem [shape: f32[64,32], index: 8, kind: output, shape index: {1}]  }
   0x1   :  { %v41_v0 = vld [vmem:[%s10709_s6] sm:$0x7]  ;;  %v34_v2 = vld [vmem:[%s10710_s4 + $0x8] sm:$0xff]  ;;  %v35_v3 = vld [vmem:[%s10710_s4 + $0x10] sm:$0xff]  ;;  %s6710_s29 = smov 32   ;;  %6566 = vset.pattern.permute.xlu1 %v10718_v13  ;;  %6565 = vset.pattern.permute.xlu0 %v10718_v13  ;;  %v10721_v60 = vmov 0.0  }
   0x2   :  { %6249 = vmatprep.subr.msk.mxu1 %vm72_vm0, %v41_v0  ;;  %v33_v1 = vld [vmem:[%s10710_s4] sm:$0xff]  ;;  %v36_v4 = vld [vmem:[%s10710_s4 + $0x18] sm:$0xff]  ;;  %v38_v7 = vld [vmem:[%s10710_s4 + $0x28] sm:$0xff]  ;;  %635 = vst.msk [vmem:[#allocation4] sm:$0xff] %vm185_vm2, %v10721_v60  ;;  %vm626_vm3 = vcmask 523264  }
   0x3   :  { %6250 = vmatpush3.msk.msra.mxu1 %vm72_vm0, %v41_v0  ;;  %6251 = vmatprep.mubr.msk.f32.mxu1 %vm47_vm1, %v33_v1  ;;  %v37_v5 = vld [vmem:[%s10710_s4 + $0x20] sm:$0xff]  ;;  %v6654_v8 = vld [vmem:[%s10711_s5 + $0x10] ss:$8 sps:$4 sm:$0xff]   ;;  %v708_v14 = vld [vmem:[%s10712_s1 + $0x8] sm:$0xff]  ;;  %636 = vst.msk [vmem:[#allocation4 + $0x8] sm:$0xff] %vm185_vm2, %v10721_v60 }
   0x4   :  { %6252 = vmatmul.mubr.msk.f32.vlgmr.msra.gmra.mrb[0].mxu1 %vm47_vm1, %v34_v2  ;;  %v6653_v6 = vld [vmem:[%s10711_s5] ss:$8 sps:$4 sm:$0xff]   ;;  %v39_v9 = vld [vmem:[%s10710_s4 + $0x30] sm:$0xff]  ;;  %v40_v10 = vld [vmem:[%s10710_s4 + $0x38] sm:$0xff]  ;;  %637 = vst.msk [vmem:[#allocation4 + $0x10] sm:$0xff] %vm185_vm2, %v10721_v60 }
   0x5   :  { %6254 = vmatprep.mubr.msk.f32.mxu1 %vm47_vm1, %v35_v3  ;;  %283 = vrot.lane.b32.xlu1 %v6653_v6, %s6708_s23  ;;  %v5745_v16 = vld [vmem:[%s10709_s6 + $0x3] ss:$0 sm:$0xff]  ;;  %v709_v38 = vld [vmem:[%s10712_s1 + $0x10] sm:$0xff]  ;;  %v710_v41 = vld [vmem:[%s10712_s1 + $0x18] sm:$0xff]  ;;  %638 = vst.msk [vmem:[#allocation4 + $0x18] sm:$0xff] %vm185_vm2, %v10721_v60 }
   0x6   :  { %359 = vrot.lane.b32.xlu0 %v6653_v6, %s6709_s24  ;;  %6263 = vmatprep.subr.bf16.mxu1 %v6653_v6  ;;  %v707_v39 = vld [vmem:[%s10712_s1] sm:$0xff]  ;;  %v713_v42 = vld [vmem:[%s10712_s1 + $0x30] sm:$0xff]  ;;  %v712_v43 = vld [vmem:[%s10712_s1 + $0x28] sm:$0xff]  ;;  %639 = vst.msk [vmem:[#allocation4 + $0x20] sm:$0xff] %vm185_vm2, %v10721_v60 }
   0x7   :  { %6264 = vmatpush3.bf16.msra.mxu1 %v6653_v6  ;;  %v711_v40 = vld [vmem:[%s10712_s1 + $0x20] sm:$0xff]  ;;  %v714_v45 = vld [vmem:[%s10712_s1 + $0x38] sm:$0xff]  ;;  %v717_v46 = vld [vmem:[%s10712_s1 + $0x50] sm:$0xff]  ;;  %640 = vst.msk [vmem:[#allocation4 + $0x28] sm:$0xff] %vm185_vm2, %v10721_v60 }
   0x8   :  { %6255 = vmatmul.mubr.msk.f32.gmra.mrb[2].mxu1 %vm47_vm1, %v36_v4  ;;  %6265 = vmatprep.subr.bf16.mxu1 %v6654_v8  ;;  %v715_v44 = vld [vmem:[%s10712_s1 + $0x40] sm:$0xff]  ;;  %v716_v47 = vld [vmem:[%s10712_s1 + $0x48] sm:$0xff]  ;;  %v718_v50 = vld [vmem:[%s10712_s1 + $0x58] sm:$0xff]  ;;  %641 = vst.msk [vmem:[#allocation4 + $0x30] sm:$0xff] %vm185_vm2, %v10721_v60 }
   0x9   :  { %6257 = vmatprep.mubr.msk.f32.mxu1 %vm47_vm1, %v37_v5  ;;  %285 = vrot.lane.b32.xlu1 %v6654_v8, %s6708_s23  ;;  %v719_v49 = vld [vmem:[%s10712_s1 + $0x60] sm:$0xff]  ;;  %v721_v52 = vld [vmem:[%s10712_s1 + $0x70] sm:$0xff]  ;;  %v720_v53 = vld [vmem:[%s10712_s1 + $0x68] sm:$0xff]  ;;  %642 = vst.msk [vmem:[#allocation4 + $0x38] sm:$0xff] %vm185_vm2, %v10721_v60 }
   0xa   :  { %361 = vrot.lane.b32.xlu0 %v6654_v8, %s6709_s24  ;;  %v723_v54 = vld [vmem:[%s10712_s1 + $0x80] sm:$0xff]  ;;  %v722_v55 = vld [vmem:[%s10712_s1 + $0x78] sm:$0xff]  ;;  %v725_v56 = vld [vmem:[%s10712_s1 + $0x90] sm:$0xff] }
   0xb   :  { %6266 = vmatpush3.bf16.msra.mxu1 %v6654_v8  ;;  %v724_v57 = vld [vmem:[%s10712_s1 + $0x88] sm:$0xff]  ;;  %v727_v58 = vld [vmem:[%s10712_s1 + $0xa0] sm:$0xff]  ;;  %v726_v59 = vld [vmem:[%s10712_s1 + $0x98] sm:$0xff] }
   0xc   :  { %6258 = vmatmul.mubr.msk.f32.gmra.mrb[4].mxu1 %vm47_vm1, %v38_v7  ;;  %v729_v61 = vld [vmem:[%s10712_s1 + $0xb0] sm:$0xff]  ;;  %v728_v62 = vld [vmem:[%s10712_s1 + $0xa8] sm:$0xff]  ;;  %v731_v63 = vld [vmem:[%s10712_s1 + $0xc0] sm:$0xff] }
   0xd   :  { %6260 = vmatprep.mubr.msk.f32.mxu1 %vm47_vm1, %v39_v9  ;;  %465 = vrot.lane.b32.xlu1 %v6654_v8, %s6710_s29  ;;  %v730_v0 = vld [vmem:[%s10712_s1 + $0xb8] sm:$0xff]  ;;  %v733_v1 = vld [vmem:[%s10712_s1 + $0xd0] sm:$0xff]  ;;  %v732_v2 = vld [vmem:[%s10712_s1 + $0xc8] sm:$0xff] }
   0xe   :  { %463 = vrot.lane.b32.xlu0 %v6653_v6, %s6710_s29  ;;  %v735_v3 = vld [vmem:[%s10712_s1 + $0xe0] sm:$0xff]  ;;  %v734_v4 = vld [vmem:[%s10712_s1 + $0xd8] sm:$0xff]  ;;  %v737_v5 = vld [vmem:[%s10712_s1 + $0xf0] sm:$0xff] }
   0xf   :  { %v736_v6 = vld [vmem:[%s10712_s1 + $0xe8] sm:$0xff]  ;;  %v739_v7 = vld [vmem:[%s10712_s1 + $0x100] sm:$0xff]  ;;  %v738_v8 = vld [vmem:[%s10712_s1 + $0xf8] sm:$0xff] }
  0x10   :  { %6261 = vmatmul.mubr.msk.f32.gmra.mrb[6].mxu1 %vm47_vm1, %v40_v10  ;;  %v741_v9 = vld [vmem:[%s10712_s1 + $0x110] sm:$0xff]  ;;  %v740_v10 = vld [vmem:[%s10712_s1 + $0x108] sm:$0xff] }
  0x11   :  { %777 = vperm.xlu1 %6566, %v708_v14   ;;  %v745_v14 = vld [vmem:[%s10712_s1 + $0x130] sm:$0xff] }
  0x12   :  { %774 = vperm.xlu0 %6565, %v707_v39   ;;  %v651_v39 = vld [vmem:[%s10713_s0 + $0x40] sm:$0xff] }
  0x15   :  { %780 = vperm.xlu1 %6566, %v709_v38   ;;  %v652_v38 = vld [vmem:[%s10713_s0 + $0x48] sm:$0xff] }
  0x16   :  { %783 = vperm.xlu0 %6565, %v710_v41   ;;  %v1197_v41 = vadd.s32 64, %v651_v39 }
  0x19   :  { %786 = vperm.xlu1 %6566, %v711_v40   ;;  %v1198_v40 = vadd.s32 64, %v652_v38 }
  0x1a   :  { %789 = vperm.xlu0 %6565, %v712_v43   ;;  %v653_v43 = vld [vmem:[%s10713_s0 + $0x50] sm:$0xff] }
  0x1d   :  { %792 = vperm.xlu1 %6566, %v713_v42   ;;  %v654_v42 = vld [vmem:[%s10713_s0 + $0x58] sm:$0xff] }
  0x1e   :  { %795 = vperm.xlu0 %6565, %v714_v45   ;;  %v1199_v45 = vadd.s32 64, %v653_v43 }
  0x21   :  { %798 = vperm.xlu1 %6566, %v715_v44   ;;  %v1200_v44 = vadd.s32 64, %v654_v42 }
  0x22   :  { %801 = vperm.xlu0 %6565, %v716_v47   ;;  %v655_v47 = vld [vmem:[%s10713_s0 + $0x60] sm:$0xff] }
  0x25   :  { %804 = vperm.xlu1 %6566, %v717_v46   ;;  %v656_v46 = vld [vmem:[%s10713_s0 + $0x68] sm:$0xff] }
  0x26   :  { %807 = vperm.xlu0 %6565, %v718_v50   ;;  %v658_v50 = vld [vmem:[%s10713_s0 + $0x78] sm:$0xff] }
  0x29   :  { %810 = vperm.xlu1 %6566, %v719_v49   ;;  %v1201_v49 = vadd.s32 64, %v655_v47 }
  0x2a   :  { %813 = vperm.xlu0 %6565, %v720_v53  }
  0x2d   :  { %816 = vperm.xlu1 %6566, %v721_v52   ;;  %v1204_v52 = vadd.s32 64, %v658_v50 }
  0x2e   :  { %819 = vperm.xlu0 %6565, %v722_v55   ;;  %v659_v55 = vld [vmem:[%s10713_s0 + $0x80] sm:$0xff] }
  0x31   :  { %822 = vperm.xlu1 %6566, %v723_v54   ;;  %v660_v54 = vld [vmem:[%s10713_s0 + $0x88] sm:$0xff] }
  0x32   :  { %825 = vperm.xlu0 %6565, %v724_v57   ;;  %v1205_v57 = vadd.s32 64, %v659_v55 }
  0x35   :  { %828 = vperm.xlu1 %6566, %v725_v56   ;;  %v1206_v56 = vadd.s32 64, %v660_v54 }
  0x36   :  { %831 = vperm.xlu0 %6565, %v726_v59  }
  0x39   :  { %834 = vperm.xlu1 %6566, %v727_v58  }
  0x3a   :  { %837 = vperm.xlu0 %6565, %v728_v62  }
  0x3d   :  { %840 = vperm.xlu1 %6566, %v729_v61  }
  0x3e   :  { %843 = vperm.xlu0 %6565, %v730_v0  }
  0x41   :  { %846 = vperm.xlu1 %6566, %v731_v63  }
  0x42   :  { %849 = vperm.xlu0 %6565, %v732_v2  }
  0x45   :  { %852 = vperm.xlu1 %6566, %v733_v1  }
  0x46   :  { %855 = vperm.xlu0 %6565, %v734_v4  }
  0x49   :  { %858 = vperm.xlu1 %6566, %v735_v3  }
  0x4a   :  { %861 = vperm.xlu0 %6565, %v736_v6  }
  0x4d   :  { %864 = vperm.xlu1 %6566, %v737_v5  }
  0x4e   :  { %867 = vperm.xlu0 %6565, %v738_v8  }
  0x51   :  { %870 = vperm.xlu1 %6566, %v739_v7  }
  0x52   :  { %873 = vperm.xlu0 %6565, %v740_v10  }
  0x55   :  { %876 = vperm.xlu1 %6566, %v741_v9  }
  0x77   :  { %v284_v11 = vpop.permute.xlu1 %283 }
  0x78   :  { %6275 = vmatprep.subr.bf16.mxu0 %v284_v11  ;;  %v360_v12 = vpop.permute.xlu0 %359 }
  0x79   :  { %6276 = vmatpush3.bf16.msra.mxu0 %v284_v11  ;;  %6287 = vmatprep.subr.bf16.mxu1 %v360_v12  ;;  %v743_v11 = vld [vmem:[%s10712_s1 + $0x120] sm:$0xff] }
  0x7a   :  { %882 = vperm.xlu1 %6566, %v743_v11  }
  0x7b   :  { %v286_v15 = vpop.permute.xlu1 %285 }
  0x7c   :  { %6277 = vmatprep.subr.bf16.mxu0 %v286_v15  ;;  %v362_v30 = vpop.permute.xlu0 %361 }
  0x7d   :  { %6278 = vmatpush3.bf16.msra.mxu0 %v286_v15  ;;  %v744_v15 = vld [vmem:[%s10712_s1 + $0x128] sm:$0xff] }
  0x7e   :  { %888 = vperm.xlu1 %6566, %v745_v14  }
  0x7f   :  { %v466_v51 = vpop.permute.xlu1 %465 }
  0x80   :  { %v464_v48 = vpop.permute.xlu0 %463 }
  0x81   :  { %6299 = vmatprep.subr.bf16.mxu0 %v464_v48 }
  0x90   :  { %v7032_v58 = vpop.permute.xlu1 %777 }
  0x91   :  { %v7049_v11 = vpop.permute.xlu0 %774 }
  0x94   :  { %v7047_v10 = vpop.permute.xlu1 %780 }
  0xd7   :  { %v6253_v17 = vpop.f32.mrb[0].mxu1 }
  0xd8   :  { %v148_v18 = vadd.f32 %v6253_v17, %v5745_v16  ;;  %v142_v19 = vpop.f32.mrb[1].mxu1  ;;  %v746_v17 = vld [vmem:[%s10712_s1 + $0x138] sm:$0xff] }
  0xd9   :  { %v143_v20 = vadd.f32 %v5745_v16, %v142_v19  ;;  %v748_v19 = vld [vmem:[%s10712_s1 + $0x148] sm:$0xff] }
  0xdb   :  { %v181_v21 = vpack.c.bf16 %v148_v18, %v143_v20  ;;  %v6256_v22 = vpop.f32.mrb[2].mxu1  ;;  %v749_v18 = vld [vmem:[%s10712_s1 + $0x150] sm:$0xff]  ;;  %v751_v20 = vld [vmem:[%s10712_s1 + $0x160] sm:$0xff] }
  0xdc   :  { %v158_v23 = vadd.f32 %v6256_v22, %v5745_v16  ;;  %v152_v24 = vpop.f32.mrb[3].mxu1  ;;  %v644_v22 = vld [vmem:[%s10713_s0 + $0x8] sm:$0xff] }
  0xdd   :  { %186 = vst.msk [vmem:[#allocation3] sm:$0xff] %vm185_vm2, %v181_v21  ;;  %v153_v25 = vadd.f32 %v5745_v16, %v152_v24  ;;  %6267 = vmatprep.mubr.msk.bf16.mxu1 %vm185_vm2, %v181_v21  ;;  %6279 = vmatprep.mubr.msk.bf16.mxu0 %vm185_vm2, %v181_v21  ;;  %v1190_v24 = vadd.s32 64, %v644_v22 }
  0xdf   :  { %v182_v26 = vpack.c.bf16 %v158_v23, %v153_v25  ;;  %v6259_v27 = vpop.f32.mrb[4].mxu1  ;;  %v643_v23 = vld [vmem:[%s10713_s0] sm:$0xff] }
  0xe0   :  { %v168_v28 = vadd.f32 %v6259_v27, %v5745_v16  ;;  %v162_v29 = vpop.f32.mrb[5].mxu1  ;;  %v1189_v25 = vadd.s32 64, %v643_v23  ;;  %v645_v27 = vld [vmem:[%s10713_s0 + $0x10] sm:$0xff] }
  0xe1   :  { %187 = vst.msk [vmem:[#allocation3 + $0x8] sm:$0xff] %vm185_vm2, %v182_v26  ;;  %v163_v31 = vadd.f32 %v5745_v16, %v162_v29  ;;  %6268 = vmatmul.mubr.msk.bf16.vlgmr.msra.gmra.mrb[8].mxu1 %vm185_vm2, %v182_v26  ;;  %6280 = vmatmul.mubr.msk.bf16.vlgmr.msra.gmra.mrb[0].mxu0 %vm185_vm2, %v182_v26  ;;  %v1191_v29 = vadd.s32 64, %v645_v27  ;;  %v7066_v27 = vpop.permute.xlu0 %783 }
  0xe2   :  { %6288 = vmatpush3.bf16.msra.mxu1 %v360_v12  ;;  %6300 = vmatpush3.bf16.msra.mxu0 %v464_v48  ;;  %v742_v12 = vld [vmem:[%s10712_s1 + $0x118] sm:$0xff]  ;;  %v1202_v48 = vadd.s32 64, %v656_v46 }
  0xe3   :  { %v183_v32 = vpack.c.bf16 %v168_v28, %v163_v31  ;;  %v6262_v33 = vpop.f32.mrb[6].mxu1  ;;  %6289 = vmatprep.subr.bf16.mxu1 %v362_v30  ;;  %6301 = vmatprep.subr.bf16.mxu0 %v466_v51  ;;  %v647_v31 = vld [vmem:[%s10713_s0 + $0x20] sm:$0xff] }
  0xe4   :  { %v178_v34 = vadd.f32 %v6262_v33, %v5745_v16  ;;  %v172_v35 = vpop.f32.mrb[7].mxu1  ;;  %879 = vperm.xlu0 %6565, %v742_v12   ;;  %v1193_v33 = vadd.s32 64, %v647_v31 }
  0xe5   :  { %188 = vst.msk [vmem:[#allocation3 + $0x10] sm:$0xff] %vm185_vm2, %v183_v32  ;;  %v173_v36 = vadd.f32 %v5745_v16, %v172_v35  ;;  %6271 = vmatprep.mubr.msk.bf16.mxu1 %vm185_vm2, %v183_v32  ;;  %6283 = vmatprep.mubr.msk.bf16.mxu0 %vm185_vm2, %v183_v32  ;;  %v747_v16 = vld [vmem:[%s10712_s1 + $0x140] sm:$0xff]  ;;  %v649_v35 = vld [vmem:[%s10713_s0 + $0x30] sm:$0xff] }
  0xe6   :  { %6290 = vmatpush3.bf16.msra.mxu1 %v362_v30  ;;  %6302 = vmatpush3.bf16.msra.mxu0 %v466_v51  ;;  %v648_v30 = vld [vmem:[%s10713_s0 + $0x28] sm:$0xff]  ;;  %v657_v51 = vld [vmem:[%s10713_s0 + $0x70] sm:$0xff] }
  0xe7   :  { %v184_v37 = vpack.c.bf16 %v178_v34, %v173_v36  ;;  %894 = vperm.xlu1 %6566, %v747_v16   ;;  %v650_v34 = vld [vmem:[%s10713_s0 + $0x38] sm:$0xff]  ;;  %v1203_v53 = vadd.s32 64, %v657_v51 }
  0xe8   :  { %885 = vperm.xlu0 %6565, %v744_v15   ;;  %v1196_v36 = vadd.s32 64, %v650_v34 }
  0xe9   :  { %189 = vst.msk [vmem:[#allocation3 + $0x18] sm:$0xff] %vm185_vm2, %v184_v37  ;;  %6272 = vmatmul.mubr.msk.bf16.gmra.mrb[12].mxu1 %vm185_vm2, %v184_v37  ;;  %6284 = vmatmul.mubr.msk.bf16.gmra.mrb[4].mxu0 %vm185_vm2, %v184_v37 }
  0xea   :  { %6291 = vmatprep.mubr.msk.bf16.mxu1 %vm185_vm2, %v181_v21  ;;  %v750_v21 = vld [vmem:[%s10712_s1 + $0x158] sm:$0xff] }
  0xeb   :  { %900 = vperm.xlu1 %6566, %v749_v18  }
  0xec   :  { %891 = vperm.xlu0 %6565, %v746_v17  }
  0xef   :  { %906 = vperm.xlu1 %6566, %v751_v20  }
  0xf0   :  { %897 = vperm.xlu0 %6565, %v748_v19  }
  0xf1   :  { %6292 = vmatmul.mubr.msk.bf16.vlgmr.msra.gmra.mrb[16].mxu1 %vm185_vm2, %v182_v26  ;;  %v646_v26 = vld [vmem:[%s10713_s0 + $0x18] sm:$0xff] }
  0xf2   :  { %6295 = vmatprep.mubr.msk.bf16.mxu1 %vm185_vm2, %v183_v32  ;;  %v1192_v28 = vadd.s32 64, %v646_v26  ;;  %v1194_v32 = vadd.s32 64, %v648_v30  ;;  %v7064_v26 = vpop.permute.xlu1 %786  ;;  %v5765_v30 = vld [vmem:[%s10709_s6 + $0x6] ss:$0 sm:$0xff] }
  0xf3   :  { %1257 = vperm.xlu1 %6566, %v1190_v24  }
  0xf4   :  { %903 = vperm.xlu0 %6565, %v750_v21  }
  0xf7   :  { %1263 = vperm.xlu1 %6566, %v1192_v28  }
  0xf8   :  { %1254 = vperm.xlu0 %6565, %v1189_v25  }
  0xf9   :  { %6296 = vmatmul.mubr.msk.bf16.gmra.mrb[20].mxu1 %vm185_vm2, %v184_v37  ;;  %v1195_v37 = vadd.s32 64, %v649_v35 }
  0xfb   :  { %1269 = vperm.xlu1 %6566, %v1194_v32  }
  0xfc   :  { %1260 = vperm.xlu0 %6565, %v1191_v29  }
  0xff   :  { %1275 = vperm.xlu1 %6566, %v1196_v36   ;;  %v7075_v36 = vpop.permute.xlu0 %789 }
 0x100   :  { %1266 = vperm.xlu0 %6565, %v1193_v33   ;;  %v7073_v33 = vpop.permute.xlu1 %792 }
 0x103   :  { %1281 = vperm.xlu1 %6566, %v1198_v40   ;;  %v7079_v46 = vpop.permute.xlu0 %795 }
 0x104   :  { %1272 = vperm.xlu0 %6565, %v1195_v37  }
 0x107   :  { %1287 = vperm.xlu1 %6566, %v1200_v44   ;;  %v7077_v44 = vpop.permute.xlu1 %798 }
 0x108   :  { %1278 = vperm.xlu0 %6565, %v1197_v41  }
 0x10b   :  { %1293 = vperm.xlu1 %6566, %v1202_v48  }
 0x10c   :  { %1284 = vperm.xlu0 %6565, %v1199_v45  }
 0x10f   :  { %1299 = vperm.xlu1 %6566, %v1204_v52  }
 0x110   :  { %1290 = vperm.xlu0 %6565, %v1201_v49  }
 0x113   :  { %1305 = vperm.xlu1 %6566, %v1206_v56   ;;  %v7081_v56 = vpop.permute.xlu1 %804 }
 0x114   :  { %1296 = vperm.xlu0 %6565, %v1203_v53  }
 0x118   :  { %1302 = vperm.xlu0 %6565, %v1205_v57  }
 0x1b4   :  { %v6269_v59 = vpop.f32.mrb[8].mxu1  ;;  %v7034_v61 = vpop.f32.mrb[0].mxu0 }
 0x1b5   :  { %v252_v62 = vpop.f32.mrb[9].mxu1  ;;  %v7036_v63 = vpop.f32.mrb[1].mxu0  ;;  %v572_v2 = vsel %vm185_vm2, %v6269_v59, 0.0 }
 0x1b6   :  { %v6270_v0 = vpop.f32.mrb[10].mxu1  ;;  %v7038_v1 = vpop.f32.mrb[2].mxu0  ;;  %v570_v6 = vsel %vm185_vm2, %v252_v62, 0.0 }
 0x1b7   :  { %v573_v3 = vsel %vm185_vm2, %v6270_v0, 0.0  ;;  %v255_v4 = vpop.f32.mrb[11].mxu1  ;;  %v7042_v5 = vpop.f32.mrb[3].mxu0 }
 0x1b8   :  { %v619_v7 = vpack.c.bf16 %v573_v3, %v572_v2  ;;  %v571_v8 = vsel %vm185_vm2, %v255_v4, 0.0  ;;  %v7083_v0 = vpop.permute.xlu0 %801 }
 0x1b9   :  { %v618_v9 = vpack.c.bf16 %v571_v8, %v570_v6 }
 0x1ba   :  { %628 = vst.msk [vmem:[#allocation2 + $0x8] sm:$0xff] %vm626_vm3, %v619_v7 }
 0x1bb   :  { %627 = vst.msk [vmem:[#allocation2] sm:$0xff] %vm626_vm3, %v618_v9 }
 0x1bc   :  { %v6273_v12 = vpop.f32.mrb[12].mxu1  ;;  %v7052_v14 = vpop.f32.mrb[4].mxu0 }
 0x1bd   :  { %v268_v15 = vpop.f32.mrb[13].mxu1  ;;  %v7054_v16 = vpop.f32.mrb[5].mxu0  ;;  %v576_v19 = vsel %vm185_vm2, %v6273_v12, 0.0 }
 0x1be   :  { %v6274_v17 = vpop.f32.mrb[14].mxu1  ;;  %v7056_v18 = vpop.f32.mrb[6].mxu0  ;;  %v574_v23 = vsel %vm185_vm2, %v268_v15, 0.0 }
 0x1bf   :  { %v577_v20 = vsel %vm185_vm2, %v6274_v17, 0.0  ;;  %v271_v21 = vpop.f32.mrb[15].mxu1  ;;  %v7060_v22 = vpop.f32.mrb[7].mxu0 }
 0x1c0   :  { %v621_v24 = vpack.c.bf16 %v577_v20, %v576_v19  ;;  %v575_v25 = vsel %vm185_vm2, %v271_v21, 0.0  ;;  %v7087_v12 = vpop.permute.xlu1 %810  ;;  %v7089_v17 = vpop.permute.xlu0 %807 }
 0x1c1   :  { %v620_v28 = vpack.c.bf16 %v575_v25, %v574_v23  ;;  %v1702_v32 = vld [vmem:[#allocation2 + $0x8] sm:$0xff] }
 0x1c2   :  { %630 = vst.msk [vmem:[#allocation2 + $0x18] sm:$0xff] %vm626_vm3, %v621_v24  ;;  %v1701_v29 = vld [vmem:[#allocation2] sm:$0xff] }
 0x1c3   :  { %629 = vst.msk [vmem:[#allocation2 + $0x10] sm:$0xff] %vm626_vm3, %v620_v28  ;;  %6311 = vmatprep.subr.bf16.mxu1 %v1701_v29 }
 0x1c4   :  { %v6293_v31 = vpop.f32.mrb[16].mxu1  ;;  %6312 = vmatpush3.bf16.msra.mxu1 %v1701_v29  ;;  %v7091_v28 = vpop.permute.xlu1 %816 }
 0x1c5   :  { %v408_v34 = vadd.f32 %v6293_v31, %v5765_v30  ;;  %v399_v35 = vpop.f32.mrb[17].mxu1  ;;  %6313 = vmatprep.subr.bf16.mxu1 %v1702_v32 }
 0x1c6   :  { %v400_v37 = vadd.f32 %v5765_v30, %v399_v35  ;;  %v6294_v38 = vpop.f32.mrb[18].mxu1 }
 0x1c7   :  { %v440_v39 = vmul.f32 0.01, %v408_v34  ;;  %v411_v40 = vadd.f32 %v6294_v38, %v5765_v30  ;;  %v402_v41 = vpop.f32.mrb[19].mxu1  ;;  %vm432_vm4 = vcmp.gt.f32.partialorder %v408_v34, 0.0 }
 0x1c8   :  { %v438_v42 = vmul.f32 0.01, %v400_v37  ;;  %v403_v43 = vadd.f32 %v5765_v30, %v402_v41  ;;  %6314 = vmatpush3.bf16.msra.mxu1 %v1702_v32  ;;  %vm430_vm5 = vcmp.gt.f32.partialorder %v400_v37, 0.0  ;;  %v7097_v31 = vpop.permute.xlu1 %822 }
 0x1c9   :  { %vm433_vm6 = vcmp.gt.f32.partialorder %v411_v40, 0.0  ;;  %v441_v45 = vmul.f32 0.01, %v411_v40  ;;  %v448_v49 = vsel %vm432_vm4, %v408_v34, %v440_v39  ;;  %v1704_v55 = vld [vmem:[#allocation2 + $0x18] sm:$0xff] }
 0x1ca   :  { %vm431_vm7 = vcmp.gt.f32.partialorder %v403_v43, 0.0  ;;  %v439_v47 = vmul.f32 0.01, %v403_v43  ;;  %v1703_v48 = vld [vmem:[#allocation2 + $0x10] sm:$0xff]  ;;  %v446_v51 = vsel %vm430_vm5, %v400_v37, %v438_v42 }
 0x1cb   :  { %v449_v50 = vsel %vm433_vm6, %v411_v40, %v441_v45  ;;  %6315 = vmatprep.subr.bf16.mxu1 %v1703_v48 }
 0x1cc   :  { %v455_v52 = vpack.c.bf16 %v449_v50, %v448_v49  ;;  %v447_v53 = vsel %vm431_vm7, %v403_v43, %v439_v47  ;;  %v6297_v54 = vpop.f32.mrb[20].mxu1  ;;  %6316 = vmatpush3.bf16.msra.mxu1 %v1703_v48  ;;  %v7101_v34 = vpop.permute.xlu1 %828 }
 0x1cd   :  { %v454_v57 = vpack.c.bf16 %v447_v53, %v446_v51  ;;  %v424_v59 = vadd.f32 %v6297_v54, %v5765_v30  ;;  %v415_v62 = vpop.f32.mrb[21].mxu1  ;;  %6317 = vmatprep.subr.bf16.mxu1 %v1704_v55 }
 0x1ce   :  { %v416_v2 = vadd.f32 %v5765_v30, %v415_v62  ;;  %v6298_v3 = vpop.f32.mrb[22].mxu1 }
 0x1cf   :  { %v444_v4 = vmul.f32 0.01, %v424_v59  ;;  %v427_v6 = vadd.f32 %v6298_v3, %v5765_v30  ;;  %v418_v7 = vpop.f32.mrb[23].mxu1  ;;  %6303 = vmatprep.mubr.msk.bf16.mxu0 %vm185_vm2, %v454_v57  ;;  %vm436_vm8 = vcmp.gt.f32.partialorder %v424_v59, 0.0 }
 0x1d0   :  { %v442_v8 = vmul.f32 0.01, %v416_v2  ;;  %v419_v9 = vadd.f32 %v5765_v30, %v418_v7  ;;  %6304 = vmatmul.mubr.msk.bf16.vlgmr.msra.gmra.mrb[8].mxu0 %vm185_vm2, %v455_v52  ;;  %6318 = vmatpush3.bf16.msra.mxu1 %v1704_v55  ;;  %vm434_vm9 = vcmp.gt.f32.partialorder %v416_v2, 0.0  ;;  %v7093_v30 = vpop.permute.xlu0 %813  ;;  %v7105_v37 = vpop.permute.xlu1 %834  ;;  %v771_v7 = vlaneseq }
 0x1d1   :  { %vm437_vm10 = vcmp.gt.f32.partialorder %v427_v6, 0.0  ;;  %v445_v15 = vmul.f32 0.01, %v427_v6  ;;  %v452_v20 = vsel %vm436_vm8, %v424_v59, %v444_v4 }
 0x1d2   :  { %vm435_vm11 = vcmp.gt.f32.partialorder %v419_v9, 0.0  ;;  %v443_v19 = vmul.f32 0.01, %v419_v9  ;;  %v450_v23 = vsel %vm434_vm9, %v416_v2, %v442_v8 }
 0x1d3   :  { %v453_v21 = vsel %vm437_vm10, %v427_v6, %v445_v15  ;;  %v7157_v15 = vand.u32 127, %v771_v7 }
 0x1d4   :  { %v457_v24 = vpack.c.bf16 %v453_v21, %v452_v20  ;;  %v451_v25 = vsel %vm435_vm11, %v419_v9, %v443_v19  ;;  %v7099_v32 = vpop.permute.xlu0 %819  ;;  %v7109_v39 = vpop.permute.xlu1 %840 }
 0x1d5   :  { %v456_v29 = vpack.c.bf16 %v451_v25, %v450_v23  ;;  %vm966_vm12 = vcmp.eq.s32.totalorder %v7157_v15, %v7032_v58  ;;  %vm965_vm13 = vcmp.eq.s32.totalorder %v7157_v15, %v7049_v11  ;;  %v5770_v11 = vld [vmem:[%s10709_s6 + $0x7] ss:$0 sm:$0xff]  ;;  %vm968_vm10 = vcmp.eq.s32.totalorder %v7157_v15, %v7066_v27 }
 0x1d6   :  { %v5776_v21 = vsel %vm966_vm12, 1.0, %v10721_v60  ;;  %v5775_v23 = vsel %vm965_vm13, 1.0, %v10721_v60  ;;  %vm969_vm13 = vcmp.eq.s32.totalorder %v7157_v15, %v7064_v26 }
 0x1d7   :  { %6307 = vmatprep.mubr.msk.bf16.mxu0 %vm185_vm2, %v456_v29  ;;  %v7169_v29 = vpack.c.bf16 %v5776_v21, %v5775_v23 }
 0x1d8   :  { %6308 = vmatmul.mubr.msk.bf16.gmra.mrb[12].mxu0 %vm185_vm2, %v457_v24  ;;  %v7103_v35 = vpop.permute.xlu0 %825  ;;  %v7113_v41 = vpop.permute.xlu1 %846 }
 0x1d9   :  { %10854 = vst [vmem:[#allocation26_spill] sm:$0xff] %v7169_v29 }
 0x1dc   :  { %v7107_v38 = vpop.permute.xlu0 %831  ;;  %v7117_v43 = vpop.permute.xlu1 %852 }
 0x1dd   :  { %10834 = vst [vmem:[#allocation6_spill] sm:$0xff] %v7117_v43 }
 0x1e0   :  { %v7111_v40 = vpop.permute.xlu0 %837  ;;  %v7121_v47 = vpop.permute.xlu1 %858 }
 0x1e1   :  { %10836 = vst [vmem:[#allocation8_spill] sm:$0xff] %v7121_v47 }
 0x1e4   :  { %v7115_v42 = vpop.permute.xlu0 %843  ;;  %v7125_v49 = vpop.permute.xlu1 %864 }
 0x1e5   :  { %10833 = vst [vmem:[#allocation5_spill] sm:$0xff] %v7115_v42  ;;  %10838 = vst [vmem:[#allocation10_spill] sm:$0xff] %v7125_v49  ;;  %v10860_v42 = vmov 1  }
 0x1e8   :  { %v7119_v45 = vpop.permute.xlu0 %849  ;;  %v7129_v51 = vpop.permute.xlu1 %870 }
 0x1e9   :  { %10835 = vst [vmem:[#allocation7_spill] sm:$0xff] %v7119_v45  ;;  %10840 = vst [vmem:[#allocation12_spill] sm:$0xff] %v7129_v51  ;;  %v766_v51 = vld [vmem:[%s10712_s1 + $0x1d8] sm:$0xff] }
 0x1ec   :  { %v7123_v48 = vpop.permute.xlu0 %855  ;;  %v7133_v53 = vpop.permute.xlu1 %876 }
 0x1ed   :  { %10837 = vst [vmem:[#allocation9_spill] sm:$0xff] %v7123_v48  ;;  %10842 = vst [vmem:[#allocation14_spill] sm:$0xff] %v7133_v53  ;;  %v700_v53 = vld [vmem:[%s10713_s0 + $0x1c8] sm:$0xff] }
 0x1f0   :  { %v7127_v50 = vpop.permute.xlu0 %861  ;;  %v7137_v55 = vpop.permute.xlu1 %882 }
 0x1f1   :  { %10839 = vst [vmem:[#allocation11_spill] sm:$0xff] %v7127_v50  ;;  %10844 = vst [vmem:[#allocation16_spill] sm:$0xff] %v7137_v55 }
 0x1f4   :  { %v7131_v52 = vpop.permute.xlu0 %867  ;;  %v7141_v59 = vpop.permute.xlu1 %888 }
 0x1f5   :  { %10841 = vst [vmem:[#allocation13_spill] sm:$0xff] %v7131_v52  ;;  %10846 = vst [vmem:[#allocation18_spill] sm:$0xff] %v7141_v59  ;;  %v702_v52 = vld [vmem:[%s10713_s0 + $0x1d8] sm:$0xff] }
 0x1f8   :  { %v7135_v54 = vpop.permute.xlu0 %873  ;;  %v7145_v2 = vpop.permute.xlu1 %894 }
 0x1f9   :  { %10843 = vst [vmem:[#allocation15_spill] sm:$0xff] %v7135_v54  ;;  %10848 = vst [vmem:[#allocation20_spill] sm:$0xff] %v7145_v2 }
 0x1fc   :  { %v7139_v57 = vpop.permute.xlu0 %879  ;;  %v7149_v4 = vpop.permute.xlu1 %900 }
 0x1fd   :  { %10845 = vst [vmem:[#allocation17_spill] sm:$0xff] %v7139_v57  ;;  %10850 = vst [vmem:[#allocation22_spill] sm:$0xff] %v7149_v4 }
 0x200   :  { %v7143_v62 = vpop.permute.xlu0 %885  ;;  %v7153_v8 = vpop.permute.xlu1 %906 }
 0x201   :  { %10847 = vst [vmem:[#allocation19_spill] sm:$0xff] %v7143_v62  ;;  %10852 = vst [vmem:[#allocation24_spill] sm:$0xff] %v7153_v8 }
 0x204   :  { %v7147_v3 = vpop.permute.xlu0 %891  ;;  %v1258_v19 = vpop.permute.xlu1 %1257 }
 0x205   :  { %10849 = vst [vmem:[#allocation21_spill] sm:$0xff] %v7147_v3  ;;  %vm1446_vm14 = vcmp.eq.s32.totalorder %v7157_v15, %v1258_v19 }
 0x206   :  { %v5840_v24 = vsel %vm1446_vm14, 1.0, %v10721_v60  ;;  %vm970_vm14 = vcmp.eq.s32.totalorder %v7157_v15, %v7075_v36 }
 0x208   :  { %v7151_v6 = vpop.permute.xlu0 %897 }
 0x209   :  { %10851 = vst [vmem:[#allocation23_spill] sm:$0xff] %v7151_v6 }
 0x20c   :  { %v7155_v9 = vpop.permute.xlu0 %903 }
 0x20d   :  { %10853 = vst [vmem:[#allocation25_spill] sm:$0xff] %v7155_v9 }
 0x210   :  { %v1255_v20 = vpop.permute.xlu0 %1254 }
 0x211   :  { %vm1445_vm15 = vcmp.eq.s32.totalorder %v7157_v15, %v1255_v20 }
 0x212   :  { %v5839_v25 = vsel %vm1445_vm15, 1.0, %v10721_v60 }
 0x213   :  { %v1637_v7 = vpack.c.bf16 %v5840_v24, %v5839_v25 }
 0x215   :  { %v1669_v58 = vadd.bf16 %v1637_v7, %v7169_v29 }
 0x217   :  { %6327 = vmatprep.mubr.bf16.mxu1 %v1669_v58  ;;  %v662_v58 = vld [vmem:[%s10713_s0 + $0x98] sm:$0xff] }
 0x2a3   :  { %v6305_v19 = vpop.f32.mrb[8].mxu0 }
 0x2a4   :  { %v524_v20 = vadd.f32 %v6305_v19, %v5770_v11  ;;  %v515_v13 = vpop.f32.mrb[9].mxu0 }
 0x2a5   :  { %v516_v8 = vadd.f32 %v5770_v11, %v515_v13  ;;  %v6306_v9 = vpop.f32.mrb[10].mxu0 }
 0x2a6   :  { %v556_v4 = vmul.f32 0.01, %v524_v20  ;;  %v527_v6 = vadd.f32 %v6306_v9, %v5770_v11  ;;  %v518_v3 = vpop.f32.mrb[11].mxu0  ;;  %vm548_vm0 = vcmp.gt.f32.partialorder %v524_v20, 0.0  ;;  %v661_v9 = vld [vmem:[%s10713_s0 + $0x90] sm:$0xff] }
 0x2a7   :  { %v554_v60 = vmul.f32 0.01, %v516_v8  ;;  %v519_v21 = vadd.f32 %v5770_v11, %v518_v3  ;;  %vm546_vm1 = vcmp.gt.f32.partialorder %v516_v8, 0.0 }
 0x2a8   :  { %vm549_vm4 = vcmp.gt.f32.partialorder %v527_v6, 0.0  ;;  %v557_v23 = vmul.f32 0.01, %v527_v6  ;;  %v564_v25 = vsel %vm548_vm0, %v524_v20, %v556_v4  ;;  %v1208_v4 = vadd.s32 64, %v662_v58 }
 0x2a9   :  { %vm547_vm5 = vcmp.gt.f32.partialorder %v519_v21, 0.0  ;;  %v555_v24 = vmul.f32 0.01, %v519_v21  ;;  %v562_v29 = vsel %vm546_vm1, %v516_v8, %v554_v60  ;;  %vm971_vm1 = vcmp.eq.s32.totalorder %v7157_v15, %v7073_v33 }
 0x2aa   :  { %v565_v7 = vsel %vm549_vm4, %v527_v6, %v557_v23  ;;  %vm972_vm4 = vcmp.eq.s32.totalorder %v7157_v15, %v7079_v46 }
 0x2ab   :  { %v6309_v19 = vpop.f32.mrb[12].mxu0  ;;  %v6567_v13 = vpack.i.bf16 %v565_v7, %v564_v25  ;;  %v563_v2 = vsel %vm547_vm5, %v519_v21, %v555_v24  ;;  %v1207_v25 = vadd.s32 64, %v661_v9  ;;  %v666_v9 = vld [vmem:[%s10713_s0 + $0xb8] sm:$0xff] }
 0x2ac   :  { %v540_v3 = vadd.f32 %v6309_v19, %v5770_v11  ;;  %v531_v59 = vpop.f32.mrb[13].mxu0  ;;  %v6572_v62 = vpack.i.bf16 %v563_v2, %v562_v29 }
 0x2ad   :  { %v532_v55 = vadd.f32 %v5770_v11, %v531_v59  ;;  %v6310_v57 = vpop.f32.mrb[14].mxu0  ;;  %6568 = vrot.lane.b32.xlu1 %v6567_v13, %s6710_s29 }
 0x2ae   :  { %v560_v6 = vmul.f32 0.01, %v540_v3  ;;  %v543_v20 = vadd.f32 %v6310_v57, %v5770_v11  ;;  %v534_v23 = vpop.f32.mrb[15].mxu0  ;;  %6573 = vrot.lane.b32.xlu0 %v6572_v62, %s6710_s29  ;;  %vm552_vm6 = vcmp.gt.f32.partialorder %v540_v3, 0.0  ;;  %v664_v57 = vld [vmem:[%s10713_s0 + $0xa8] sm:$0xff] }
 0x2af   :  { %v558_v60 = vmul.f32 0.01, %v532_v55  ;;  %v535_v8 = vadd.f32 %v5770_v11, %v534_v23  ;;  %vm550_vm7 = vcmp.gt.f32.partialorder %v532_v55, 0.0  ;;  %v663_v11 = vld [vmem:[%s10713_s0 + $0xa0] sm:$0xff]  ;;  %v1210_v19 = vadd.s32 64, %v664_v57 }
 0x2b0   :  { %vm553_vm8 = vcmp.gt.f32.partialorder %v543_v20, 0.0  ;;  %v561_v21 = vmul.f32 0.01, %v543_v20  ;;  %v568_v59 = vsel %vm552_vm6, %v540_v3, %v560_v6  ;;  %v1209_v13 = vadd.s32 64, %v663_v11  ;;  %v668_v6 = vld [vmem:[%s10713_s0 + $0xc8] sm:$0xff]  ;;  %v671_v57 = vld [vmem:[%s10713_s0 + $0xe0] sm:$0xff] }
 0x2b1   :  { %vm551_vm9 = vcmp.gt.f32.partialorder %v535_v8, 0.0  ;;  %v559_v24 = vmul.f32 0.01, %v535_v8  ;;  %1311 = vperm.xlu1 %6566, %v1208_v4   ;;  %v566_v7 = vsel %vm550_vm7, %v532_v55, %v558_v60  ;;  %v665_v55 = vld [vmem:[%s10713_s0 + $0xb0] sm:$0xff]  ;;  %v1212_v3 = vadd.s32 64, %v666_v9  ;;  %v670_v60 = vld [vmem:[%s10713_s0 + $0xd8] sm:$0xff] }
 0x2b2   :  { %1308 = vperm.xlu0 %6565, %v1207_v25   ;;  %v569_v2 = vsel %vm553_vm8, %v543_v20, %v561_v21  ;;  %v1211_v4 = vadd.s32 64, %v665_v55  ;;  %v667_v20 = vld [vmem:[%s10713_s0 + $0xc0] sm:$0xff]  ;;  %v1214_v23 = vadd.s32 64, %v668_v6  ;;  %v1216_v21 = vadd.s32 64, %v670_v60  ;;  %v680_v60 = vld [vmem:[%s10713_s0 + $0x128] sm:$0xff] }
 0x2b3   :  { %v6577_v29 = vpack.i.bf16 %v569_v2, %v568_v59  ;;  %v567_v62 = vsel %vm551_vm9, %v535_v8, %v559_v24  ;;  %v1213_v25 = vadd.s32 64, %v667_v20  ;;  %v669_v8 = vld [vmem:[%s10713_s0 + $0xd0] sm:$0xff]  ;;  %v7212_v24 = vld [vmem:[%s10711_s5 + $0x4] ss:$8 sps:$4 sm:$0xff]   ;;  %v1217_v11 = vadd.s32 64, %v671_v57 }
 0x2b4   :  { %v6582_v58 = vpack.i.bf16 %v567_v62, %v566_v7  ;;  %v1215_v59 = vadd.s32 64, %v669_v8  ;;  %v672_v2 = vld [vmem:[%s10713_s0 + $0xe8] sm:$0xff]  ;;  %6391 = vmatprep.subr.bf16.mxu0 %v7212_v24  ;;  %v674_v7 = vld [vmem:[%s10713_s0 + $0xf8] sm:$0xff]  ;;  %v673_v62 = vld [vmem:[%s10713_s0 + $0xf0] sm:$0xff]  ;;  %vm973_vm7 = vcmp.eq.s32.totalorder %v7157_v15, %v7077_v44  ;;  %vm974_vm8 = vcmp.eq.s32.totalorder %v7157_v15, %v7083_v0 }
 0x2b5   :  { %6578 = vrot.lane.b32.xlu1 %v6577_v29, %s6710_s29  ;;  %6392 = vmatpush3.bf16.msra.mxu0 %v7212_v24  ;;  %v1218_v29 = vadd.s32 64, %v672_v2  ;;  %v1220_v9 = vadd.s32 64, %v674_v7  ;;  %v1219_v55 = vadd.s32 64, %v673_v62  ;;  %v6658_v20 = vld [vmem:[%s10714_s2 + $0x8] sm:$0xff]   ;;  %v679_v8 = vld [vmem:[%s10713_s0 + $0x120] sm:$0xff]  ;;  %v1226_v2 = vadd.s32 64, %v680_v60 }
 0x2b6   :  { %6583 = vrot.lane.b32.xlu0 %v6582_v58, %s6710_s29  ;;  %v676_v58 = vld [vmem:[%s10713_s0 + $0x108] sm:$0xff]  ;;  %v6659_v57 = vld [vmem:[%s10714_s2 + $0x10] sm:$0xff]   ;;  %v6660_v7 = vld [vmem:[%s10714_s2 + $0x18] sm:$0xff]  }
 0x2b7   :  { %v682_v62 = vld [vmem:[%s10713_s0 + $0x138] sm:$0xff]  ;;  %v6663_v60 = vld [vmem:[%s10714_s2 + $0x30] sm:$0xff]  }
 0x2b9   :  { %1317 = vperm.xlu1 %6566, %v1210_v19   ;;  %v6656_v19 = vld [vmem:[%s10711_s5 + $0x14] ss:$8 sps:$4 sm:$0xff]  }
 0x2ba   :  { %1314 = vperm.xlu0 %6565, %v1209_v13   ;;  %v675_v13 = vld [vmem:[%s10713_s0 + $0x100] sm:$0xff]  ;;  %6393 = vmatprep.subr.bf16.mxu0 %v6656_v19 }
 0x2bb   :  { %6394 = vmatpush3.bf16.msra.mxu0 %v6656_v19  ;;  %v1221_v6 = vadd.s32 64, %v675_v13  ;;  %v683_v19 = vld [vmem:[%s10713_s0 + $0x140] sm:$0xff]  ;;  %v1228_v13 = vadd.s32 64, %v682_v62 }
 0x2bd   :  { %1323 = vperm.xlu1 %6566, %v1212_v3   ;;  %v1222_v3 = vadd.s32 64, %v676_v58  ;;  %v684_v58 = vld [vmem:[%s10713_s0 + $0x148] sm:$0xff] }
 0x2be   :  { %1320 = vperm.xlu0 %6565, %v1211_v4   ;;  %v6657_v4 = vld [vmem:[%s10714_s2] sm:$0xff]  }
 0x2bf   :  { %6395 = vmatprep.mubr.msk.bf16.mxu0 %vm185_vm2, %v6657_v4  ;;  %v1230_v4 = vadd.s32 64, %v684_v58  ;;  %v6665_v58 = vld [vmem:[%s10714_s2 + $0x40] sm:$0xff]  }
 0x2c0   :  { %6396 = vmatmul.mubr.msk.bf16.vlgmr.msra.gmra.mrb[16].mxu0 %vm185_vm2, %v6658_v20  ;;  %v686_v20 = vld [vmem:[%s10713_s0 + $0x158] sm:$0xff] }
 0x2c1   :  { %1329 = vperm.xlu1 %6566, %v1214_v23   ;;  %v678_v23 = vld [vmem:[%s10713_s0 + $0x118] sm:$0xff]  ;;  %6399 = vmatprep.mubr.msk.bf16.mxu0 %vm185_vm2, %v6659_v57  ;;  %v752_v57 = vld [vmem:[%s10712_s1 + $0x168] sm:$0xff] }
 0x2c2   :  { %1326 = vperm.xlu0 %6565, %v1213_v25   ;;  %v677_v25 = vld [vmem:[%s10713_s0 + $0x110] sm:$0xff] }
 0x2c5   :  { %1335 = vperm.xlu1 %6566, %v1216_v21   ;;  %v1224_v21 = vadd.s32 64, %v678_v23  ;;  %v685_v23 = vld [vmem:[%s10713_s0 + $0x150] sm:$0xff] }
 0x2c6   :  { %1332 = vperm.xlu0 %6565, %v1215_v59   ;;  %v1223_v59 = vadd.s32 64, %v677_v25  ;;  %v1232_v25 = vadd.s32 64, %v686_v20 }
 0x2c8   :  { %6400 = vmatmul.mubr.msk.bf16.gmra.mrb[20].mxu0 %vm185_vm2, %v6660_v7  ;;  %v753_v7 = vld [vmem:[%s10712_s1 + $0x170] sm:$0xff] }
 0x2c9   :  { %1341 = vperm.xlu1 %6566, %v1218_v29   ;;  %v1225_v29 = vadd.s32 64, %v679_v8  ;;  %v1231_v8 = vadd.s32 64, %v685_v23  ;;  %v691_v23 = vld [vmem:[%s10713_s0 + $0x180] sm:$0xff] }
 0x2ca   :  { %1338 = vperm.xlu0 %6565, %v1217_v11   ;;  %v681_v11 = vld [vmem:[%s10713_s0 + $0x130] sm:$0xff] }
 0x2cd   :  { %1347 = vperm.xlu1 %6566, %v1220_v9   ;;  %v6661_v9 = vld [vmem:[%s10714_s2 + $0x20] sm:$0xff]  }
 0x2ce   :  { %1344 = vperm.xlu0 %6565, %v1219_v55   ;;  %v1227_v55 = vadd.s32 64, %v681_v11  ;;  %6403 = vmatprep.mubr.msk.bf16.mxu0 %vm185_vm2, %v6661_v9  ;;  %v689_v11 = vld [vmem:[%s10713_s0 + $0x170] sm:$0xff]  ;;  %v754_v9 = vld [vmem:[%s10712_s1 + $0x178] sm:$0xff] }
 0x2d1   :  { %1353 = vperm.xlu1 %6566, %v1222_v3   ;;  %v6662_v3 = vld [vmem:[%s10714_s2 + $0x28] sm:$0xff]  }
 0x2d2   :  { %1350 = vperm.xlu0 %6565, %v1221_v6   ;;  %v1229_v6 = vadd.s32 64, %v683_v19  ;;  %6404 = vmatmul.mubr.msk.bf16.gmra.mrb[24].mxu0 %vm185_vm2, %v6662_v3  ;;  %v6666_v19 = vld [vmem:[%s10714_s2 + $0x48] sm:$0xff]   ;;  %v7328_v3 = vpop.permute.xlu1 %1263 }
 0x2d3   :  { %6407 = vmatprep.mubr.msk.bf16.mxu0 %vm185_vm2, %v6663_v60  ;;  %v6668_v60 = vld [vmem:[%s10714_s2 + $0x58] sm:$0xff]   ;;  %vm1448_vm11 = vcmp.eq.s32.totalorder %v7157_v15, %v7328_v3  ;;  %v6687_v3 = vld [vmem:[%s10714_s2 + $0xf0] sm:$0xff]  }
 0x2d5   :  { %1359 = vperm.xlu1 %6566, %v1224_v21   ;;  %v687_v21 = vld [vmem:[%s10713_s0 + $0x160] sm:$0xff] }
 0x2d6   :  { %1356 = vperm.xlu0 %6565, %v1223_v59   ;;  %v6664_v59 = vld [vmem:[%s10714_s2 + $0x38] sm:$0xff]  }
 0x2d9   :  { %1365 = vperm.xlu1 %6566, %v1226_v2   ;;  %v1233_v2 = vadd.s32 64, %v687_v21  ;;  %v7346_v21 = vpop.permute.xlu1 %1269 }
 0x2da   :  { %1362 = vperm.xlu0 %6565, %v1225_v29   ;;  %6408 = vmatmul.mubr.msk.bf16.gmra.mrb[28].mxu0 %vm185_vm2, %v6664_v59  ;;  %v688_v29 = vld [vmem:[%s10713_s0 + $0x168] sm:$0xff]  ;;  %vm1450_vm15 = vcmp.eq.s32.totalorder %v7157_v15, %v7346_v21  ;;  %v6688_v21 = vld [vmem:[%s10714_s2 + $0xf8] sm:$0xff]  }
 0x2db   :  { %v1234_v62 = vadd.s32 64, %v688_v29  ;;  %6411 = vmatprep.mubr.msk.bf16.mxu0 %vm185_vm2, %v6665_v58  ;;  %v756_v59 = vld [vmem:[%s10712_s1 + $0x188] sm:$0xff]  ;;  %v757_v29 = vld [vmem:[%s10712_s1 + $0x190] sm:$0xff] }
 0x2dc   :  { %v6670_v58 = vld [vmem:[%s10714_s2 + $0x68] sm:$0xff]  }
 0x2dd   :  { %1371 = vperm.xlu1 %6566, %v1228_v13   ;;  %v1235_v13 = vadd.s32 64, %v689_v11  ;;  %v6669_v11 = vld [vmem:[%s10714_s2 + $0x60] sm:$0xff]  }
 0x2de   :  { %1368 = vperm.xlu0 %6565, %v1227_v55   ;;  %v690_v55 = vld [vmem:[%s10713_s0 + $0x178] sm:$0xff] }
 0x2df   :  { %v1236_v20 = vadd.s32 64, %v690_v55  ;;  %v758_v55 = vld [vmem:[%s10712_s1 + $0x198] sm:$0xff] }
 0x2e1   :  { %1377 = vperm.xlu1 %6566, %v1230_v4   ;;  %v7330_v4 = vpop.permute.xlu0 %1260 }
 0x2e2   :  { %1374 = vperm.xlu0 %6565, %v1229_v6   ;;  %6412 = vmatmul.mubr.msk.bf16.gmra.mrb[32].mxu0 %vm185_vm2, %v6666_v19  ;;  %v755_v6 = vld [vmem:[%s10712_s1 + $0x180] sm:$0xff]  ;;  %v7369_v19 = vpop.permute.xlu1 %1275  ;;  %vm1447_vm12 = vcmp.eq.s32.totalorder %v7157_v15, %v7330_v4  ;;  %v10856_v4 = vmov 0.0  }
 0x2e3   :  { %v5778_v26 = vsel %vm968_vm10, 1.0, %v10856_v4  ;;  %v5841_v36 = vsel %vm1447_vm12, 1.0, %v10856_v4  ;;  %vm1452_vm5 = vcmp.eq.s32.totalorder %v7157_v15, %v7369_v19  ;;  %v5781_v19 = vsel %vm971_vm1, 1.0, %v10856_v4 }
 0x2e4   :  { %v5782_v44 = vsel %vm972_vm4, 1.0, %v10856_v4  ;;  %v5846_v0 = vsel %vm1452_vm5, 1.0, %v10856_v4  ;;  %vm975_vm10 = vcmp.eq.s32.totalorder %v7157_v15, %v7081_v56  ;;  %vm979_vm4 = vcmp.eq.s32.totalorder %v7157_v15, %v7091_v28 }
 0x2e5   :  { %1383 = vperm.xlu1 %6566, %v1232_v25   ;;  %v6667_v25 = vld [vmem:[%s10714_s2 + $0x50] sm:$0xff]   ;;  %vm980_vm5 = vcmp.eq.s32.totalorder %v7157_v15, %v7099_v32  ;;  %v2005_v32 = vld [vmem:[%s10715_s3 + $0x38] sm:$0xff] }
 0x2e6   :  { %1380 = vperm.xlu0 %6565, %v1231_v8   ;;  %6415 = vmatprep.mubr.msk.bf16.mxu0 %vm185_vm2, %v6667_v25  ;;  %v1237_v8 = vadd.s32 64, %v691_v23  ;;  %v695_v25 = vld [vmem:[%s10713_s0 + $0x1a0] sm:$0xff] }
 0x2e9   :  { %1386 = vperm.xlu1 %6566, %v1233_v2   ;;  %v692_v2 = vld [vmem:[%s10713_s0 + $0x188] sm:$0xff] }
 0x2ea   :  { %909 = vperm.xlu0 %6565, %v752_v57   ;;  %6416 = vmatmul.mubr.msk.bf16.gmra.mrb[36].mxu0 %vm185_vm2, %v6668_v60  ;;  %v7354_v57 = vpop.permute.xlu0 %1266  ;;  %v6671_v60 = vld [vmem:[%s10714_s2 + $0x70] sm:$0xff]  }
 0x2eb   :  { %6419 = vmatprep.mubr.msk.bf16.mxu0 %vm185_vm2, %v6669_v11  ;;  %vm1449_vm0 = vcmp.eq.s32.totalorder %v7157_v15, %v7354_v57  ;;  %v5779_v57 = vsel %vm969_vm13, 1.0, %v10856_v4 }
 0x2ed   :  { %912 = vperm.xlu1 %6566, %v753_v7   ;;  %v1238_v7 = vadd.s32 64, %v692_v2 }
 0x2ee   :  { %1389 = vperm.xlu0 %6565, %v1234_v62   ;;  %v693_v62 = vld [vmem:[%s10713_s0 + $0x190] sm:$0xff] }
 0x2f1   :  { %1392 = vperm.xlu1 %6566, %v1235_v13   ;;  %v1239_v13 = vadd.s32 64, %v693_v62  ;;  %v696_v62 = vld [vmem:[%s10713_s0 + $0x1a8] sm:$0xff] }
 0x2f2   :  { %915 = vperm.xlu0 %6565, %v754_v9   ;;  %6420 = vmatmul.mubr.msk.bf16.gmra.mrb[40].mxu0 %vm185_vm2, %v6670_v58  ;;  %v7372_v9 = vpop.permute.xlu0 %1272 }
 0x2f3   :  { %6423 = vmatprep.mubr.msk.bf16.mxu0 %vm185_vm2, %v6671_v60  ;;  %vm1451_vm6 = vcmp.eq.s32.totalorder %v7157_v15, %v7372_v9 }
 0x2f5   :  { %918 = vperm.xlu1 %6566, %v755_v6   ;;  %v694_v6 = vld [vmem:[%s10713_s0 + $0x198] sm:$0xff] }
 0x2f6   :  { %1395 = vperm.xlu0 %6565, %v1236_v20   ;;  %v759_v20 = vld [vmem:[%s10712_s1 + $0x1a0] sm:$0xff]  ;;  %v1240_v23 = vadd.s32 64, %v694_v6  ;;  %v7394_v2 = vpop.permute.xlu0 %1278  ;;  %v697_v6 = vld [vmem:[%s10713_s0 + $0x1b0] sm:$0xff] }
 0x2f9   :  { %1398 = vperm.xlu1 %6566, %v1237_v8   ;;  %v7389_v8 = vpop.permute.xlu1 %1281 }
 0x2fa   :  { %921 = vperm.xlu0 %6565, %v756_v59   ;;  %v6672_v59 = vld [vmem:[%s10714_s2 + $0x78] sm:$0xff]   ;;  %v7406_v58 = vpop.permute.xlu0 %1284  ;;  %vm1454_vm9 = vcmp.eq.s32.totalorder %v7157_v15, %v7389_v8 }
 0x2fb   :  { %6424 = vmatmul.mubr.msk.bf16.gmra.mrb[44].mxu0 %vm185_vm2, %v6672_v59  ;;  %v762_v59 = vld [vmem:[%s10712_s1 + $0x1b8] sm:$0xff]  ;;  %vm1455_vm13 = vcmp.eq.s32.totalorder %v7157_v15, %v7406_v58 }
 0x2fd   :  { %924 = vperm.xlu1 %6566, %v757_v29   ;;  %v1241_v29 = vadd.s32 64, %v695_v25  ;;  %v7404_v11 = vpop.permute.xlu1 %1287  ;;  %v1243_v25 = vadd.s32 64, %v697_v6  ;;  %v6675_v6 = vld [vmem:[%s10714_s2 + $0x90] sm:$0xff]  }
 0x2fe   :  { %1401 = vperm.xlu0 %6565, %v1238_v7   ;;  %v760_v7 = vld [vmem:[%s10712_s1 + $0x1a8] sm:$0xff]  ;;  %vm1456_vm12 = vcmp.eq.s32.totalorder %v7157_v15, %v7404_v11 }
 0x2ff   :  { %v5850_v58 = vsel %vm1456_vm12, 1.0, %v10856_v4 }
 0x301   :  { %1404 = vperm.xlu1 %6566, %v1239_v13   ;;  %v761_v13 = vld [vmem:[%s10712_s1 + $0x1b0] sm:$0xff]  ;;  %v7422_v60 = vpop.permute.xlu1 %1293 }
 0x302   :  { %927 = vperm.xlu0 %6565, %v758_v55   ;;  %v1242_v55 = vadd.s32 64, %v696_v62  ;;  %v763_v62 = vld [vmem:[%s10712_s1 + $0x1c0] sm:$0xff] }
 0x305   :  { %930 = vperm.xlu1 %6566, %v759_v20   ;;  %v6673_v20 = vld [vmem:[%s10714_s2 + $0x80] sm:$0xff]  }
 0x306   :  { %1407 = vperm.xlu0 %6565, %v1240_v23   ;;  %v6674_v23 = vld [vmem:[%s10714_s2 + $0x88] sm:$0xff]   ;;  %6427 = vmatprep.mubr.msk.bf16.mxu0 %vm185_vm2, %v6673_v20  ;;  %v6676_v20 = vld [vmem:[%s10714_s2 + $0x98] sm:$0xff]  }
 0x307   :  { %6428 = vmatmul.mubr.msk.bf16.gmra.mrb[48].mxu0 %vm185_vm2, %v6674_v23  ;;  %v7445_v23 = vpop.permute.xlu1 %1299 }
 0x308   :  { %6431 = vmatprep.mubr.msk.bf16.mxu0 %vm185_vm2, %v6675_v6  ;;  %v701_v6 = vld [vmem:[%s10713_s0 + $0x1d0] sm:$0xff] }
 0x309   :  { %1410 = vperm.xlu1 %6566, %v1241_v29   ;;  %v698_v29 = vld [vmem:[%s10713_s0 + $0x1b8] sm:$0xff] }
 0x30a   :  { %933 = vperm.xlu0 %6565, %v760_v7   ;;  %v7430_v7 = vpop.permute.xlu0 %1290 }
 0x30b   :  { %vm1457_vm1 = vcmp.eq.s32.totalorder %v7157_v15, %v7430_v7 }
 0x30d   :  { %936 = vperm.xlu1 %6566, %v761_v13   ;;  %v1244_v13 = vadd.s32 64, %v698_v29  ;;  %v764_v29 = vld [vmem:[%s10712_s1 + $0x1c8] sm:$0xff] }
 0x30e   :  { %1413 = vperm.xlu0 %6565, %v1242_v55   ;;  %v699_v55 = vld [vmem:[%s10713_s0 + $0x1c0] sm:$0xff] }
 0x30f   :  { %6432 = vmatmul.mubr.msk.bf16.gmra.mrb[52].mxu0 %vm185_vm2, %v6676_v20  ;;  %v7465_v20 = vpop.permute.xlu1 %1305 }
 0x311   :  { %1416 = vperm.xlu1 %6566, %v1243_v25   ;;  %v1245_v25 = vadd.s32 64, %v699_v55  ;;  %v1246_v55 = vadd.s32 64, %v700_v53  ;;  %v1247_v53 = vadd.s32 64, %v701_v6  ;;  %v767_v6 = vld [vmem:[%s10712_s1 + $0x1e0] sm:$0xff] }
 0x312   :  { %939 = vperm.xlu0 %6565, %v762_v59   ;;  %v7448_v59 = vpop.permute.xlu0 %1296 }
 0x315   :  { %942 = vperm.xlu1 %6566, %v763_v62   ;;  %v765_v62 = vld [vmem:[%s10712_s1 + $0x1d0] sm:$0xff] }
 0x316   :  { %1419 = vperm.xlu0 %6565, %v1244_v13   ;;  %v6677_v13 = vld [vmem:[%s10714_s2 + $0xa0] sm:$0xff]  }
 0x317   :  { %6435 = vmatprep.mubr.msk.bf16.mxu0 %vm185_vm2, %v6677_v13  ;;  %v1248_v13 = vadd.s32 64, %v702_v52  ;;  %v705_v52 = vld [vmem:[%s10713_s0 + $0x1f0] sm:$0xff] }
 0x319   :  { %1422 = vperm.xlu1 %6566, %v1245_v25   ;;  %v6678_v25 = vld [vmem:[%s10714_s2 + $0xa8] sm:$0xff]  }
 0x31a   :  { %945 = vperm.xlu0 %6565, %v764_v29   ;;  %v7470_v29 = vpop.permute.xlu0 %1302  ;;  %6436 = vmatmul.mubr.msk.bf16.gmra.mrb[56].mxu0 %vm185_vm2, %v6678_v25 }
 0x31d   :  { %948 = vperm.xlu1 %6566, %v765_v62  }
 0x31e   :  { %1425 = vperm.xlu0 %6565, %v1246_v55  }
 0x31f   :  { %v6569_v54 = vpop.permute.xlu1 %6568 }
 0x320   :  { %v6571_v49 = vunpack.i.h.bf16 %v6569_v54  ;;  %v6570_v50 = vunpack.i.l.bf16 %v6569_v54  ;;  %v6574_v48 = vpop.permute.xlu0 %6573  ;;  %v703_v54 = vld [vmem:[%s10713_s0 + $0x1e0] sm:$0xff] }
 0x321   :  { %v6576_v47 = vunpack.i.h.bf16 %v6574_v48  ;;  %v6575_v43 = vunpack.i.l.bf16 %v6574_v48  ;;  %1428 = vperm.xlu1 %6566, %v1247_v53   ;;  %v6679_v48 = vld [vmem:[%s10714_s2 + $0xb0] sm:$0xff]   ;;  %v6681_v53 = vld [vmem:[%s10714_s2 + $0xc0] sm:$0xff]  }
 0x322   :  { %v613_v62 = vsel %vm185_vm2, %v7038_v1, %v6571_v49  ;;  %v612_v55 = vsel %vm185_vm2, %v7034_v61, %v6570_v50  ;;  %951 = vperm.xlu0 %6565, %v766_v51   ;;  %v6680_v49 = vld [vmem:[%s10714_s2 + $0xb8] sm:$0xff]   ;;  %6439 = vmatprep.mubr.msk.bf16.mxu0 %vm185_vm2, %v6679_v48  ;;  %v1249_v51 = vadd.s32 64, %v703_v54 }
 0x323   :  { %v623_v25 = vpack.c.bf16 %v613_v62, %v612_v55  ;;  %v611_v1 = vsel %vm185_vm2, %v7042_v5, %v6576_v47  ;;  %v610_v61 = vsel %vm185_vm2, %v7036_v63, %v6575_v43  ;;  %6440 = vmatmul.mubr.msk.bf16.gmra.mrb[60].mxu0 %vm185_vm2, %v6680_v49  ;;  %v768_v63 = vld [vmem:[%s10712_s1 + $0x1e8] sm:$0xff]  ;;  %v769_v43 = vld [vmem:[%s10712_s1 + $0x1f0] sm:$0xff]  ;;  %v770_v54 = vld [vmem:[%s10712_s1 + $0x1f8] sm:$0xff] }
 0x324   :  { %v622_v50 = vpack.c.bf16 %v611_v1, %v610_v61  ;;  %v704_v5 = vld [vmem:[%s10713_s0 + $0x1e8] sm:$0xff]  ;;  %6443 = vmatprep.mubr.msk.bf16.mxu0 %vm185_vm2, %v6681_v53  ;;  %v706_v48 = vld [vmem:[%s10713_s0 + $0x1f8] sm:$0xff]  ;;  %v1998_v61 = vld [vmem:[%s10715_s3] sm:$0xff] }
 0x325   :  { %632 = vst.msk [vmem:[#allocation2 + $0x28] sm:$0xff] %vm626_vm3, %v623_v25  ;;  %954 = vperm.xlu1 %6566, %v767_v6   ;;  %v1250_v47 = vadd.s32 64, %v704_v5  ;;  %v6682_v62 = vld [vmem:[%s10714_s2 + $0xc8] sm:$0xff]   ;;  %v1251_v6 = vadd.s32 64, %v705_v52  ;;  %v1252_v49 = vadd.s32 64, %v706_v48 }
 0x326   :  { %631 = vst.msk [vmem:[#allocation2 + $0x20] sm:$0xff] %vm626_vm3, %v622_v50  ;;  %1431 = vperm.xlu0 %6565, %v1248_v13   ;;  %v6683_v50 = vld [vmem:[%s10714_s2 + $0xd0] sm:$0xff]  }
 0x329   :  { %1434 = vperm.xlu1 %6566, %v1249_v51   ;;  %v6684_v51 = vld [vmem:[%s10714_s2 + $0xd8] sm:$0xff]  }
 0x32a   :  { %957 = vperm.xlu0 %6565, %v768_v63  }
 0x32b   :  { %6444 = vmatmul.mubr.msk.bf16.gmra.mrb[64].mxu0 %vm185_vm2, %v6682_v62 }
 0x32c   :  { %v1706_v13 = vld [vmem:[#allocation2 + $0x28] sm:$0xff]  ;;  %6447 = vmatprep.mubr.msk.bf16.mxu0 %vm185_vm2, %v6683_v50 }
 0x32d   :  { %960 = vperm.xlu1 %6566, %v769_v43   ;;  %v1705_v55 = vld [vmem:[#allocation2 + $0x20] sm:$0xff]  ;;  %v7558_v50 = vld [vmem:[%s10715_s3 + $0x8] sm:$0xff] }
 0x32e   :  { %1437 = vperm.xlu0 %6565, %v1250_v47   ;;  %6319 = vmatprep.subr.bf16.mxu1 %v1705_v55 }
 0x32f   :  { %6320 = vmatpush3.bf16.msra.mxu1 %v1705_v55 }
 0x330   :  { %v7530_v25 = vpop.permute.xlu1 %1311  ;;  %6321 = vmatprep.subr.bf16.mxu1 %v1706_v13 }
 0x331   :  { %1440 = vperm.xlu1 %6566, %v1251_v6   ;;  %v7532_v1 = vpop.permute.xlu0 %1308 }
 0x332   :  { %963 = vperm.xlu0 %6565, %v770_v54   ;;  %vm1463_vm12 = vcmp.eq.s32.totalorder %v7157_v15, %v7532_v1  ;;  %v7817_v1 = vld [vmem:[%s10715_s3 + $0x80] sm:$0xff] }
 0x333   :  { %6322 = vmatpush3.bf16.msra.mxu1 %v1706_v13  ;;  %6448 = vmatmul.mubr.msk.bf16.gmra.mrb[68].mxu0 %vm185_vm2, %v6684_v51  ;;  %v10732_v51 = vmov 1  }
 0x334   :  { %v6579_v63 = vpop.permute.xlu1 %6578 }
 0x335   :  { %v6581_v5 = vunpack.i.h.bf16 %v6579_v63  ;;  %v6580_v43 = vunpack.i.l.bf16 %v6579_v63  ;;  %2065 = vperm.xlu1 %6566, %v1998_v61   ;;  %v6584_v47 = vpop.permute.xlu0 %6583 }
 0x336   :  { %v6586_v52 = vunpack.i.h.bf16 %v6584_v47  ;;  %v6585_v53 = vunpack.i.l.bf16 %v6584_v47  ;;  %1443 = vperm.xlu0 %6565, %v1252_v49   ;;  %v2001_v47 = vld [vmem:[%s10715_s3 + $0x18] sm:$0xff] }
 0x337   :  { %v617_v62 = vsel %vm185_vm2, %v7056_v18, %v6581_v5  ;;  %v616_v55 = vsel %vm185_vm2, %v7052_v14, %v6580_v43  ;;  %v6685_v14 = vld [vmem:[%s10714_s2 + $0xe0] sm:$0xff]   ;;  %v10855_v5 = vmov 0  }
 0x338   :  { %v625_v6 = vpack.c.bf16 %v617_v62, %v616_v55  ;;  %v615_v13 = vsel %vm185_vm2, %v7060_v22, %v6586_v52  ;;  %v614_v54 = vsel %vm185_vm2, %v7054_v16, %v6585_v53  ;;  %v7553_v48 = vpop.permute.xlu1 %1317  ;;  %v6686_v16 = vld [vmem:[%s10714_s2 + $0xe8] sm:$0xff]   ;;  %6451 = vmatprep.mubr.msk.bf16.mxu0 %vm185_vm2, %v6685_v14  ;;  %v5842_v62 = vsel %vm1448_vm11, 1.0, %v10856_v4 }
 0x339   :  { %v624_v49 = vpack.c.bf16 %v615_v13, %v614_v54  ;;  %6587 = vset.pattern.permute.xlu1 %v10732_v51  ;;  %v7561_v18 = vpop.permute.xlu0 %1314  ;;  %v7599_v52 = vld [vmem:[%s10715_s3 + $0x28] sm:$0xff]  ;;  %v5780_v55 = vsel %vm970_vm14, 1.0, %v10856_v4  ;;  %v5843_v13 = vsel %vm1449_vm0, 1.0, %v10856_v4  ;;  %vm976_vm11 = vcmp.eq.s32.totalorder %v7157_v15, %v7089_v17 }
 0x33a   :  { %634 = vst.msk [vmem:[#allocation2 + $0x38] sm:$0xff] %vm626_vm3, %v625_v6  ;;  %2453 = vperm.xlu1 %6587, %v1998_v61   ;;  %6588 = vset.pattern.permute.xlu0 %v10732_v51  ;;  %v2000_v61 = vld [vmem:[%s10715_s3 + $0x10] sm:$0xff]  ;;  %v5844_v6 = vsel %vm1450_vm15, 1.0, %v10856_v4  ;;  %v1638_v51 = vpack.c.bf16 %v5842_v62, %v5841_v36  ;;  %v7683_v62 = vpack.c.bf16 %v5782_v44, %v5781_v19  ;;  %v2002_v36 = vld [vmem:[%s10715_s3 + $0x20] sm:$0xff]  ;;  %v5785_v17 = vsel %vm975_vm10, 1.0, %v10856_v4  ;;  %v7735_v44 = vld [vmem:[%s10715_s3 + $0x48] sm:$0xff] }
 0x33b   :  { %633 = vst.msk [vmem:[#allocation2 + $0x30] sm:$0xff] %vm626_vm3, %v624_v49  ;;  %2457 = vperm.xlu0 %6588, %v7558_v50   ;;  %6452 = vmatmul.mubr.msk.bf16.gmra.mrb[72].mxu0 %vm185_vm2, %v6686_v16  ;;  %vm967_vm3 = vcmp.eq.s32.totalorder %v7157_v15, %v7047_v10  ;;  %v7631_v49 = vld [vmem:[%s10715_s3 + $0x30] sm:$0xff]  ;;  %v1639_v45 = vpack.c.bf16 %v5844_v6, %v5843_v13  ;;  %v5851_v6 = vsel %vm1457_vm1, 1.0, %v10856_v4 }
 0x33c   :  { %v7573_v22 = vpop.permute.xlu1 %1323  ;;  %v5777_v53 = vsel %vm967_vm3, 1.0, %v10856_v4  ;;  %6455 = vmatprep.mubr.msk.bf16.mxu0 %vm185_vm2, %v6687_v3  ;;  %vm1453_vm3 = vcmp.eq.s32.totalorder %v7157_v15, %v7394_v2  ;;  %v5783_v2 = vsel %vm973_vm7, 1.0, %v10856_v4  ;;  %v5784_v3 = vsel %vm974_vm8, 1.0, %v10856_v4  ;;  %10861 = vst [vmem:[#allocation30_spill] sm:$0xff] %v7683_v62 }
 0x33d   :  { %v7579_v63 = vpop.permute.xlu0 %1320  ;;  %v5847_v33 = vsel %vm1453_vm3, 1.0, %v10856_v4  ;;  %vm977_vm14 = vcmp.eq.s32.totalorder %v7157_v15, %v7087_v12  ;;  %vm978_vm15 = vcmp.eq.s32.totalorder %v7157_v15, %v7093_v30  ;;  %vm1458_vm0 = vcmp.eq.s32.totalorder %v7157_v15, %v7422_v60 }
 0x33e   :  { %6589 = vset.pattern.permute.xlu1 %v10855_v5  ;;  %v5786_v12 = vsel %vm976_vm11, 1.0, %v10856_v4  ;;  %v5849_v30 = vsel %vm1455_vm13, 1.0, %v10856_v4  ;;  %v5787_v7 = vsel %vm977_vm14, 1.0, %v10856_v4  ;;  %vm1459_vm7 = vcmp.eq.s32.totalorder %v7157_v15, %v7448_v59  ;;  %v7768_v59 = vld [vmem:[%s10715_s3 + $0x50] sm:$0xff] }
 0x33f   :  { %2075 = vperm.xlu1 %6589, %v2000_v61   ;;  %2461 = vperm.xlu0 %6588, %v2000_v61   ;;  %v7637_v61 = vpack.c.bf16 %v5778_v26, %v5777_v53  ;;  %v5848_v53 = vsel %vm1454_vm9, 1.0, %v10856_v4  ;;  %v7728_v19 = vpack.c.bf16 %v5786_v12, %v5785_v17  ;;  %vm981_vm8 = vcmp.eq.s32.totalorder %v7157_v15, %v7097_v31 }
 0x340   :  { %v7591_v43 = vpop.permute.xlu1 %1329  ;;  %vm982_vm9 = vcmp.eq.s32.totalorder %v7157_v15, %v7103_v35  ;;  %vm1462_vm3 = vcmp.eq.s32.totalorder %v7157_v15, %v7465_v20  ;;  %vm1461_vm10 = vcmp.eq.s32.totalorder %v7157_v15, %v7470_v29  ;;  %v5791_v29 = vsel %vm981_vm8, 1.0, %v10856_v4 }
 0x341   :  { %v7609_v10 = vpop.permute.xlu0 %1326  ;;  %v1708_v16 = vld [vmem:[#allocation2 + $0x38] sm:$0xff]  ;;  %10858 = vst [vmem:[#allocation28_spill] sm:$0xff] %v7637_v61  ;;  %v1670_v9 = vadd.bf16 %v1638_v51, %v7637_v61  ;;  %10863 = vst [vmem:[#allocation32_spill] sm:$0xff] %v7728_v19  ;;  %vm1464_vm11 = vcmp.eq.s32.totalorder %v7157_v15, %v7530_v25  ;;  %vm1466_vm13 = vcmp.eq.s32.totalorder %v7157_v15, %v7553_v48 }
 0x342   :  { %v1707_v27 = vld [vmem:[#allocation2 + $0x30] sm:$0xff]  ;;  %vm1465_vm14 = vcmp.eq.s32.totalorder %v7157_v15, %v7561_v18  ;;  %vm985_vm1 = vcmp.eq.s32.totalorder %v7157_v15, %v7105_v37  ;;  %v5858_v48 = vsel %vm1464_vm11, 1.0, %v10856_v4  ;;  %v5860_v18 = vsel %vm1466_vm13, 1.0, %v10856_v4 }
 0x343   :  { %2080 = vperm.xlu1 %6589, %v2001_v47   ;;  %2473 = vperm.xlu0 %6588, %v7599_v52   ;;  %vm1469_vm8 = vcmp.eq.s32.totalorder %v7157_v15, %v7609_v10  ;;  %v10867_v10 = vld [vmem:[#allocation7_spill] sm:$0xff] }
 0x344   :  { %6323 = vmatprep.subr.bf16.mxu1 %v1707_v27  ;;  %v7626_v54 = vpop.permute.xlu1 %1335  ;;  %6456 = vmatmul.mubr.msk.bf16.gmra.mrb[76].mxu0 %vm185_vm2, %v6688_v21  ;;  %v7691_v21 = vpack.c.bf16 %v5784_v3, %v5783_v2  ;;  %v5853_v3 = vsel %vm1459_vm7, 1.0, %v10856_v4  ;;  %vm1470_vm7 = vcmp.eq.s32.totalorder %v7157_v15, %v7591_v43  ;;  %v7874_v43 = vld [vmem:[%s10715_s3 + $0xc0] sm:$0xff]  ;;  %vm990_vm11 = vcmp.eq.s32.totalorder %v7157_v15, %v10867_v10 }
 0x345   :  { %10857 = vst [vmem:[#allocation27_spill] sm:$0xff] %v7626_v54  ;;  %6324 = vmatpush3.bf16.msra.mxu1 %v1707_v27  ;;  %v7634_v14 = vpop.permute.xlu0 %1332  ;;  %v7641_v54 = vpack.c.bf16 %v5780_v55, %v5779_v57  ;;  %v1641_v57 = vpack.c.bf16 %v5848_v53, %v5847_v33  ;;  %v5852_v55 = vsel %vm1458_vm0, 1.0, %v10856_v4  ;;  %v5792_v53 = vsel %vm982_vm9, 1.0, %v10856_v4 }
 0x346   :  { %6325 = vmatprep.subr.bf16.mxu1 %v1708_v16  ;;  %10862 = vst [vmem:[#allocation31_spill] sm:$0xff] %v7691_v21  ;;  %v5856_v33 = vsel %vm1462_vm3, 1.0, %v10856_v4  ;;  %v7793_v31 = vpack.c.bf16 %v5792_v53, %v5791_v29  ;;  %vm984_vm0 = vcmp.eq.s32.totalorder %v7157_v15, %v7107_v38  ;;  %v2006_v38 = vld [vmem:[%s10715_s3 + $0x40] sm:$0xff]  ;;  %vm987_vm9 = vcmp.eq.s32.totalorder %v7157_v15, %v7109_v39 }
 0x347   :  { %10859 = vst [vmem:[#allocation29_spill] sm:$0xff] %v7641_v54  ;;  %6590 = vset.pattern.permute.xlu1 %v10860_v42  ;;  %2477 = vperm.xlu0 %6588, %v7631_v49   ;;  %v1671_v8 = vadd.bf16 %v1639_v45, %v7641_v54  ;;  %v1673_v60 = vadd.bf16 %v1641_v57, %v7691_v21  ;;  %v5864_v53 = vsel %vm1470_vm7, 1.0, %v10856_v4  ;;  %v8558_v21 = vld [vmem:[%s10715_s3 + $0x150] sm:$0xff]  ;;  %v2025_v54 = vld [vmem:[%s10715_s3 + $0xd8] sm:$0xff] }
 0x348   :  { %2465 = vperm.xlu1 %6590, %v2001_v47   ;;  %v7651_v27 = vpop.permute.xlu1 %1341  ;;  %v5845_v47 = vsel %vm1451_vm6, 1.0, %v10856_v4  ;;  %vm1460_vm6 = vcmp.eq.s32.totalorder %v7157_v15, %v7445_v23  ;;  %vm989_vm3 = vcmp.eq.s32.totalorder %v7157_v15, %v7113_v41  ;;  %vm1471_vm13 = vcmp.eq.s32.totalorder %v7157_v15, %v7634_v14  ;;  %10923 = vst [vmem:[#allocation48_spill] sm:$0xff] %v8558_v21 }
 0x349   :  { %6326 = vmatpush3.bf16.msra.mxu1 %v1708_v16  ;;  %v7661_v46 = vpop.permute.xlu0 %1338  ;;  %v1640_v45 = vpack.c.bf16 %v5846_v0, %v5845_v47  ;;  %v1643_v47 = vpack.c.bf16 %v5852_v55, %v5851_v6  ;;  %v5854_v2 = vsel %vm1460_vm6, 1.0, %v10856_v4  ;;  %v5795_v6 = vsel %vm985_vm1, 1.0, %v10856_v4 }
 0x34a   :  { %v1644_v17 = vpack.c.bf16 %v5854_v2, %v5853_v3  ;;  %vm1467_vm6 = vcmp.eq.s32.totalorder %v7157_v15, %v7579_v63  ;;  %vm1474_vm1 = vcmp.eq.s32.totalorder %v7157_v15, %v7651_v27 }
 0x34b   :  { %6594 = vset.pattern.permute.xlu0 %v10855_v5  ;;  %v1672_v11 = vadd.bf16 %v1640_v45, %v7683_v62  ;;  %v5855_v45 = vsel %vm1461_vm10, 1.0, %v10856_v4 }
 0x34c   :  { %6328 = vmatmul.mubr.bf16.vlgmr.msra.gmra.mrb[24].mxu1 %v1670_v9  ;;  %6591 = vset.pattern.permute.xlu1 %v10855_v5  ;;  %v7678_v51 = vpop.permute.xlu1 %1347  ;;  %v1642_v9 = vpack.c.bf16 %v5850_v58, %v5849_v30  ;;  %v1645_v12 = vpack.c.bf16 %v5856_v33, %v5855_v45  ;;  %v5863_v33 = vsel %vm1469_vm8, 1.0, %v10856_v4 }
 0x34d   :  { %2070 = vperm.xlu0 %6594, %v7558_v50   ;;  %6331 = vmatprep.mubr.bf16.mxu1 %v1671_v8  ;;  %v7681_v26 = vpop.permute.xlu0 %1344 }
 0x34e   :  { %2090 = vperm.xlu1 %6591, %v7599_v52   ;;  %v5788_v52 = vsel %vm978_vm15, 1.0, %v10856_v4  ;;  %v1674_v23 = vadd.bf16 %v1642_v9, %v7728_v19  ;;  %vm983_vm15 = vcmp.eq.s32.totalorder %v7157_v15, %v7101_v34  ;;  %v5857_v34 = vsel %vm1463_vm12, 1.0, %v10856_v4 }
 0x34f   :  { %v7737_v0 = vpack.c.bf16 %v5788_v52, %v5787_v7  ;;  %v1677_v37 = vadd.bf16 %v1645_v12, %v7793_v31  ;;  %v5793_v52 = vsel %vm983_vm15, 1.0, %v10856_v4  ;;  %vm1475_vm7 = vcmp.eq.s32.totalorder %v7157_v15, %v7681_v26  ;;  %v2038_v26 = vld [vmem:[%s10715_s3 + $0x140] sm:$0xff] }
 0x350   :  { %v7699_v50 = vpop.permute.xlu1 %1353 }
 0x351   :  { %2085 = vperm.xlu0 %6594, %v2002_v36   ;;  %v7709_v56 = vpop.permute.xlu0 %1350  ;;  %10864 = vst [vmem:[#allocation33_spill] sm:$0xff] %v7737_v0  ;;  %v1675_v35 = vadd.bf16 %v1643_v47, %v7737_v0  ;;  %v1646_v47 = vpack.c.bf16 %v5858_v48, %v5857_v34  ;;  %v5799_v48 = vsel %vm989_vm3, 1.0, %v10856_v4  ;;  %v5800_v34 = vsel %vm990_vm11, 1.0, %v10856_v4 }
 0x352   :  { %6592 = vset.pattern.permute.xlu1 %v10860_v42  ;;  %vm1478_vm3 = vcmp.eq.s32.totalorder %v7157_v15, %v7699_v50 }
 0x353   :  { %2469 = vperm.xlu1 %6592, %v2002_v36  }
 0x354   :  { %6332 = vmatmul.mubr.bf16.gmra.mrb[28].mxu1 %v1672_v11  ;;  %v7722_v13 = vpop.permute.xlu1 %1359  ;;  %v7791_v11 = vld [vmem:[%s10715_s3 + $0x60] sm:$0xff] }
 0x355   :  { %3892 = vrot.lane.b32.xlu0 %v7212_v24, %s6708_s23  ;;  %6335 = vmatprep.mubr.bf16.mxu1 %v1673_v60  ;;  %v7726_v16 = vpop.permute.xlu0 %1356  ;;  %v5789_v24 = vsel %vm979_vm4, 1.0, %v10856_v4  ;;  %vm986_vm4 = vcmp.eq.s32.totalorder %v7157_v15, %v7111_v40  ;;  %v5859_v60 = vsel %vm1465_vm14, 1.0, %v10856_v4  ;;  %v5794_v40 = vsel %vm984_vm0, 1.0, %v10856_v4 }
 0x356   :  { %v5796_v9 = vsel %vm986_vm4, 1.0, %v10856_v4  ;;  %vm1473_vm4 = vcmp.eq.s32.totalorder %v7157_v15, %v7661_v46 }
 0x357   :  { %6593 = vset.pattern.permute.xlu1 %v10855_v5  ;;  %v7854_v2 = vpack.c.bf16 %v5796_v9, %v5795_v6  ;;  %v7911_v6 = vpack.c.bf16 %v5800_v34, %v5799_v48  ;;  %v10870_v9 = vld [vmem:[#allocation8_spill] sm:$0xff] }
 0x358   :  { %2095 = vperm.xlu1 %6593, %v7631_v49   ;;  %v7747_v28 = vpop.permute.xlu1 %1365  ;;  %v5790_v49 = vsel %vm980_vm5, 1.0, %v10856_v4  ;;  %vm1468_vm5 = vcmp.eq.s32.totalorder %v7157_v15, %v7573_v22  ;;  %v10866_v22 = vld [vmem:[#allocation5_spill] sm:$0xff]  ;;  %vm993_vm15 = vcmp.eq.s32.totalorder %v7157_v15, %v10870_v9  ;;  %v10873_v9 = vld [vmem:[#allocation10_spill] sm:$0xff] }
 0x359   :  { %2110 = vperm.xlu0 %6594, %v7735_v44   ;;  %v7753_v8 = vpop.permute.xlu0 %1362  ;;  %v7786_v57 = vpack.c.bf16 %v5790_v49, %v5789_v24  ;;  %v7844_v24 = vld [vmem:[%s10715_s3 + $0xa0] sm:$0xff]  ;;  %vm988_vm10 = vcmp.eq.s32.totalorder %v7157_v15, %v10866_v22  ;;  %v5862_v39 = vsel %vm1468_vm5, 1.0, %v10856_v4  ;;  %vm995_vm8 = vcmp.eq.s32.totalorder %v7157_v15, %v10873_v9 }
 0x35a   :  { %v5798_v12 = vsel %vm988_vm10, 1.0, %v10856_v4  ;;  %v7931_v22 = vld [vmem:[%s10715_s3 + $0x100] sm:$0xff]  ;;  %vm1477_vm10 = vcmp.eq.s32.totalorder %v7157_v15, %v7709_v56 }
 0x35b   :  { %10865 = vst [vmem:[#allocation34_spill] sm:$0xff] %v7786_v57  ;;  %v1676_v25 = vadd.bf16 %v1644_v17, %v7786_v57  ;;  %v5797_v17 = vsel %vm987_vm9, 1.0, %v10856_v4  ;;  %v2042_v9 = vld [vmem:[%s10715_s3 + $0x160] sm:$0xff] }
 0x35c   :  { %2100 = vperm.xlu1 %6593, %v2005_v32   ;;  %6336 = vmatmul.mubr.bf16.gmra.mrb[32].mxu1 %v1674_v23  ;;  %v7774_v20 = vpop.permute.xlu1 %1371  ;;  %v7846_v23 = vpack.c.bf16 %v5794_v40, %v5793_v52  ;;  %v10868_v52 = vld [vmem:[#allocation27_spill] sm:$0xff]  ;;  %v10869_v40 = vld [vmem:[#allocation6_spill] sm:$0xff] }
 0x35d   :  { %2115 = vperm.xlu0 %6594, %v7768_v59   ;;  %6339 = vmatprep.mubr.bf16.mxu1 %v1675_v35  ;;  %v7784_v36 = vpop.permute.xlu0 %1368  ;;  %v5861_v35 = vsel %vm1467_vm6, 1.0, %v10856_v4  ;;  %vm1472_vm12 = vcmp.eq.s32.totalorder %v7157_v15, %v10868_v52  ;;  %vm991_vm14 = vcmp.eq.s32.totalorder %v7157_v15, %v10869_v40  ;;  %vm1476_vm6 = vcmp.eq.s32.totalorder %v7157_v15, %v7678_v51 }
 0x35e   :  { %v1678_v63 = vadd.bf16 %v1646_v47, %v7846_v23  ;;  %v2009_v47 = vld [vmem:[%s10715_s3 + $0x58] sm:$0xff]  ;;  %v5866_v10 = vsel %vm1472_vm12, 1.0, %v10856_v4 }
 0x360   :  { %6595 = vset.pattern.permute.xlu1 %v10860_v42  ;;  %v7800_v58 = vpop.permute.xlu1 %1377 }
 0x361   :  { %2481 = vperm.xlu1 %6595, %v2005_v32   ;;  %2125 = vperm.xlu0 %6594, %v7791_v11   ;;  %v7807_v30 = vpop.permute.xlu0 %1374  ;;  %v1647_v32 = vpack.c.bf16 %v5860_v18, %v5859_v60  ;;  %v7898_v18 = vld [vmem:[%s10715_s3 + $0xe0] sm:$0xff]  ;;  %v1649_v60 = vpack.c.bf16 %v5864_v53, %v5863_v33  ;;  %v5868_v53 = vsel %vm1474_vm1, 1.0, %v10856_v4  ;;  %v5867_v33 = vsel %vm1473_vm4, 1.0, %v10856_v4 }
 0x362   :  { %v1651_v52 = vpack.c.bf16 %v5868_v53, %v5867_v33  ;;  %v5872_v53 = vsel %vm1478_vm3, 1.0, %v10856_v4  ;;  %v5871_v33 = vsel %vm1477_vm10, 1.0, %v10856_v4  ;;  %vm1485_vm3 = vcmp.eq.s32.totalorder %v7157_v15, %v7807_v30  ;;  %v10889_v30 = vld [vmem:[#allocation23_spill] sm:$0xff] }
 0x363   :  { %v1679_v29 = vadd.bf16 %v1647_v32, %v7854_v2  ;;  %v10871_v32 = vld [vmem:[#allocation9_spill] sm:$0xff]  ;;  %v1681_v27 = vadd.bf16 %v1649_v60, %v7911_v6 }
 0x364   :  { %6340 = vmatmul.mubr.bf16.gmra.mrb[36].mxu1 %v1676_v25  ;;  %v7830_v7 = vpop.permute.xlu1 %1383  ;;  %vm992_vm0 = vcmp.eq.s32.totalorder %v7157_v15, %v10871_v32 }
 0x365   :  { %6596 = vset.pattern.permute.xlu1 %v10855_v5  ;;  %2145 = vperm.xlu0 %6594, %v7817_v1   ;;  %v7837_v55 = vpop.permute.xlu0 %1380 }
 0x366   :  { %6343 = vmatprep.mubr.bf16.mxu1 %v1677_v37  ;;  %2105 = vperm.xlu1 %6596, %v2006_v38   ;;  %v7901_v37 = vpack.c.bf16 %v5798_v12, %v5797_v17  ;;  %v5803_v12 = vsel %vm993_vm15, 1.0, %v10856_v4  ;;  %vm1482_vm15 = vcmp.eq.s32.totalorder %v7157_v15, %v7747_v28  ;;  %v2046_v28 = vld [vmem:[%s10715_s3 + $0x180] sm:$0xff] }
 0x368   :  { %v7852_v49 = vpop.permute.xlu1 %1386 }
 0x369   :  { %2165 = vperm.xlu0 %6594, %v7844_v24   ;;  %v7861_v3 = vpop.permute.xlu0 %909 }
 0x36a   :  { %6597 = vset.pattern.permute.xlu1 %v10860_v42 }
 0x36b   :  { %2485 = vperm.xlu1 %6597, %v2006_v38   ;;  %v1648_v38 = vpack.c.bf16 %v5862_v39, %v5861_v35  ;;  %v5865_v39 = vsel %vm1471_vm13, 1.0, %v10856_v4  ;;  %v5801_v35 = vsel %vm991_vm14, 1.0, %v10856_v4  ;;  %vm1480_vm13 = vcmp.eq.s32.totalorder %v7157_v15, %v7722_v13 }
 0x36c   :  { %6344 = vmatmul.mubr.bf16.gmra.mrb[40].mxu1 %v1678_v63  ;;  %v7883_v45 = vpop.permute.xlu1 %912  ;;  %v10872_v63 = vld [vmem:[#allocation11_spill] sm:$0xff]  ;;  %v1650_v34 = vpack.c.bf16 %v5866_v10, %v5865_v39  ;;  %v5869_v10 = vsel %vm1475_vm7, 1.0, %v10856_v4  ;;  %v10876_v39 = vld [vmem:[#allocation12_spill] sm:$0xff]  ;;  %vm1479_vm14 = vcmp.eq.s32.totalorder %v7157_v15, %v7726_v16  ;;  %vm1484_vm7 = vcmp.eq.s32.totalorder %v7157_v15, %v7774_v20 }
 0x36d   :  { %2185 = vperm.xlu0 %6594, %v7874_v43   ;;  %6347 = vmatprep.mubr.bf16.mxu1 %v1679_v29  ;;  %v7888_v25 = vpop.permute.xlu0 %1389  ;;  %v1680_v14 = vadd.bf16 %v1648_v38, %v7901_v37  ;;  %vm994_vm5 = vcmp.eq.s32.totalorder %v7157_v15, %v10872_v63  ;;  %v5802_v29 = vsel %vm992_vm0, 1.0, %v10856_v4  ;;  %v7962_v38 = vld [vmem:[%s10715_s3 + $0x120] sm:$0xff]  ;;  %vm997_vm11 = vcmp.eq.s32.totalorder %v7157_v15, %v10876_v39  ;;  %v2013_v20 = vld [vmem:[%s10715_s3 + $0x78] sm:$0xff] }
 0x36e   :  { %v5804_v48 = vsel %vm994_vm5, 1.0, %v10856_v4  ;;  %v7964_v60 = vpack.c.bf16 %v5802_v29, %v5801_v35  ;;  %v10875_v63 = vld [vmem:[#allocation13_spill] sm:$0xff]  ;;  %v5805_v35 = vsel %vm995_vm8, 1.0, %v10856_v4  ;;  %vm1481_vm0 = vcmp.eq.s32.totalorder %v7157_v15, %v7753_v8  ;;  %v10882_v8 = vld [vmem:[#allocation16_spill] sm:$0xff] }
 0x36f   :  { %2489 = vperm.xlu1 %6597, %v7735_v44   ;;  %v7975_v32 = vpack.c.bf16 %v5804_v48, %v5803_v12  ;;  %vm996_vm9 = vcmp.eq.s32.totalorder %v7157_v15, %v10875_v63  ;;  %v6691_v12 = vld [vmem:[%s10711_s5 + $0x14] ss:$8 sps:$4 sm:$0xff]   ;;  %v5807_v63 = vsel %vm997_vm11, 1.0, %v10856_v4  ;;  %vm1001_vm5 = vcmp.eq.s32.totalorder %v7157_v15, %v10882_v8 }
 0x370   :  { %v7907_v41 = vpop.permute.xlu1 %1392  ;;  %v1682_v51 = vadd.bf16 %v1650_v34, %v7964_v60  ;;  %v5806_v29 = vsel %vm996_vm9, 1.0, %v10856_v4  ;;  %vm1483_vm8 = vcmp.eq.s32.totalorder %v7157_v15, %v7784_v36  ;;  %vm1486_vm9 = vcmp.eq.s32.totalorder %v7157_v15, %v7800_v58  ;;  %v2054_v58 = vld [vmem:[%s10715_s3 + $0x1c0] sm:$0xff] }
 0x371   :  { %2205 = vperm.xlu0 %6594, %v7898_v18   ;;  %v7916_v44 = vpop.permute.xlu0 %915  ;;  %10874 = vst [vmem:[#allocation5_spill] sm:$0xff] %v7975_v32  ;;  %v1683_v56 = vadd.bf16 %v1651_v52, %v7975_v32  ;;  %v8016_v52 = vld [vmem:[%s10715_s3 + $0x68] sm:$0xff] }
 0x373   :  { %6598 = vset.pattern.permute.xlu1 %v10855_v5 }
 0x374   :  { %2120 = vperm.xlu1 %6598, %v2009_v47   ;;  %6348 = vmatmul.mubr.bf16.gmra.mrb[44].mxu1 %v1680_v14  ;;  %v7939_v46 = vpop.permute.xlu1 %918 }
 0x375   :  { %2225 = vperm.xlu0 %6594, %v7931_v22   ;;  %6351 = vmatprep.mubr.bf16.mxu1 %v1681_v27  ;;  %v7949_v17 = vpop.permute.xlu0 %1395  ;;  %v10877_v27 = vld [vmem:[#allocation15_spill] sm:$0xff] }
 0x376   :  { %vm998_vm12 = vcmp.eq.s32.totalorder %v7157_v15, %v10877_v27  ;;  %v10879_v27 = vld [vmem:[#allocation14_spill] sm:$0xff] }
 0x377   :  { %vm999_vm1 = vcmp.eq.s32.totalorder %v7157_v15, %v10879_v27 }
 0x378   :  { %6599 = vset.pattern.permute.xlu1 %v10860_v42  ;;  %v7971_v40 = vpop.permute.xlu1 %1398 }
 0x379   :  { %2497 = vperm.xlu1 %6599, %v2009_v47   ;;  %2245 = vperm.xlu0 %6594, %v7962_v38   ;;  %v7978_v14 = vpop.permute.xlu0 %921  ;;  %v5870_v47 = vsel %vm1476_vm6, 1.0, %v10856_v4 }
 0x37a   :  { %v1652_v34 = vpack.c.bf16 %v5870_v47, %v5869_v10  ;;  %v1653_v47 = vpack.c.bf16 %v5872_v53, %v5871_v33  ;;  %v5873_v53 = vsel %vm1479_vm14, 1.0, %v10856_v4  ;;  %v5876_v33 = vsel %vm1482_vm15, 1.0, %v10856_v4 }
 0x37b   :  { %vm1488_vm14 = vcmp.eq.s32.totalorder %v7157_v15, %v7830_v7  ;;  %vm1487_vm15 = vcmp.eq.s32.totalorder %v7157_v15, %v7837_v55  ;;  %v10893_v7 = vld [vmem:[#allocation25_spill] sm:$0xff] }
 0x37c   :  { %6352 = vmatmul.mubr.bf16.gmra.mrb[48].mxu1 %v1682_v51  ;;  %v7996_v50 = vpop.permute.xlu1 %924  ;;  %v5808_v51 = vsel %vm998_vm12, 1.0, %v10856_v4 }
 0x37d   :  { %3894 = vrot.lane.b32.xlu1 %v6691_v12, %s6708_s23  ;;  %2265 = vperm.xlu0 %6594, %v2038_v26   ;;  %v8010_v48 = vpop.permute.xlu0 %1401  ;;  %v8029_v26 = vpack.c.bf16 %v5806_v29, %v5805_v35  ;;  %v8046_v13 = vpack.c.bf16 %v5808_v51, %v5807_v63  ;;  %v10883_v35 = vld [vmem:[#allocation19_spill] sm:$0xff]  ;;  %v5874_v29 = vsel %vm1480_vm13, 1.0, %v10856_v4  ;;  %v5875_v12 = vsel %vm1481_vm0, 1.0, %v10856_v4 }
 0x37e   :  { %6355 = vmatprep.mubr.bf16.mxu1 %v1683_v56  ;;  %6600 = vset.pattern.permute.xlu1 %v10855_v5  ;;  %v10881_v56 = vld [vmem:[#allocation17_spill] sm:$0xff]  ;;  %vm1002_vm6 = vcmp.eq.s32.totalorder %v7157_v15, %v10883_v35  ;;  %v5809_v63 = vsel %vm999_vm1, 1.0, %v10856_v4  ;;  %v1654_v35 = vpack.c.bf16 %v5874_v29, %v5873_v53  ;;  %v8087_v29 = vld [vmem:[%s10715_s3 + $0x70] sm:$0xff]  ;;  %vm1006_vm13 = vcmp.eq.s32.totalorder %v7157_v15, %v10889_v30 }
 0x37f   :  { %10878 = vst [vmem:[#allocation7_spill] sm:$0xff] %v8029_v26  ;;  %10880 = vst [vmem:[#allocation27_spill] sm:$0xff] %v8046_v13  ;;  %vm1000_vm4 = vcmp.eq.s32.totalorder %v7157_v15, %v10881_v56  ;;  %v1684_v16 = vadd.bf16 %v1652_v34, %v8029_v26  ;;  %v5811_v56 = vsel %vm1001_vm5, 1.0, %v10856_v4  ;;  %v5812_v8 = vsel %vm1002_vm6, 1.0, %v10856_v4 }
 0x380   :  { %v8035_v10 = vpop.permute.xlu1 %1404  ;;  %v5810_v51 = vsel %vm1000_vm4, 1.0, %v10856_v4  ;;  %vm1490_vm0 = vcmp.eq.s32.totalorder %v7157_v15, %v7888_v25  ;;  %vm1008_vm4 = vcmp.eq.s32.totalorder %v7157_v15, %v10893_v7  ;;  %vm1489_vm5 = vcmp.eq.s32.totalorder %v7157_v15, %v7852_v49 }
 0x381   :  { %2130 = vperm.xlu1 %6600, %v8016_v52   ;;  %2285 = vperm.xlu0 %6594, %v2042_v9   ;;  %v8042_v39 = vpop.permute.xlu0 %927  ;;  %v1685_v9 = vadd.bf16 %v1653_v47, %v8046_v13  ;;  %v2050_v47 = vld [vmem:[%s10715_s3 + $0x1a0] sm:$0xff]  ;;  %v8076_v13 = vpack.c.bf16 %v5810_v51, %v5809_v63  ;;  %v5878_v51 = vsel %vm1484_vm7, 1.0, %v10856_v4  ;;  %vm1010_vm6 = vcmp.eq.s32.totalorder %v7157_v15, %v7861_v3 }
 0x382   :  { %v5818_v49 = vsel %vm1008_vm4, 1.0, %v10856_v4  ;;  %vm1016_vm4 = vcmp.eq.s32.totalorder %v7157_v15, %v8042_v39 }
 0x383   :  { %10884 = vst [vmem:[#allocation6_spill] sm:$0xff] %v8076_v13  ;;  %v1686_v63 = vadd.bf16 %v1654_v35, %v8076_v13  ;;  %v5880_v35 = vsel %vm1486_vm9, 1.0, %v10856_v4  ;;  %vm1494_vm9 = vcmp.eq.s32.totalorder %v7157_v15, %v8010_v48 }
 0x384   :  { %6356 = vmatmul.mubr.bf16.gmra.mrb[52].mxu1 %v1684_v16  ;;  %v8062_v34 = vpop.permute.xlu1 %930  ;;  %v1655_v16 = vpack.c.bf16 %v5876_v33, %v5875_v12  ;;  %v10886_v33 = vld [vmem:[#allocation18_spill] sm:$0xff]  ;;  %v10887_v12 = vld [vmem:[#allocation20_spill] sm:$0xff] }
 0x385   :  { %6601 = vset.pattern.permute.xlu1 %v10860_v42  ;;  %2305 = vperm.xlu0 %6594, %v2046_v28   ;;  %v8068_v27 = vpop.permute.xlu0 %1407  ;;  %vm1003_vm10 = vcmp.eq.s32.totalorder %v7157_v15, %v10886_v33  ;;  %vm1005_vm11 = vcmp.eq.s32.totalorder %v7157_v15, %v10887_v12  ;;  %v2058_v33 = vld [vmem:[%s10715_s3 + $0x1e0] sm:$0xff] }
 0x386   :  { %6359 = vmatprep.mubr.bf16.mxu1 %v1685_v9  ;;  %2501 = vperm.xlu1 %6601, %v7791_v11   ;;  %v8089_v11 = vpack.c.bf16 %v5812_v8, %v5811_v56  ;;  %v10888_v9 = vld [vmem:[#allocation21_spill] sm:$0xff]  ;;  %v5877_v56 = vsel %vm1483_vm8, 1.0, %v10856_v4  ;;  %v5813_v36 = vsel %vm1003_vm10, 1.0, %v10856_v4  ;;  %vm1492_vm8 = vcmp.eq.s32.totalorder %v7157_v15, %v7949_v17 }
 0x387   :  { %vm1004_vm12 = vcmp.eq.s32.totalorder %v7157_v15, %v10888_v9  ;;  %v1656_v57 = vpack.c.bf16 %v5878_v51, %v5877_v56  ;;  %v10892_v51 = vld [vmem:[#allocation22_spill] sm:$0xff]  ;;  %v5881_v56 = vsel %vm1487_vm15, 1.0, %v10856_v4  ;;  %vm1012_vm10 = vcmp.eq.s32.totalorder %v7157_v15, %v7916_v44 }
 0x388   :  { %v8082_v28 = vpop.permute.xlu1 %1410  ;;  %10885 = vst [vmem:[#allocation8_spill] sm:$0xff] %v8089_v11  ;;  %v1687_v8 = vadd.bf16 %v1655_v16, %v8089_v11  ;;  %v5814_v13 = vsel %vm1004_vm12, 1.0, %v10856_v4  ;;  %v5816_v11 = vsel %vm1006_vm13, 1.0, %v10856_v4  ;;  %vm1007_vm1 = vcmp.eq.s32.totalorder %v7157_v15, %v10892_v51 }
 0x389   :  { %2325 = vperm.xlu0 %6594, %v2050_v47   ;;  %v8095_v53 = vpop.permute.xlu0 %933  ;;  %v5879_v47 = vsel %vm1485_vm3, 1.0, %v10856_v4  ;;  %vm1491_vm3 = vcmp.eq.s32.totalorder %v7157_v15, %v7907_v41  ;;  %vm1014_vm12 = vcmp.eq.s32.totalorder %v7157_v15, %v7978_v14  ;;  %vm1011_vm13 = vcmp.eq.s32.totalorder %v7157_v15, %v7883_v45 }
 0x38a   :  { %6602 = vset.pattern.permute.xlu1 %v10855_v5  ;;  %v1657_v0 = vpack.c.bf16 %v5880_v35, %v5879_v47  ;;  %v10894_v47 = vld [vmem:[#allocation24_spill] sm:$0xff]  ;;  %v5888_v41 = vsel %vm1494_vm9, 1.0, %v10856_v4  ;;  %vm1496_vm15 = vcmp.eq.s32.totalorder %v7157_v15, %v8068_v27 }
 0x38b   :  { %2135 = vperm.xlu1 %6602, %v8087_v29   ;;  %vm1009_vm7 = vcmp.eq.s32.totalorder %v7157_v15, %v10894_v47 }
 0x38c   :  { %6360 = vmatmul.mubr.bf16.gmra.mrb[56].mxu1 %v1686_v63  ;;  %v8122_v9 = vpop.permute.xlu1 %936  ;;  %v5815_v63 = vsel %vm1005_vm11, 1.0, %v10856_v4  ;;  %v5819_v51 = vsel %vm1009_vm7, 1.0, %v10856_v4  ;;  %vm1493_vm11 = vcmp.eq.s32.totalorder %v7157_v15, %v7971_v40  ;;  %vm1015_vm7 = vcmp.eq.s32.totalorder %v7157_v15, %v7996_v50 }
 0x38d   :  { %2345 = vperm.xlu0 %6594, %v2054_v58   ;;  %6363 = vmatprep.mubr.bf16.mxu1 %v1687_v8  ;;  %v8132_v16 = vpop.permute.xlu0 %1413  ;;  %v8147_v58 = vpack.c.bf16 %v5814_v13, %v5813_v36  ;;  %v8153_v8 = vpack.c.bf16 %v5816_v11, %v5815_v63  ;;  %v5882_v13 = vsel %vm1488_vm14, 1.0, %v10856_v4  ;;  %v5884_v11 = vsel %vm1490_vm0, 1.0, %v10856_v4  ;;  %v2015_v63 = vld [vmem:[%s10715_s3 + $0x88] sm:$0xff] }
 0x38e   :  { %v1658_v36 = vpack.c.bf16 %v5882_v13, %v5881_v56  ;;  %v5886_v56 = vsel %vm1492_vm8, 1.0, %v10856_v4  ;;  %vm1013_vm14 = vcmp.eq.s32.totalorder %v7157_v15, %v7939_v46  ;;  %v5887_v45 = vsel %vm1493_vm11, 1.0, %v10856_v4 }
 0x38f   :  { %2140 = vperm.xlu1 %6602, %v2013_v20   ;;  %10890 = vst [vmem:[#allocation9_spill] sm:$0xff] %v8147_v58  ;;  %10891 = vst [vmem:[#allocation11_spill] sm:$0xff] %v8153_v8  ;;  %v1688_v55 = vadd.bf16 %v1656_v57, %v8147_v58  ;;  %v1689_v25 = vadd.bf16 %v1657_v0, %v8153_v8  ;;  %v5817_v57 = vsel %vm1007_vm1, 1.0, %v10856_v4  ;;  %v5883_v0 = vsel %vm1489_vm5, 1.0, %v10856_v4 }
 0x390   :  { %v8151_v12 = vpop.permute.xlu1 %1416  ;;  %v8189_v7 = vpack.c.bf16 %v5818_v49, %v5817_v57  ;;  %v5821_v57 = vsel %vm1011_vm13, 1.0, %v10856_v4  ;;  %v1661_v47 = vpack.c.bf16 %v5888_v41, %v5887_v45  ;;  %v5823_v46 = vsel %vm1013_vm14, 1.0, %v10856_v4 }
 0x391   :  { %2365 = vperm.xlu0 %6594, %v2058_v33   ;;  %v8157_v30 = vpop.permute.xlu0 %939  ;;  %v1659_v33 = vpack.c.bf16 %v5884_v11, %v5883_v0  ;;  %v5824_v11 = vsel %vm1014_vm12, 1.0, %v10856_v4  ;;  %v2016_v0 = vld [vmem:[%s10715_s3 + $0x90] sm:$0xff]  ;;  %vm1498_vm0 = vcmp.eq.s32.totalorder %v7157_v15, %v8132_v16  ;;  %vm1495_vm1 = vcmp.eq.s32.totalorder %v7157_v15, %v8035_v10 }
 0x392   :  { %10895 = vst [vmem:[#allocation10_spill] sm:$0xff] %v8189_v7  ;;  %v1690_v17 = vadd.bf16 %v1658_v36, %v8189_v7  ;;  %vm1497_vm5 = vcmp.eq.s32.totalorder %v7157_v15, %v8082_v28  ;;  %v5826_v50 = vsel %vm1016_vm4, 1.0, %v10856_v4  ;;  %vm1017_vm8 = vcmp.eq.s32.totalorder %v7157_v15, %v8062_v34  ;;  %v2019_v34 = vld [vmem:[%s10715_s3 + $0xa8] sm:$0xff] }
 0x393   :  { %6603 = vset.pattern.permute.xlu1 %v10860_v42  ;;  %v5891_v45 = vsel %vm1497_vm5, 1.0, %v10856_v4  ;;  %v5825_v39 = vsel %vm1015_vm7, 1.0, %v10856_v4  ;;  %vm1020_vm11 = vcmp.eq.s32.totalorder %v7157_v15, %v8157_v30  ;;  %vm1019_vm14 = vcmp.eq.s32.totalorder %v7157_v15, %v8122_v9  ;;  %v8542_v7 = vld [vmem:[%s10715_s3 + $0x148] sm:$0xff] }
 0x394   :  { %2513 = vperm.xlu1 %6603, %v2013_v20   ;;  %6364 = vmatmul.mubr.bf16.gmra.mrb[60].mxu1 %v1688_v55  ;;  %v8173_v35 = vpop.permute.xlu1 %942  ;;  %v5820_v20 = vsel %vm1010_vm6, 1.0, %v10856_v4  ;;  %vm1018_vm6 = vcmp.eq.s32.totalorder %v7157_v15, %v8095_v53  ;;  %v5829_v30 = vsel %vm1019_vm14, 1.0, %v10856_v4 }
 0x395   :  { %6648 = vset.pattern.permute.xlu0 %v10860_v42  ;;  %6367 = vmatprep.mubr.bf16.mxu1 %v1689_v25  ;;  %v8180_v3 = vpop.permute.xlu0 %1419  ;;  %v8196_v55 = vpack.c.bf16 %v5820_v20, %v5819_v51  ;;  %v5822_v25 = vsel %vm1012_vm10, 1.0, %v10856_v4  ;;  %v8241_v20 = vpop.f32.mrb[16].mxu0  ;;  %v5828_v10 = vsel %vm1018_vm6, 1.0, %v10856_v4  ;;  %vm1499_vm10 = vcmp.eq.s32.totalorder %v7157_v15, %v8151_v12 }
 0x396   :  { %2493 = vperm.xlu0 %6648, %v7768_v59   ;;  %v8231_v49 = vpack.c.bf16 %v5822_v25, %v5821_v57  ;;  %v5889_v25 = vsel %vm1495_vm1, 1.0, %v10856_v4  ;;  %v8302_v57 = vpack.c.bf16 %v5826_v50, %v5825_v39  ;;  %vm1500_vm9 = vcmp.eq.s32.totalorder %v7157_v15, %v8180_v3 }
 0x397   :  { %10896 = vst [vmem:[#allocation13_spill] sm:$0xff] %v8196_v55  ;;  %v1691_v48 = vadd.bf16 %v1659_v33, %v8196_v55  ;;  %v8249_v33 = vpop.f32.mrb[17].mxu0  ;;  %v5830_v39 = vsel %vm1020_vm11, 1.0, %v10856_v4 }
 0x398   :  { %6604 = vset.pattern.permute.xlu1 %v10855_v5  ;;  %v8194_v13 = vpop.permute.xlu1 %1422  ;;  %10897 = vst [vmem:[#allocation12_spill] sm:$0xff] %v8231_v49  ;;  %v8257_v51 = vpop.f32.mrb[18].mxu0  ;;  %10899 = vst [vmem:[#allocation14_spill] sm:$0xff] %v8302_v57 }
 0x399   :  { %2150 = vperm.xlu1 %6604, %v2015_v63   ;;  %v8200_v59 = vpop.permute.xlu0 %945  ;;  %vm1501_vm12 = vcmp.eq.s32.totalorder %v7157_v15, %v8194_v13 }
 0x39a   :  { %2505 = vperm.xlu0 %6648, %v8016_v52   ;;  %v5885_v52 = vsel %vm1491_vm3, 1.0, %v10856_v4  ;;  %vm1022_vm13 = vcmp.eq.s32.totalorder %v7157_v15, %v8200_v59 }
 0x39b   :  { %v1660_v14 = vpack.c.bf16 %v5886_v56, %v5885_v52  ;;  %v2017_v52 = vld [vmem:[%s10715_s3 + $0x98] sm:$0xff]  ;;  %v5832_v12 = vsel %vm1022_vm13, 1.0, %v10856_v4 }
 0x39c   :  { %6368 = vmatmul.mubr.bf16.gmra.mrb[64].mxu1 %v1690_v17  ;;  %v8217_v44 = vpop.permute.xlu1 %948  ;;  %v5890_v17 = vsel %vm1496_vm15, 1.0, %v10856_v4  ;;  %vm1021_vm15 = vcmp.eq.s32.totalorder %v7157_v15, %v8173_v35  ;;  %v8371_v35 = vld [vmem:[%s10715_s3 + $0xc8] sm:$0xff] }
 0x39d   :  { %6605 = vset.pattern.permute.xlu1 %v10860_v42  ;;  %6371 = vmatprep.mubr.bf16.mxu1 %v1691_v48  ;;  %v8224_v40 = vpop.permute.xlu0 %1425  ;;  %v1692_v27 = vadd.bf16 %v1660_v14, %v8231_v49  ;;  %v8265_v48 = vpop.f32.mrb[19].mxu0  ;;  %v1662_v14 = vpack.c.bf16 %v5890_v17, %v5889_v25  ;;  %v8336_v25 = vld [vmem:[%s10715_s3 + $0xb0] sm:$0xff]  ;;  %v5831_v13 = vsel %vm1021_vm15, 1.0, %v10856_v4 }
 0x39e   :  { %2517 = vperm.xlu1 %6605, %v7817_v1   ;;  %2509 = vperm.xlu0 %6648, %v8087_v29   ;;  %v8243_v1 = vpack.c.bf16 %v5824_v11, %v5823_v46  ;;  %v8309_v53 = vpop.f32.mrb[20].mxu0  ;;  %vm1502_vm3 = vcmp.eq.s32.totalorder %v7157_v15, %v8224_v40 }
 0x39f   :  { %v1694_v3 = vadd.bf16 %v1662_v14, %v8302_v57  ;;  %v5896_v14 = vsel %vm1502_vm3, 1.0, %v10856_v4 }
 0x3a0   :  { %v8236_v36 = vpop.permute.xlu1 %1428  ;;  %10898 = vst [vmem:[#allocation15_spill] sm:$0xff] %v8243_v1  ;;  %v1693_v56 = vadd.bf16 %v1661_v47, %v8243_v1  ;;  %v5827_v47 = vsel %vm1017_vm8, 1.0, %v10856_v4  ;;  %vm1023_vm8 = vcmp.eq.s32.totalorder %v7157_v15, %v8217_v44 }
 0x3a1   :  { %v8247_v29 = vpop.permute.xlu0 %951  ;;  %v8311_v46 = vpack.c.bf16 %v5828_v10, %v5827_v47  ;;  %v5893_v10 = vsel %vm1499_vm10, 1.0, %v10856_v4  ;;  %v8373_v47 = vpack.c.bf16 %v5830_v39, %v5829_v30  ;;  %vm1503_vm4 = vcmp.eq.s32.totalorder %v7157_v15, %v8236_v36  ;;  %v8403_v36 = vld [vmem:[%s10715_s3 + $0xd0] sm:$0xff] }
 0x3a2   :  { %6606 = vset.pattern.permute.xlu1 %v10855_v5  ;;  %2521 = vperm.xlu0 %6648, %v2015_v63   ;;  %v5892_v63 = vsel %vm1498_vm0, 1.0, %v10856_v4  ;;  %vm1024_vm5 = vcmp.eq.s32.totalorder %v7157_v15, %v8247_v29 }
 0x3a3   :  { %2155 = vperm.xlu1 %6606, %v2016_v0   ;;  %v1663_v11 = vpack.c.bf16 %v5892_v63, %v5891_v45  ;;  %10900 = vst [vmem:[#allocation17_spill] sm:$0xff] %v8311_v46  ;;  %10901 = vst [vmem:[#allocation16_spill] sm:$0xff] %v8373_v47  ;;  %v5834_v30 = vsel %vm1024_vm5, 1.0, %v10856_v4 }
 0x3a4   :  { %6372 = vmatmul.mubr.bf16.gmra.mrb[68].mxu1 %v1692_v27  ;;  %v8273_v41 = vpop.permute.xlu1 %954  ;;  %v8317_v27 = vpop.f32.mrb[21].mxu0 }
 0x3a5   :  { %6375 = vmatprep.mubr.bf16.mxu1 %v1693_v56  ;;  %v8288_v16 = vpop.permute.xlu0 %1431  ;;  %v8324_v17 = vpop.f32.mrb[22].mxu0  ;;  %v5894_v56 = vsel %vm1500_vm9, 1.0, %v10856_v4  ;;  %v1695_v63 = vadd.bf16 %v1663_v11, %v8311_v46  ;;  %vm1025_vm9 = vcmp.eq.s32.totalorder %v7157_v15, %v8273_v41  ;;  %v5833_v41 = vsel %vm1023_vm8, 1.0, %v10856_v4  ;;  %v8514_v46 = vld [vmem:[%s10715_s3 + $0x128] sm:$0xff] }
 0x3a6   :  { %2525 = vperm.xlu0 %6648, %v2016_v0   ;;  %v8338_v50 = vpop.f32.mrb[23].mxu0  ;;  %v1664_v40 = vpack.c.bf16 %v5894_v56, %v5893_v10  ;;  %vm1504_vm0 = vcmp.eq.s32.totalorder %v7157_v15, %v8288_v16  ;;  %v8381_v56 = vpack.c.bf16 %v5832_v12, %v5831_v13  ;;  %v5897_v12 = vsel %vm1503_vm4, 1.0, %v10856_v4 }
 0x3a7   :  { %2160 = vperm.xlu1 %6606, %v2017_v52   ;;  %v5898_v39 = vsel %vm1504_vm0, 1.0, %v10856_v4 }
 0x3a8   :  { %v8307_v28 = vpop.permute.xlu1 %1434  ;;  %10902 = vst [vmem:[#allocation19_spill] sm:$0xff] %v8381_v56  ;;  %v1696_v16 = vadd.bf16 %v1664_v40, %v8373_v47  ;;  %v1666_v13 = vpack.c.bf16 %v5898_v39, %v5897_v12  ;;  %v8433_v39 = vld [vmem:[%s10715_s3 + $0xe8] sm:$0xff] }
 0x3a9   :  { %v8315_v0 = vpop.permute.xlu0 %957  ;;  %vm1505_vm6 = vcmp.eq.s32.totalorder %v7157_v15, %v8307_v28  ;;  %v5835_v28 = vsel %vm1025_vm9, 1.0, %v10856_v4 }
 0x3aa   :  { %2537 = vperm.xlu0 %6648, %v2019_v34   ;;  %vm1026_vm7 = vcmp.eq.s32.totalorder %v7157_v15, %v8315_v0  ;;  %v5899_v44 = vsel %vm1505_vm6, 1.0, %v10856_v4 }
 0x3ab   :  { %6607 = vset.pattern.permute.xlu1 %v10860_v42 }
 0x3ac   :  { %2529 = vperm.xlu1 %6607, %v2017_v52   ;;  %6376 = vmatmul.mubr.bf16.gmra.mrb[72].mxu1 %v1694_v3  ;;  %v8346_v45 = vpop.permute.xlu1 %960  ;;  %v5895_v52 = vsel %vm1501_vm12, 1.0, %v10856_v4  ;;  %v8379_v3 = vpop.f32.mrb[24].mxu0 }
 0x3ad   :  { %6379 = vmatprep.mubr.bf16.mxu1 %v1695_v63  ;;  %v1438_v9 = vpop.permute.xlu0 %1437  ;;  %v1665_v11 = vpack.c.bf16 %v5896_v14, %v5895_v52  ;;  %v8384_v14 = vpop.f32.mrb[25].mxu0  ;;  %vm1027_vm12 = vcmp.eq.s32.totalorder %v7157_v15, %v8346_v45 }
 0x3ae   :  { %2541 = vperm.xlu0 %6648, %v8336_v25   ;;  %vm1506_vm1 = vcmp.eq.s32.totalorder %v7157_v15, %v1438_v9  ;;  %10903 = vst [vmem:[#allocation18_spill] sm:$0xff] %v8384_v14  ;;  %v8392_v10 = vpop.f32.mrb[26].mxu0  ;;  %v5836_v9 = vsel %vm1026_vm7, 1.0, %v10856_v4 }
 0x3af   :  { %10904 = vst [vmem:[#allocation20_spill] sm:$0xff] %v8392_v10  ;;  %v8405_v29 = vpop.f32.mrb[27].mxu0  ;;  %v5900_v40 = vsel %vm1506_vm1, 1.0, %v10856_v4  ;;  %v8441_v12 = vpack.c.bf16 %v5836_v9, %v5835_v28 }
 0x3b0   :  { %6608 = vset.pattern.permute.xlu1 %v10855_v5  ;;  %v1441_v59 = vpop.permute.xlu1 %1440  ;;  %10905 = vst [vmem:[#allocation21_spill] sm:$0xff] %v8405_v29  ;;  %v8439_v0 = vpop.f32.mrb[28].mxu0 }
 0x3b1   :  { %2170 = vperm.xlu1 %6608, %v2019_v34   ;;  %v964_v63 = vpop.permute.xlu0 %963  ;;  %v1697_v34 = vadd.bf16 %v1665_v11, %v8381_v56  ;;  %10907 = vst [vmem:[#allocation22_spill] sm:$0xff] %v8439_v0  ;;  %10908 = vst [vmem:[#allocation25_spill] sm:$0xff] %v8441_v12  ;;  %v8445_v56 = vpop.f32.mrb[29].mxu0  ;;  %vm1507_vm10 = vcmp.eq.s32.totalorder %v7157_v15, %v1441_v59  ;;  %v8462_v59 = vld [vmem:[%s10715_s3 + $0xf0] sm:$0xff] }
 0x3b2   :  { %2553 = vperm.xlu0 %6648, %v8371_v35   ;;  %10909 = vst [vmem:[#allocation24_spill] sm:$0xff] %v8445_v56  ;;  %vm1028_vm11 = vcmp.eq.s32.totalorder %v7157_v15, %v964_v63 }
 0x3b4   :  { %6380 = vmatmul.mubr.bf16.gmra.mrb[76].mxu1 %v1696_v16  ;;  %v8412_v52 = vpop.permute.xlu1 %2065  ;;  %v1667_v16 = vpack.c.bf16 %v5900_v40, %v5899_v44 }
 0x3b5   :  { %6609 = vset.pattern.permute.xlu1 %v10860_v42  ;;  %6383 = vmatprep.mubr.bf16.mxu1 %v1697_v34  ;;  %v1444_v11 = vpop.permute.xlu0 %1443  ;;  %v8435_v34 = vpack.c.bf16 %v5834_v30, %v5833_v41  ;;  %v5901_v41 = vsel %vm1507_vm10, 1.0, %v10856_v4 }
 0x3b6   :  { %2533 = vperm.xlu1 %6609, %v7844_v24   ;;  %2557 = vperm.xlu0 %6648, %v8403_v36   ;;  %vm1508_vm3 = vcmp.eq.s32.totalorder %v7157_v15, %v1444_v11  ;;  %v8454_v11 = vpop.f32.mrb[30].mxu0  ;;  %v1699_v9 = vadd.bf16 %v1667_v16, %v8441_v12  ;;  %v8482_v15 = vld [vmem:[%s10715_s3 + $0x108] sm:$0xff] }
 0x3b7   :  { %10906 = vst [vmem:[#allocation23_spill] sm:$0xff] %v8435_v34  ;;  %v1698_v30 = vadd.bf16 %v1666_v13, %v8435_v34  ;;  %10910 = vst [vmem:[#allocation35_spill] sm:$0xff] %v8454_v11  ;;  %v5902_v44 = vsel %vm1508_vm3, 1.0, %v10856_v4  ;;  %v8464_v63 = vpop.f32.mrb[31].mxu0  ;;  %v2021_v13 = vld [vmem:[%s10715_s3 + $0xb8] sm:$0xff]  ;;  %v5837_v34 = vsel %vm1027_vm12, 1.0, %v10856_v4 }
 0x3b8   :  { %10911 = vst [vmem:[#allocation36_spill] sm:$0xff] %v8464_v63  ;;  %v1668_v16 = vpack.c.bf16 %v5902_v44, %v5901_v41 }
 0x3b9   :  { %v8443_v24 = vpop.permute.xlu1 %2453 }
 0x3ba   :  { %6610 = vset.pattern.permute.xlu1 %v10855_v5  ;;  %2569 = vperm.xlu0 %6648, %v8433_v39   ;;  %v8451_v40 = vpop.permute.xlu0 %2457 }
 0x3bb   :  { %2175 = vperm.xlu1 %6610, %v8336_v25   ;;  %v5838_v25 = vsel %vm1028_vm11, 1.0, %v10856_v4  ;;  %v8498_v4 = vld [vmem:[%s10715_s3 + $0x110] sm:$0xff] }
 0x3bc   :  { %6384 = vmatmul.mubr.bf16.gmra.mrb[80].mxu1 %v1698_v30  ;;  %v8484_v45 = vpack.c.bf16 %v5838_v25, %v5837_v34  ;;  %v8486_v30 = vpop.f32.mrb[32].mxu0 }
 0x3bd   :  { %6387 = vmatprep.mubr.bf16.mxu1 %v1699_v9  ;;  %10913 = vst [vmem:[#allocation38_spill] sm:$0xff] %v8486_v30  ;;  %v8500_v34 = vpop.f32.mrb[33].mxu0 }
 0x3be   :  { %2573 = vperm.xlu0 %6648, %v8462_v59   ;;  %v8474_v28 = vpop.permute.xlu1 %2075  ;;  %v8476_v12 = vpop.permute.xlu0 %2461  ;;  %10912 = vst [vmem:[#allocation37_spill] sm:$0xff] %v8484_v45  ;;  %v1700_v9 = vadd.bf16 %v1668_v16, %v8484_v45  ;;  %10914 = vst [vmem:[#allocation39_spill] sm:$0xff] %v8500_v34 }
 0x3bf   :  { %2180 = vperm.xlu1 %6610, %v2021_v13   ;;  %v8502_v25 = vpop.f32.mrb[34].mxu0 }
 0x3c0   :  { %10915 = vst [vmem:[#allocation40_spill] sm:$0xff] %v8502_v25  ;;  %v8507_v16 = vpop.f32.mrb[35].mxu0  ;;  %v8600_v25 = vld [vmem:[%s10715_s3 + $0x188] sm:$0xff] }
 0x3c1   :  { %10916 = vst [vmem:[#allocation41_spill] sm:$0xff] %v8507_v16  ;;  %10932 = vst [vmem:[#allocation57_spill] sm:$0xff] %v8600_v25 }
 0x3c2   :  { %2585 = vperm.xlu0 %6648, %v8482_v15   ;;  %v8489_v44 = vpop.permute.xlu1 %2080  ;;  %v8492_v41 = vpop.permute.xlu0 %2473 }
 0x3c3   :  { %6611 = vset.pattern.permute.xlu1 %v10860_v42 }
 0x3c4   :  { %2545 = vperm.xlu1 %6611, %v2021_v13   ;;  %6388 = vmatmul.mubr.bf16.gmra.mrb[84].mxu1 %v1700_v9  ;;  %v8519_v13 = vpop.f32.mrb[36].mxu0  ;;  %v8524_v9 = vld [vmem:[%s10715_s3 + $0x130] sm:$0xff] }
 0x3c5   :  { %10917 = vst [vmem:[#allocation42_spill] sm:$0xff] %v8519_v13  ;;  %v8528_v1 = vpop.f32.mrb[37].mxu0 }
 0x3c6   :  { %2589 = vperm.xlu0 %6648, %v8498_v4   ;;  %v8505_v47 = vpop.permute.xlu0 %2477  ;;  %10918 = vst [vmem:[#allocation43_spill] sm:$0xff] %v8528_v1  ;;  %v8533_v55 = vpop.f32.mrb[38].mxu0 }
 0x3c7   :  { %v8509_v45 = vpop.permute.xlu1 %2465  ;;  %10919 = vst [vmem:[#allocation44_spill] sm:$0xff] %v8533_v55 }
 0x3c8   :  { %6612 = vset.pattern.permute.xlu1 %v10855_v5 }
 0x3c9   :  { %2190 = vperm.xlu1 %6612, %v8371_v35   ;;  %v8537_v35 = vpop.f32.mrb[39].mxu0 }
 0x3ca   :  { %2601 = vperm.xlu0 %6648, %v8514_v46   ;;  %10920 = vst [vmem:[#allocation45_spill] sm:$0xff] %v8537_v35  ;;  %v8546_v58 = vpop.f32.mrb[40].mxu0 }
 0x3cb   :  { %10921 = vst [vmem:[#allocation46_spill] sm:$0xff] %v8546_v58 }
 0x3cc   :  { %v8526_v57 = vpop.permute.xlu0 %2070 }
 0x3cd   :  { %6613 = vset.pattern.permute.xlu1 %v10860_v42  ;;  %v8531_v49 = vpop.permute.xlu1 %2090 }
 0x3ce   :  { %2549 = vperm.xlu1 %6613, %v7874_v43   ;;  %2605 = vperm.xlu0 %6648, %v8524_v9   ;;  %v8552_v43 = vpop.f32.mrb[41].mxu0 }
 0x3cf   :  { %10922 = vst [vmem:[#allocation47_spill] sm:$0xff] %v8552_v43  ;;  %v8563_v61 = vpop.f32.mrb[42].mxu0  ;;  %v8573_v43 = vld [vmem:[%s10715_s3 + $0x168] sm:$0xff] }
 0x3d0   :  { %v8544_v8 = vpop.permute.xlu0 %2085  ;;  %10924 = vst [vmem:[#allocation49_spill] sm:$0xff] %v8563_v61  ;;  %v8566_v58 = vpop.f32.mrb[43].mxu0  ;;  %10926 = vst [vmem:[#allocation51_spill] sm:$0xff] %v8573_v43 }
 0x3d1   :  { %10925 = vst [vmem:[#allocation50_spill] sm:$0xff] %v8566_v58  ;;  %v8586_v58 = vpop.f32.mrb[44].mxu0 }
 0x3d2   :  { %6614 = vset.pattern.permute.xlu1 %v10855_v5  ;;  %v8549_v19 = vpop.permute.xlu1 %2469  ;;  %2617 = vperm.xlu0 %6648, %v8542_v7   ;;  %10928 = vst [vmem:[#allocation53_spill] sm:$0xff] %v8586_v58  ;;  %v8590_v1 = vpop.f32.mrb[45].mxu0 }
 0x3d3   :  { %2195 = vperm.xlu1 %6614, %v8403_v36   ;;  %10929 = vst [vmem:[#allocation54_spill] sm:$0xff] %v8590_v1  ;;  %v8592_v13 = vpop.f32.mrb[46].mxu0 }
 0x3d4   :  { %v3893_v62 = vpop.permute.xlu0 %3892  ;;  %10930 = vst [vmem:[#allocation55_spill] sm:$0xff] %v8592_v13  ;;  %v8595_v16 = vpop.f32.mrb[47].mxu0  ;;  %v8612_v13 = vld [vmem:[%s10715_s3 + $0x190] sm:$0xff] }
 0x3d5   :  { %6459 = vmatprep.subr.bf16.mxu0 %v3893_v62  ;;  %10931 = vst [vmem:[#allocation56_spill] sm:$0xff] %v8595_v16  ;;  %10933 = vst [vmem:[#allocation58_spill] sm:$0xff] %v8612_v13 }
 0x3d6   :  { %2621 = vperm.xlu0 %6648, %v8558_v21   ;;  %6460 = vmatpush3.bf16.msra.mxu0 %v3893_v62  ;;  %v8584_v62 = vld [vmem:[%s10715_s3 + $0x170] sm:$0xff] }
 0x3d7   :  { %2200 = vperm.xlu1 %6614, %v2025_v54   ;;  %v8568_v36 = vpop.permute.xlu1 %2095  ;;  %10927 = vst [vmem:[#allocation52_spill] sm:$0xff] %v8584_v62 }
 0x3d8   :  { %v8575_v35 = vpop.permute.xlu0 %2110 }
 0x3da   :  { %2633 = vperm.xlu0 %6648, %v8573_v43   ;;  %v8614_v16 = vpop.f32.mrb[48].mxu0 }
 0x3db   :  { %6615 = vset.pattern.permute.xlu1 %v10860_v42  ;;  %v8579_v61 = vpop.permute.xlu1 %2100  ;;  %10934 = vst [vmem:[#allocation59_spill] sm:$0xff] %v8614_v16  ;;  %v8618_v58 = vpop.f32.mrb[49].mxu0  ;;  %v2051_v16 = vld [vmem:[%s10715_s3 + $0x1a8] sm:$0xff] }
 0x3dc   :  { %2561 = vperm.xlu1 %6615, %v2025_v54   ;;  %v8588_v55 = vpop.permute.xlu0 %2115  ;;  %10935 = vst [vmem:[#allocation60_spill] sm:$0xff] %v8618_v58  ;;  %v8623_v43 = vpop.f32.mrb[50].mxu0 }
 0x3dd   :  { %10936 = vst [vmem:[#allocation61_spill] sm:$0xff] %v8623_v43  ;;  %v2029_v43 = vld [vmem:[%s10715_s3 + $0xf8] sm:$0xff] }
 0x3de   :  { %2637 = vperm.xlu0 %6648, %v8584_v62  }
 0x3e0   :  { %6616 = vset.pattern.permute.xlu1 %v10855_v5  ;;  %v8603_v34 = vpop.permute.xlu1 %2481  ;;  %v8605_v54 = vpop.permute.xlu0 %2125 }
 0x3e1   :  { %2210 = vperm.xlu1 %6616, %v8433_v39   ;;  %v8627_v39 = vpop.f32.mrb[51].mxu0 }
 0x3e2   :  { %2649 = vperm.xlu0 %6648, %v8600_v25   ;;  %10937 = vst [vmem:[#allocation62_spill] sm:$0xff] %v8627_v39 }
 0x3e4   :  { %v8616_v1 = vpop.permute.xlu0 %2145 }
 0x3e5   :  { %6617 = vset.pattern.permute.xlu1 %v10860_v42  ;;  %v8621_v62 = vpop.permute.xlu1 %2105 }
 0x3e6   :  { %2565 = vperm.xlu1 %6617, %v7898_v18   ;;  %2653 = vperm.xlu0 %6648, %v8612_v13   ;;  %v2052_v18 = vld [vmem:[%s10715_s3 + $0x1b0] sm:$0xff]  ;;  %v8641_v13 = vpop.f32.mrb[52].mxu0 }
 0x3e7   :  { %10938 = vst [vmem:[#allocation63_spill] sm:$0xff] %v8641_v13  ;;  %v8648_v30 = vpop.f32.mrb[53].mxu0 }
 0x3e8   :  { %v8632_v25 = vpop.permute.xlu0 %2165  ;;  %10939 = vst [vmem:[#allocation64_spill] sm:$0xff] %v8648_v30  ;;  %v8650_v63 = vpop.f32.mrb[54].mxu0 }
 0x3e9   :  { %10940 = vst [vmem:[#allocation65_spill] sm:$0xff] %v8650_v63  ;;  %v2056_v63 = vld [vmem:[%s10715_s3 + $0x1d0] sm:$0xff] }
 0x3ea   :  { %6618 = vset.pattern.permute.xlu1 %v10855_v5  ;;  %v8635_v58 = vpop.permute.xlu1 %2485  ;;  %2665 = vperm.xlu0 %6648, %v2051_v16   ;;  %v2055_v16 = vld [vmem:[%s10715_s3 + $0x1c8] sm:$0xff] }
 0x3eb   :  { %2215 = vperm.xlu1 %6618, %v8462_v59   ;;  %v8654_v59 = vpop.f32.mrb[55].mxu0 }
 0x3ec   :  { %v8643_v39 = vpop.permute.xlu0 %2185  ;;  %10941 = vst [vmem:[#allocation66_spill] sm:$0xff] %v8654_v59 }
 0x3ed   :  { %v8667_v30 = vpop.f32.mrb[56].mxu0 }
 0x3ee   :  { %v8652_v11 = vpop.permute.xlu1 %2489  ;;  %2669 = vperm.xlu0 %6648, %v2052_v18   ;;  %10943 = vst [vmem:[#allocation68_spill] sm:$0xff] %v8667_v30  ;;  %v8671_v59 = vpop.f32.mrb[57].mxu0 }
 0x3ef   :  { %2220 = vperm.xlu1 %6618, %v2029_v43   ;;  %10945 = vst [vmem:[#allocation70_spill] sm:$0xff] %v8671_v59  ;;  %v8673_v0 = vpop.f32.mrb[58].mxu0 }
 0x3f0   :  { %v8659_v13 = vpop.permute.xlu0 %2205  ;;  %10946 = vst [vmem:[#allocation71_spill] sm:$0xff] %v8673_v0 }
 0x3f1   :  { %10942 = vst [vmem:[#allocation67_spill] sm:$0xff] %v8659_v13  ;;  %v8675_v13 = vpop.f32.mrb[59].mxu0 }
 0x3f2   :  { %2681 = vperm.xlu0 %6648, %v2055_v16   ;;  %10947 = vst [vmem:[#allocation72_spill] sm:$0xff] %v8675_v13  ;;  %v2059_v16 = vld [vmem:[%s10715_s3 + $0x1e8] sm:$0xff] }
 0x3f3   :  { %6619 = vset.pattern.permute.xlu1 %v10860_v42  ;;  %v8662_v56 = vpop.permute.xlu1 %2120 }
 0x3f4   :  { %2577 = vperm.xlu1 %6619, %v2029_v43   ;;  %v8669_v18 = vpop.permute.xlu0 %2225  ;;  %v2060_v43 = vld [vmem:[%s10715_s3 + $0x1f0] sm:$0xff] }
 0x3f5   :  { %10944 = vst [vmem:[#allocation69_spill] sm:$0xff] %v8669_v18 }
 0x3f6   :  { %2685 = vperm.xlu0 %6648, %v2056_v63   ;;  %v8689_v63 = vpop.f32.mrb[60].mxu0 }
 0x3f7   :  { %10949 = vst [vmem:[#allocation74_spill] sm:$0xff] %v8689_v63  ;;  %v8694_v0 = vpop.f32.mrb[61].mxu0 }
 0x3f8   :  { %6620 = vset.pattern.permute.xlu1 %v10855_v5  ;;  %v8681_v26 = vpop.permute.xlu1 %2497  ;;  %v8683_v32 = vpop.permute.xlu0 %2245  ;;  %10951 = vst [vmem:[#allocation76_spill] sm:$0xff] %v8694_v0 }
 0x3f9   :  { %10948 = vst [vmem:[#allocation73_spill] sm:$0xff] %v8683_v32  ;;  %2230 = vperm.xlu1 %6620, %v8482_v15   ;;  %v8697_v32 = vpop.f32.mrb[62].mxu0 }
 0x3fa   :  { %2697 = vperm.xlu0 %6648, %v2059_v16   ;;  %10952 = vst [vmem:[#allocation77_spill] sm:$0xff] %v8697_v32  ;;  %v8699_v15 = vpop.f32.mrb[63].mxu0 }
 0x3fb   :  { %10953 = vst [vmem:[#allocation78_spill] sm:$0xff] %v8699_v15 }
 0x3fc   :  { %v3895_v18 = vpop.permute.xlu1 %3894  ;;  %v8691_v13 = vpop.permute.xlu0 %2265 }
 0x3fd   :  { %10950 = vst [vmem:[#allocation75_spill] sm:$0xff] %v8691_v13  ;;  %6621 = vset.pattern.permute.xlu1 %v10860_v42  ;;  %6461 = vmatprep.subr.bf16.mxu0 %v3895_v18 }
 0x3fe   :  { %2581 = vperm.xlu1 %6621, %v7931_v22   ;;  %2701 = vperm.xlu0 %6648, %v2060_v43   ;;  %v8707_v13 = vpop.f32.mrb[64].mxu0  ;;  %v2033_v22 = vld [vmem:[%s10715_s3 + $0x118] sm:$0xff] }
 0x3ff   :  { %6462 = vmatpush3.bf16.msra.mxu0 %v3895_v18  ;;  %10955 = vst [vmem:[#allocation80_spill] sm:$0xff] %v8707_v13  ;;  %v8714_v43 = vpop.f32.mrb[65].mxu0 }
 0x400   :  { %v8701_v16 = vpop.permute.xlu1 %2130  ;;  %v8703_v59 = vpop.permute.xlu0 %2285  ;;  %10957 = vst [vmem:[#allocation82_spill] sm:$0xff] %v8714_v43 }
 0x401   :  { %10954 = vst [vmem:[#allocation79_spill] sm:$0xff] %v8703_v59  ;;  %v8718_v15 = vpop.f32.mrb[66].mxu0 }
 0x402   :  { %6622 = vset.pattern.permute.xlu1 %v10855_v5  ;;  %10958 = vst [vmem:[#allocation83_spill] sm:$0xff] %v8718_v15  ;;  %v8720_v32 = vpop.f32.mrb[67].mxu0 }
 0x403   :  { %2235 = vperm.xlu1 %6622, %v8498_v4   ;;  %10959 = vst [vmem:[#allocation84_spill] sm:$0xff] %v8720_v32 }
 0x404   :  { %v8709_v63 = vpop.permute.xlu0 %2305 }
 0x405   :  { %10956 = vst [vmem:[#allocation81_spill] sm:$0xff] %v8709_v63  ;;  %v8716_v18 = vpop.permute.xlu1 %2501 }
 0x406   :  { %v8727_v63 = vpop.f32.mrb[68].mxu0 }
 0x407   :  { %2240 = vperm.xlu1 %6622, %v2033_v22   ;;  %10961 = vst [vmem:[#allocation86_spill] sm:$0xff] %v8727_v63  ;;  %v8731_v0 = vpop.f32.mrb[69].mxu0 }
 0x408   :  { %v8722_v59 = vpop.permute.xlu0 %2325  ;;  %10963 = vst [vmem:[#allocation88_spill] sm:$0xff] %v8731_v0  ;;  %v8733_v43 = vpop.f32.mrb[70].mxu0 }
 0x409   :  { %10960 = vst [vmem:[#allocation85_spill] sm:$0xff] %v8722_v59  ;;  %10964 = vst [vmem:[#allocation89_spill] sm:$0xff] %v8733_v43  ;;  %v8737_v15 = vpop.f32.mrb[71].mxu0 }
 0x40a   :  { %v8724_v4 = vpop.permute.xlu1 %2135  ;;  %10965 = vst [vmem:[#allocation90_spill] sm:$0xff] %v8737_v15 }
 0x40b   :  { %6623 = vset.pattern.permute.xlu1 %v10860_v42 }
 0x40c   :  { %2593 = vperm.xlu1 %6623, %v2033_v22   ;;  %v8729_v13 = vpop.permute.xlu0 %2345  ;;  %v8750_v22 = vld [vmem:[%s10709_s6 + $0xa] ss:$0 sm:$0xff] }
 0x40d   :  { %10962 = vst [vmem:[#allocation87_spill] sm:$0xff] %v8729_v13  ;;  %v2717_v29 = vmul.f32 %v8750_v22, %v8492_v41 }
 0x40e   :  { %v8735_v30 = vpop.permute.xlu1 %2140  ;;  %v8745_v63 = vpop.f32.mrb[72].mxu0 }
 0x40f   :  { %10967 = vst [vmem:[#allocation92_spill] sm:$0xff] %v8745_v63  ;;  %v8752_v13 = vpop.f32.mrb[73].mxu0  ;;  %v2712_v63 = vmul.f32 %v8750_v22, %v8443_v24 }
 0x410   :  { %6624 = vset.pattern.permute.xlu1 %v10855_v5  ;;  %v8740_v59 = vpop.permute.xlu0 %2365  ;;  %10968 = vst [vmem:[#allocation93_spill] sm:$0xff] %v8752_v13  ;;  %v8757_v43 = vpop.f32.mrb[74].mxu0  ;;  %v2713_v13 = vmul.f32 %v8750_v22, %v8451_v40 }
 0x411   :  { %10966 = vst [vmem:[#allocation91_spill] sm:$0xff] %v8740_v59  ;;  %2250 = vperm.xlu1 %6624, %v8514_v46   ;;  %10969 = vst [vmem:[#allocation94_spill] sm:$0xff] %v8757_v43  ;;  %v8762_v46 = vld [vmem:[%s10709_s6 + $0x9] ss:$0 sm:$0xff]  ;;  %v8765_v59 = vpop.f32.mrb[75].mxu0  ;;  %v2714_v43 = vmul.f32 %v8750_v22, %v8476_v12 }
 0x412   :  { %10970 = vst [vmem:[#allocation95_spill] sm:$0xff] %v8765_v59  ;;  %v2389_v0 = vmul.f32 %v8762_v46, %v8474_v28  ;;  %v2392_v59 = vmul.f32 %v8762_v46, %v8531_v49  ;;  %v2388_v24 = vmul.f32 %v8762_v46, %v8526_v57  ;;  %v2387_v40 = vmul.f32 %v8762_v46, %v8412_v52 }
 0x413   :  { %v8743_v32 = vpop.permute.xlu1 %2513  ;;  %v2391_v12 = vmul.f32 %v8762_v46, %v8544_v8  ;;  %v2716_v28 = vmul.f32 %v8750_v22, %v8549_v19  ;;  %v2718_v49 = vmul.f32 %v8750_v22, %v8505_v47  ;;  %v2393_v57 = vmul.f32 %v8762_v46, %v8568_v36 }
 0x414   :  { %v2776_v41 = vadd.f32 %v2712_v63, %v2387_v40  ;;  %v2778_v10 = vadd.f32 %v2714_v43, %v2389_v0  ;;  %v2719_v52 = vmul.f32 %v8750_v22, %v8603_v34  ;;  %v8805_v14 = vadd.f32 %v2717_v29, %v2392_v59  ;;  %v2037_v0 = vld [vmem:[%s10715_s3 + $0x138] sm:$0xff] }
 0x415   :  { %6625 = vset.pattern.permute.xlu1 %v10860_v42  ;;  %v8755_v15 = vpop.permute.xlu0 %2493  ;;  %v2777_v47 = vadd.f32 %v2713_v13, %v2388_v24  ;;  %v2720_v36 = vmul.f32 %v8750_v22, %v8635_v58  ;;  %v8815_v63 = vadd.f32 %v2716_v28, %v2391_v12  ;;  %v2394_v29 = vmul.f32 %v8762_v46, %v8579_v61  ;;  %v8863_v28 = vld [vmem:[%s10709_s6 + $0x4] ss:$0 sm:$0xff] }
 0x416   :  { %2597 = vperm.xlu1 %6625, %v7962_v38   ;;  %v2715_v38 = vmul.f32 %v8750_v22, %v8509_v45  ;;  %v2390_v45 = vmul.f32 %v8762_v46, %v8489_v44  ;;  %v2721_v13 = vmul.f32 %v8750_v22, %v8652_v11  ;;  %v8823_v59 = vadd.f32 %v2718_v49, %v2393_v57 }
 0x417   :  { %v8803_v19 = vpop.f32.mrb[76].mxu0  ;;  %v2395_v43 = vmul.f32 %v8762_v46, %v8621_v62  ;;  %v2399_v61 = vmul.f32 %v8762_v46, %v8605_v54  ;;  %v8839_v11 = vmul.f32 %v8762_v46, %v8616_v1  ;;  %v2398_v12 = vmul.f32 %v8762_v46, %v8662_v56 }
 0x418   :  { %v8783_v21 = vpop.permute.xlu1 %2150  ;;  %v2779_v44 = vadd.f32 %v2715_v38, %v2390_v45  ;;  %v8813_v34 = vpop.f32.mrb[77].mxu0  ;;  %v2723_v38 = vmul.f32 %v8750_v22, %v8681_v26  ;;  %v2724_v54 = vmul.f32 %v8750_v22, %v8716_v18  ;;  %v8867_v45 = vmul.f32 %v8762_v46, %v8643_v39 }
 0x419   :  { %v8800_v8 = vpop.permute.xlu0 %2505  ;;  %v8831_v24 = vpop.f32.mrb[78].mxu0  ;;  %v8849_v26 = vadd.f32 %v2720_v36, %v2395_v43  ;;  %v2727_v18 = vmul.f32 %v8750_v22, %v8743_v32  ;;  %v2400_v32 = vmul.f32 %v8762_v46, %v8701_v16  ;;  %v2401_v16 = vmul.f32 %v8762_v46, %v8724_v4 }
 0x41a   :  { %6626 = vset.pattern.permute.xlu1 %v10855_v5  ;;  %v8847_v40 = vpop.f32.mrb[79].mxu0  ;;  %v8877_v57 = vadd.f32 %v2723_v38, %v2398_v12 }
 0x41b   :  { %2255 = vperm.xlu1 %6626, %v8524_v9   ;;  %v2396_v9 = vmul.f32 %v8762_v46, %v8575_v35  ;;  %v8833_v35 = vadd.f32 %v2719_v52, %v2394_v29  ;;  %v2722_v52 = vmul.f32 %v8750_v22, %v8755_v15 }
 0x41c   :  { %5171 = vxpose.xlu0.c.b16.start [1/8] (narrow) %v7793_v31, 64  ;;  %v2397_v31 = vmul.f32 %v8762_v46, %v8588_v55  ;;  %v8843_v55 = vmul.f32 %v8762_v46, %v8632_v25 }
 0x41d   :  { %v2518_v58 = vpop.permute.xlu1 %2517  ;;  %v8869_v56 = vadd.f32 %v2721_v13, %v2396_v9  ;;  %v2510_v49 = vpop.permute.xlu0 %2509 }
 0x41e   :  { %v8903_v12 = vadd.f32 %v2722_v52, %v2397_v31 }
 0x41f   :  { %2260 = vperm.xlu1 %6626, %v2037_v0   ;;  %v8845_v62 = vpop.f32.mrb[24].mxu1 }
 0x420   :  { %v3468_v1 = vadd.f32 %v8241_v20, %v8845_v62  ;;  %5172 = vxpose.xlu0.c.b16.cont [2/8] (narrow) %v7846_v23, 64  ;;  %v8858_v25 = vpop.f32.mrb[25].mxu1 }
 0x421   :  { %v3466_v23 = vadd.f32 %v8249_v33, %v8858_v25  ;;  %v8875_v20 = vpop.f32.mrb[26].mxu1  ;;  %v2402_v33 = vmul.f32 %v8762_v46, %v8735_v30 }
 0x422   :  { %v3532_v36 = vadd.f32 %v3468_v1, %v2778_v10  ;;  %v3469_v39 = vadd.f32 %v8257_v51, %v8875_v20  ;;  %v8883_v9 = vpop.permute.xlu1 %2155  ;;  %v8885_v29 = vpop.f32.mrb[27].mxu1  ;;  %v8894_v10 = vadd.f32 %v2724_v54, %v2399_v61 }
 0x423   :  { %v3530_v13 = vadd.f32 %v3466_v23, %v2776_v41  ;;  %v3467_v43 = vadd.f32 %v8265_v48, %v8885_v29  ;;  %6627 = vset.pattern.permute.xlu1 %v10860_v42  ;;  %v8900_v38 = vadd.f32 %v2727_v18, %v2402_v33  ;;  %v2404_v48 = vmul.f32 %v8762_v46, %v8783_v21 }
 0x424   :  { %v3601_v51 = vadd.f32 %v8863_v28, %v3532_v36  ;;  %v3533_v15 = vadd.f32 %v3469_v39, %v2779_v44  ;;  %2609 = vperm.xlu1 %6627, %v2037_v0   ;;  %5173 = vxpose.xlu0.c.b16.cont [3/8] (narrow) %v7854_v2, 64  ;;  %v2725_v2 = vmul.f32 %v8750_v22, %v8800_v8  ;;  %v2522_v0 = vpop.permute.xlu0 %2521 }
 0x425   :  { %v3599_v30 = vadd.f32 %v8863_v28, %v3530_v13  ;;  %v3531_v41 = vadd.f32 %v3467_v43, %v2777_v47  ;;  %v2728_v47 = vmul.f32 %v8750_v22, %v2518_v58  ;;  %v2726_v36 = vmul.f32 %v8750_v22, %v2510_v49 }
 0x426   :  { %v3729_v61 = vmul.f32 0.01, %v3601_v51  ;;  %v3602_v54 = vadd.f32 %v8863_v28, %v3533_v15  ;;  %v8908_v44 = vpop.permute.xlu1 %2160  ;;  %vm3665_vm13 = vcmp.gt.f32.partialorder %v3601_v51, 0.0 }
 0x427   :  { %v3727_v4 = vmul.f32 0.01, %v3599_v30  ;;  %v3600_v1 = vadd.f32 %v8863_v28, %v3531_v41  ;;  %v8913_v18 = vpop.f32.mrb[28].mxu1  ;;  %vm3663_vm14 = vcmp.gt.f32.partialorder %v3599_v30, 0.0  ;;  %v2729_v41 = vmul.f32 %v8750_v22, %v2522_v0 }
 0x428   :  { %vm3666_vm15 = vcmp.gt.f32.partialorder %v3602_v54, 0.0  ;;  %v3730_v21 = vmul.f32 0.01, %v3602_v54  ;;  %6628 = vset.pattern.permute.xlu1 %v10855_v5  ;;  %5174 = vxpose.xlu0.c.b16.cont [4/8] (narrow) %v7901_v37, 64  ;;  %v8918_v31 = vpop.f32.mrb[29].mxu1  ;;  %v3472_v23 = vadd.f32 %v8309_v53, %v8913_v18  ;;  %v3793_v39 = vsel %vm3665_vm13, %v3601_v51, %v3729_v61  ;;  %v2526_v61 = vpop.permute.xlu0 %2525 }
 0x429   :  { %10971 = vst [vmem:[#allocation96_spill] sm:$0xff] %v8918_v31  ;;  %vm3664_vm0 = vcmp.gt.f32.partialorder %v3600_v1, 0.0  ;;  %v3728_v8 = vmul.f32 0.01, %v3600_v1  ;;  %v3470_v52 = vadd.f32 %v8317_v27, %v8918_v31  ;;  %2270 = vperm.xlu1 %6628, %v8542_v7   ;;  %v8925_v58 = vpop.f32.mrb[30].mxu1  ;;  %v3791_v51 = vsel %vm3663_vm14, %v3599_v30, %v3727_v4  ;;  %v6692_v4 = vld [vmem:[%s10715_s3 + $0x140] sm:$0xff] }
 0x42a   :  { %v3794_v33 = vsel %vm3666_vm15, %v3602_v54, %v3730_v21  ;;  %v3473_v37 = vadd.f32 %v8324_v17, %v8925_v58  ;;  %v8931_v13 = vpop.f32.mrb[31].mxu1  ;;  %v3536_v53 = vadd.f32 %v3472_v23, %v8823_v59  ;;  %v8946_v21 = vadd.f32 %v2725_v2, %v2400_v32 }
 0x42b   :  { %v3856_v43 = vpack.c.bf16 %v3794_v33, %v3793_v39  ;;  %v3534_v15 = vadd.f32 %v3470_v52, %v8815_v63  ;;  %v3471_v7 = vadd.f32 %v8338_v50, %v8931_v13  ;;  %v2530_v27 = vpop.permute.xlu1 %2529  ;;  %v3792_v17 = vsel %vm3664_vm0, %v3600_v1, %v3728_v8  ;;  %v10974_v39 = vld [vmem:[#allocation18_spill] sm:$0xff] }
 0x42c   :  { %v3537_v49 = vadd.f32 %v3473_v37, %v8833_v35  ;;  %5175 = vxpose.xlu0.c.b16.cont [5/8] (narrow) %v7911_v6, 64  ;;  %v3605_v54 = vadd.f32 %v8863_v28, %v3536_v53  ;;  %v3855_v50 = vpack.c.bf16 %v3792_v17, %v3791_v51  ;;  %v8949_v35 = vadd.f32 %v2728_v47, %v8839_v11  ;;  %v2538_v23 = vpop.permute.xlu0 %2537  ;;  %v10976_v53 = vld [vmem:[#allocation20_spill] sm:$0xff]  ;;  %v10979_v17 = vld [vmem:[#allocation21_spill] sm:$0xff] }
 0x42d   :  { %v3603_v59 = vadd.f32 %v8863_v28, %v3534_v15  ;;  %v3535_v63 = vadd.f32 %v3471_v7, %v8805_v14  ;;  %6629 = vset.pattern.permute.xlu1 %v10860_v42  ;;  %v8951_v6 = vadd.f32 %v2726_v36, %v2401_v16  ;;  %v2405_v14 = vmul.f32 %v8762_v46, %v8883_v9 }
 0x42e   :  { %v3606_v30 = vadd.f32 %v8863_v28, %v3537_v49  ;;  %2613 = vperm.xlu1 %6629, %v6692_v4   ;;  %vm3669_vm1 = vcmp.gt.f32.partialorder %v3605_v54, 0.0  ;;  %v3733_v0 = vmul.f32 0.01, %v3605_v54  ;;  %6463 = vmatprep.mubr.msk.bf16.mxu0 %vm185_vm2, %v3855_v50  ;;  %v8960_v32 = vadd.f32 %v2729_v41, %v2404_v48  ;;  %v10978_v41 = vld [vmem:[#allocation48_spill] sm:$0xff] }
 0x42f   :  { %v3731_v1 = vmul.f32 0.01, %v3603_v59  ;;  %v3604_v16 = vadd.f32 %v8863_v28, %v3535_v63  ;;  %v8963_v2 = vpop.f32.mrb[32].mxu1  ;;  %6464 = vmatmul.mubr.msk.bf16.vlgmr.msra.gmra.mrb[80].mxu0 %vm185_vm2, %v3856_v43  ;;  %v2730_v9 = vmul.f32 %v8750_v22, %v2526_v61  ;;  %vm3667_vm5 = vcmp.gt.f32.partialorder %v3603_v59, 0.0 }
 0x430   :  { %vm3670_vm4 = vcmp.gt.f32.partialorder %v3606_v30, 0.0  ;;  %v3734_v11 = vmul.f32 0.01, %v3606_v30  ;;  %10972 = vst [vmem:[#allocation97_spill] sm:$0xff] %v8963_v2  ;;  %v2171_v47 = vpop.permute.xlu1 %2170  ;;  %5176 = vxpose.xlu0.c.b16.cont [6/8] (narrow) %v7964_v60, 64  ;;  %v3476_v8 = vadd.f32 %v8379_v3, %v8963_v2  ;;  %v8970_v48 = vpop.f32.mrb[33].mxu1  ;;  %v3797_v52 = vsel %vm3669_vm1, %v3605_v54, %v3733_v0 }
 0x431   :  { %10973 = vst [vmem:[#allocation98_spill] sm:$0xff] %v8970_v48  ;;  %vm3668_vm6 = vcmp.gt.f32.partialorder %v3604_v16, 0.0  ;;  %v3732_v36 = vmul.f32 0.01, %v3604_v16  ;;  %v3474_v33 = vadd.f32 %v10974_v39, %v8970_v48  ;;  %v8975_v37 = vpop.f32.mrb[34].mxu1  ;;  %v2731_v43 = vmul.f32 %v8750_v22, %v2530_v27  ;;  %v10980_v54 = vld [vmem:[#allocation5_spill] sm:$0xff] }
 0x432   :  { %10975 = vst [vmem:[#allocation18_spill] sm:$0xff] %v8975_v37  ;;  %6630 = vset.pattern.permute.xlu1 %v10855_v5  ;;  %v3798_v60 = vsel %vm3670_vm4, %v3606_v30, %v3734_v11  ;;  %v3540_v3 = vadd.f32 %v3476_v8, %v8903_v12  ;;  %v3477_v15 = vadd.f32 %v10976_v53, %v8975_v37  ;;  %v8983_v7 = vpop.f32.mrb[35].mxu1  ;;  %v2041_v12 = vld [vmem:[%s10715_s3 + $0x158] sm:$0xff]  ;;  %v2542_v11 = vpop.permute.xlu0 %2541 }
 0x433   :  { %10977 = vst [vmem:[#allocation20_spill] sm:$0xff] %v8983_v7  ;;  %2275 = vperm.xlu1 %6630, %v10978_v41   ;;  %v3858_v49 = vpack.c.bf16 %v3798_v60, %v3797_v52  ;;  %v3538_v51 = vadd.f32 %v3474_v33, %v8849_v26  ;;  %v3475_v61 = vadd.f32 %v10979_v17, %v8983_v7  ;;  %v10984_v60 = vld [vmem:[#allocation22_spill] sm:$0xff]  ;;  %v11056_v48 = vld [vmem:[#allocation80_spill] sm:$0xff] }
 0x434   :  { %5177 = vxpose.xlu0.c.b16.cont [7/8] (narrow) %v10980_v54, 64  ;;  %v3795_v63 = vsel %vm3667_vm5, %v3603_v59, %v3731_v1  ;;  %v3796_v27 = vsel %vm3668_vm6, %v3604_v16, %v3732_v36  ;;  %v2406_v50 = vmul.f32 %v8762_v46, %v8908_v44  ;;  %v3609_v30 = vadd.f32 %v8863_v28, %v3540_v3  ;;  %v10985_v3 = vld [vmem:[#allocation24_spill] sm:$0xff] }
 0x435   :  { %v3541_v26 = vadd.f32 %v3477_v15, %v8877_v57  ;;  %v2534_v4 = vpop.permute.xlu1 %2533  ;;  %v3857_v0 = vpack.c.bf16 %v3796_v27, %v3795_v63  ;;  %v8999_v8 = vadd.f32 %v2730_v9, %v2405_v14  ;;  %v2733_v59 = vmul.f32 %v8750_v22, %v2538_v23  ;;  %v10982_v23 = vld [vmem:[#allocation7_spill] sm:$0xff] }
 0x436   :  { %v3607_v1 = vadd.f32 %v8863_v28, %v3538_v51  ;;  %v3539_v16 = vadd.f32 %v3475_v61, %v8869_v56  ;;  %v9004_v52 = vadd.f32 %v2731_v43, %v2406_v50  ;;  %v3737_v36 = vmul.f32 0.01, %v3609_v30  ;;  %v10989_v50 = vld [vmem:[#allocation36_spill] sm:$0xff] }
 0x437   :  { %v2408_v44 = vmul.f32 %v8762_v46, %v2171_v47  ;;  %v3610_v39 = vadd.f32 %v8863_v28, %v3541_v26  ;;  %6467 = vmatprep.mubr.msk.bf16.mxu0 %vm185_vm2, %v3857_v0  ;;  %2280 = vperm.xlu1 %6630, %v2041_v12   ;;  %v9009_v57 = vpop.f32.mrb[36].mxu1  ;;  %v9017_v33 = vmul.f32 %v8750_v22, %v2542_v11  ;;  %vm3673_vm9 = vcmp.gt.f32.partialorder %v3609_v30, 0.0  ;;  %v2554_v0 = vpop.permute.xlu0 %2553 }
 0x438   :  { %10981 = vst [vmem:[#allocation48_spill] sm:$0xff] %v9009_v57  ;;  %vm3671_vm7 = vcmp.gt.f32.partialorder %v3607_v1, 0.0  ;;  %v3735_v14 = vmul.f32 0.01, %v3607_v1  ;;  %v3608_v9 = vadd.f32 %v8863_v28, %v3539_v16  ;;  %6468 = vmatmul.mubr.msk.bf16.gmra.mrb[84].mxu0 %vm185_vm2, %v3858_v49  ;;  %5178 = vxpose.xlu0.c.b16.end [8/8] (narrow) %v10982_v23, 64  ;;  %v9014_v56 = vpop.f32.mrb[37].mxu1  ;;  %v3480_v43 = vadd.f32 %v10984_v60, %v9009_v57 }
 0x439   :  { %10983 = vst [vmem:[#allocation21_spill] sm:$0xff] %v9014_v56  ;;  %vm3674_vm8 = vcmp.gt.f32.partialorder %v3610_v39, 0.0  ;;  %v3738_v47 = vmul.f32 0.01, %v3610_v39  ;;  %v3478_v53 = vadd.f32 %v10985_v3, %v9014_v56  ;;  %v9023_v15 = vpop.f32.mrb[38].mxu1  ;;  %v10987_v49 = vld [vmem:[#allocation35_spill] sm:$0xff]  ;;  %v9029_v54 = vadd.f32 %v2733_v59, %v2408_v44 }
 0x43a   :  { %10986 = vst [vmem:[#allocation5_spill] sm:$0xff] %v9023_v15  ;;  %vm3672_vm3 = vcmp.gt.f32.partialorder %v3608_v9, 0.0  ;;  %v3736_v41 = vmul.f32 0.01, %v3608_v9  ;;  %v3481_v51 = vadd.f32 %v10987_v49, %v9023_v15  ;;  %v2176_v17 = vpop.permute.xlu1 %2175  ;;  %v9027_v61 = vpop.f32.mrb[39].mxu1  ;;  %v3544_v63 = vadd.f32 %v3480_v43, %v8951_v6 }
 0x43b   :  { %10988 = vst [vmem:[#allocation7_spill] sm:$0xff] %v9027_v61  ;;  %v3542_v27 = vadd.f32 %v3478_v53, %v8894_v10  ;;  %v3479_v26 = vadd.f32 %v10989_v50, %v9027_v61  ;;  %6631 = vset.pattern.permute.xlu1 %v10860_v42  ;;  %v3799_v16 = vsel %vm3671_vm7, %v3607_v1, %v3735_v14 }
 0x43c   :  { %v3545_v11 = vadd.f32 %v3481_v51, %v8900_v38  ;;  %2625 = vperm.xlu1 %6631, %v2041_v12   ;;  %v3800_v23 = vsel %vm3672_vm3, %v3608_v9, %v3736_v41  ;;  %v3802_v60 = vsel %vm3674_vm8, %v3610_v39, %v3738_v47  ;;  %v3613_v59 = vadd.f32 %v8863_v28, %v3544_v63  ;;  %v10990_v9 = vld [vmem:[#allocation38_spill] sm:$0xff]  ;;  %v10991_v41 = vld [vmem:[#allocation51_spill] sm:$0xff] }
 0x43d   :  { %v3611_v6 = vadd.f32 %v8863_v28, %v3542_v27  ;;  %v3543_v10 = vadd.f32 %v3479_v26, %v8946_v21  ;;  %v3801_v44 = vsel %vm3673_vm9, %v3609_v30, %v3737_v36  ;;  %v3859_v53 = vpack.c.bf16 %v3800_v23, %v3799_v16  ;;  %v10992_v27 = vld [vmem:[#allocation39_spill] sm:$0xff]  ;;  %v10993_v16 = vld [vmem:[#allocation40_spill] sm:$0xff] }
 0x43e   :  { %v3614_v43 = vadd.f32 %v8863_v28, %v3545_v11  ;;  %v2181_v3 = vpop.permute.xlu1 %2180  ;;  %v3860_v49 = vpack.c.bf16 %v3802_v60, %v3801_v44  ;;  %v9045_v38 = vmul.f32 %v8750_v22, %v2554_v0  ;;  %v2732_v12 = vmul.f32 %v8750_v22, %v2534_v4 }
 0x43f   :  { %vm3677_vm10 = vcmp.gt.f32.partialorder %v3613_v59, 0.0  ;;  %v3741_v1 = vmul.f32 0.01, %v3613_v59  ;;  %v3739_v39 = vmul.f32 0.01, %v3611_v6  ;;  %vm3675_vm11 = vcmp.gt.f32.partialorder %v3611_v6, 0.0  ;;  %6471 = vmatprep.mubr.msk.bf16.mxu0 %vm185_vm2, %v3859_v53 }
 0x440   :  { %vm3678_vm12 = vcmp.gt.f32.partialorder %v3614_v43, 0.0  ;;  %v3742_v14 = vmul.f32 0.01, %v3614_v43  ;;  %v3612_v21 = vadd.f32 %v8863_v28, %v3543_v10  ;;  %v9050_v30 = vpop.f32.mrb[40].mxu1  ;;  %6632 = vset.pattern.permute.xlu1 %v10855_v5  ;;  %v2409_v36 = vmul.f32 %v8762_v46, %v2176_v17  ;;  %6472 = vmatmul.mubr.msk.bf16.gmra.mrb[88].mxu0 %vm185_vm2, %v3860_v49  ;;  %v2558_v17 = vpop.permute.xlu0 %2557  ;;  %v10994_v49 = vld [vmem:[#allocation41_spill] sm:$0xff] }
 0x441   :  { %v3484_v47 = vadd.f32 %v10990_v9, %v9050_v30  ;;  %v9057_v4 = vpop.f32.mrb[41].mxu1  ;;  %2290 = vperm.xlu1 %6632, %v10991_v41   ;;  %v3805_v51 = vsel %vm3677_vm10, %v3613_v59, %v3741_v1  ;;  %v3803_v59 = vsel %vm3675_vm11, %v3611_v6, %v3739_v39  ;;  %v2796_v6 = vadd.f32 %v2732_v12, %v8843_v55 }
 0x442   :  { %vm3676_vm13 = vcmp.gt.f32.partialorder %v3612_v21, 0.0  ;;  %v3740_v63 = vmul.f32 0.01, %v3612_v21  ;;  %v3482_v50 = vadd.f32 %v10992_v27, %v9057_v4  ;;  %v9062_v26 = vpop.f32.mrb[42].mxu1  ;;  %v3806_v0 = vsel %vm3678_vm12, %v3614_v43, %v3742_v14 }
 0x443   :  { %v3548_v11 = vadd.f32 %v3484_v47, %v8999_v8  ;;  %v3485_v23 = vadd.f32 %v10993_v16, %v9062_v26  ;;  %v9068_v60 = vpop.f32.mrb[43].mxu1  ;;  %v2546_v10 = vpop.permute.xlu1 %2545  ;;  %v3862_v44 = vpack.c.bf16 %v3806_v0, %v3805_v51  ;;  %v2410_v14 = vmul.f32 %v8762_v46, %v2181_v3  ;;  %v6693_v51 = vld [vmem:[%s10715_s3 + $0x160] sm:$0xff] }
 0x444   :  { %v3546_v53 = vadd.f32 %v3482_v50, %v8949_v35  ;;  %v3483_v1 = vadd.f32 %v10994_v49, %v9068_v60  ;;  %v2735_v9 = vmul.f32 %v8750_v22, %v2546_v10  ;;  %v3804_v43 = vsel %vm3676_vm13, %v3612_v21, %v3740_v63  ;;  %v10996_v50 = vld [vmem:[#allocation42_spill] sm:$0xff] }
 0x445   :  { %v3617_v8 = vadd.f32 %v8863_v28, %v3548_v11  ;;  %v3549_v47 = vadd.f32 %v3485_v23, %v9004_v52  ;;  %6633 = vset.pattern.permute.xlu1 %v10860_v42  ;;  %v3861_v41 = vpack.c.bf16 %v3804_v43, %v3803_v59  ;;  %v9086_v3 = vmul.f32 %v8750_v22, %v2558_v17 }
 0x446   :  { %v3615_v39 = vadd.f32 %v8863_v28, %v3546_v53  ;;  %v3547_v35 = vadd.f32 %v3483_v1, %v8960_v32  ;;  %2629 = vperm.xlu1 %6633, %v6693_v51   ;;  %v2798_v21 = vadd.f32 %v9017_v33, %v2409_v36  ;;  %v2799_v27 = vadd.f32 %v2735_v9, %v2410_v14  ;;  %v10998_v36 = vld [vmem:[#allocation43_spill] sm:$0xff]  ;;  %v10999_v53 = vld [vmem:[#allocation44_spill] sm:$0xff] }
 0x447   :  { %v3745_v52 = vmul.f32 0.01, %v3617_v8  ;;  %v3618_v63 = vadd.f32 %v8863_v28, %v3549_v47  ;;  %6475 = vmatprep.mubr.msk.bf16.mxu0 %vm185_vm2, %v3861_v41  ;;  %v9091_v55 = vpop.f32.mrb[44].mxu1  ;;  %vm3681_vm15 = vcmp.gt.f32.partialorder %v3617_v8, 0.0  ;;  %v11002_v47 = vld [vmem:[#allocation52_spill] sm:$0xff] }
 0x448   :  { %10995 = vst [vmem:[#allocation22_spill] sm:$0xff] %v9091_v55  ;;  %vm3679_vm14 = vcmp.gt.f32.partialorder %v3615_v39, 0.0  ;;  %v3743_v32 = vmul.f32 0.01, %v3615_v39  ;;  %v3616_v12 = vadd.f32 %v8863_v28, %v3547_v35  ;;  %v3488_v0 = vadd.f32 %v10996_v50, %v9091_v55  ;;  %v2191_v11 = vpop.permute.xlu1 %2190  ;;  %v9096_v17 = vpop.f32.mrb[45].mxu1  ;;  %6476 = vmatmul.mubr.msk.bf16.gmra.mrb[92].mxu0 %vm185_vm2, %v3862_v44  ;;  %v11001_v44 = vld [vmem:[#allocation45_spill] sm:$0xff] }
 0x449   :  { %10997 = vst [vmem:[#allocation24_spill] sm:$0xff] %v9096_v17  ;;  %vm3682_vm0 = vcmp.gt.f32.partialorder %v3618_v63, 0.0  ;;  %v3746_v33 = vmul.f32 0.01, %v3618_v63  ;;  %v3486_v16 = vadd.f32 %v10998_v36, %v9096_v17  ;;  %v9101_v23 = vpop.f32.mrb[46].mxu1  ;;  %v2412_v9 = vmul.f32 %v8762_v46, %v2191_v11  ;;  %v2045_v50 = vld [vmem:[%s10715_s3 + $0x178] sm:$0xff] }
 0x44a   :  { %vm3680_vm1 = vcmp.gt.f32.partialorder %v3616_v12, 0.0  ;;  %v3744_v10 = vmul.f32 0.01, %v3616_v12  ;;  %v3552_v59 = vadd.f32 %v3488_v0, %v2798_v21  ;;  %v3489_v49 = vadd.f32 %v10999_v53, %v9101_v23  ;;  %6634 = vset.pattern.permute.xlu1 %v10855_v5  ;;  %v9106_v1 = vpop.f32.mrb[47].mxu1 }
 0x44b   :  { %11000 = vst [vmem:[#allocation35_spill] sm:$0xff] %v9106_v1  ;;  %v3550_v43 = vadd.f32 %v3486_v16, %v2796_v6  ;;  %v3487_v14 = vadd.f32 %v11001_v44, %v9106_v1  ;;  %2295 = vperm.xlu1 %6634, %v11002_v47   ;;  %v3807_v41 = vsel %vm3679_vm14, %v3615_v39, %v3743_v32 }
 0x44c   :  { %v3621_v35 = vadd.f32 %v8863_v28, %v3552_v59  ;;  %v3553_v51 = vadd.f32 %v3489_v49, %v2799_v27  ;;  %v3808_v21 = vsel %vm3680_vm1, %v3616_v12, %v3744_v10  ;;  %v3809_v0 = vsel %vm3681_vm15, %v3617_v8, %v3745_v52 }
 0x44d   :  { %v3619_v11 = vadd.f32 %v8863_v28, %v3550_v43  ;;  %v3551_v6 = vadd.f32 %v3487_v14, %v9029_v54  ;;  %v2550_v36 = vpop.permute.xlu1 %2549  ;;  %v3863_v16 = vpack.c.bf16 %v3808_v21, %v3807_v41  ;;  %v3810_v53 = vsel %vm3682_vm0, %v3618_v63, %v3746_v33  ;;  %v11004_v33 = vld [vmem:[#allocation46_spill] sm:$0xff]  ;;  %v11006_v14 = vld [vmem:[#allocation47_spill] sm:$0xff] }
 0x44e   :  { %vm3685_vm4 = vcmp.gt.f32.partialorder %v3621_v35, 0.0  ;;  %v3749_v39 = vmul.f32 0.01, %v3621_v35  ;;  %v3622_v32 = vadd.f32 %v8863_v28, %v3553_v51  ;;  %v2736_v27 = vmul.f32 %v8750_v22, %v2550_v36  ;;  %v11008_v51 = vld [vmem:[#allocation49_spill] sm:$0xff] }
 0x44f   :  { %vm3683_vm5 = vcmp.gt.f32.partialorder %v3619_v11, 0.0  ;;  %v3747_v12 = vmul.f32 0.01, %v3619_v11  ;;  %v3620_v10 = vadd.f32 %v8863_v28, %v3551_v6  ;;  %6479 = vmatprep.mubr.msk.bf16.mxu0 %vm185_vm2, %v3863_v16  ;;  %2300 = vperm.xlu1 %6634, %v2045_v50   ;;  %v9125_v8 = vpop.f32.mrb[48].mxu1  ;;  %v3864_v54 = vpack.c.bf16 %v3810_v53, %v3809_v0  ;;  %v11010_v53 = vld [vmem:[#allocation50_spill] sm:$0xff] }
 0x450   :  { %11003 = vst [vmem:[#allocation36_spill] sm:$0xff] %v9125_v8  ;;  %vm3686_vm6 = vcmp.gt.f32.partialorder %v3622_v32, 0.0  ;;  %v3750_v52 = vmul.f32 0.01, %v3622_v32  ;;  %v2800_v63 = vadd.f32 %v2736_v27, %v8867_v45  ;;  %v3492_v59 = vadd.f32 %v11004_v33, %v9125_v8  ;;  %v9130_v49 = vpop.f32.mrb[49].mxu1 }
 0x451   :  { %11005 = vst [vmem:[#allocation38_spill] sm:$0xff] %v9130_v49  ;;  %v2801_v43 = vadd.f32 %v9045_v38, %v2412_v9  ;;  %vm3684_vm7 = vcmp.gt.f32.partialorder %v3620_v10, 0.0  ;;  %v3748_v44 = vmul.f32 0.01, %v3620_v10  ;;  %6480 = vmatmul.mubr.msk.bf16.gmra.mrb[96].mxu0 %vm185_vm2, %v3864_v54  ;;  %v3490_v47 = vadd.f32 %v11006_v14, %v9130_v49  ;;  %v9136_v41 = vpop.f32.mrb[50].mxu1 }
 0x452   :  { %11007 = vst [vmem:[#allocation51_spill] sm:$0xff] %v9136_v41  ;;  %v3493_v21 = vadd.f32 %v11008_v51, %v9136_v41  ;;  %v2196_v45 = vpop.permute.xlu1 %2195  ;;  %v9140_v0 = vpop.f32.mrb[51].mxu1  ;;  %v3811_v6 = vsel %vm3683_vm5, %v3619_v11, %v3747_v12  ;;  %v3813_v36 = vsel %vm3685_vm4, %v3621_v35, %v3749_v39  ;;  %v3814_v38 = vsel %vm3686_vm6, %v3622_v32, %v3750_v52  ;;  %v11012_v52 = vld [vmem:[#allocation53_spill] sm:$0xff] }
 0x453   :  { %11009 = vst [vmem:[#allocation39_spill] sm:$0xff] %v9140_v0  ;;  %v3554_v9 = vadd.f32 %v3490_v47, %v2800_v63  ;;  %v2413_v16 = vmul.f32 %v8762_v46, %v2196_v45  ;;  %v3491_v27 = vadd.f32 %v11010_v53, %v9140_v0  ;;  %6635 = vset.pattern.permute.xlu1 %v10860_v42  ;;  %v11017_v45 = vld [vmem:[#allocation55_spill] sm:$0xff] }
 0x454   :  { %v3812_v54 = vsel %vm3684_vm7, %v3620_v10, %v3748_v44  ;;  %2641 = vperm.xlu1 %6635, %v2045_v50   ;;  %v3866_v14 = vpack.c.bf16 %v3814_v38, %v3813_v36  ;;  %v11015_v44 = vld [vmem:[#allocation57_spill] sm:$0xff]  ;;  %v11019_v38 = vld [vmem:[#allocation56_spill] sm:$0xff] }
 0x455   :  { %v3865_v33 = vpack.c.bf16 %v3812_v54, %v3811_v6  ;;  %v3623_v51 = vadd.f32 %v8863_v28, %v3554_v9  ;;  %v3555_v56 = vadd.f32 %v3491_v27, %v2801_v43  ;;  %v2802_v11 = vadd.f32 %v9086_v3, %v2413_v16  ;;  %v11014_v3 = vld [vmem:[#allocation54_spill] sm:$0xff] }
 0x456   :  { %v2201_v35 = vpop.permute.xlu1 %2200 }
 0x457   :  { %6483 = vmatprep.mubr.msk.bf16.mxu0 %vm185_vm2, %v3865_v33  ;;  %v3751_v39 = vmul.f32 0.01, %v3623_v51  ;;  %v3624_v32 = vadd.f32 %v8863_v28, %v3555_v56  ;;  %v9153_v12 = vpop.f32.mrb[52].mxu1  ;;  %vm3687_vm8 = vcmp.gt.f32.partialorder %v3623_v51, 0.0  ;;  %v3556_v47 = vadd.f32 %v3492_v59, %v2802_v11 }
 0x458   :  { %11011 = vst [vmem:[#allocation40_spill] sm:$0xff] %v9153_v12  ;;  %v9157_v10 = vadd.f32 %v11012_v52, %v9153_v12  ;;  %6636 = vset.pattern.permute.xlu1 %v10855_v5  ;;  %v9160_v50 = vpop.f32.mrb[53].mxu1  ;;  %v2414_v54 = vmul.f32 %v8762_v46, %v2201_v35  ;;  %v2570_v52 = vpop.permute.xlu0 %2569 }
 0x459   :  { %11013 = vst [vmem:[#allocation41_spill] sm:$0xff] %v9160_v50  ;;  %vm3688_vm9 = vcmp.gt.f32.partialorder %v3624_v32, 0.0  ;;  %v3752_v63 = vmul.f32 0.01, %v3624_v32  ;;  %6484 = vmatmul.mubr.msk.bf16.gmra.mrb[100].mxu0 %vm185_vm2, %v3866_v14  ;;  %v3494_v43 = vadd.f32 %v11014_v3, %v9160_v50  ;;  %2310 = vperm.xlu1 %6636, %v11015_v44   ;;  %v9166_v56 = vpop.f32.mrb[54].mxu1  ;;  %v3815_v53 = vsel %vm3687_vm8, %v3623_v51, %v3751_v39  ;;  %v6694_v3 = vld [vmem:[%s10715_s3 + $0x180] sm:$0xff] }
 0x45a   :  { %11016 = vst [vmem:[#allocation42_spill] sm:$0xff] %v9166_v56  ;;  %v9170_v6 = vadd.f32 %v11017_v45, %v9166_v56  ;;  %v9172_v36 = vpop.f32.mrb[55].mxu1  ;;  %v3625_v59 = vadd.f32 %v8863_v28, %v3556_v47  ;;  %v2741_v35 = vmul.f32 %v8750_v22, %v2570_v52 }
 0x45b   :  { %11018 = vst [vmem:[#allocation43_spill] sm:$0xff] %v9172_v36  ;;  %v3495_v9 = vadd.f32 %v11019_v38, %v9172_v36  ;;  %v2562_v16 = vpop.permute.xlu1 %2561  ;;  %v3816_v27 = vsel %vm3688_vm9, %v3624_v32, %v3752_v63  ;;  %v11021_v32 = vld [vmem:[#allocation59_spill] sm:$0xff]  ;;  %v11023_v38 = vld [vmem:[#allocation60_spill] sm:$0xff] }
 0x45c   :  { %v2739_v33 = vmul.f32 %v8750_v22, %v2562_v16  ;;  %v3867_v14 = vpack.c.bf16 %v3816_v27, %v3815_v53  ;;  %v3753_v27 = vmul.f32 0.01, %v3625_v59  ;;  %vm3689_vm3 = vcmp.gt.f32.partialorder %v3625_v59, 0.0  ;;  %v11031_v36 = vld [vmem:[#allocation63_spill] sm:$0xff] }
 0x45d   :  { %6637 = vset.pattern.permute.xlu1 %v10860_v42 }
 0x45e   :  { %v2803_v11 = vadd.f32 %v2739_v33, %v2414_v54  ;;  %2645 = vperm.xlu1 %6637, %v6694_v3   ;;  %6487 = vmatprep.mubr.msk.bf16.mxu0 %vm185_vm2, %v3867_v14 }
 0x45f   :  { %v9184_v51 = vpop.f32.mrb[56].mxu1 }
 0x460   :  { %11020 = vst [vmem:[#allocation44_spill] sm:$0xff] %v9184_v51  ;;  %v3557_v39 = vadd.f32 %v3493_v21, %v2803_v11  ;;  %v9189_v63 = vadd.f32 %v11021_v32, %v9184_v51  ;;  %v2211_v44 = vpop.permute.xlu1 %2210  ;;  %v9191_v45 = vpop.f32.mrb[57].mxu1  ;;  %v11025_v21 = vld [vmem:[#allocation61_spill] sm:$0xff]  ;;  %v11027_v11 = vld [vmem:[#allocation62_spill] sm:$0xff] }
 0x461   :  { %11022 = vst [vmem:[#allocation45_spill] sm:$0xff] %v9191_v45  ;;  %v2416_v47 = vmul.f32 %v8762_v46, %v2211_v44  ;;  %v9196_v16 = vadd.f32 %v11023_v38, %v9191_v45  ;;  %v9198_v53 = vpop.f32.mrb[58].mxu1  ;;  %v11028_v32 = vld [vmem:[#allocation58_spill] sm:$0xff]  ;;  %v11029_v44 = vld [vmem:[#allocation67_spill] sm:$0xff] }
 0x462   :  { %11024 = vst [vmem:[#allocation52_spill] sm:$0xff] %v9198_v53  ;;  %v3626_v54 = vadd.f32 %v8863_v28, %v3557_v39  ;;  %v9203_v33 = vadd.f32 %v11025_v21, %v9198_v53  ;;  %6638 = vset.pattern.permute.xlu1 %v10855_v5  ;;  %v9206_v14 = vpop.f32.mrb[59].mxu1  ;;  %v2415_v38 = vmul.f32 %v8762_v46, %v11029_v44  ;;  %v2049_v21 = vld [vmem:[%s10715_s3 + $0x198] sm:$0xff] }
 0x463   :  { %11026 = vst [vmem:[#allocation46_spill] sm:$0xff] %v9206_v14  ;;  %v2805_v52 = vadd.f32 %v2741_v35, %v2416_v47  ;;  %v9210_v3 = vadd.f32 %v11027_v11, %v9206_v14  ;;  %2315 = vperm.xlu1 %6638, %v11028_v32   ;;  %v3817_v47 = vsel %vm3689_vm3, %v3625_v59, %v3753_v27  ;;  %v2574_v14 = vpop.permute.xlu0 %2573 }
 0x464   :  { %v3754_v39 = vmul.f32 0.01, %v3626_v54  ;;  %vm3690_vm10 = vcmp.gt.f32.partialorder %v3626_v54, 0.0 }
 0x465   :  { %v3559_v45 = vadd.f32 %v3495_v9, %v2805_v52  ;;  %v2566_v51 = vpop.permute.xlu1 %2565  ;;  %v11033_v9 = vld [vmem:[#allocation64_spill] sm:$0xff] }
 0x466   :  { %v2740_v35 = vmul.f32 %v8750_v22, %v2566_v51  ;;  %v3818_v53 = vsel %vm3690_vm10, %v3626_v54, %v3754_v39  ;;  %v2742_v54 = vmul.f32 %v8750_v22, %v2574_v14  ;;  %v11037_v39 = vld [vmem:[#allocation66_spill] sm:$0xff] }
 0x467   :  { %2320 = vperm.xlu1 %6638, %v2049_v21   ;;  %v9219_v11 = vpop.f32.mrb[60].mxu1  ;;  %v3868_v32 = vpack.c.bf16 %v3818_v53, %v3817_v47  ;;  %v3628_v50 = vadd.f32 %v8863_v28, %v3559_v45  ;;  %v11035_v53 = vld [vmem:[#allocation65_spill] sm:$0xff] }
 0x468   :  { %11030 = vst [vmem:[#allocation47_spill] sm:$0xff] %v9219_v11  ;;  %v2804_v44 = vadd.f32 %v2740_v35, %v2415_v38  ;;  %v9224_v12 = vadd.f32 %v11031_v36, %v9219_v11  ;;  %v9226_v61 = vpop.f32.mrb[61].mxu1 }
 0x469   :  { %11032 = vst [vmem:[#allocation49_spill] sm:$0xff] %v9226_v61  ;;  %v9230_v52 = vadd.f32 %v11033_v9, %v9226_v61  ;;  %v9232_v59 = vpop.f32.mrb[62].mxu1  ;;  %6488 = vmatmul.mubr.msk.bf16.gmra.mrb[104].mxu0 %vm185_vm2, %v3868_v32  ;;  %v3756_v47 = vmul.f32 0.01, %v3628_v50  ;;  %vm3692_vm11 = vcmp.gt.f32.partialorder %v3628_v50, 0.0 }
 0x46a   :  { %11034 = vst [vmem:[#allocation50_spill] sm:$0xff] %v9232_v59  ;;  %v3558_v51 = vadd.f32 %v3494_v43, %v2804_v44  ;;  %v9237_v27 = vadd.f32 %v11035_v53, %v9232_v59  ;;  %v2216_v45 = vpop.permute.xlu1 %2215  ;;  %v9240_v36 = vpop.f32.mrb[63].mxu1  ;;  %v11039_v53 = vld [vmem:[#allocation68_spill] sm:$0xff] }
 0x46b   :  { %11036 = vst [vmem:[#allocation53_spill] sm:$0xff] %v9240_v36  ;;  %v2417_v38 = vmul.f32 %v8762_v46, %v2216_v45  ;;  %v9245_v35 = vadd.f32 %v11037_v39, %v9240_v36  ;;  %6639 = vset.pattern.permute.xlu1 %v10860_v42  ;;  %v3820_v36 = vsel %vm3692_vm11, %v3628_v50, %v3756_v47  ;;  %v11045_v50 = vld [vmem:[#allocation72_spill] sm:$0xff] }
 0x46c   :  { %v3627_v43 = vadd.f32 %v8863_v28, %v3558_v51  ;;  %2657 = vperm.xlu1 %6639, %v2049_v21   ;;  %v11041_v51 = vld [vmem:[#allocation70_spill] sm:$0xff] }
 0x46d   :  { %v2806_v44 = vadd.f32 %v2742_v54, %v2417_v38  ;;  %v6695_v54 = vld [vmem:[%s10715_s3 + $0x1a8] sm:$0xff] }
 0x46e   :  { %v3755_v32 = vmul.f32 0.01, %v3627_v43  ;;  %v2221_v9 = vpop.permute.xlu1 %2220  ;;  %vm3691_vm12 = vcmp.gt.f32.partialorder %v3627_v43, 0.0 }
 0x46f   :  { %v9249_v14 = vpop.f32.mrb[64].mxu1 }
 0x470   :  { %11038 = vst [vmem:[#allocation54_spill] sm:$0xff] %v9249_v14  ;;  %v9253_v45 = vadd.f32 %v11039_v53, %v9249_v14  ;;  %6640 = vset.pattern.permute.xlu1 %v10855_v5  ;;  %v9256_v39 = vpop.f32.mrb[65].mxu1  ;;  %v3819_v61 = vsel %vm3691_vm12, %v3627_v43, %v3755_v32  ;;  %v3560_v53 = vadd.f32 %v9157_v10, %v2806_v44  ;;  %v11043_v14 = vld [vmem:[#allocation71_spill] sm:$0xff]  ;;  %v6696_v44 = vld [vmem:[%s10715_s3 + $0x1a0] sm:$0xff] }
 0x471   :  { %11040 = vst [vmem:[#allocation57_spill] sm:$0xff] %v9256_v39  ;;  %v9260_v21 = vadd.f32 %v11041_v51, %v9256_v39  ;;  %2330 = vperm.xlu1 %6640, %v6695_v54   ;;  %v9265_v38 = vpop.f32.mrb[66].mxu1  ;;  %v3869_v11 = vpack.c.bf16 %v3820_v36, %v3819_v61  ;;  %v2418_v51 = vmul.f32 %v8762_v46, %v2221_v9  ;;  %v2586_v61 = vpop.permute.xlu0 %2585  ;;  %v11047_v9 = vld [vmem:[#allocation74_spill] sm:$0xff] }
 0x472   :  { %11042 = vst [vmem:[#allocation55_spill] sm:$0xff] %v9265_v38  ;;  %v9270_v59 = vadd.f32 %v11043_v14, %v9265_v38  ;;  %v9272_v43 = vpop.f32.mrb[67].mxu1  ;;  %v3629_v10 = vadd.f32 %v8863_v28, %v3560_v53  ;;  %v2745_v14 = vmul.f32 %v8750_v22, %v2586_v61 }
 0x473   :  { %11044 = vst [vmem:[#allocation56_spill] sm:$0xff] %v9272_v43  ;;  %v9276_v47 = vadd.f32 %v11045_v50, %v9272_v43  ;;  %v2578_v32 = vpop.permute.xlu1 %2577  ;;  %6491 = vmatprep.mubr.msk.bf16.mxu0 %vm185_vm2, %v3869_v11 }
 0x474   :  { %v2743_v54 = vmul.f32 %v8750_v22, %v2578_v32  ;;  %v3757_v61 = vmul.f32 0.01, %v3629_v10  ;;  %vm3693_vm13 = vcmp.gt.f32.partialorder %v3629_v10, 0.0 }
 0x475   :  { %6641 = vset.pattern.permute.xlu1 %v10860_v42  ;;  %v2590_v49 = vpop.permute.xlu0 %2589 }
 0x476   :  { %v2807_v36 = vadd.f32 %v2743_v54, %v2418_v51  ;;  %2661 = vperm.xlu1 %6641, %v6696_v44   ;;  %v11049_v51 = vld [vmem:[#allocation76_spill] sm:$0xff] }
 0x477   :  { %v9287_v50 = vpop.f32.mrb[68].mxu1 }
 0x478   :  { %11046 = vst [vmem:[#allocation59_spill] sm:$0xff] %v9287_v50  ;;  %v3561_v11 = vadd.f32 %v9170_v6, %v2807_v36  ;;  %v9292_v32 = vadd.f32 %v11047_v9, %v9287_v50  ;;  %v2231_v39 = vpop.permute.xlu1 %2230  ;;  %v9294_v43 = vpop.f32.mrb[69].mxu1  ;;  %v11051_v6 = vld [vmem:[#allocation77_spill] sm:$0xff] }
 0x479   :  { %11048 = vst [vmem:[#allocation60_spill] sm:$0xff] %v9294_v43  ;;  %v2420_v53 = vmul.f32 %v8762_v46, %v2231_v39  ;;  %v9299_v54 = vadd.f32 %v11049_v51, %v9294_v43  ;;  %v9301_v44 = vpop.f32.mrb[70].mxu1  ;;  %v11053_v39 = vld [vmem:[#allocation78_spill] sm:$0xff]  ;;  %v6697_v51 = vld [vmem:[%s10715_s3 + $0x1b0] sm:$0xff] }
 0x47a   :  { %11050 = vst [vmem:[#allocation61_spill] sm:$0xff] %v9301_v44  ;;  %v3630_v38 = vadd.f32 %v8863_v28, %v3561_v11  ;;  %v9306_v36 = vadd.f32 %v11051_v6, %v9301_v44  ;;  %6642 = vset.pattern.permute.xlu1 %v10855_v5  ;;  %v9309_v9 = vpop.f32.mrb[71].mxu1  ;;  %v11054_v11 = vld [vmem:[#allocation69_spill] sm:$0xff]  ;;  %v2053_v44 = vld [vmem:[%s10715_s3 + $0x1b8] sm:$0xff] }
 0x47b   :  { %11052 = vst [vmem:[#allocation62_spill] sm:$0xff] %v9309_v9  ;;  %v2809_v50 = vadd.f32 %v2745_v14, %v2420_v53  ;;  %v9313_v56 = vadd.f32 %v11053_v39, %v9309_v9  ;;  %2335 = vperm.xlu1 %6642, %v6697_v51   ;;  %v2419_v43 = vmul.f32 %v8762_v46, %v11054_v11 }
 0x47c   :  { %v3758_v6 = vmul.f32 0.01, %v3630_v38  ;;  %vm3694_vm14 = vcmp.gt.f32.partialorder %v3630_v38, 0.0  ;;  %v3821_v9 = vsel %vm3693_vm13, %v3629_v10, %v3757_v61 }
 0x47d   :  { %v3563_v14 = vadd.f32 %v9210_v3, %v2809_v50  ;;  %v2582_v53 = vpop.permute.xlu1 %2581  ;;  %v11058_v3 = vld [vmem:[#allocation82_spill] sm:$0xff] }
 0x47e   :  { %v2744_v39 = vmul.f32 %v8750_v22, %v2582_v53  ;;  %v3822_v57 = vsel %vm3694_vm14, %v3630_v38, %v3758_v6  ;;  %v2746_v38 = vmul.f32 %v8750_v22, %v2590_v49 }
 0x47f   :  { %2340 = vperm.xlu1 %6642, %v2053_v44   ;;  %v9325_v51 = vpop.f32.mrb[72].mxu1  ;;  %v3870_v15 = vpack.c.bf16 %v3822_v57, %v3821_v9  ;;  %v3632_v11 = vadd.f32 %v8863_v28, %v3563_v14  ;;  %v11062_v14 = vld [vmem:[#allocation84_spill] sm:$0xff] }
 0x480   :  { %11055 = vst [vmem:[#allocation58_spill] sm:$0xff] %v9325_v51  ;;  %v2808_v0 = vadd.f32 %v2744_v39, %v2419_v43  ;;  %v9330_v8 = vadd.f32 %v11056_v48, %v9325_v51  ;;  %v9332_v7 = vpop.f32.mrb[73].mxu1  ;;  %v11060_v43 = vld [vmem:[#allocation83_spill] sm:$0xff] }
 0x481   :  { %11057 = vst [vmem:[#allocation67_spill] sm:$0xff] %v9332_v7  ;;  %v9336_v50 = vadd.f32 %v11058_v3, %v9332_v7  ;;  %v9338_v10 = vpop.f32.mrb[74].mxu1  ;;  %6492 = vmatmul.mubr.msk.bf16.gmra.mrb[108].mxu0 %vm185_vm2, %v3870_v15  ;;  %v3760_v15 = vmul.f32 0.01, %v3632_v11  ;;  %vm3696_vm15 = vcmp.gt.f32.partialorder %v3632_v11, 0.0  ;;  %v11064_v3 = vld [vmem:[#allocation86_spill] sm:$0xff] }
 0x482   :  { %11059 = vst [vmem:[#allocation63_spill] sm:$0xff] %v9338_v10  ;;  %v3562_v57 = vadd.f32 %v9196_v16, %v2808_v0  ;;  %v9345_v61 = vadd.f32 %v11060_v43, %v9338_v10  ;;  %v2236_v48 = vpop.permute.xlu1 %2235  ;;  %v9347_v9 = vpop.f32.mrb[75].mxu1 }
 0x483   :  { %11061 = vst [vmem:[#allocation64_spill] sm:$0xff] %v9347_v9  ;;  %v2421_v6 = vmul.f32 %v8762_v46, %v2236_v48  ;;  %v9352_v53 = vadd.f32 %v11062_v14, %v9347_v9  ;;  %6643 = vset.pattern.permute.xlu1 %v10860_v42  ;;  %v3824_v14 = vsel %vm3696_vm15, %v3632_v11, %v3760_v15  ;;  %v11070_v11 = vld [vmem:[#allocation90_spill] sm:$0xff] }
 0x484   :  { %v3631_v22 = vadd.f32 %v8863_v28, %v3562_v57  ;;  %2673 = vperm.xlu1 %6643, %v2053_v44   ;;  %v11066_v57 = vld [vmem:[#allocation88_spill] sm:$0xff] }
 0x485   :  { %v2810_v0 = vadd.f32 %v2746_v38, %v2421_v6  ;;  %v6698_v38 = vld [vmem:[%s10715_s3 + $0x1c8] sm:$0xff] }
 0x486   :  { %v3759_v49 = vmul.f32 0.01, %v3631_v22  ;;  %v2241_v16 = vpop.permute.xlu1 %2240  ;;  %vm3695_vm0 = vcmp.gt.f32.partialorder %v3631_v22, 0.0 }
 0x487   :  { %v9356_v39 = vpop.f32.mrb[76].mxu1 }
 0x488   :  { %11063 = vst [vmem:[#allocation65_spill] sm:$0xff] %v9356_v39  ;;  %v9360_v46 = vadd.f32 %v11064_v3, %v9356_v39  ;;  %6644 = vset.pattern.permute.xlu1 %v10855_v5  ;;  %v9363_v43 = vpop.f32.mrb[77].mxu1  ;;  %v3823_v48 = vsel %vm3695_vm0, %v3631_v22, %v3759_v49  ;;  %v3564_v3 = vadd.f32 %v9189_v63, %v2810_v0  ;;  %v11068_v39 = vld [vmem:[#allocation89_spill] sm:$0xff]  ;;  %v9395_v0 = vld [vmem:[%s10709_s6 + $0xa] ss:$0 sm:$0xff] }
 0x489   :  { %11065 = vst [vmem:[#allocation66_spill] sm:$0xff] %v9363_v43  ;;  %v9367_v44 = vadd.f32 %v11066_v57, %v9363_v43  ;;  %2350 = vperm.xlu1 %6644, %v6698_v38   ;;  %v9372_v6 = vpop.f32.mrb[78].mxu1  ;;  %v3871_v9 = vpack.c.bf16 %v3824_v14, %v3823_v48  ;;  %v2602_v57 = vpop.permute.xlu0 %2601  ;;  %v9389_v48 = vld [vmem:[%s10709_s6 + $0x9] ss:$0 sm:$0xff]  ;;  %v6701_v38 = vld [vmem:[%s10715_s3 + $0x1c0] sm:$0xff]  ;;  %v11072_v43 = vld [vmem:[#allocation92_spill] sm:$0xff] }
 0x48a   :  { %11067 = vst [vmem:[#allocation68_spill] sm:$0xff] %v9372_v6  ;;  %v9377_v7 = vadd.f32 %v11068_v39, %v9372_v6  ;;  %v9379_v22 = vpop.f32.mrb[79].mxu1  ;;  %v2422_v63 = vmul.f32 %v9389_v48, %v2241_v16  ;;  %v3633_v14 = vadd.f32 %v8863_v28, %v3564_v3 }
 0x48b   :  { %11069 = vst [vmem:[#allocation70_spill] sm:$0xff] %v9379_v22  ;;  %v9383_v15 = vadd.f32 %v11070_v11, %v9379_v22  ;;  %v2594_v49 = vpop.permute.xlu1 %2593  ;;  %6495 = vmatprep.mubr.msk.bf16.mxu0 %vm185_vm2, %v3871_v9  ;;  %v2749_v11 = vmul.f32 %v9395_v0, %v2602_v57 }
 0x48c   :  { %v2747_v39 = vmul.f32 %v9395_v0, %v2594_v49  ;;  %v3761_v57 = vmul.f32 0.01, %v3633_v14  ;;  %vm3697_vm1 = vcmp.gt.f32.partialorder %v3633_v14, 0.0 }
 0x48d   :  { %6645 = vset.pattern.permute.xlu1 %v10860_v42 }
 0x48e   :  { %v2811_v9 = vadd.f32 %v2747_v39, %v2422_v63  ;;  %2677 = vperm.xlu1 %6645, %v6701_v38   ;;  %v11074_v63 = vld [vmem:[#allocation93_spill] sm:$0xff] }
 0x48f   :  { %v9404_v16 = vpop.f32.mrb[80].mxu1 }
 0x490   :  { %11071 = vst [vmem:[#allocation71_spill] sm:$0xff] %v9404_v16  ;;  %v3565_v22 = vadd.f32 %v9203_v33, %v2811_v9  ;;  %v9409_v6 = vadd.f32 %v11072_v43, %v9404_v16  ;;  %v2251_v49 = vpop.permute.xlu1 %2250  ;;  %v9411_v10 = vpop.f32.mrb[81].mxu1  ;;  %v11076_v33 = vld [vmem:[#allocation94_spill] sm:$0xff] }
 0x491   :  { %11073 = vst [vmem:[#allocation72_spill] sm:$0xff] %v9411_v10  ;;  %v2424_v3 = vmul.f32 %v9389_v48, %v2251_v49  ;;  %v9416_v39 = vadd.f32 %v11074_v63, %v9411_v10  ;;  %v9418_v38 = vpop.f32.mrb[82].mxu1  ;;  %v2606_v16 = vpop.permute.xlu0 %2605  ;;  %v11078_v49 = vld [vmem:[#allocation95_spill] sm:$0xff] }
 0x492   :  { %11075 = vst [vmem:[#allocation74_spill] sm:$0xff] %v9418_v38  ;;  %v3634_v51 = vadd.f32 %v8863_v28, %v3565_v22  ;;  %v9423_v9 = vadd.f32 %v11076_v33, %v9418_v38  ;;  %6646 = vset.pattern.permute.xlu1 %v10855_v5  ;;  %v9426_v43 = vpop.f32.mrb[83].mxu1  ;;  %v6702_v63 = vld [vmem:[%s10715_s3 + $0x1d0] sm:$0xff]  ;;  %v2057_v33 = vld [vmem:[%s10715_s3 + $0x1d8] sm:$0xff] }
 0x493   :  { %11077 = vst [vmem:[#allocation76_spill] sm:$0xff] %v9426_v43  ;;  %v2813_v41 = vadd.f32 %v2749_v11, %v2424_v3  ;;  %v9430_v2 = vadd.f32 %v11078_v49, %v9426_v43  ;;  %2355 = vperm.xlu1 %6646, %v6702_v63   ;;  %v11079_v11 = vld [vmem:[#allocation73_spill] sm:$0xff]  ;;  %v3825_v43 = vsel %vm3697_vm1, %v3633_v14, %v3761_v57 }
 0x494   :  { %v3762_v22 = vmul.f32 0.01, %v3634_v51  ;;  %vm3698_vm4 = vcmp.gt.f32.partialorder %v3634_v51, 0.0  ;;  %v2423_v3 = vmul.f32 %v9389_v48, %v11079_v11 }
 0x495   :  { %v3567_v10 = vadd.f32 %v9245_v35, %v2813_v41  ;;  %v2598_v38 = vpop.permute.xlu1 %2597  ;;  %v2618_v35 = vpop.permute.xlu0 %2617 }
 0x496   :  { %v2748_v49 = vmul.f32 %v9395_v0, %v2598_v38  ;;  %v3826_v17 = vsel %vm3698_vm4, %v3634_v51, %v3762_v22 }
 0x497   :  { %2360 = vperm.xlu1 %6646, %v2057_v33   ;;  %v9442_v37 = vpop.f32.mrb[84].mxu1  ;;  %v3872_v63 = vpack.c.bf16 %v3826_v17, %v3825_v43  ;;  %v3636_v1 = vadd.f32 %v8863_v28, %v3567_v10  ;;  %v2750_v17 = vmul.f32 %v9395_v0, %v2606_v16 }
 0x498   :  { %v2812_v31 = vadd.f32 %v2748_v49, %v2423_v3  ;;  %v9447_v55 = vadd.f32 %v8803_v19, %v9442_v37  ;;  %v9449_v41 = vpop.f32.mrb[85].mxu1  ;;  %v6704_v49 = vld [vmem:[%s10715_s3 + $0x1e8] sm:$0xff] }
 0x499   :  { %v9453_v11 = vadd.f32 %v8813_v34, %v9449_v41  ;;  %v9455_v14 = vpop.f32.mrb[86].mxu1  ;;  %6496 = vmatmul.mubr.msk.bf16.gmra.mrb[112].mxu0 %vm185_vm2, %v3872_v63  ;;  %v3764_v57 = vmul.f32 0.01, %v3636_v1  ;;  %vm3700_vm5 = vcmp.gt.f32.partialorder %v3636_v1, 0.0  ;;  %v2622_v22 = vpop.permute.xlu0 %2621 }
 0x49a   :  { %v3566_v28 = vadd.f32 %v9230_v52, %v2812_v31  ;;  %v9462_v51 = vadd.f32 %v8831_v24, %v9455_v14  ;;  %v2256_v19 = vpop.permute.xlu1 %2255  ;;  %v9464_v10 = vpop.f32.mrb[87].mxu1  ;;  %v9475_v31 = vld [vmem:[%s10709_s6 + $0x4] ss:$0 sm:$0xff] }
 0x49b   :  { %11080 = vst [vmem:[#allocation77_spill] sm:$0xff] %v9464_v10  ;;  %v2425_v38 = vmul.f32 %v9389_v48, %v2256_v19  ;;  %v9469_v34 = vadd.f32 %v8847_v40, %v9464_v10  ;;  %6647 = vset.pattern.permute.xlu1 %v10860_v42  ;;  %v3828_v3 = vsel %vm3700_vm5, %v3636_v1, %v3764_v57 }
 0x49c   :  { %v3635_v24 = vadd.f32 %v9475_v31, %v3566_v28  ;;  %2689 = vperm.xlu1 %6647, %v2057_v33  }
 0x49d   :  { %v2814_v16 = vadd.f32 %v2750_v17, %v2425_v38  ;;  %v2634_v38 = vpop.permute.xlu0 %2633 }
 0x49e   :  { %v3763_v52 = vmul.f32 0.01, %v3635_v24  ;;  %v2261_v43 = vpop.permute.xlu1 %2260  ;;  %vm3699_vm6 = vcmp.gt.f32.partialorder %v3635_v24, 0.0 }
 0x49f   :  { %v3568_v19 = vadd.f32 %v9224_v12, %v2814_v16  ;;  %v2426_v33 = vmul.f32 %v9389_v48, %v2261_v43  ;;  %v2753_v12 = vmul.f32 %v9395_v0, %v2618_v35 }
 0x4a0   :  { %6649 = vset.pattern.permute.xlu1 %v10855_v5  ;;  %v3827_v40 = vsel %vm3699_vm6, %v3635_v24, %v3763_v52  ;;  %v6705_v24 = vld [vmem:[%s10715_s3 + $0x1e0] sm:$0xff] }
 0x4a1   :  { %2370 = vperm.xlu1 %6649, %v6704_v49   ;;  %v3873_v63 = vpack.c.bf16 %v3828_v3, %v3827_v40  ;;  %v3637_v1 = vadd.f32 %v9475_v31, %v3568_v19  ;;  %v9499_v19 = vpop.permute.xlu0 %2637 }
 0x4a3   :  { %v2610_v28 = vpop.permute.xlu1 %2609  ;;  %6499 = vmatprep.mubr.msk.bf16.mxu0 %vm185_vm2, %v3873_v63  ;;  %v3765_v40 = vmul.f32 0.01, %v3637_v1  ;;  %v6706_v63 = vld [vmem:[%s10715_s3 + $0x1f0] sm:$0xff]  ;;  %vm3701_vm7 = vcmp.gt.f32.partialorder %v3637_v1, 0.0 }
 0x4a4   :  { %v2751_v17 = vmul.f32 %v9395_v0, %v2610_v28 }
 0x4a5   :  { %6650 = vset.pattern.permute.xlu1 %v10860_v42  ;;  %v9511_v10 = vpop.permute.xlu0 %2649 }
 0x4a6   :  { %v2815_v57 = vadd.f32 %v2751_v17, %v2426_v33  ;;  %2693 = vperm.xlu1 %6650, %v6705_v24   ;;  %v11081_v17 = vld [vmem:[#allocation75_spill] sm:$0xff]  ;;  %v3829_v24 = vsel %vm3701_vm7, %v3637_v1, %v3765_v40 }
 0x4a8   :  { %v3569_v52 = vadd.f32 %v9237_v27, %v2815_v57  ;;  %v2271_v16 = vpop.permute.xlu1 %2270  ;;  %v2061_v27 = vld [vmem:[%s10715_s3 + $0x1f8] sm:$0xff] }
 0x4a9   :  { %v2428_v43 = vmul.f32 %v9389_v48, %v2271_v16 }
 0x4aa   :  { %v3638_v3 = vadd.f32 %v9475_v31, %v3569_v52  ;;  %6651 = vset.pattern.permute.xlu1 %v10855_v5  ;;  %v2427_v5 = vmul.f32 %v9389_v48, %v11081_v17 }
 0x4ab   :  { %v2817_v49 = vadd.f32 %v2753_v12, %v2428_v43  ;;  %2375 = vperm.xlu1 %6651, %v6706_v63   ;;  %v2754_v63 = vmul.f32 %v9395_v0, %v2622_v22 }
 0x4ac   :  { %v3766_v35 = vmul.f32 0.01, %v3638_v3  ;;  %vm3702_vm8 = vcmp.gt.f32.partialorder %v3638_v3, 0.0 }
 0x4ad   :  { %v3571_v28 = vadd.f32 %v9276_v47, %v2817_v49  ;;  %v2614_v33 = vpop.permute.xlu1 %2613 }
 0x4ae   :  { %v2752_v57 = vmul.f32 %v9395_v0, %v2614_v33  ;;  %v3830_v12 = vsel %vm3702_vm8, %v3638_v3, %v3766_v35  ;;  %v9517_v33 = vpop.permute.xlu0 %2653 }
 0x4af   :  { %2380 = vperm.xlu1 %6651, %v2061_v27   ;;  %v3874_v52 = vpack.c.bf16 %v3830_v12, %v3829_v24  ;;  %v3640_v16 = vadd.f32 %v9475_v31, %v3571_v28 }
 0x4b0   :  { %v2816_v43 = vadd.f32 %v2752_v57, %v2427_v5 }
 0x4b1   :  { %6500 = vmatmul.mubr.msk.bf16.gmra.mrb[116].mxu0 %vm185_vm2, %v3874_v52  ;;  %v3768_v1 = vmul.f32 0.01, %v3640_v16  ;;  %vm3704_vm9 = vcmp.gt.f32.partialorder %v3640_v16, 0.0 }
 0x4b2   :  { %v3570_v47 = vadd.f32 %v9260_v21, %v2816_v43  ;;  %v2276_v49 = vpop.permute.xlu1 %2275 }
 0x4b3   :  { %v2429_v17 = vmul.f32 %v9389_v48, %v2276_v49  ;;  %6652 = vset.pattern.permute.xlu1 %v10860_v42  ;;  %v3832_v5 = vsel %vm3704_vm9, %v3640_v16, %v3768_v1 }
 0x4b4   :  { %v3639_v40 = vadd.f32 %v9475_v31, %v3570_v47  ;;  %2705 = vperm.xlu1 %6652, %v2061_v27   ;;  %v9523_v27 = vpop.permute.xlu0 %2665 }
 0x4b5   :  { %v2818_v35 = vadd.f32 %v2754_v63, %v2429_v17  ;;  %v2757_v63 = vmul.f32 %v9395_v0, %v2634_v38 }
 0x4b6   :  { %v3767_v3 = vmul.f32 0.01, %v3639_v40  ;;  %v2281_v28 = vpop.permute.xlu1 %2280  ;;  %vm3703_vm3 = vcmp.gt.f32.partialorder %v3639_v40, 0.0 }
 0x4b7   :  { %v3572_v21 = vadd.f32 %v9253_v45, %v2818_v35  ;;  %v2430_v42 = vmul.f32 %v9389_v48, %v2281_v28 }
 0x4b8   :  { %v3831_v22 = vsel %vm3703_vm3, %v3639_v40, %v3767_v3  ;;  %v9530_v40 = vpop.permute.xlu0 %2669 }
 0x4b9   :  { %v3875_v57 = vpack.c.bf16 %v3832_v5, %v3831_v22  ;;  %v3641_v52 = vadd.f32 %v9475_v31, %v3572_v21  ;;  %v11082_v22 = vld [vmem:[#allocation79_spill] sm:$0xff] }
 0x4ba   :  { %v2431_v38 = vmul.f32 %v9389_v48, %v11082_v22 }
 0x4bb   :  { %v2626_v24 = vpop.permute.xlu1 %2625  ;;  %6503 = vmatprep.mubr.msk.bf16.mxu0 %vm185_vm2, %v3875_v57  ;;  %v3769_v45 = vmul.f32 0.01, %v3641_v52  ;;  %vm3705_vm10 = vcmp.gt.f32.partialorder %v3641_v52, 0.0 }
 0x4bc   :  { %v2755_v12 = vmul.f32 %v9395_v0, %v2626_v24 }
 0x4bd   :  { %v3833_v5 = vsel %vm3705_vm10, %v3641_v52, %v3769_v45 }
 0x4be   :  { %v2819_v43 = vadd.f32 %v2755_v12, %v2430_v42  ;;  %v9538_v12 = vpop.permute.xlu0 %2681 }
 0x4c0   :  { %v3573_v47 = vadd.f32 %v9270_v59, %v2819_v43  ;;  %v2291_v16 = vpop.permute.xlu1 %2290 }
 0x4c1   :  { %v2432_v49 = vmul.f32 %v9389_v48, %v2291_v16 }
 0x4c2   :  { %v3642_v17 = vadd.f32 %v9475_v31, %v3573_v47  ;;  %v2758_v47 = vmul.f32 %v9395_v0, %v9499_v19 }
 0x4c3   :  { %v2821_v1 = vadd.f32 %v2757_v63, %v2432_v49 }
 0x4c4   :  { %v3770_v3 = vmul.f32 0.01, %v3642_v17  ;;  %vm3706_vm11 = vcmp.gt.f32.partialorder %v3642_v17, 0.0 }
 0x4c5   :  { %v3575_v35 = vadd.f32 %v9313_v56, %v2821_v1  ;;  %v2630_v28 = vpop.permute.xlu1 %2629  ;;  %v9545_v1 = vpop.permute.xlu0 %2685 }
 0x4c6   :  { %v2756_v59 = vmul.f32 %v9395_v0, %v2630_v28  ;;  %v3834_v57 = vsel %vm3706_vm11, %v3642_v17, %v3770_v3 }
 0x4c7   :  { %v3876_v21 = vpack.c.bf16 %v3834_v57, %v3833_v5  ;;  %v3644_v24 = vadd.f32 %v9475_v31, %v3575_v35 }
 0x4c8   :  { %v2820_v42 = vadd.f32 %v2756_v59, %v2431_v38 }
 0x4c9   :  { %6504 = vmatmul.mubr.msk.bf16.gmra.mrb[120].mxu0 %vm185_vm2, %v3876_v21  ;;  %v3772_v16 = vmul.f32 0.01, %v3644_v24  ;;  %vm3708_vm12 = vcmp.gt.f32.partialorder %v3644_v24, 0.0  ;;  %v9551_v59 = vpop.permute.xlu0 %2697  ;;  %v11083_v21 = vld [vmem:[#allocation26_spill] sm:$0xff] }
 0x4ca   :  { %v3574_v43 = vadd.f32 %v9299_v54, %v2820_v42  ;;  %v2296_v63 = vpop.permute.xlu1 %2295 }
 0x4cb   :  { %v2433_v56 = vmul.f32 %v9389_v48, %v2296_v63  ;;  %v3836_v35 = vsel %vm3708_vm12, %v3644_v24, %v3772_v16  ;;  %v11084_v16 = vld [vmem:[#allocation28_spill] sm:$0xff] }
 0x4cc   :  { %v3643_v52 = vadd.f32 %v9475_v31, %v3574_v43 }
 0x4cd   :  { %v2822_v45 = vadd.f32 %v2758_v47, %v2433_v56 }
 0x4ce   :  { %v3771_v49 = vmul.f32 0.01, %v3643_v52  ;;  %v2301_v17 = vpop.permute.xlu1 %2300  ;;  %vm3707_vm13 = vcmp.gt.f32.partialorder %v3643_v52, 0.0 }
 0x4cf   :  { %v3576_v54 = vadd.f32 %v9292_v32, %v2822_v45  ;;  %v2434_v19 = vmul.f32 %v9389_v48, %v2301_v17  ;;  %v2761_v32 = vmul.f32 %v9395_v0, %v9511_v10  ;;  %v11085_v17 = vld [vmem:[#allocation81_spill] sm:$0xff] }
 0x4d0   :  { %v3835_v3 = vsel %vm3707_vm13, %v3643_v52, %v3771_v49  ;;  %v9561_v52 = vpop.permute.xlu0 %2701 }
 0x4d1   :  { %v3877_v28 = vpack.c.bf16 %v3836_v35, %v3835_v3  ;;  %v3645_v5 = vadd.f32 %v9475_v31, %v3576_v54  ;;  %v2435_v3 = vmul.f32 %v9389_v48, %v11085_v17  ;;  %v11086_v54 = vld [vmem:[#allocation29_spill] sm:$0xff]  ;;  %v11089_v17 = vld [vmem:[#allocation32_spill] sm:$0xff] }
 0x4d3   :  { %v2642_v22 = vpop.permute.xlu1 %2641  ;;  %6507 = vmatprep.mubr.msk.bf16.mxu0 %vm185_vm2, %v3877_v28  ;;  %v3773_v63 = vmul.f32 0.01, %v3645_v5  ;;  %vm3709_vm14 = vcmp.gt.f32.partialorder %v3645_v5, 0.0 }
 0x4d4   :  { %v2759_v38 = vmul.f32 %v9395_v0, %v2642_v22 }
 0x4d5   :  { %v3837_v35 = vsel %vm3709_vm14, %v3645_v5, %v3773_v63  ;;  %v2762_v5 = vmul.f32 %v9395_v0, %v9517_v33 }
 0x4d6   :  { %v2823_v57 = vadd.f32 %v2759_v38, %v2434_v19 }
 0x4d7   :  { %5155 = vxpose.xlu1.c.b16.start [1/8] (narrow) %v11083_v21, 64 }
 0x4d8   :  { %v3577_v42 = vadd.f32 %v9306_v36, %v2823_v57  ;;  %v2311_v24 = vpop.permute.xlu1 %2310  ;;  %v5179_v57 = vpop.trf.xlu0 }
 0x4d9   :  { %v2436_v43 = vmul.f32 %v9389_v48, %v2311_v24  ;;  %5379 = vmatprep.mubr.bf16.mxu1 %v5179_v57  ;;  %v11087_v24 = vld [vmem:[#allocation30_spill] sm:$0xff] }
 0x4da   :  { %v3646_v56 = vadd.f32 %v9475_v31, %v3577_v42 }
 0x4db   :  { %v2825_v47 = vadd.f32 %v2761_v32, %v2436_v43  ;;  %5156 = vxpose.xlu1.c.b16.cont [2/8] (narrow) %v11084_v16, 64  ;;  %v11088_v16 = vld [vmem:[#allocation31_spill] sm:$0xff] }
 0x4dc   :  { %v3774_v49 = vmul.f32 0.01, %v3646_v56  ;;  %vm3710_vm15 = vcmp.gt.f32.partialorder %v3646_v56, 0.0 }
 0x4dd   :  { %v3579_v45 = vadd.f32 %v9352_v53, %v2825_v47  ;;  %v2646_v36 = vpop.permute.xlu1 %2645 }
 0x4de   :  { %v2760_v10 = vmul.f32 %v9395_v0, %v2646_v36  ;;  %v3838_v28 = vsel %vm3710_vm15, %v3646_v56, %v3774_v49 }
 0x4df   :  { %5157 = vxpose.xlu1.c.b16.cont [3/8] (narrow) %v11086_v54, 64  ;;  %v3878_v22 = vpack.c.bf16 %v3838_v28, %v3837_v35  ;;  %v3648_v19 = vadd.f32 %v9475_v31, %v3579_v45  ;;  %v11090_v54 = vld [vmem:[#allocation33_spill] sm:$0xff] }
 0x4e0   :  { %v2824_v38 = vadd.f32 %v2760_v10, %v2435_v3 }
 0x4e1   :  { %6508 = vmatmul.mubr.msk.bf16.gmra.mrb[124].mxu0 %vm185_vm2, %v3878_v22  ;;  %v3776_v32 = vmul.f32 0.01, %v3648_v19  ;;  %vm3712_vm0 = vcmp.gt.f32.partialorder %v3648_v19, 0.0 }
 0x4e2   :  { %v3578_v53 = vadd.f32 %v9336_v50, %v2824_v38  ;;  %v2316_v21 = vpop.permute.xlu1 %2315 }
 0x4e3   :  { %v2437_v42 = vmul.f32 %v9389_v48, %v2316_v21  ;;  %5158 = vxpose.xlu1.c.b16.cont [4/8] (narrow) %v11087_v24, 64  ;;  %v3840_v50 = vsel %vm3712_vm0, %v3648_v19, %v3776_v32 }
 0x4e4   :  { %v3647_v43 = vadd.f32 %v9475_v31, %v3578_v53 }
 0x4e5   :  { %v2826_v56 = vadd.f32 %v2762_v5, %v2437_v42  ;;  %v11091_v42 = vld [vmem:[#allocation34_spill] sm:$0xff] }
 0x4e6   :  { %v3775_v63 = vmul.f32 0.01, %v3647_v43  ;;  %v2321_v47 = vpop.permute.xlu1 %2320  ;;  %vm3711_vm1 = vcmp.gt.f32.partialorder %v3647_v43, 0.0 }
 0x4e7   :  { %5159 = vxpose.xlu1.c.b16.cont [5/8] (narrow) %v11088_v16, 64  ;;  %v3580_v36 = vadd.f32 %v9330_v8, %v2826_v56  ;;  %v2438_v33 = vmul.f32 %v9389_v48, %v2321_v47  ;;  %v2765_v8 = vmul.f32 %v9395_v0, %v9523_v27 }
 0x4e8   :  { %v3839_v49 = vsel %vm3711_vm1, %v3647_v43, %v3775_v63  ;;  %v11092_v43 = vld [vmem:[#allocation85_spill] sm:$0xff] }
 0x4e9   :  { %v3879_v45 = vpack.c.bf16 %v3840_v50, %v3839_v49  ;;  %v3649_v35 = vadd.f32 %v9475_v31, %v3580_v36 }
 0x4eb   :  { %5160 = vxpose.xlu1.c.b16.cont [6/8] (narrow) %v11089_v17, 64  ;;  %v2658_v3 = vpop.permute.xlu1 %2657  ;;  %6511 = vmatprep.mubr.msk.bf16.mxu0 %vm185_vm2, %v3879_v45  ;;  %v3777_v57 = vmul.f32 0.01, %v3649_v35  ;;  %vm3713_vm4 = vcmp.gt.f32.partialorder %v3649_v35, 0.0 }
 0x4ec   :  { %v2763_v10 = vmul.f32 %v9395_v0, %v2658_v3  ;;  %v2766_v3 = vmul.f32 %v9395_v0, %v9530_v40 }
 0x4ed   :  { %v3841_v27 = vsel %vm3713_vm4, %v3649_v35, %v3777_v57 }
 0x4ee   :  { %v2827_v28 = vadd.f32 %v2763_v10, %v2438_v33 }
 0x4ef   :  { %5161 = vxpose.xlu1.c.b16.cont [7/8] (narrow) %v11090_v54, 64 }
 0x4f0   :  { %v3581_v22 = vadd.f32 %v9345_v61, %v2827_v28  ;;  %v2331_v19 = vpop.permute.xlu1 %2330  ;;  %v2439_v61 = vmul.f32 %v9389_v48, %v11092_v43 }
 0x4f1   :  { %v2440_v38 = vmul.f32 %v9389_v48, %v2331_v19 }
 0x4f2   :  { %v3650_v53 = vadd.f32 %v9475_v31, %v3581_v22 }
 0x4f3   :  { %v2829_v21 = vadd.f32 %v2765_v8, %v2440_v38  ;;  %5162 = vxpose.xlu1.c.b16.end [8/8] (narrow) %v11091_v42, 64 }
 0x4f4   :  { %v3778_v24 = vmul.f32 0.01, %v3650_v53  ;;  %vm3714_vm5 = vcmp.gt.f32.partialorder %v3650_v53, 0.0 }
 0x4f5   :  { %v3583_v5 = vadd.f32 %v9383_v15, %v2829_v21  ;;  %v2662_v32 = vpop.permute.xlu1 %2661 }
 0x4f6   :  { %v2764_v63 = vmul.f32 %v9395_v0, %v2662_v32  ;;  %v3842_v56 = vsel %vm3714_vm5, %v3650_v53, %v3778_v24 }
 0x4f7   :  { %v3880_v47 = vpack.c.bf16 %v3842_v56, %v3841_v27  ;;  %v3652_v16 = vadd.f32 %v9475_v31, %v3583_v5 }
 0x4f8   :  { %v2828_v49 = vadd.f32 %v2764_v63, %v2439_v61  ;;  %v2769_v61 = vmul.f32 %v9395_v0, %v9538_v12 }
 0x4f9   :  { %6512 = vmatmul.mubr.msk.bf16.gmra.mrb[128].mxu0 %vm185_vm2, %v3880_v47  ;;  %v3780_v15 = vmul.f32 0.01, %v3652_v16  ;;  %vm3716_vm6 = vcmp.gt.f32.partialorder %v3652_v16, 0.0 }
 0x4fa   :  { %v3582_v50 = vadd.f32 %v9367_v44, %v2828_v49  ;;  %v2336_v45 = vpop.permute.xlu1 %2335  ;;  %v9604_v44 = vld [vmem:[%s10709_s6 + $0x5] ss:$0 sm:$0xff] }
 0x4fb   :  { %v2441_v36 = vmul.f32 %v9389_v48, %v2336_v45  ;;  %v3844_v54 = vsel %vm3716_vm6, %v3652_v16, %v3780_v15 }
 0x4fc   :  { %v3651_v17 = vadd.f32 %v9475_v31, %v3582_v50 }
 0x4fd   :  { %v2830_v35 = vadd.f32 %v2766_v3, %v2441_v36 }
 0x4fe   :  { %v3779_v33 = vmul.f32 0.01, %v3651_v17  ;;  %v2341_v10 = vpop.permute.xlu1 %2340  ;;  %vm3715_vm7 = vcmp.gt.f32.partialorder %v3651_v17, 0.0 }
 0x4ff   :  { %v3584_v19 = vadd.f32 %v9360_v46, %v2830_v35  ;;  %v2442_v40 = vmul.f32 %v9389_v48, %v2341_v10 }
 0x500   :  { %v3843_v28 = vsel %vm3715_vm7, %v3651_v17, %v3779_v33  ;;  %v11093_v17 = vld [vmem:[#allocation87_spill] sm:$0xff] }
 0x501   :  { %v3881_v22 = vpack.c.bf16 %v3844_v54, %v3843_v28  ;;  %v3653_v63 = vadd.f32 %v9475_v31, %v3584_v19  ;;  %v2443_v3 = vmul.f32 %v9389_v48, %v11093_v17 }
 0x502   :  { %v6465_v8 = vpop.f32.mrb[80].mxu0 }
 0x503   :  { %v2674_v38 = vpop.permute.xlu1 %2673  ;;  %6515 = vmatprep.mubr.msk.bf16.mxu0 %vm185_vm2, %v3881_v22  ;;  %v4037_v57 = vadd.f32 %v6465_v8, %v9604_v44  ;;  %v4028_v21 = vpop.f32.mrb[81].mxu0  ;;  %v3781_v33 = vmul.f32 0.01, %v3653_v63  ;;  %vm3717_vm11 = vcmp.gt.f32.partialorder %v3653_v63, 0.0 }
 0x504   :  { %v2767_v53 = vmul.f32 %v9395_v0, %v2674_v38  ;;  %v4029_v42 = vadd.f32 %v9604_v44, %v4028_v21  ;;  %v6466_v24 = vpop.f32.mrb[82].mxu0 }
 0x505   :  { %vm4285_vm8 = vcmp.gt.f32.partialorder %v4037_v57, 0.0  ;;  %v4349_v5 = vmul.f32 0.01, %v4037_v57  ;;  %v4040_v43 = vadd.f32 %v6466_v24, %v9604_v44  ;;  %v4031_v46 = vpop.f32.mrb[83].mxu0 }
 0x506   :  { %v2831_v32 = vadd.f32 %v2767_v53, %v2442_v40  ;;  %v4347_v27 = vmul.f32 0.01, %v4029_v42  ;;  %v4032_v56 = vadd.f32 %v9604_v44, %v4031_v46  ;;  %vm4283_vm3 = vcmp.gt.f32.partialorder %v4029_v42, 0.0 }
 0x507   :  { %vm4286_vm9 = vcmp.gt.f32.partialorder %v4040_v43, 0.0  ;;  %v4350_v16 = vmul.f32 0.01, %v4040_v43  ;;  %v4413_v50 = vsel %vm4285_vm8, %v4037_v57, %v4349_v5 }
 0x508   :  { %v3585_v47 = vadd.f32 %v9377_v7, %v2831_v32  ;;  %v2351_v49 = vpop.permute.xlu1 %2350  ;;  %vm4284_vm10 = vcmp.gt.f32.partialorder %v4032_v56, 0.0  ;;  %v4348_v45 = vmul.f32 0.01, %v4032_v56  ;;  %4543 = vrot.lane.b32.xlu0 %v4413_v50, %s6710_s29  ;;  %v4411_v54 = vsel %vm4283_vm3, %v4029_v42, %v4347_v27 }
 0x509   :  { %v2444_v36 = vmul.f32 %v9389_v48, %v2351_v49  ;;  %v4414_v15 = vsel %vm4286_vm9, %v4040_v43, %v4350_v16  ;;  %v3845_v27 = vsel %vm3717_vm11, %v3653_v63, %v3781_v33  ;;  %v2770_v63 = vmul.f32 %v9395_v0, %v9545_v1 }
 0x50a   :  { %v3654_v12 = vadd.f32 %v9475_v31, %v3585_v47  ;;  %4545 = vrot.lane.b32.xlu1 %v4414_v15, %s6710_s29  ;;  %v4412_v22 = vsel %vm4284_vm10, %v4032_v56, %v4348_v45 }
 0x50b   :  { %v2833_v10 = vadd.f32 %v2769_v61, %v2444_v36  ;;  %v6469_v7 = vpop.f32.mrb[84].mxu0 }
 0x50c   :  { %v4053_v35 = vadd.f32 %v6469_v7, %v9604_v44  ;;  %v4044_v28 = vpop.f32.mrb[85].mxu0  ;;  %v3782_v19 = vmul.f32 0.01, %v3654_v12  ;;  %4539 = vrot.lane.b32.xlu0 %v4411_v54, %s6710_s29  ;;  %vm3718_vm12 = vcmp.gt.f32.partialorder %v3654_v12, 0.0 }
 0x50d   :  { %v3587_v8 = vadd.f32 %v9430_v2, %v2833_v10  ;;  %v4045_v38 = vadd.f32 %v9604_v44, %v4044_v28  ;;  %v6470_v40 = vpop.f32.mrb[86].mxu0  ;;  %v2678_v57 = vpop.permute.xlu1 %2677 }
 0x50e   :  { %vm4289_vm13 = vcmp.gt.f32.partialorder %v4053_v35, 0.0  ;;  %v4353_v53 = vmul.f32 0.01, %v4053_v35  ;;  %v4056_v21 = vadd.f32 %v6470_v40, %v9604_v44  ;;  %v2768_v24 = vmul.f32 %v9395_v0, %v2678_v57  ;;  %v4047_v5 = vpop.f32.mrb[87].mxu0  ;;  %4541 = vrot.lane.b32.xlu1 %v4412_v22, %s6710_s29 }
 0x50f   :  { %v4351_v42 = vmul.f32 0.01, %v4045_v38  ;;  %v4048_v32 = vadd.f32 %v9604_v44, %v4047_v5  ;;  %v3656_v61 = vadd.f32 %v9475_v31, %v3587_v8  ;;  %vm4287_vm15 = vcmp.gt.f32.partialorder %v4045_v38, 0.0 }
 0x510   :  { %vm4290_vm14 = vcmp.gt.f32.partialorder %v4056_v21, 0.0  ;;  %v4354_v2 = vmul.f32 0.01, %v4056_v21  ;;  %v2832_v43 = vadd.f32 %v2768_v24, %v2443_v3  ;;  %v4417_v46 = vsel %vm4289_vm13, %v4053_v35, %v4353_v53 }
 0x511   :  { %4551 = vrot.lane.b32.xlu0 %v4417_v46, %s6710_s29  ;;  %v3846_v56 = vsel %vm3718_vm12, %v3654_v12, %v3782_v19  ;;  %v4352_v16 = vmul.f32 0.01, %v4048_v32  ;;  %vm4288_vm0 = vcmp.gt.f32.partialorder %v4048_v32, 0.0  ;;  %v4415_v3 = vsel %vm4287_vm15, %v4045_v38, %v4351_v42 }
 0x512   :  { %v3586_v47 = vadd.f32 %v9416_v39, %v2832_v43  ;;  %v3882_v49 = vpack.c.bf16 %v3846_v56, %v3845_v27  ;;  %v2356_v50 = vpop.permute.xlu1 %2355  ;;  %v4418_v45 = vsel %vm4290_vm14, %v4056_v21, %v4354_v2  ;;  %v3784_v12 = vmul.f32 0.01, %v3656_v61 }
 0x513   :  { %4553 = vrot.lane.b32.xlu1 %v4418_v45, %s6710_s29  ;;  %v2445_v15 = vmul.f32 %v9389_v48, %v2356_v50  ;;  %v6473_v17 = vpop.f32.mrb[88].mxu0  ;;  %v4416_v54 = vsel %vm4288_vm0, %v4048_v32, %v4352_v16  ;;  %vm3720_vm1 = vcmp.gt.f32.partialorder %v3656_v61, 0.0 }
 0x514   :  { %v3655_v36 = vadd.f32 %v9475_v31, %v3586_v47  ;;  %6516 = vmatmul.mubr.msk.bf16.gmra.mrb[132].mxu0 %vm185_vm2, %v3882_v49  ;;  %v4069_v39 = vadd.f32 %v6473_v17, %v9604_v44  ;;  %v4060_v33 = vpop.f32.mrb[89].mxu0  ;;  %v3848_v24 = vsel %vm3720_vm1, %v3656_v61, %v3784_v12  ;;  %v2773_v49 = vmul.f32 %v9395_v0, %v9551_v59 }
 0x515   :  { %4547 = vrot.lane.b32.xlu0 %v4415_v3, %s6710_s29  ;;  %v4061_v7 = vadd.f32 %v9604_v44, %v4060_v33  ;;  %v6474_v35 = vpop.f32.mrb[90].mxu0  ;;  %v2834_v1 = vadd.f32 %v2770_v63, %v2445_v15 }
 0x516   :  { %v3783_v10 = vmul.f32 0.01, %v3655_v36  ;;  %v2361_v28 = vpop.permute.xlu1 %2360  ;;  %vm4293_vm4 = vcmp.gt.f32.partialorder %v4069_v39, 0.0  ;;  %v4357_v22 = vmul.f32 0.01, %v4069_v39  ;;  %v4072_v19 = vadd.f32 %v6474_v35, %v9604_v44  ;;  %v4063_v8 = vpop.f32.mrb[91].mxu0 }
 0x517   :  { %4549 = vrot.lane.b32.xlu1 %v4416_v54, %s6710_s29  ;;  %vm3719_vm5 = vcmp.gt.f32.partialorder %v3655_v36, 0.0  ;;  %v4064_v38 = vadd.f32 %v9604_v44, %v4063_v8  ;;  %v4355_v40 = vmul.f32 0.01, %v4061_v7  ;;  %vm4291_vm7 = vcmp.gt.f32.partialorder %v4061_v7, 0.0 }
 0x518   :  { %vm4294_vm6 = vcmp.gt.f32.partialorder %v4072_v19, 0.0  ;;  %v4358_v57 = vmul.f32 0.01, %v4072_v19  ;;  %v4421_v53 = vsel %vm4293_vm4, %v4069_v39, %v4357_v22  ;;  %v3847_v21 = vsel %vm3719_vm5, %v3655_v36, %v3783_v10 }
 0x519   :  { %4559 = vrot.lane.b32.xlu0 %v4421_v53, %s6710_s29  ;;  %v4356_v5 = vmul.f32 0.01, %v4064_v38  ;;  %v3883_v2 = vpack.c.bf16 %v3848_v24, %v3847_v21  ;;  %v3588_v43 = vadd.f32 %v9409_v6, %v2834_v1  ;;  %vm4292_vm8 = vcmp.gt.f32.partialorder %v4064_v38, 0.0  ;;  %v11094_v24 = vld [vmem:[#allocation91_spill] sm:$0xff] }
 0x51a   :  { %v4422_v42 = vsel %vm4294_vm6, %v4072_v19, %v4358_v57  ;;  %v2446_v46 = vmul.f32 %v9389_v48, %v2361_v28  ;;  %v4419_v61 = vsel %vm4291_vm7, %v4061_v7, %v4355_v40 }
 0x51b   :  { %v2690_v32 = vpop.permute.xlu1 %2689  ;;  %4561 = vrot.lane.b32.xlu1 %v4422_v42, %s6710_s29  ;;  %v6477_v27 = vpop.f32.mrb[92].mxu0  ;;  %6519 = vmatprep.mubr.msk.bf16.mxu0 %vm185_vm2, %v3883_v2  ;;  %v4420_v3 = vsel %vm4292_vm8, %v4064_v38, %v4356_v5  ;;  %v3657_v63 = vadd.f32 %v9475_v31, %v3588_v43  ;;  %v2447_v5 = vmul.f32 %v9389_v48, %v11094_v24 }
 0x51c   :  { %v2771_v56 = vmul.f32 %v9395_v0, %v2690_v32  ;;  %v4085_v47 = vadd.f32 %v6477_v27, %v9604_v44  ;;  %v4076_v16 = vpop.f32.mrb[93].mxu0 }
 0x51d   :  { %v4077_v6 = vadd.f32 %v9604_v44, %v4076_v16  ;;  %4555 = vrot.lane.b32.xlu0 %v4419_v61, %s6710_s29  ;;  %v6478_v45 = vpop.f32.mrb[94].mxu0  ;;  %v3785_v19 = vmul.f32 0.01, %v3657_v63  ;;  %vm3721_vm13 = vcmp.gt.f32.partialorder %v3657_v63, 0.0 }
 0x51e   :  { %v2835_v50 = vadd.f32 %v2771_v56, %v2446_v46  ;;  %vm4297_vm9 = vcmp.gt.f32.partialorder %v4085_v47, 0.0  ;;  %v4361_v36 = vmul.f32 0.01, %v4085_v47  ;;  %v4088_v15 = vadd.f32 %v6478_v45, %v9604_v44  ;;  %v4079_v17 = vpop.f32.mrb[95].mxu0 }
 0x51f   :  { %v4359_v39 = vmul.f32 0.01, %v4077_v6  ;;  %v4080_v59 = vadd.f32 %v9604_v44, %v4079_v17  ;;  %4557 = vrot.lane.b32.xlu1 %v4420_v3, %s6710_s29  ;;  %vm4295_vm10 = vcmp.gt.f32.partialorder %v4077_v6, 0.0 }
 0x520   :  { %v3589_v12 = vadd.f32 %v9423_v9, %v2835_v50  ;;  %v2371_v33 = vpop.permute.xlu1 %2370  ;;  %vm4298_vm3 = vcmp.gt.f32.partialorder %v4088_v15, 0.0  ;;  %v4362_v10 = vmul.f32 0.01, %v4088_v15  ;;  %v4425_v35 = vsel %vm4297_vm9, %v4085_v47, %v4361_v36 }
 0x521   :  { %v2448_v7 = vmul.f32 %v9389_v48, %v2371_v33  ;;  %v4360_v54 = vmul.f32 0.01, %v4080_v59  ;;  %4567 = vrot.lane.b32.xlu0 %v4425_v35, %s6710_s29  ;;  %vm4296_vm11 = vcmp.gt.f32.partialorder %v4080_v59, 0.0  ;;  %v4423_v53 = vsel %vm4295_vm10, %v4077_v6, %v4359_v39 }
 0x522   :  { %v3658_v28 = vadd.f32 %v9475_v31, %v3589_v12  ;;  %v4426_v9 = vsel %vm4298_vm3, %v4088_v15, %v4362_v10 }
 0x523   :  { %v2837_v22 = vadd.f32 %v2773_v49, %v2448_v7  ;;  %4569 = vrot.lane.b32.xlu1 %v4426_v9, %s6710_s29  ;;  %v4424_v43 = vsel %vm4296_vm11, %v4080_v59, %v4360_v54  ;;  %v3849_v49 = vsel %vm3721_vm13, %v3657_v63, %v3785_v19  ;;  %v2774_v59 = vmul.f32 %v9395_v0, %v9561_v52 }
 0x524   :  { %v3786_v8 = vmul.f32 0.01, %v3658_v28  ;;  %v6481_v1 = vpop.f32.mrb[96].mxu0  ;;  %vm3722_vm12 = vcmp.gt.f32.partialorder %v3658_v28, 0.0 }
 0x525   :  { %v3591_v38 = vadd.f32 %v9469_v34, %v2837_v22  ;;  %v4101_v40 = vadd.f32 %v6481_v1, %v9604_v44  ;;  %v4092_v57 = vpop.f32.mrb[97].mxu0  ;;  %v2694_v21 = vpop.permute.xlu1 %2693  ;;  %4563 = vrot.lane.b32.xlu0 %v4423_v53, %s6710_s29 }
 0x526   :  { %v4093_v42 = vadd.f32 %v9604_v44, %v4092_v57  ;;  %v6482_v32 = vpop.f32.mrb[98].mxu0  ;;  %v2772_v2 = vmul.f32 %v9395_v0, %v2694_v21  ;;  %v3850_v56 = vsel %vm3722_vm12, %v3658_v28, %v3786_v8 }
 0x527   :  { %vm4301_vm14 = vcmp.gt.f32.partialorder %v4101_v40, 0.0  ;;  %v4365_v34 = vmul.f32 0.01, %v4101_v40  ;;  %v4104_v46 = vadd.f32 %v6482_v32, %v9604_v44  ;;  %v4095_v27 = vpop.f32.mrb[99].mxu0  ;;  %v3660_v47 = vadd.f32 %v9475_v31, %v3591_v38  ;;  %4565 = vrot.lane.b32.xlu1 %v4424_v43, %s6710_s29 }
 0x528   :  { %v2836_v16 = vadd.f32 %v2772_v2, %v2447_v5  ;;  %v4096_v61 = vadd.f32 %v9604_v44, %v4095_v27  ;;  %v4363_v50 = vmul.f32 0.01, %v4093_v42  ;;  %vm4299_vm0 = vcmp.gt.f32.partialorder %v4093_v42, 0.0 }
 0x529   :  { %vm4302_vm15 = vcmp.gt.f32.partialorder %v4104_v46, 0.0  ;;  %v4366_v6 = vmul.f32 0.01, %v4104_v46  ;;  %v4429_v45 = vsel %vm4301_vm14, %v4101_v40, %v4365_v34  ;;  %v3884_v17 = vpack.c.bf16 %v3850_v56, %v3849_v49 }
 0x52a   :  { %v3590_v36 = vadd.f32 %v9453_v11, %v2836_v16  ;;  %v4364_v15 = vmul.f32 0.01, %v4096_v61  ;;  %4575 = vrot.lane.b32.xlu0 %v4429_v45, %s6710_s29  ;;  %v2376_v3 = vpop.permute.xlu1 %2375  ;;  %vm4300_vm1 = vcmp.gt.f32.partialorder %v4096_v61, 0.0  ;;  %v3788_v11 = vmul.f32 0.01, %v3660_v47 }
 0x52b   :  { %v2449_v12 = vmul.f32 %v9389_v48, %v2376_v3  ;;  %v4430_v39 = vsel %vm4302_vm15, %v4104_v46, %v4366_v6  ;;  %6520 = vmatmul.mubr.msk.bf16.gmra.mrb[136].mxu0 %vm185_vm2, %v3884_v17  ;;  %v4427_v35 = vsel %vm4299_vm0, %v4093_v42, %v4363_v50  ;;  %vm3724_vm4 = vcmp.gt.f32.partialorder %v3660_v47, 0.0 }
 0x52c   :  { %v3659_v63 = vadd.f32 %v9475_v31, %v3590_v36  ;;  %4577 = vrot.lane.b32.xlu1 %v4430_v39, %s6710_s29  ;;  %v6485_v33 = vpop.f32.mrb[100].mxu0  ;;  %v4428_v19 = vsel %vm4300_vm1, %v4096_v61, %v4364_v15  ;;  %v3852_v42 = vsel %vm3724_vm4, %v3660_v47, %v3788_v11 }
 0x52d   :  { %v4117_v10 = vadd.f32 %v6485_v33, %v9604_v44  ;;  %v4108_v7 = vpop.f32.mrb[101].mxu0  ;;  %v2838_v54 = vadd.f32 %v2774_v59, %v2449_v12 }
 0x52e   :  { %v3787_v28 = vmul.f32 0.01, %v3659_v63  ;;  %v4109_v22 = vadd.f32 %v9604_v44, %v4108_v7  ;;  %4571 = vrot.lane.b32.xlu0 %v4427_v35, %s6710_s29  ;;  %v6486_v52 = vpop.f32.mrb[102].mxu0  ;;  %v2381_v9 = vpop.permute.xlu1 %2380  ;;  %vm3723_vm6 = vcmp.gt.f32.partialorder %v3659_v63, 0.0 }
 0x52f   :  { %vm4305_vm5 = vcmp.gt.f32.partialorder %v4117_v10, 0.0  ;;  %v4369_v8 = vmul.f32 0.01, %v4117_v10  ;;  %v4120_v1 = vadd.f32 %v6486_v52, %v9604_v44  ;;  %v4111_v38 = vpop.f32.mrb[103].mxu0  ;;  %v3592_v24 = vadd.f32 %v9447_v55, %v2838_v54 }
 0x530   :  { %v4112_v40 = vadd.f32 %v9604_v44, %v4111_v38  ;;  %4573 = vrot.lane.b32.xlu1 %v4428_v19, %s6710_s29  ;;  %v4367_v57 = vmul.f32 0.01, %v4109_v22  ;;  %vm4303_vm8 = vcmp.gt.f32.partialorder %v4109_v22, 0.0  ;;  %v3851_v5 = vsel %vm3723_vm6, %v3659_v63, %v3787_v28 }
 0x531   :  { %vm4306_vm7 = vcmp.gt.f32.partialorder %v4120_v1, 0.0  ;;  %v4370_v53 = vmul.f32 0.01, %v4120_v1  ;;  %v4433_v21 = vsel %vm4305_vm5, %v4117_v10, %v4369_v8  ;;  %v3885_v34 = vpack.c.bf16 %v3852_v42, %v3851_v5 }
 0x532   :  { %4583 = vrot.lane.b32.xlu0 %v4433_v21, %s6710_s29  ;;  %v4368_v32 = vmul.f32 0.01, %v4112_v40  ;;  %vm4304_vm9 = vcmp.gt.f32.partialorder %v4112_v40, 0.0  ;;  %v2450_v46 = vmul.f32 %v9389_v48, %v2381_v9  ;;  %v4431_v55 = vsel %vm4303_vm8, %v4109_v22, %v4367_v57 }
 0x533   :  { %v4434_v2 = vsel %vm4306_vm7, %v4120_v1, %v4370_v53  ;;  %v2706_v43 = vpop.permute.xlu1 %2705  ;;  %6523 = vmatprep.mubr.msk.bf16.mxu0 %vm185_vm2, %v3885_v34  ;;  %v3661_v56 = vadd.f32 %v9475_v31, %v3592_v24 }
 0x534   :  { %4585 = vrot.lane.b32.xlu1 %v4434_v2, %s6710_s29  ;;  %v2775_v27 = vmul.f32 %v9395_v0, %v2706_v43  ;;  %v4432_v47 = vsel %vm4304_vm9, %v4112_v40, %v4368_v32 }
 0x535   :  { %v3789_v49 = vmul.f32 0.01, %v3661_v56  ;;  %vm3725_vm3 = vcmp.gt.f32.partialorder %v3661_v56, 0.0 }
 0x536   :  { %v2839_v16 = vadd.f32 %v2775_v27, %v2450_v46  ;;  %4579 = vrot.lane.b32.xlu0 %v4431_v55, %s6710_s29 }
 0x537   :  { %v3853_v17 = vsel %vm3725_vm3, %v3661_v56, %v3789_v49 }
 0x538   :  { %v3593_v61 = vadd.f32 %v9462_v51, %v2839_v16  ;;  %4581 = vrot.lane.b32.xlu1 %v4432_v47, %s6710_s29 }
 0x53a   :  { %v3662_v48 = vadd.f32 %v9475_v31, %v3593_v61 }
 0x53c   :  { %v3790_v50 = vmul.f32 0.01, %v3662_v48  ;;  %v6489_v6 = vpop.f32.mrb[104].mxu0  ;;  %vm3726_vm10 = vcmp.gt.f32.partialorder %v3662_v48, 0.0 }
 0x53d   :  { %v4133_v0 = vadd.f32 %v6489_v6, %v9604_v44  ;;  %v4124_v45 = vpop.f32.mrb[105].mxu0 }
 0x53e   :  { %v4125_v36 = vadd.f32 %v9604_v44, %v4124_v45  ;;  %v6490_v15 = vpop.f32.mrb[106].mxu0  ;;  %v3854_v3 = vsel %vm3726_vm10, %v3662_v48, %v3790_v50 }
 0x53f   :  { %vm4309_vm11 = vcmp.gt.f32.partialorder %v4133_v0, 0.0  ;;  %v4373_v12 = vmul.f32 0.01, %v4133_v0  ;;  %v4136_v51 = vadd.f32 %v6490_v15, %v9604_v44  ;;  %v4127_v39 = vpop.f32.mrb[107].mxu0  ;;  %v3886_v59 = vpack.c.bf16 %v3854_v3, %v3853_v17 }
 0x540   :  { %v4128_v31 = vadd.f32 %v9604_v44, %v4127_v39  ;;  %v4371_v63 = vmul.f32 0.01, %v4125_v36  ;;  %vm4307_vm13 = vcmp.gt.f32.partialorder %v4125_v36, 0.0 }
 0x541   :  { %vm4310_vm12 = vcmp.gt.f32.partialorder %v4136_v51, 0.0  ;;  %v4374_v33 = vmul.f32 0.01, %v4136_v51  ;;  %6524 = vmatmul.mubr.msk.bf16.gmra.mrb[140].mxu0 %vm185_vm2, %v3886_v59  ;;  %v4437_v11 = vsel %vm4309_vm11, %v4133_v0, %v4373_v12 }
 0x542   :  { %4591 = vrot.lane.b32.xlu0 %v4437_v11, %s6710_s29  ;;  %v4372_v10 = vmul.f32 0.01, %v4128_v31  ;;  %vm4308_vm14 = vcmp.gt.f32.partialorder %v4128_v31, 0.0  ;;  %v4435_v35 = vsel %vm4307_vm13, %v4125_v36, %v4371_v63 }
 0x543   :  { %v4438_v7 = vsel %vm4310_vm12, %v4136_v51, %v4374_v33 }
 0x544   :  { %4593 = vrot.lane.b32.xlu1 %v4438_v7, %s6710_s29  ;;  %v4436_v28 = vsel %vm4308_vm14, %v4128_v31, %v4372_v10 }
 0x546   :  { %4587 = vrot.lane.b32.xlu0 %v4435_v35, %s6710_s29 }
 0x548   :  { %4589 = vrot.lane.b32.xlu1 %v4436_v28, %s6710_s29 }
 0x554   :  { %v6493_v54 = vpop.f32.mrb[108].mxu0 }
 0x555   :  { %v4149_v22 = vadd.f32 %v6493_v54, %v9604_v44  ;;  %v4140_v52 = vpop.f32.mrb[109].mxu0 }
 0x556   :  { %v4141_v9 = vadd.f32 %v9604_v44, %v4140_v52  ;;  %v6494_v19 = vpop.f32.mrb[110].mxu0 }
 0x557   :  { %vm4313_vm15 = vcmp.gt.f32.partialorder %v4149_v22, 0.0  ;;  %v4377_v8 = vmul.f32 0.01, %v4149_v22  ;;  %v4152_v1 = vadd.f32 %v6494_v19, %v9604_v44  ;;  %v4143_v38 = vpop.f32.mrb[111].mxu0 }
 0x558   :  { %v4144_v40 = vadd.f32 %v9604_v44, %v4143_v38  ;;  %v4375_v57 = vmul.f32 0.01, %v4141_v9  ;;  %vm4311_vm1 = vcmp.gt.f32.partialorder %v4141_v9, 0.0 }
 0x559   :  { %vm4314_vm0 = vcmp.gt.f32.partialorder %v4152_v1, 0.0  ;;  %v4378_v53 = vmul.f32 0.01, %v4152_v1  ;;  %v4441_v21 = vsel %vm4313_vm15, %v4149_v22, %v4377_v8 }
 0x55a   :  { %4599 = vrot.lane.b32.xlu0 %v4441_v21, %s6710_s29  ;;  %v4376_v24 = vmul.f32 0.01, %v4144_v40  ;;  %vm4312_vm4 = vcmp.gt.f32.partialorder %v4144_v40, 0.0  ;;  %v4439_v42 = vsel %vm4311_vm1, %v4141_v9, %v4375_v57 }
 0x55b   :  { %v4442_v5 = vsel %vm4314_vm0, %v4152_v1, %v4378_v53 }
 0x55c   :  { %4601 = vrot.lane.b32.xlu1 %v4442_v5, %s6710_s29  ;;  %v4440_v32 = vsel %vm4312_vm4, %v4144_v40, %v4376_v24 }
 0x55e   :  { %4595 = vrot.lane.b32.xlu0 %v4439_v42, %s6710_s29 }
 0x560   :  { %4597 = vrot.lane.b32.xlu1 %v4440_v32, %s6710_s29 }
 0x56c   :  { %v6497_v2 = vpop.f32.mrb[112].mxu0 }
 0x56d   :  { %v4165_v43 = vadd.f32 %v6497_v2, %v9604_v44  ;;  %v4156_v34 = vpop.f32.mrb[113].mxu0  ;;  %v9756_v2 = vpop.trf.xlu1 }
 0x56e   :  { %v4157_v46 = vadd.f32 %v9604_v44, %v4156_v34  ;;  %v6498_v27 = vpop.f32.mrb[114].mxu0 }
 0x56f   :  { %vm4317_vm5 = vcmp.gt.f32.partialorder %v4165_v43, 0.0  ;;  %v4381_v55 = vmul.f32 0.01, %v4165_v43  ;;  %v4168_v56 = vadd.f32 %v6498_v27, %v9604_v44  ;;  %v4159_v16 = vpop.f32.mrb[115].mxu0 }
 0x570   :  { %v4160_v47 = vadd.f32 %v9604_v44, %v4159_v16  ;;  %v4379_v61 = vmul.f32 0.01, %v4157_v46  ;;  %vm4315_vm7 = vcmp.gt.f32.partialorder %v4157_v46, 0.0 }
 0x571   :  { %vm4318_vm6 = vcmp.gt.f32.partialorder %v4168_v56, 0.0  ;;  %v4382_v49 = vmul.f32 0.01, %v4168_v56  ;;  %v4445_v48 = vsel %vm4317_vm5, %v4165_v43, %v4381_v55  ;;  %v9758_v43 = vpop.trf.xlu0  ;;  %v9760_v34 = vpop.trf.xlu1 }
 0x572   :  { %4607 = vrot.lane.b32.xlu0 %v4445_v48, %s6710_s29  ;;  %v4380_v50 = vmul.f32 0.01, %v4160_v47  ;;  %vm4316_vm8 = vcmp.gt.f32.partialorder %v4160_v47, 0.0  ;;  %v4443_v0 = vsel %vm4315_vm7, %v4157_v46, %v4379_v61 }
 0x573   :  { %v4446_v6 = vsel %vm4318_vm6, %v4168_v56, %v4382_v49 }
 0x574   :  { %4609 = vrot.lane.b32.xlu1 %v4446_v6, %s6710_s29  ;;  %v4444_v45 = vsel %vm4316_vm8, %v4160_v47, %v4380_v50 }
 0x575   :  { %v9764_v47 = vpop.trf.xlu0  ;;  %v9767_v50 = vpop.trf.xlu1 }
 0x576   :  { %4603 = vrot.lane.b32.xlu0 %v4443_v0, %s6710_s29 }
 0x578   :  { %4605 = vrot.lane.b32.xlu1 %v4444_v45, %s6710_s29 }
 0x584   :  { %v6501_v36 = vpop.f32.mrb[116].mxu0 }
 0x585   :  { %v4181_v15 = vadd.f32 %v6501_v36, %v9604_v44  ;;  %v4172_v17 = vpop.f32.mrb[117].mxu0 }
 0x586   :  { %v4173_v3 = vadd.f32 %v9604_v44, %v4172_v17  ;;  %v6502_v12 = vpop.f32.mrb[118].mxu0 }
 0x587   :  { %vm4321_vm9 = vcmp.gt.f32.partialorder %v4181_v15, 0.0  ;;  %v4385_v51 = vmul.f32 0.01, %v4181_v15  ;;  %v4184_v39 = vadd.f32 %v6502_v12, %v9604_v44  ;;  %v4175_v59 = vpop.f32.mrb[119].mxu0  ;;  %v9774_v12 = vpop.trf.xlu1 }
 0x588   :  { %v4383_v31 = vmul.f32 0.01, %v4173_v3  ;;  %v4176_v33 = vadd.f32 %v9604_v44, %v4175_v59  ;;  %vm4319_vm10 = vcmp.gt.f32.partialorder %v4173_v3, 0.0 }
 0x589   :  { %vm4322_vm3 = vcmp.gt.f32.partialorder %v4184_v39, 0.0  ;;  %v4386_v63 = vmul.f32 0.01, %v4184_v39  ;;  %v4449_v11 = vsel %vm4321_vm9, %v4181_v15, %v4385_v51 }
 0x58a   :  { %4615 = vrot.lane.b32.xlu0 %v4449_v11, %s6710_s29  ;;  %v4384_v10 = vmul.f32 0.01, %v4176_v33  ;;  %vm4320_vm11 = vcmp.gt.f32.partialorder %v4176_v33, 0.0  ;;  %v4447_v35 = vsel %vm4319_vm10, %v4173_v3, %v4383_v31  ;;  %v9772_v3 = vpop.trf.xlu0 }
 0x58b   :  { %v4450_v7 = vsel %vm4322_vm3, %v4184_v39, %v4386_v63  ;;  %v9780_v31 = vpop.permute.xlu1 %4545 }
 0x58c   :  { %4617 = vrot.lane.b32.xlu1 %v4450_v7, %s6710_s29  ;;  %v4448_v28 = vsel %vm4320_vm11, %v4176_v33, %v4384_v10 }
 0x58e   :  { %4611 = vrot.lane.b32.xlu0 %v4447_v35, %s6710_s29  ;;  %v9778_v59 = vpop.permute.xlu0 %4543 }
 0x58f   :  { %v9784_v33 = vpop.permute.xlu1 %4541 }
 0x590   :  { %4613 = vrot.lane.b32.xlu1 %v4448_v28, %s6710_s29 }
 0x592   :  { %v9782_v63 = vpop.permute.xlu0 %4539 }
 0x59c   :  { %v6505_v54 = vpop.f32.mrb[120].mxu0 }
 0x59d   :  { %v4197_v22 = vadd.f32 %v6505_v54, %v9604_v44  ;;  %v4188_v52 = vpop.f32.mrb[121].mxu0  ;;  %v9788_v54 = vpop.permute.xlu0 %4551 }
 0x59e   :  { %v4189_v9 = vadd.f32 %v9604_v44, %v4188_v52  ;;  %v6506_v19 = vpop.f32.mrb[122].mxu0 }
 0x59f   :  { %vm4325_vm12 = vcmp.gt.f32.partialorder %v4197_v22, 0.0  ;;  %v4389_v8 = vmul.f32 0.01, %v4197_v22  ;;  %v4200_v1 = vadd.f32 %v6506_v19, %v9604_v44  ;;  %v4191_v38 = vpop.f32.mrb[123].mxu0  ;;  %v9791_v19 = vpop.permute.xlu1 %4553 }
 0x5a0   :  { %v4192_v40 = vadd.f32 %v9604_v44, %v4191_v38  ;;  %v4387_v53 = vmul.f32 0.01, %v4189_v9  ;;  %vm4323_vm14 = vcmp.gt.f32.partialorder %v4189_v9, 0.0 }
 0x5a1   :  { %vm4326_vm13 = vcmp.gt.f32.partialorder %v4200_v1, 0.0  ;;  %v4390_v57 = vmul.f32 0.01, %v4200_v1  ;;  %v4453_v21 = vsel %vm4325_vm12, %v4197_v22, %v4389_v8 }
 0x5a2   :  { %v4388_v24 = vmul.f32 0.01, %v4192_v40  ;;  %4623 = vrot.lane.b32.xlu0 %v4453_v21, %s6710_s29  ;;  %vm4324_vm15 = vcmp.gt.f32.partialorder %v4192_v40, 0.0  ;;  %v4451_v42 = vsel %vm4323_vm14, %v4189_v9, %v4387_v53  ;;  %v9796_v21 = vpop.permute.xlu0 %4547 }
 0x5a3   :  { %v4454_v5 = vsel %vm4326_vm13, %v4200_v1, %v4390_v57 }
 0x5a4   :  { %4625 = vrot.lane.b32.xlu1 %v4454_v5, %s6710_s29  ;;  %v4452_v32 = vsel %vm4324_vm15, %v4192_v40, %v4388_v24  ;;  %v9798_v24 = vpop.permute.xlu1 %4549 }
 0x5a6   :  { %4619 = vrot.lane.b32.xlu0 %v4451_v42, %s6710_s29 }
 0x5a8   :  { %4621 = vrot.lane.b32.xlu1 %v4452_v32, %s6710_s29  ;;  %v9802_v32 = vpop.permute.xlu0 %4559 }
 0x5b4   :  { %v6509_v46 = vpop.f32.mrb[124].mxu0 }
 0x5b5   :  { %v4213_v27 = vadd.f32 %v6509_v46, %v9604_v44  ;;  %v4204_v55 = vpop.f32.mrb[125].mxu0  ;;  %v9804_v46 = vpop.permute.xlu1 %4561 }
 0x5b6   :  { %v4205_v56 = vadd.f32 %v9604_v44, %v4204_v55  ;;  %v6510_v16 = vpop.f32.mrb[126].mxu0 }
 0x5b7   :  { %vm4329_vm0 = vcmp.gt.f32.partialorder %v4213_v27, 0.0  ;;  %v4393_v61 = vmul.f32 0.01, %v4213_v27  ;;  %v4216_v49 = vadd.f32 %v6510_v16, %v9604_v44  ;;  %v4207_v48 = vpop.f32.mrb[127].mxu0 }
 0x5b8   :  { %v4208_v6 = vadd.f32 %v9604_v44, %v4207_v48  ;;  %v4391_v45 = vmul.f32 0.01, %v4205_v56  ;;  %vm4327_vm4 = vcmp.gt.f32.partialorder %v4205_v56, 0.0 }
 0x5b9   :  { %vm4330_vm1 = vcmp.gt.f32.partialorder %v4216_v49, 0.0  ;;  %v4394_v0 = vmul.f32 0.01, %v4216_v49  ;;  %v4457_v36 = vsel %vm4329_vm0, %v4213_v27, %v4393_v61  ;;  %v9806_v27 = vpop.permute.xlu0 %4555  ;;  %v9808_v55 = vpop.permute.xlu1 %4557 }
 0x5ba   :  { %v4392_v15 = vmul.f32 0.01, %v4208_v6  ;;  %4631 = vrot.lane.b32.xlu0 %v4457_v36, %s6710_s29  ;;  %vm4328_vm5 = vcmp.gt.f32.partialorder %v4208_v6, 0.0  ;;  %v4455_v51 = vsel %vm4327_vm4, %v4205_v56, %v4391_v45 }
 0x5bb   :  { %v4458_v17 = vsel %vm4330_vm1, %v4216_v49, %v4394_v0 }
 0x5bc   :  { %4633 = vrot.lane.b32.xlu1 %v4458_v17, %s6710_s29  ;;  %v4456_v39 = vsel %vm4328_vm5, %v4208_v6, %v4392_v15 }
 0x5bd   :  { %v9810_v56 = vpop.permute.xlu0 %4567  ;;  %v9812_v61 = vpop.permute.xlu1 %4569 }
 0x5be   :  { %4627 = vrot.lane.b32.xlu0 %v4455_v51, %s6710_s29 }
 0x5c0   :  { %4629 = vrot.lane.b32.xlu1 %v4456_v39, %s6710_s29 }
 0x5cc   :  { %v6513_v11 = vpop.f32.mrb[128].mxu0 }
 0x5cd   :  { %v4229_v10 = vadd.f32 %v6513_v11, %v9604_v44  ;;  %v4220_v7 = vpop.f32.mrb[129].mxu0 }
 0x5ce   :  { %v4221_v35 = vadd.f32 %v9604_v44, %v4220_v7  ;;  %v6514_v28 = vpop.f32.mrb[130].mxu0  ;;  %v9821_v7 = vpop.permute.xlu1 %4565 }
 0x5cf   :  { %vm4333_vm6 = vcmp.gt.f32.partialorder %v4229_v10, 0.0  ;;  %v4397_v22 = vmul.f32 0.01, %v4229_v10  ;;  %v4232_v52 = vadd.f32 %v6514_v28, %v9604_v44  ;;  %v4223_v9 = vpop.f32.mrb[131].mxu0 }
 0x5d0   :  { %v4224_v8 = vadd.f32 %v9604_v44, %v4223_v9  ;;  %v4395_v38 = vmul.f32 0.01, %v4221_v35  ;;  %vm4331_vm8 = vcmp.gt.f32.partialorder %v4221_v35, 0.0 }
 0x5d1   :  { %vm4334_vm7 = vcmp.gt.f32.partialorder %v4232_v52, 0.0  ;;  %v4398_v1 = vmul.f32 0.01, %v4232_v52  ;;  %v4461_v40 = vsel %vm4333_vm6, %v4229_v10, %v4397_v22  ;;  %v9818_v10 = vpop.permute.xlu0 %4563 }
 0x5d2   :  { %v4396_v57 = vmul.f32 0.01, %v4224_v8  ;;  %4639 = vrot.lane.b32.xlu0 %v4461_v40, %s6710_s29  ;;  %vm4332_vm9 = vcmp.gt.f32.partialorder %v4224_v8, 0.0  ;;  %v4459_v5 = vsel %vm4331_vm8, %v4221_v35, %v4395_v38 }
 0x5d3   :  { %v4462_v53 = vsel %vm4334_vm7, %v4232_v52, %v4398_v1 }
 0x5d4   :  { %4641 = vrot.lane.b32.xlu1 %v4462_v53, %s6710_s29  ;;  %v4460_v42 = vsel %vm4332_vm9, %v4224_v8, %v4396_v57  ;;  %v9828_v8 = vpop.permute.xlu1 %4577 }
 0x5d5   :  { %v9825_v9 = vpop.permute.xlu0 %4575 }
 0x5d6   :  { %4635 = vrot.lane.b32.xlu0 %v4459_v5, %s6710_s29 }
 0x5d8   :  { %4637 = vrot.lane.b32.xlu1 %v4460_v42, %s6710_s29  ;;  %v9832_v38 = vpop.permute.xlu1 %4573 }
 0x5d9   :  { %v9830_v1 = vpop.permute.xlu0 %4571 }
 0x5dc   :  { %v9836_v53 = vpop.permute.xlu1 %4585 }
 0x5dd   :  { %v9834_v40 = vpop.permute.xlu0 %4583 }
 0x5e7   :  { %v6517_v16 = vpop.f32.mrb[132].mxu0 }
 0x5e8   :  { %v4245_v49 = vadd.f32 %v6517_v16, %v9604_v44  ;;  %v4236_v48 = vpop.f32.mrb[133].mxu0 }
 0x5e9   :  { %v4237_v6 = vadd.f32 %v9604_v44, %v4236_v48  ;;  %v6518_v0 = vpop.f32.mrb[134].mxu0 }
 0x5ea   :  { %vm4337_vm3 = vcmp.gt.f32.partialorder %v4245_v49, 0.0  ;;  %v4401_v45 = vmul.f32 0.01, %v4245_v49  ;;  %v4248_v36 = vadd.f32 %v6518_v0, %v9604_v44  ;;  %v4239_v15 = vpop.f32.mrb[135].mxu0 }
 0x5eb   :  { %v4240_v17 = vadd.f32 %v9604_v44, %v4239_v15  ;;  %v4399_v51 = vmul.f32 0.01, %v4237_v6  ;;  %vm4335_vm11 = vcmp.gt.f32.partialorder %v4237_v6, 0.0 }
 0x5ec   :  { %vm4338_vm10 = vcmp.gt.f32.partialorder %v4248_v36, 0.0  ;;  %v4402_v39 = vmul.f32 0.01, %v4248_v36  ;;  %v4465_v11 = vsel %vm4337_vm3, %v4245_v49, %v4401_v45 }
 0x5ed   :  { %4647 = vrot.lane.b32.xlu0 %v4465_v11, %s6710_s29  ;;  %v4400_v35 = vmul.f32 0.01, %v4240_v17  ;;  %vm4336_vm12 = vcmp.gt.f32.partialorder %v4240_v17, 0.0  ;;  %v4463_v22 = vsel %vm4335_vm11, %v4237_v6, %v4399_v51  ;;  %v9842_v51 = vpop.permute.xlu0 %4579 }
 0x5ee   :  { %v4466_v28 = vsel %vm4338_vm10, %v4248_v36, %v4402_v39  ;;  %v9845_v39 = vpop.permute.xlu1 %4581 }
 0x5ef   :  { %4649 = vrot.lane.b32.xlu1 %v4466_v28, %s6710_s29  ;;  %v4464_v52 = vsel %vm4336_vm12, %v4240_v17, %v4400_v35 }
 0x5f1   :  { %4643 = vrot.lane.b32.xlu0 %v4463_v22, %s6710_s29  ;;  %v9850_v22 = vadd.f32 %v8875_v20, %v9780_v31 }
 0x5f3   :  { %4645 = vrot.lane.b32.xlu1 %v4464_v52, %s6710_s29  ;;  %v9852_v52 = vpop.permute.xlu0 %4591 }
 0x5fe   :  { %v6521_v57 = vpop.f32.mrb[136].mxu0 }
 0x5ff   :  { %v4261_v5 = vadd.f32 %v6521_v57, %v9604_v44  ;;  %v4252_v42 = vpop.f32.mrb[137].mxu0  ;;  %v9855_v57 = vpop.permute.xlu1 %4593 }
 0x600   :  { %v4253_v16 = vadd.f32 %v9604_v44, %v4252_v42  ;;  %v6522_v49 = vpop.f32.mrb[138].mxu0  ;;  %v9859_v42 = vadd.f32 %v8845_v62, %v9778_v59 }
 0x601   :  { %vm4341_vm13 = vcmp.gt.f32.partialorder %v4261_v5, 0.0  ;;  %v4405_v48 = vmul.f32 0.01, %v4261_v5  ;;  %v4264_v6 = vadd.f32 %v6522_v49, %v9604_v44  ;;  %v4255_v0 = vpop.f32.mrb[139].mxu0  ;;  %v9864_v49 = vpop.permute.xlu0 %4587 }
 0x602   :  { %v4256_v45 = vadd.f32 %v9604_v44, %v4255_v0  ;;  %v4403_v36 = vmul.f32 0.01, %v4253_v16  ;;  %vm4339_vm15 = vcmp.gt.f32.partialorder %v4253_v16, 0.0  ;;  %11095 = vst [vmem:[#allocation78_spill] sm:$0xff] %v9859_v42 }
 0x603   :  { %vm4342_vm14 = vcmp.gt.f32.partialorder %v4264_v6, 0.0  ;;  %v4406_v15 = vmul.f32 0.01, %v4264_v6  ;;  %v4469_v17 = vsel %vm4341_vm13, %v4261_v5, %v4405_v48  ;;  %v9867_v20 = vpop.permute.xlu1 %4589 }
 0x604   :  { %4655 = vrot.lane.b32.xlu0 %v4469_v17, %s6710_s29  ;;  %v4404_v11 = vmul.f32 0.01, %v4256_v45  ;;  %vm4340_vm0 = vcmp.gt.f32.partialorder %v4256_v45, 0.0  ;;  %v4467_v28 = vsel %vm4339_vm15, %v4253_v16, %v4403_v36  ;;  %v5124_v16 = vpack.c.bf16 %v9850_v22, %v9859_v42 }
 0x605   :  { %v4470_v35 = vsel %vm4342_vm14, %v4264_v6, %v4406_v15  ;;  %v9869_v31 = vpop.permute.xlu0 %4599  ;;  %v9890_v42 = vadd.f32 %v9782_v63, %v8858_v25  ;;  %v9912_v63 = vadd.f32 %v9832_v38, %v9068_v60  ;;  %v9928_v60 = vadd.f32 %v8913_v18, %v9788_v54  ;;  %v11096_v18 = vld [vmem:[#allocation22_spill] sm:$0xff] }
 0x606   :  { %4657 = vrot.lane.b32.xlu1 %v4470_v35, %s6710_s29  ;;  %v4468_v5 = vsel %vm4340_vm0, %v4256_v45, %v4404_v11  ;;  %v9945_v54 = vadd.f32 %v11096_v18, %v9834_v40  ;;  %v11100_v40 = vld [vmem:[#allocation18_spill] sm:$0xff] }
 0x607   :  { %v9871_v48 = vpop.permute.xlu1 %4601 }
 0x608   :  { %4651 = vrot.lane.b32.xlu0 %v4467_v28, %s6710_s29  ;;  %11097 = vst [vmem:[#allocation69_spill] sm:$0xff] %v9945_v54 }
 0x609   :  { %v9876_v11 = vpop.permute.xlu0 %4595 }
 0x60a   :  { %4653 = vrot.lane.b32.xlu1 %v4468_v5, %s6710_s29 }
 0x60e   :  { %5253 = vrot.lane.b32.xlu1 %v5124_v16, %s6708_s23  ;;  %v9880_v16 = vadd.f32 %v9784_v33, %v8885_v29  ;;  %v9897_v29 = vpop.permute.xlu0 %4607 }
 0x614   :  { %v6525_v6 = vpop.f32.mrb[140].mxu0 }
 0x615   :  { %v4277_v0 = vadd.f32 %v6525_v6, %v9604_v44  ;;  %v4268_v62 = vpop.f32.mrb[141].mxu0  ;;  %v9882_v6 = vpop.permute.xlu1 %4597 }
 0x616   :  { %v4269_v59 = vadd.f32 %v9604_v44, %v4268_v62  ;;  %v6526_v45 = vpop.f32.mrb[142].mxu0 }
 0x617   :  { %vm4345_vm1 = vcmp.gt.f32.partialorder %v4277_v0, 0.0  ;;  %v4409_v36 = vmul.f32 0.01, %v4277_v0  ;;  %v4280_v15 = vadd.f32 %v6526_v45, %v9604_v44  ;;  %v4271_v17 = vpop.f32.mrb[143].mxu0  ;;  %v6707_v44 = vld [vmem:[%s10709_s6 + $0x5] ss:$0 sm:$0xff] }
 0x618   :  { %v4407_v35 = vmul.f32 0.01, %v4269_v59  ;;  %vm4343_vm5 = vcmp.gt.f32.partialorder %v4269_v59, 0.0  ;;  %v4272_v62 = vadd.f32 %v6707_v44, %v4271_v17  ;;  %v9903_v17 = vadd.f32 %v9050_v30, %v9825_v9  ;;  %v9924_v9 = vpop.permute.xlu0 %4603 }
 0x619   :  { %vm4346_vm4 = vcmp.gt.f32.partialorder %v4280_v15, 0.0  ;;  %v4410_v28 = vmul.f32 0.01, %v4280_v15  ;;  %v4473_v5 = vsel %vm4345_vm1, %v4277_v0, %v4409_v36  ;;  %v9894_v0 = vadd.f32 %v9062_v26, %v9828_v8 }
 0x61a   :  { %4663 = vrot.lane.b32.xlu0 %v4473_v5, %s6710_s29  ;;  %v4471_v33 = vsel %vm4343_vm5, %v4269_v59, %v4407_v35  ;;  %v5123_v36 = vpack.c.bf16 %v9880_v16, %v9890_v42  ;;  %v4408_v25 = vmul.f32 0.01, %v4272_v62  ;;  %vm4344_vm6 = vcmp.gt.f32.partialorder %v4272_v62, 0.0  ;;  %v11099_v5 = vld [vmem:[#allocation35_spill] sm:$0xff] }
 0x61b   :  { %v4474_v45 = vsel %vm4346_vm4, %v4280_v15, %v4410_v28  ;;  %v9905_v15 = vpop.permute.xlu1 %4609  ;;  %v5132_v26 = vpack.c.bf16 %v9894_v0, %v9903_v17  ;;  %v9917_v8 = vadd.f32 %v8925_v58, %v9791_v19  ;;  %v9921_v30 = vadd.f32 %v9830_v1, %v9057_v4  ;;  %v11098_v28 = vld [vmem:[#allocation96_spill] sm:$0xff] }
 0x61c   :  { %4665 = vrot.lane.b32.xlu1 %v4474_v45, %s6710_s29  ;;  %v4472_v59 = vsel %vm4344_vm6, %v4272_v62, %v4408_v25  ;;  %v9934_v58 = vadd.f32 %v9101_v23, %v9836_v53  ;;  %v9941_v1 = vadd.f32 %v9798_v24, %v8931_v13  ;;  %v4616_v35 = vpop.permute.xlu0 %4615  ;;  %v9950_v23 = vadd.f32 %v9796_v21, %v11098_v28  ;;  %v11101_v45 = vld [vmem:[#allocation24_spill] sm:$0xff]  ;;  %v11103_v25 = vld [vmem:[#allocation51_spill] sm:$0xff]  ;;  %v11107_v28 = vld [vmem:[#allocation98_spill] sm:$0xff] }
 0x61d   :  { %v5131_v38 = vpack.c.bf16 %v9912_v63, %v9921_v30  ;;  %v5126_v4 = vpack.c.bf16 %v9917_v8, %v9928_v60  ;;  %v9956_v44 = vadd.f32 %v9845_v39, %v11099_v5  ;;  %v9963_v62 = vadd.f32 %v11100_v40, %v9804_v46  ;;  %v11108_v5 = vld [vmem:[#allocation39_spill] sm:$0xff]  ;;  %v11109_v40 = vld [vmem:[#allocation5_spill] sm:$0xff] }
 0x61e   :  { %4659 = vrot.lane.b32.xlu0 %v4471_v33, %s6710_s29  ;;  %v5134_v53 = vpack.c.bf16 %v9934_v58, %v9945_v54  ;;  %v5125_v24 = vpack.c.bf16 %v9941_v1, %v9950_v23  ;;  %v9967_v21 = vadd.f32 %v9842_v51, %v11101_v45  ;;  %v11102_v33 = vld [vmem:[#allocation97_spill] sm:$0xff]  ;;  %v10007_v45 = vadd.f32 %v11109_v40, %v9812_v61 }
 0x61f   :  { %v4606_v19 = vpop.permute.xlu1 %4605  ;;  %v9972_v39 = vadd.f32 %v11102_v33, %v9802_v32  ;;  %v11105_v32 = vld [vmem:[#allocation36_spill] sm:$0xff]  ;;  %v11110_v33 = vld [vmem:[#allocation38_spill] sm:$0xff]  ;;  %v11117_v40 = vld [vmem:[#allocation21_spill] sm:$0xff] }
 0x620   :  { %5251 = vrot.lane.b32.xlu1 %v5123_v36, %s6708_s23  ;;  %v5133_v36 = vpack.c.bf16 %v9956_v44, %v9967_v21  ;;  %v4612_v46 = vpop.permute.xlu0 %4611 }
 0x621   :  { %v5128_v51 = vpack.c.bf16 %v9963_v62, %v9972_v39 }
 0x622   :  { %5269 = vrot.lane.b32.xlu0 %v5132_v26, %s6708_s23  ;;  %v9978_v26 = vadd.f32 %v11103_v25, %v9855_v57  ;;  %v9994_v57 = vadd.f32 %v9806_v27, %v11107_v28  ;;  %v10011_v27 = vadd.f32 %v9864_v49, %v11110_v33  ;;  %v11114_v49 = vld [vmem:[#allocation7_spill] sm:$0xff] }
 0x623   :  { %v4618_v13 = vpop.permute.xlu1 %4617  ;;  %v10029_v28 = vadd.f32 %v9821_v7, %v11114_v49  ;;  %v11118_v33 = vld [vmem:[#allocation43_spill] sm:$0xff] }
 0x624   :  { %4661 = vrot.lane.b32.xlu1 %v4472_v59, %s6710_s29  ;;  %v11104_v59 = vld [vmem:[#allocation20_spill] sm:$0xff]  ;;  %11111 = vst [vmem:[#allocation82_spill] sm:$0xff] %v10011_v27 }
 0x626   :  { %5267 = vrot.lane.b32.xlu0 %v5131_v38, %s6708_s23  ;;  %v9985_v38 = vadd.f32 %v9808_v55, %v11104_v59  ;;  %v4624_v55 = vpop.permute.xlu0 %4623  ;;  %v11113_v59 = vld [vmem:[#allocation42_spill] sm:$0xff] }
 0x627   :  { %v4614_v18 = vpop.permute.xlu1 %4613 }
 0x628   :  { %5257 = vrot.lane.b32.xlu1 %v5126_v4, %s6708_s23  ;;  %v9989_v4 = vadd.f32 %v11105_v32, %v9852_v52  ;;  %v5127_v52 = vpack.c.bf16 %v9985_v38, %v9994_v57  ;;  %v10022_v32 = vadd.f32 %v11113_v59, %v9871_v48  ;;  %v10038_v48 = vadd.f32 %v9818_v10, %v11117_v40  ;;  %v11119_v59 = vld [vmem:[#allocation41_spill] sm:$0xff]  ;;  %v11121_v10 = vld [vmem:[#allocation52_spill] sm:$0xff] }
 0x629   :  { %v10055_v49 = vadd.f32 %v11121_v10, %v9905_v15  ;;  %v11122_v40 = vld [vmem:[#allocation44_spill] sm:$0xff]  ;;  %v11125_v15 = vld [vmem:[#allocation45_spill] sm:$0xff] }
 0x62a   :  { %5273 = vrot.lane.b32.xlu0 %v5134_v53, %s6708_s23  ;;  %11106 = vst [vmem:[#allocation80_spill] sm:$0xff] %v9989_v4  ;;  %v5136_v53 = vpack.c.bf16 %v9978_v26, %v9989_v4 }
 0x62c   :  { %5255 = vrot.lane.b32.xlu1 %v5125_v24, %s6708_s23  ;;  %v10000_v24 = vadd.f32 %v9867_v20, %v11108_v5  ;;  %v11112_v20 = vld [vmem:[#allocation48_spill] sm:$0xff]  ;;  %v4620_v5 = vpop.permute.xlu0 %4619 }
 0x62d   :  { %v10016_v25 = vadd.f32 %v11112_v20, %v9810_v56  ;;  %v10044_v20 = vadd.f32 %v9882_v6, %v11118_v33 }
 0x62e   :  { %5271 = vrot.lane.b32.xlu0 %v5133_v36, %s6708_s23  ;;  %v4626_v36 = vpop.permute.xlu1 %4625 }
 0x62f   :  { %v5130_v61 = vpack.c.bf16 %v10007_v45, %v10016_v25 }
 0x630   :  { %5261 = vrot.lane.b32.xlu1 %v5128_v51, %s6708_s23  ;;  %v5135_v51 = vpack.c.bf16 %v10000_v24, %v10011_v27 }
 0x632   :  { %5277 = vrot.lane.b32.xlu0 %v5136_v53, %s6708_s23  ;;  %v11115_v53 = vld [vmem:[#allocation40_spill] sm:$0xff]  ;;  %v4622_v7 = vpop.permute.xlu1 %4621 }
 0x633   :  { %v10033_v56 = vadd.f32 %v11115_v53, %v9869_v31  ;;  %v5129_v31 = vpack.c.bf16 %v10029_v28, %v10038_v48  ;;  %v4632_v53 = vpop.permute.xlu0 %4631 }
 0x634   :  { %5259 = vrot.lane.b32.xlu1 %v5127_v52, %s6708_s23 }
 0x635   :  { %11116 = vst [vmem:[#allocation83_spill] sm:$0xff] %v10033_v56  ;;  %v5138_v52 = vpack.c.bf16 %v10022_v32, %v10033_v56 }
 0x636   :  { %5275 = vrot.lane.b32.xlu0 %v5135_v51, %s6708_s23  ;;  %v10051_v51 = vadd.f32 %v9876_v11, %v11119_v59  ;;  %v4634_v33 = vpop.permute.xlu1 %4633  ;;  %v11124_v59 = vld [vmem:[#allocation46_spill] sm:$0xff] }
 0x637   :  { %v10068_v56 = vadd.f32 %v4606_v19, %v11124_v59  ;;  %v4628_v10 = vpop.permute.xlu0 %4627 }
 0x638   :  { %5265 = vrot.lane.b32.xlu1 %v5130_v61, %s6708_s23  ;;  %11120 = vst [vmem:[#allocation84_spill] sm:$0xff] %v10051_v51  ;;  %v5137_v6 = vpack.c.bf16 %v10044_v20, %v10051_v51  ;;  %v10062_v61 = vadd.f32 %v11122_v40, %v9897_v29  ;;  %v11127_v40 = vld [vmem:[#allocation50_spill] sm:$0xff] }
 0x63a   :  { %5281 = vrot.lane.b32.xlu0 %v5138_v52, %s6708_s23  ;;  %11123 = vst [vmem:[#allocation86_spill] sm:$0xff] %v10062_v61  ;;  %v5140_v11 = vpack.c.bf16 %v10055_v49, %v10062_v61  ;;  %v10073_v52 = vadd.f32 %v9924_v9, %v11125_v15  ;;  %v4630_v51 = vpop.permute.xlu1 %4629  ;;  %v11128_v61 = vld [vmem:[#allocation47_spill] sm:$0xff]  ;;  %v11131_v15 = vld [vmem:[#allocation58_spill] sm:$0xff] }
 0x63b   :  { %v10082_v4 = vadd.f32 %v11128_v61, %v4616_v35 }
 0x63c   :  { %5263 = vrot.lane.b32.xlu1 %v5129_v31, %s6708_s23  ;;  %11126 = vst [vmem:[#allocation88_spill] sm:$0xff] %v10073_v52  ;;  %v5139_v29 = vpack.c.bf16 %v10068_v56, %v10073_v52  ;;  %v10079_v31 = vadd.f32 %v11127_v40, %v4618_v13  ;;  %v11133_v52 = vld [vmem:[#allocation63_spill] sm:$0xff]  ;;  %v11134_v40 = vld [vmem:[#allocation49_spill] sm:$0xff] }
 0x63d   :  { %11129 = vst [vmem:[#allocation89_spill] sm:$0xff] %v10082_v4  ;;  %v10097_v54 = vadd.f32 %v4612_v46, %v11134_v40  ;;  %v11139_v46 = vld [vmem:[#allocation54_spill] sm:$0xff] }
 0x63e   :  { %5279 = vrot.lane.b32.xlu0 %v5137_v6, %s6708_s23  ;;  %v5142_v9 = vpack.c.bf16 %v10079_v31, %v10082_v4  ;;  %v11130_v6 = vld [vmem:[#allocation53_spill] sm:$0xff] }
 0x63f   :  { %v10088_v59 = vadd.f32 %v4614_v18, %v11130_v6 }
 0x640   :  { %5285 = vrot.lane.b32.xlu1 %v5140_v11, %s6708_s23 }
 0x641   :  { %v5141_v18 = vpack.c.bf16 %v10088_v59, %v10097_v54 }
 0x644   :  { %5283 = vrot.lane.b32.xlu1 %v5139_v29, %s6708_s23  ;;  %v4640_v19 = vpop.permute.xlu0 %4639  ;;  %v11135_v29 = vld [vmem:[#allocation55_spill] sm:$0xff] }
 0x645   :  { %v10091_v27 = vadd.f32 %v11131_v15, %v4640_v19  ;;  %v10105_v6 = vadd.f32 %v11135_v29, %v4626_v36  ;;  %v11136_v15 = vld [vmem:[#allocation67_spill] sm:$0xff]  ;;  %v11141_v29 = vld [vmem:[#allocation56_spill] sm:$0xff] }
 0x646   :  { %v4642_v11 = vpop.permute.xlu1 %4641 }
 0x647   :  { %11132 = vst [vmem:[#allocation90_spill] sm:$0xff] %v10091_v27  ;;  %v10094_v13 = vadd.f32 %v11133_v52, %v4642_v11  ;;  %v11138_v52 = vld [vmem:[#allocation64_spill] sm:$0xff] }
 0x648   :  { %5289 = vrot.lane.b32.xlu1 %v5142_v9, %s6708_s23  ;;  %v4636_v61 = vpop.permute.xlu0 %4635  ;;  %v10115_v9 = vadd.f32 %v11139_v46, %v4624_v55  ;;  %v11147_v46 = vld [vmem:[#allocation62_spill] sm:$0xff] }
 0x649   :  { %v5148_v35 = vpack.c.bf16 %v10094_v13, %v10091_v27  ;;  %v10108_v4 = vadd.f32 %v4636_v61, %v11136_v15  ;;  %v10123_v27 = vadd.f32 %v4622_v7, %v11141_v29  ;;  %v11142_v61 = vld [vmem:[#allocation57_spill] sm:$0xff]  ;;  %v11145_v15 = vld [vmem:[#allocation59_spill] sm:$0xff] }
 0x64a   :  { %v4638_v19 = vpop.permute.xlu1 %4637  ;;  %11140 = vst [vmem:[#allocation93_spill] sm:$0xff] %v10115_v9  ;;  %v5144_v36 = vpack.c.bf16 %v10105_v6, %v10115_v9  ;;  %v11161_v9 = vld [vmem:[#allocation76_spill] sm:$0xff] }
 0x64b   :  { %11137 = vst [vmem:[#allocation92_spill] sm:$0xff] %v10108_v4  ;;  %v10111_v11 = vadd.f32 %v4638_v19, %v11138_v52  ;;  %5301 = vrot.lane.b32.xlu0 %v5148_v35, %s6708_s23  ;;  %v10127_v19 = vadd.f32 %v4620_v5, %v11142_v61  ;;  %v11144_v35 = vld [vmem:[#allocation61_spill] sm:$0xff]  ;;  %v10136_v52 = vadd.f32 %v11145_v15, %v4632_v53  ;;  %v11148_v5 = vld [vmem:[#allocation60_spill] sm:$0xff] }
 0x64c   :  { %5287 = vrot.lane.b32.xlu1 %v5141_v18, %s6708_s23  ;;  %v10133_v18 = vadd.f32 %v11144_v35, %v4634_v33  ;;  %v10145_v29 = vadd.f32 %v4628_v10, %v11148_v5  ;;  %v11150_v61 = vld [vmem:[#allocation65_spill] sm:$0xff]  ;;  %v11152_v35 = vld [vmem:[#allocation68_spill] sm:$0xff]  ;;  %v11153_v5 = vld [vmem:[#allocation66_spill] sm:$0xff] }
 0x64d   :  { %v5147_v40 = vpack.c.bf16 %v10111_v11, %v10108_v4  ;;  %11143 = vst [vmem:[#allocation94_spill] sm:$0xff] %v10127_v19  ;;  %v5143_v55 = vpack.c.bf16 %v10123_v27, %v10127_v19  ;;  %11146 = vst [vmem:[#allocation95_spill] sm:$0xff] %v10136_v52  ;;  %v11155_v4 = vld [vmem:[#allocation70_spill] sm:$0xff] }
 0x64e   :  { %v5146_v7 = vpack.c.bf16 %v10133_v18, %v10136_v52  ;;  %11149 = vst [vmem:[#allocation73_spill] sm:$0xff] %v10145_v29 }
 0x64f   :  { %5299 = vrot.lane.b32.xlu0 %v5147_v40, %s6708_s23  ;;  %v10142_v40 = vadd.f32 %v4630_v51, %v11147_v46 }
 0x650   :  { %5293 = vrot.lane.b32.xlu1 %v5144_v36, %s6708_s23 }
 0x651   :  { %v5145_v33 = vpack.c.bf16 %v10142_v40, %v10145_v29 }
 0x654   :  { %5291 = vrot.lane.b32.xlu1 %v5143_v55, %s6708_s23 }
 0x658   :  { %5297 = vrot.lane.b32.xlu1 %v5146_v7, %s6708_s23 }
 0x65c   :  { %5295 = vrot.lane.b32.xlu1 %v5145_v33, %s6708_s23 }
 0x65f   :  { %v4648_v53 = vpop.permute.xlu0 %4647 }
 0x660   :  { %v10152_v55 = vadd.f32 %v11150_v61, %v4648_v53  ;;  %v11156_v61 = vld [vmem:[#allocation71_spill] sm:$0xff] }
 0x661   :  { %v4650_v36 = vpop.permute.xlu1 %4649 }
 0x662   :  { %11151 = vst [vmem:[#allocation75_spill] sm:$0xff] %v10152_v55  ;;  %v10155_v15 = vadd.f32 %v11152_v35, %v4650_v36 }
 0x663   :  { %v4644_v51 = vpop.permute.xlu0 %4643 }
 0x664   :  { %v5150_v10 = vpack.c.bf16 %v10155_v15, %v10152_v55  ;;  %v10160_v7 = vadd.f32 %v4644_v51, %v11153_v5  ;;  %v11158_v55 = vld [vmem:[#allocation74_spill] sm:$0xff]  ;;  %v11159_v5 = vld [vmem:[#allocation72_spill] sm:$0xff] }
 0x665   :  { %v4646_v46 = vpop.permute.xlu1 %4645 }
 0x666   :  { %11154 = vst [vmem:[#allocation79_spill] sm:$0xff] %v10160_v7  ;;  %v10163_v52 = vadd.f32 %v4646_v46, %v11155_v4  ;;  %5305 = vrot.lane.b32.xlu0 %v5150_v10, %s6708_s23 }
 0x668   :  { %v5149_v33 = vpack.c.bf16 %v10163_v52, %v10160_v7 }
 0x66a   :  { %5303 = vrot.lane.b32.xlu0 %v5149_v33, %s6708_s23  ;;  %v11162_v33 = vld [vmem:[#allocation27_spill] sm:$0xff] }
 0x676   :  { %v4656_v53 = vpop.permute.xlu0 %4655 }
 0x677   :  { %v10170_v35 = vadd.f32 %v11156_v61, %v4656_v53 }
 0x678   :  { %v4658_v36 = vpop.permute.xlu1 %4657 }
 0x679   :  { %11157 = vst [vmem:[#allocation26_spill] sm:$0xff] %v10170_v35  ;;  %v10173_v29 = vadd.f32 %v11158_v55, %v4658_v36  ;;  %v11163_v55 = vld [vmem:[#allocation6_spill] sm:$0xff]  ;;  %v11164_v36 = vld [vmem:[#allocation8_spill] sm:$0xff] }
 0x67a   :  { %v4652_v51 = vpop.permute.xlu0 %4651 }
 0x67b   :  { %v5152_v4 = vpack.c.bf16 %v10173_v29, %v10170_v35  ;;  %v10178_v10 = vadd.f32 %v4652_v51, %v11159_v5  ;;  %v11165_v35 = vld [vmem:[#allocation9_spill] sm:$0xff] }
 0x67c   :  { %v4654_v46 = vpop.permute.xlu1 %4653 }
 0x67d   :  { %11160 = vst [vmem:[#allocation28_spill] sm:$0xff] %v10178_v10  ;;  %v10181_v7 = vadd.f32 %v4654_v46, %v11161_v9  ;;  %5309 = vrot.lane.b32.xlu0 %v5152_v4, %s6708_s23  ;;  %v11167_v46 = vld [vmem:[#allocation11_spill] sm:$0xff] }
 0x67f   :  { %5187 = vxpose.xlu1.c.b16.start [1/8] (narrow) %v11162_v33, 64  ;;  %v5151_v53 = vpack.c.bf16 %v10181_v7, %v10178_v10  ;;  %v11168_v10 = vld [vmem:[#allocation10_spill] sm:$0xff] }
 0x680   :  { %v5254_v61 = vpop.permute.xlu1 %5253 }
 0x681   :  { %5307 = vrot.lane.b32.xlu0 %v5151_v53, %s6708_s23 }
 0x683   :  { %5188 = vxpose.xlu1.c.b16.cont [2/8] (narrow) %v11163_v55, 64 }
 0x687   :  { %5189 = vxpose.xlu1.c.b16.cont [3/8] (narrow) %v11164_v36, 64 }
 0x68b   :  { %5190 = vxpose.xlu1.c.b16.cont [4/8] (narrow) %v11165_v35, 64 }
 0x68c   :  { %v4664_v51 = vpop.permute.xlu0 %4663 }
 0x68d   :  { %v10192_v9 = vadd.f32 %v9442_v37, %v4664_v51  ;;  %v11169_v37 = vld [vmem:[#allocation77_spill] sm:$0xff] }
 0x68e   :  { %v4666_v5 = vpop.permute.xlu1 %4665 }
 0x68f   :  { %11166 = vst [vmem:[#allocation81_spill] sm:$0xff] %v10192_v9  ;;  %v10195_v4 = vadd.f32 %v9455_v14, %v4666_v5  ;;  %5191 = vxpose.xlu1.c.b16.cont [5/8] (narrow) %v11167_v46, 64  ;;  %v11170_v14 = vld [vmem:[#allocation13_spill] sm:$0xff] }
 0x690   :  { %v4660_v33 = vpop.permute.xlu0 %4659 }
 0x691   :  { %v5154_v53 = vpack.c.bf16 %v10195_v4, %v10192_v9  ;;  %v10203_v19 = vadd.f32 %v4660_v33, %v9449_v41  ;;  %v6689_v41 = vld [vmem:[%s10711_s5 + $0x14] ss:$8 sps:$4 sm:$0xff]  }
 0x692   :  { %v5252_v55 = vpop.permute.xlu1 %5251 }
 0x693   :  { %5192 = vxpose.xlu1.c.b16.cont [6/8] (narrow) %v11168_v10, 64  ;;  %5313 = vrot.lane.b32.xlu0 %v5154_v53, %s6708_s23  ;;  %v11171_v10 = vld [vmem:[#allocation12_spill] sm:$0xff] }
 0x694   :  { %v5270_v35 = vpop.permute.xlu0 %5269 }
 0x696   :  { %v4662_v36 = vpop.permute.xlu1 %4661 }
 0x697   :  { %v10206_v51 = vadd.f32 %v4662_v36, %v11169_v37  ;;  %5193 = vxpose.xlu1.c.b16.cont [7/8] (narrow) %v11170_v14, 64 }
 0x698   :  { %v5268_v5 = vpop.permute.xlu0 %5267 }
 0x699   :  { %v5153_v46 = vpack.c.bf16 %v10206_v51, %v10203_v19  ;;  %6157 = vmatprep.subr.bf16.mxu1 %v5268_v5 }
 0x69a   :  { %v5258_v9 = vpop.permute.xlu1 %5257  ;;  %6158 = vmatpush3.bf16.msra.mxu1 %v5252_v55 }
 0x69b   :  { %5194 = vxpose.xlu1.c.b16.end [8/8] (narrow) %v11171_v10, 64  ;;  %5311 = vrot.lane.b32.xlu0 %v5153_v46, %s6708_s23 }
 0x69c   :  { %6159 = vmatprep.subr.bf16.mxu1 %v5270_v35  ;;  %v5274_v33 = vpop.permute.xlu0 %5273 }
 0x69e   :  { %v5256_v53 = vpop.permute.xlu1 %5255  ;;  %6160 = vmatpush3.bf16.msra.mxu1 %v5254_v61 }
 0x69f   :  { %5528 = vrot.lane.b32.xlu1 %v6689_v41, %s6710_s29 }
 0x6a0   :  { %v5272_v36 = vpop.permute.xlu0 %5271 }
 0x6a1   :  { %6161 = vmatprep.subr.bf16.mxu1 %v5272_v36  ;;  %v11190_v36 = vld [vmem:[#allocation93_spill] sm:$0xff] }
 0x6a2   :  { %v5262_v37 = vpop.permute.xlu1 %5261  ;;  %6162 = vmatpush3.bf16.msra.mxu1 %v5256_v53 }
 0x6a3   :  { %5611 = vrot.lane.b32.xlu1 %v6689_v41, %s6709_s24  ;;  %6163 = vmatprep.subr.bf16.mxu1 %v5274_v33 }
 0x6a4   :  { %v5278_v55 = vpop.permute.xlu0 %5277 }
 0x6a6   :  { %v5260_v14 = vpop.permute.xlu1 %5259  ;;  %6164 = vmatpush3.bf16.msra.mxu1 %v5258_v9 }
 0x6a7   :  { %4861 = vrot.lane.b32.xlu1 %v9880_v16, %s6708_s23  ;;  %v11172_v16 = vld [vmem:[#allocation15_spill] sm:$0xff] }
 0x6a8   :  { %v5276_v5 = vpop.permute.xlu0 %5275 }
 0x6a9   :  { %6165 = vmatprep.subr.bf16.mxu1 %v5276_v5  ;;  %v11192_v5 = vld [vmem:[#allocation95_spill] sm:$0xff] }
 0x6aa   :  { %6166 = vmatpush3.bf16.msra.mxu1 %v5260_v14  ;;  %v5266_v35 = vpop.permute.xlu1 %5265 }
 0x6ab   :  { %4865 = vrot.lane.b32.xlu1 %v9850_v22, %s6708_s23  ;;  %6167 = vmatprep.subr.bf16.mxu1 %v5278_v55  ;;  %v11191_v55 = vld [vmem:[#allocation73_spill] sm:$0xff] }
 0x6ac   :  { %v5282_v61 = vpop.permute.xlu0 %5281 }
 0x6ae   :  { %6168 = vmatpush3.bf16.msra.mxu1 %v5262_v37  ;;  %v5264_v10 = vpop.permute.xlu1 %5263 }
 0x6af   :  { %4869 = vrot.lane.b32.xlu1 %v9941_v1, %s6708_s23  ;;  %v11173_v1 = vld [vmem:[#allocation14_spill] sm:$0xff] }
 0x6b0   :  { %v5280_v46 = vpop.permute.xlu0 %5279 }
 0x6b1   :  { %6169 = vmatprep.subr.bf16.mxu1 %v5280_v46 }
 0x6b2   :  { %6170 = vmatpush3.bf16.msra.mxu1 %v5264_v10  ;;  %v5286_v22 = vpop.permute.xlu1 %5285  ;;  %v11194_v10 = vld [vmem:[#allocation90_spill] sm:$0xff] }
 0x6b3   :  { %4873 = vrot.lane.b32.xlu1 %v9917_v8, %s6708_s23  ;;  %6171 = vmatprep.subr.bf16.mxu1 %v5282_v61  ;;  %v11174_v8 = vld [vmem:[#allocation17_spill] sm:$0xff]  ;;  %v11193_v61 = vld [vmem:[#allocation92_spill] sm:$0xff] }
 0x6b6   :  { %6172 = vmatpush3.bf16.msra.mxu1 %v5266_v35  ;;  %v5284_v41 = vpop.permute.xlu1 %5283 }
 0x6b7   :  { %4877 = vrot.lane.b32.xlu1 %v9985_v38, %s6708_s23 }
 0x6b9   :  { %5203 = vxpose.xlu0.c.b16.start [1/8] (narrow) %v11172_v16, 64  ;;  %5380 = vmatmul.mubr.bf16.vlgmr.msra.gmra.mrb[88].mxu1 %v9756_v2  ;;  %v11175_v2 = vld [vmem:[#allocation16_spill] sm:$0xff] }
 0x6ba   :  { %5387 = vmatprep.mubr.bf16.mxu1 %v9758_v43  ;;  %v11176_v43 = vld [vmem:[#allocation19_spill] sm:$0xff] }
 0x6bb   :  { %4881 = vrot.lane.b32.xlu1 %v9963_v62, %s6708_s23 }
 0x6bd   :  { %5204 = vxpose.xlu0.c.b16.cont [2/8] (narrow) %v11173_v1, 64  ;;  %v5302_v9 = vpop.permute.xlu0 %5301 }
 0x6bf   :  { %4885 = vrot.lane.b32.xlu1 %v10029_v28, %s6708_s23 }
 0x6c1   :  { %5205 = vxpose.xlu0.c.b16.cont [3/8] (narrow) %v11174_v8, 64  ;;  %5388 = vmatmul.mubr.bf16.gmra.mrb[92].mxu1 %v9760_v34  ;;  %v5300_v38 = vpop.permute.xlu0 %5299  ;;  %v11177_v34 = vld [vmem:[#allocation23_spill] sm:$0xff] }
 0x6c2   :  { %5395 = vmatprep.mubr.bf16.mxu1 %v9764_v47  ;;  %6197 = vmatprep.subr.bf16.mxu1 %v5300_v38  ;;  %v11178_v47 = vld [vmem:[#allocation25_spill] sm:$0xff]  ;;  %v11196_v8 = vld [vmem:[#allocation75_spill] sm:$0xff] }
 0x6c3   :  { %4889 = vrot.lane.b32.xlu1 %v10007_v45, %s6708_s23  ;;  %6198 = vmatpush3.bf16.msra.mxu1 %v5284_v41 }
 0x6c4   :  { %6199 = vmatprep.subr.bf16.mxu1 %v5302_v9 }
 0x6c5   :  { %5206 = vxpose.xlu0.c.b16.cont [4/8] (narrow) %v11175_v2, 64  ;;  %v11197_v2 = vld [vmem:[#allocation28_spill] sm:$0xff] }
 0x6c7   :  { %4893 = vrot.lane.b32.xlu1 %v9912_v63, %s6708_s23  ;;  %6200 = vmatpush3.bf16.msra.mxu1 %v5286_v22  ;;  %v11179_v63 = vld [vmem:[#allocation37_spill] sm:$0xff]  ;;  %v11195_v22 = vld [vmem:[#allocation79_spill] sm:$0xff] }
 0x6c9   :  { %5207 = vxpose.xlu0.c.b16.cont [5/8] (narrow) %v11176_v43, 64  ;;  %5396 = vmatmul.mubr.bf16.gmra.mrb[96].mxu1 %v9767_v50  ;;  %v5290_v50 = vpop.permute.xlu1 %5289 }
 0x6ca   :  { %5403 = vmatprep.mubr.bf16.mxu1 %v9772_v3 }
 0x6cb   :  { %4897 = vrot.lane.b32.xlu1 %v9894_v0, %s6708_s23  ;;  %v6690_v0 = vld [vmem:[%s10711_s5 + $0x4] ss:$8 sps:$4 sm:$0xff]  }
 0x6cd   :  { %5208 = vxpose.xlu0.c.b16.cont [6/8] (narrow) %v11177_v34, 64  ;;  %v5288_v62 = vpop.permute.xlu1 %5287 }
 0x6cf   :  { %4901 = vrot.lane.b32.xlu1 %v9956_v44, %s6708_s23 }
 0x6d1   :  { %5209 = vxpose.xlu0.c.b16.cont [7/8] (narrow) %v11178_v47, 64  ;;  %5404 = vmatmul.mubr.bf16.gmra.mrb[100].mxu1 %v9774_v12  ;;  %v5294_v12 = vpop.permute.xlu1 %5293  ;;  %v11198_v47 = vld [vmem:[#allocation26_spill] sm:$0xff] }
 0x6d3   :  { %4905 = vrot.lane.b32.xlu1 %v9934_v58, %s6708_s23 }
 0x6d5   :  { %5210 = vxpose.xlu0.c.b16.end [8/8] (narrow) %v11179_v63, 64  ;;  %v5292_v58 = vpop.permute.xlu1 %5291 }
 0x6d7   :  { %4909 = vrot.lane.b32.xlu1 %v10000_v24, %s6708_s23 }
 0x6d8   :  { %v5306_v3 = vpop.permute.xlu0 %5305 }
 0x6d9   :  { %v5298_v24 = vpop.permute.xlu1 %5297 }
 0x6db   :  { %4913 = vrot.lane.b32.xlu1 %v9978_v26, %s6708_s23  ;;  %v11180_v26 = vld [vmem:[#allocation78_spill] sm:$0xff] }
 0x6dc   :  { %v5304_v44 = vpop.permute.xlu0 %5303 }
 0x6dd   :  { %6201 = vmatprep.subr.bf16.mxu1 %v5304_v44  ;;  %v11199_v44 = vld [vmem:[#allocation81_spill] sm:$0xff] }
 0x6de   :  { %6202 = vmatpush3.bf16.msra.mxu1 %v5288_v62  ;;  %5526 = vrot.lane.b32.xlu0 %v6690_v0, %s6710_s29 }
 0x6df   :  { %6203 = vmatprep.subr.bf16.mxu1 %v5306_v3  ;;  %4917 = vrot.lane.b32.xlu1 %v10044_v20, %s6708_s23 }
 0x6e2   :  { %6204 = vmatpush3.bf16.msra.mxu1 %v5290_v50  ;;  %5609 = vrot.lane.b32.xlu0 %v6690_v0, %s6709_s24 }
 0x6e3   :  { %4921 = vrot.lane.b32.xlu1 %v10022_v32, %s6708_s23  ;;  %v5296_v32 = vpop.permute.xlu1 %5295 }
 0x6e6   :  { %4859 = vrot.lane.b32.xlu0 %v9890_v42, %s6708_s23 }
 0x6e7   :  { %4925 = vrot.lane.b32.xlu1 %v10068_v56, %s6708_s23  ;;  %v11182_v56 = vld [vmem:[#allocation82_spill] sm:$0xff] }
 0x6ea   :  { %4863 = vrot.lane.b32.xlu0 %v11180_v26, %s6708_s23 }
 0x6eb   :  { %4929 = vrot.lane.b32.xlu1 %v10055_v49, %s6708_s23  ;;  %v11184_v49 = vld [vmem:[#allocation84_spill] sm:$0xff] }
 0x6ee   :  { %4867 = vrot.lane.b32.xlu0 %v9950_v23, %s6708_s23  ;;  %v5195_v23 = vpop.trf.xlu1 }
 0x6ef   :  { %4933 = vrot.lane.b32.xlu1 %v10088_v59, %s6708_s23  ;;  %v5310_v45 = vpop.permute.xlu0 %5309 }
 0x6f2   :  { %4871 = vrot.lane.b32.xlu0 %v9928_v60, %s6708_s23  ;;  %v5196_v60 = vpop.trf.xlu1 }
 0x6f3   :  { %4937 = vrot.lane.b32.xlu1 %v10079_v31, %s6708_s23  ;;  %v5308_v42 = vpop.permute.xlu0 %5307 }
 0x6f4   :  { %6205 = vmatprep.subr.bf16.mxu1 %v5308_v42 }
 0x6f5   :  { %6206 = vmatpush3.bf16.msra.mxu1 %v5292_v58 }
 0x6f6   :  { %4875 = vrot.lane.b32.xlu0 %v9994_v57, %s6708_s23  ;;  %6207 = vmatprep.subr.bf16.mxu1 %v5310_v45  ;;  %v5197_v57 = vpop.trf.xlu1 }
 0x6f7   :  { %4941 = vrot.lane.b32.xlu1 %v10123_v27, %s6708_s23 }
 0x6f9   :  { %6208 = vmatpush3.bf16.msra.mxu1 %v5294_v12 }
 0x6fa   :  { %4879 = vrot.lane.b32.xlu0 %v9972_v39, %s6708_s23  ;;  %v5198_v27 = vpop.trf.xlu1 }
 0x6fb   :  { %4945 = vrot.lane.b32.xlu1 %v10105_v6, %s6708_s23 }
 0x6fe   :  { %4883 = vrot.lane.b32.xlu0 %v10038_v48, %s6708_s23  ;;  %v11183_v48 = vld [vmem:[#allocation80_spill] sm:$0xff] }
 0x6ff   :  { %4949 = vrot.lane.b32.xlu1 %v10142_v40, %s6708_s23 }
 0x702   :  { %4887 = vrot.lane.b32.xlu0 %v10016_v25, %s6708_s23  ;;  %v11181_v25 = vld [vmem:[#allocation69_spill] sm:$0xff] }
 0x703   :  { %4953 = vrot.lane.b32.xlu1 %v10133_v18, %s6708_s23  ;;  %v11186_v18 = vld [vmem:[#allocation88_spill] sm:$0xff] }
 0x705   :  { %v5314_v39 = vpop.permute.xlu0 %5313 }
 0x706   :  { %4891 = vrot.lane.b32.xlu0 %v9921_v30, %s6708_s23 }
 0x707   :  { %4957 = vrot.lane.b32.xlu1 %v10111_v11, %s6708_s23 }
 0x70a   :  { %4895 = vrot.lane.b32.xlu0 %v9903_v17, %s6708_s23 }
 0x70b   :  { %4961 = vrot.lane.b32.xlu1 %v10094_v13, %s6708_s23  ;;  %v11185_v13 = vld [vmem:[#allocation83_spill] sm:$0xff] }
 0x70d   :  { %v5312_v28 = vpop.permute.xlu0 %5311 }
 0x70e   :  { %4899 = vrot.lane.b32.xlu0 %v9967_v21, %s6708_s23  ;;  %6209 = vmatprep.subr.bf16.mxu1 %v5312_v28 }
 0x70f   :  { %4965 = vrot.lane.b32.xlu1 %v10163_v52, %s6708_s23  ;;  %6210 = vmatpush3.bf16.msra.mxu1 %v5296_v32 }
 0x710   :  { %6211 = vmatprep.subr.bf16.mxu1 %v5314_v39 }
 0x711   :  { %v10314_v30 = vpop.permute.xlu1 %5528 }
 0x712   :  { %4903 = vrot.lane.b32.xlu0 %v11181_v25, %s6708_s23 }
 0x713   :  { %4969 = vrot.lane.b32.xlu1 %v10155_v15, %s6708_s23  ;;  %6212 = vmatpush3.bf16.msra.mxu1 %v5298_v24 }
 0x715   :  { %v10320_v17 = vpop.permute.xlu1 %5611 }
 0x716   :  { %4907 = vrot.lane.b32.xlu0 %v11182_v56, %s6708_s23 }
 0x717   :  { %4973 = vrot.lane.b32.xlu1 %v10181_v7, %s6708_s23 }
 0x719   :  { %v4862_v21 = vpop.permute.xlu1 %4861 }
 0x71a   :  { %5052 = vst.msk [vmem:[%s10716_s7 + $0x8] sm:$0xff] %vm185_vm2, %v4862_v21  ;;  %4911 = vrot.lane.b32.xlu0 %v11183_v48, %s6708_s23 }
 0x71b   :  { %4977 = vrot.lane.b32.xlu1 %v10173_v29, %s6708_s23  ;;  %v11187_v29 = vld [vmem:[#allocation86_spill] sm:$0xff] }
 0x71d   :  { %v4866_v20 = vpop.permute.xlu1 %4865 }
 0x71e   :  { %5054 = vst.msk [vmem:[%s10716_s7 + $0x18] sm:$0xff] %vm185_vm2, %v4866_v20  ;;  %4915 = vrot.lane.b32.xlu0 %v11184_v49, %s6708_s23 }
 0x71f   :  { %4981 = vrot.lane.b32.xlu1 %v10206_v51, %s6708_s23  ;;  %v5211_v31 = vpop.trf.xlu0  ;;  %v11188_v51 = vld [vmem:[#allocation89_spill] sm:$0xff] }
 0x720   :  { %5444 = vmatprep.mubr.bf16.mxu1 %v5211_v31 }
 0x721   :  { %v4870_v59 = vpop.permute.xlu1 %4869  ;;  %5445 = vmatmul.mubr.bf16.vlgmr.msra.gmra.mrb[104].mxu1 %v5195_v23 }
 0x722   :  { %5056 = vst.msk [vmem:[%s10716_s7 + $0x28] sm:$0xff] %vm185_vm2, %v4870_v59  ;;  %4919 = vrot.lane.b32.xlu0 %v11185_v13, %s6708_s23 }
 0x723   :  { %4985 = vrot.lane.b32.xlu1 %v10195_v4, %s6708_s23  ;;  %v5212_v6 = vpop.trf.xlu0 }
 0x724   :  { %5452 = vmatprep.mubr.bf16.mxu1 %v5212_v6 }
 0x725   :  { %v4874_v11 = vpop.permute.xlu1 %4873 }
 0x726   :  { %5058 = vst.msk [vmem:[%s10716_s7 + $0x38] sm:$0xff] %vm185_vm2, %v4874_v11  ;;  %4923 = vrot.lane.b32.xlu0 %v11186_v18, %s6708_s23 }
 0x727   :  { %v5213_v52 = vpop.trf.xlu0 }
 0x729   :  { %v4878_v40 = vpop.permute.xlu1 %4877  ;;  %5453 = vmatmul.mubr.bf16.gmra.mrb[108].mxu1 %v5196_v60 }
 0x72a   :  { %5060 = vst.msk [vmem:[%s10716_s7 + $0x48] sm:$0xff] %vm185_vm2, %v4878_v40  ;;  %4927 = vrot.lane.b32.xlu0 %v11187_v29, %s6708_s23  ;;  %5460 = vmatprep.mubr.bf16.mxu1 %v5213_v52 }
 0x72b   :  { %v5214_v7 = vpop.trf.xlu0 }
 0x72d   :  { %v4882_v15 = vpop.permute.xlu1 %4881 }
 0x72e   :  { %5062 = vst.msk [vmem:[%s10716_s7 + $0x58] sm:$0xff] %vm185_vm2, %v4882_v15  ;;  %4931 = vrot.lane.b32.xlu0 %v10097_v54, %s6708_s23  ;;  %v11189_v54 = vld [vmem:[#allocation94_spill] sm:$0xff] }
 0x731   :  { %v4886_v4 = vpop.permute.xlu1 %4885  ;;  %5461 = vmatmul.mubr.bf16.gmra.mrb[112].mxu1 %v5197_v57 }
 0x732   :  { %5064 = vst.msk [vmem:[%s10716_s7 + $0x68] sm:$0xff] %vm185_vm2, %v4886_v4  ;;  %4935 = vrot.lane.b32.xlu0 %v11188_v51, %s6708_s23  ;;  %5468 = vmatprep.mubr.bf16.mxu1 %v5214_v7 }
 0x735   :  { %v4890_v33 = vpop.permute.xlu1 %4889 }
 0x736   :  { %5066 = vst.msk [vmem:[%s10716_s7 + $0x78] sm:$0xff] %vm185_vm2, %v4890_v33  ;;  %4939 = vrot.lane.b32.xlu0 %v11189_v54, %s6708_s23 }
 0x739   :  { %v4894_v53 = vpop.permute.xlu1 %4893  ;;  %5469 = vmatmul.mubr.bf16.gmra.mrb[116].mxu1 %v5198_v27 }
 0x73a   :  { %5068 = vst.msk [vmem:[%s10716_s7 + $0x88] sm:$0xff] %vm185_vm2, %v4894_v53  ;;  %4943 = vrot.lane.b32.xlu0 %v11190_v36, %s6708_s23 }
 0x73d   :  { %v4898_v37 = vpop.permute.xlu1 %4897 }
 0x73e   :  { %5070 = vst.msk [vmem:[%s10716_s7 + $0x98] sm:$0xff] %vm185_vm2, %v4898_v37  ;;  %4947 = vrot.lane.b32.xlu0 %v11191_v55, %s6708_s23 }
 0x741   :  { %v4902_v14 = vpop.permute.xlu1 %4901 }
 0x742   :  { %5072 = vst.msk [vmem:[%s10716_s7 + $0xa8] sm:$0xff] %vm185_vm2, %v4902_v14  ;;  %4951 = vrot.lane.b32.xlu0 %v11192_v5, %s6708_s23 }
 0x745   :  { %v4906_v35 = vpop.permute.xlu1 %4905 }
 0x746   :  { %5074 = vst.msk [vmem:[%s10716_s7 + $0xb8] sm:$0xff] %vm185_vm2, %v4906_v35  ;;  %4955 = vrot.lane.b32.xlu0 %v11193_v61, %s6708_s23 }
 0x749   :  { %v4910_v46 = vpop.permute.xlu1 %4909 }
 0x74a   :  { %5076 = vst.msk [vmem:[%s10716_s7 + $0xc8] sm:$0xff] %vm185_vm2, %v4910_v46  ;;  %4959 = vrot.lane.b32.xlu0 %v11194_v10, %s6708_s23 }
 0x74d   :  { %v4914_v16 = vpop.permute.xlu1 %4913 }
 0x74e   :  { %5078 = vst.msk [vmem:[%s10716_s7 + $0xd8] sm:$0xff] %vm185_vm2, %v4914_v16  ;;  %4963 = vrot.lane.b32.xlu0 %v11195_v22, %s6708_s23 }
 0x750   :  { %v5527_v1 = vpop.permute.xlu0 %5526 }
 0x751   :  { %v4918_v9 = vpop.permute.xlu1 %4917  ;;  %6527 = vmatprep.subr.bf16.mxu1 %v5527_v1 }
 0x752   :  { %5080 = vst.msk [vmem:[%s10716_s7 + $0xe8] sm:$0xff] %vm185_vm2, %v4918_v9  ;;  %4967 = vrot.lane.b32.xlu0 %v11196_v8, %s6708_s23  ;;  %6528 = vmatpush3.bf16.msra.mxu1 %v5527_v1 }
 0x753   :  { %6529 = vmatprep.subr.bf16.mxu1 %v10314_v30 }
 0x754   :  { %v10423_v38 = vpop.permute.xlu0 %5609 }
 0x755   :  { %v4922_v41 = vpop.permute.xlu1 %4921 }
 0x756   :  { %5082 = vst.msk [vmem:[%s10716_s7 + $0xf8] sm:$0xff] %vm185_vm2, %v4922_v41  ;;  %4971 = vrot.lane.b32.xlu0 %v11197_v2, %s6708_s23  ;;  %6530 = vmatpush3.bf16.msra.mxu1 %v10314_v30 }
 0x757   :  { %6539 = vmatprep.subr.bf16.mxu1 %v10423_v38 }
 0x758   :  { %v4860_v43 = vpop.permute.xlu0 %4859 }
 0x759   :  { %5051 = vst.msk [vmem:[%s10716_s7] sm:$0xff] %vm185_vm2, %v4860_v43  ;;  %v4926_v34 = vpop.permute.xlu1 %4925 }
 0x75a   :  { %5084 = vst.msk [vmem:[%s10716_s7 + $0x108] sm:$0xff] %vm185_vm2, %v4926_v34  ;;  %4975 = vrot.lane.b32.xlu0 %v11198_v47, %s6708_s23 }
 0x75c   :  { %v4864_v63 = vpop.permute.xlu0 %4863 }
 0x75d   :  { %5053 = vst.msk [vmem:[%s10716_s7 + $0x10] sm:$0xff] %vm185_vm2, %v4864_v63  ;;  %v4930_v50 = vpop.permute.xlu1 %4929 }
 0x75e   :  { %5086 = vst.msk [vmem:[%s10716_s7 + $0x118] sm:$0xff] %vm185_vm2, %v4930_v50  ;;  %4979 = vrot.lane.b32.xlu0 %v10203_v19, %s6708_s23 }
 0x760   :  { %v4868_v3 = vpop.permute.xlu0 %4867 }
 0x761   :  { %5055 = vst.msk [vmem:[%s10716_s7 + $0x20] sm:$0xff] %vm185_vm2, %v4868_v3  ;;  %v4934_v0 = vpop.permute.xlu1 %4933 }
 0x762   :  { %5088 = vst.msk [vmem:[%s10716_s7 + $0x128] sm:$0xff] %vm185_vm2, %v4934_v0  ;;  %4983 = vrot.lane.b32.xlu0 %v11199_v44, %s6708_s23 }
 0x764   :  { %v4872_v62 = vpop.permute.xlu0 %4871 }
 0x765   :  { %5057 = vst.msk [vmem:[%s10716_s7 + $0x30] sm:$0xff] %vm185_vm2, %v4872_v62  ;;  %v4938_v19 = vpop.permute.xlu1 %4937 }
 0x766   :  { %5090 = vst.msk [vmem:[%s10716_s7 + $0x138] sm:$0xff] %vm185_vm2, %v4938_v19 }
 0x768   :  { %v4876_v12 = vpop.permute.xlu0 %4875 }
 0x769   :  { %5059 = vst.msk [vmem:[%s10716_s7 + $0x40] sm:$0xff] %vm185_vm2, %v4876_v12  ;;  %v4942_v58 = vpop.permute.xlu1 %4941 }
 0x76a   :  { %5092 = vst.msk [vmem:[%s10716_s7 + $0x148] sm:$0xff] %vm185_vm2, %v4942_v58 }
 0x76c   :  { %v4880_v26 = vpop.permute.xlu0 %4879 }
 0x76d   :  { %5061 = vst.msk [vmem:[%s10716_s7 + $0x50] sm:$0xff] %vm185_vm2, %v4880_v26  ;;  %v4946_v24 = vpop.permute.xlu1 %4945 }
 0x76e   :  { %5094 = vst.msk [vmem:[%s10716_s7 + $0x158] sm:$0xff] %vm185_vm2, %v4946_v24 }
 0x770   :  { %v4884_v45 = vpop.permute.xlu0 %4883 }
 0x771   :  { %5063 = vst.msk [vmem:[%s10716_s7 + $0x60] sm:$0xff] %vm185_vm2, %v4884_v45  ;;  %v4950_v42 = vpop.permute.xlu1 %4949 }
 0x772   :  { %5096 = vst.msk [vmem:[%s10716_s7 + $0x168] sm:$0xff] %vm185_vm2, %v4950_v42 }
 0x774   :  { %v4888_v32 = vpop.permute.xlu0 %4887 }
 0x775   :  { %5065 = vst.msk [vmem:[%s10716_s7 + $0x70] sm:$0xff] %vm185_vm2, %v4888_v32  ;;  %v4954_v23 = vpop.permute.xlu1 %4953  ;;  %v5115_v32 = vld [vmem:[#allocation4] sm:$0xff] }
 0x776   :  { %5098 = vst.msk [vmem:[%s10716_s7 + $0x178] sm:$0xff] %vm185_vm2, %v4954_v23 }
 0x778   :  { %v4892_v60 = vpop.permute.xlu0 %4891 }
 0x779   :  { %5067 = vst.msk [vmem:[%s10716_s7 + $0x80] sm:$0xff] %vm185_vm2, %v4892_v60  ;;  %v4958_v57 = vpop.permute.xlu1 %4957 }
 0x77a   :  { %5100 = vst.msk [vmem:[%s10716_s7 + $0x188] sm:$0xff] %vm185_vm2, %v4958_v57 }
 0x77c   :  { %v4896_v39 = vpop.permute.xlu0 %4895 }
 0x77d   :  { %5069 = vst.msk [vmem:[%s10716_s7 + $0x90] sm:$0xff] %vm185_vm2, %v4896_v39  ;;  %v4962_v27 = vpop.permute.xlu1 %4961  ;;  %v5116_v39 = vld [vmem:[#allocation4 + $0x8] sm:$0xff] }
 0x77e   :  { %5102 = vst.msk [vmem:[%s10716_s7 + $0x198] sm:$0xff] %vm185_vm2, %v4962_v27 }
 0x780   :  { %v4900_v28 = vpop.permute.xlu0 %4899 }
 0x781   :  { %5071 = vst.msk [vmem:[%s10716_s7 + $0xa0] sm:$0xff] %vm185_vm2, %v4900_v28  ;;  %v4966_v30 = vpop.permute.xlu1 %4965 }
 0x782   :  { %5104 = vst.msk [vmem:[%s10716_s7 + $0x1a8] sm:$0xff] %vm185_vm2, %v4966_v30 }
 0x784   :  { %v4904_v25 = vpop.permute.xlu0 %4903 }
 0x785   :  { %5073 = vst.msk [vmem:[%s10716_s7 + $0xb0] sm:$0xff] %vm185_vm2, %v4904_v25  ;;  %v4970_v56 = vpop.permute.xlu1 %4969 }
 0x786   :  { %5106 = vst.msk [vmem:[%s10716_s7 + $0x1b8] sm:$0xff] %vm185_vm2, %v4970_v56 }
 0x788   :  { %v4908_v21 = vpop.permute.xlu0 %4907 }
 0x789   :  { %5075 = vst.msk [vmem:[%s10716_s7 + $0xc0] sm:$0xff] %vm185_vm2, %v4908_v21  ;;  %v4974_v48 = vpop.permute.xlu1 %4973 }
 0x78a   :  { %5108 = vst.msk [vmem:[%s10716_s7 + $0x1c8] sm:$0xff] %vm185_vm2, %v4974_v48 }
 0x78c   :  { %v6173_v20 = vpop.f32.mrb[88].mxu1  ;;  %v4912_v49 = vpop.permute.xlu0 %4911 }
 0x78d   :  { %5077 = vst.msk [vmem:[%s10716_s7 + $0xd0] sm:$0xff] %vm185_vm2, %v4912_v49  ;;  %v4978_v31 = vpop.permute.xlu1 %4977  ;;  %v6174_v59 = vpop.f32.mrb[89].mxu1 }
 0x78e   :  { %5110 = vst.msk [vmem:[%s10716_s7 + $0x1d8] sm:$0xff] %vm185_vm2, %v4978_v31  ;;  %v10551_v13 = vadd.f32 %v6174_v59, %v6173_v20  ;;  %v6176_v6 = vpop.f32.mrb[90].mxu1  ;;  %v5117_v20 = vld [vmem:[#allocation4 + $0x10] sm:$0xff] }
 0x78f   :  { %v6177_v11 = vpop.f32.mrb[91].mxu1 }
 0x790   :  { %v10553_v18 = vadd.f32 %v6177_v11, %v6176_v6  ;;  %v4916_v52 = vpop.permute.xlu0 %4915 }
 0x791   :  { %5079 = vst.msk [vmem:[%s10716_s7 + $0xe0] sm:$0xff] %vm185_vm2, %v4916_v52  ;;  %v4982_v40 = vpop.permute.xlu1 %4981 }
 0x792   :  { %5112 = vst.msk [vmem:[%s10716_s7 + $0x1e8] sm:$0xff] %vm185_vm2, %v4982_v40 }
 0x794   :  { %v6179_v29 = vpop.f32.mrb[92].mxu1  ;;  %v4920_v15 = vpop.permute.xlu0 %4919 }
 0x795   :  { %5081 = vst.msk [vmem:[%s10716_s7 + $0xf0] sm:$0xff] %vm185_vm2, %v4920_v15  ;;  %v4986_v7 = vpop.permute.xlu1 %4985  ;;  %v6180_v4 = vpop.f32.mrb[93].mxu1 }
 0x796   :  { %5114 = vst.msk [vmem:[%s10716_s7 + $0x1f8] sm:$0xff] %vm185_vm2, %v4986_v7  ;;  %v10571_v51 = vadd.f32 %v6180_v4, %v6179_v29  ;;  %v6182_v33 = vpop.f32.mrb[94].mxu1 }
 0x797   :  { %v6183_v54 = vpop.f32.mrb[95].mxu1 }
 0x798   :  { %v10573_v53 = vadd.f32 %v6183_v54, %v6182_v33  ;;  %v4924_v36 = vpop.permute.xlu0 %4923  ;;  %v5119_v54 = vld [vmem:[#allocation4 + $0x20] sm:$0xff] }
 0x799   :  { %5083 = vst.msk [vmem:[%s10716_s7 + $0x100] sm:$0xff] %vm185_vm2, %v4924_v36 }
 0x79c   :  { %v6185_v37 = vpop.f32.mrb[96].mxu1  ;;  %v4928_v55 = vpop.permute.xlu0 %4927 }
 0x79d   :  { %5085 = vst.msk [vmem:[%s10716_s7 + $0x110] sm:$0xff] %vm185_vm2, %v4928_v55  ;;  %v6186_v14 = vpop.f32.mrb[97].mxu1 }
 0x79e   :  { %v10583_v5 = vadd.f32 %v6186_v14, %v6185_v37  ;;  %v6188_v35 = vpop.f32.mrb[98].mxu1 }
 0x79f   :  { %v6189_v61 = vpop.f32.mrb[99].mxu1 }
 0x7a0   :  { %v10585_v46 = vadd.f32 %v6189_v61, %v6188_v35  ;;  %v4932_v10 = vpop.permute.xlu0 %4931 }
 0x7a1   :  { %5087 = vst.msk [vmem:[%s10716_s7 + $0x120] sm:$0xff] %vm185_vm2, %v4932_v10 }
 0x7a4   :  { %v6191_v16 = vpop.f32.mrb[100].mxu1  ;;  %v4936_v22 = vpop.permute.xlu0 %4935 }
 0x7a5   :  { %5089 = vst.msk [vmem:[%s10716_s7 + $0x130] sm:$0xff] %vm185_vm2, %v4936_v22  ;;  %v6192_v1 = vpop.f32.mrb[101].mxu1 }
 0x7a6   :  { %v10595_v9 = vadd.f32 %v6192_v1, %v6191_v16  ;;  %v6194_v8 = vpop.f32.mrb[102].mxu1 }
 0x7a7   :  { %v6195_v41 = vpop.f32.mrb[103].mxu1 }
 0x7a8   :  { %v10597_v2 = vadd.f32 %v6195_v41, %v6194_v8  ;;  %v4940_v43 = vpop.permute.xlu0 %4939 }
 0x7a9   :  { %5091 = vst.msk [vmem:[%s10716_s7 + $0x140] sm:$0xff] %vm185_vm2, %v4940_v43 }
 0x7ac   :  { %v4944_v34 = vpop.permute.xlu0 %4943 }
 0x7ad   :  { %5093 = vst.msk [vmem:[%s10716_s7 + $0x150] sm:$0xff] %vm185_vm2, %v4944_v34 }
 0x7b0   :  { %v4948_v47 = vpop.permute.xlu0 %4947 }
 0x7b1   :  { %5095 = vst.msk [vmem:[%s10716_s7 + $0x160] sm:$0xff] %vm185_vm2, %v4948_v47 }
 0x7b4   :  { %v4952_v63 = vpop.permute.xlu0 %4951 }
 0x7b5   :  { %5097 = vst.msk [vmem:[%s10716_s7 + $0x170] sm:$0xff] %vm185_vm2, %v4952_v63 }
 0x7b8   :  { %v4956_v50 = vpop.permute.xlu0 %4955 }
 0x7b9   :  { %5099 = vst.msk [vmem:[%s10716_s7 + $0x180] sm:$0xff] %vm185_vm2, %v4956_v50 }
 0x7bc   :  { %v4960_v3 = vpop.permute.xlu0 %4959 }
 0x7bd   :  { %5101 = vst.msk [vmem:[%s10716_s7 + $0x190] sm:$0xff] %vm185_vm2, %v4960_v3 }
 0x7c0   :  { %v4964_v0 = vpop.permute.xlu0 %4963 }
 0x7c1   :  { %5103 = vst.msk [vmem:[%s10716_s7 + $0x1a0] sm:$0xff] %vm185_vm2, %v4964_v0 }
 0x7c4   :  { %v4968_v44 = vpop.permute.xlu0 %4967 }
 0x7c5   :  { %5105 = vst.msk [vmem:[%s10716_s7 + $0x1b0] sm:$0xff] %vm185_vm2, %v4968_v44 }
 0x7c8   :  { %v4972_v62 = vpop.permute.xlu0 %4971 }
 0x7c9   :  { %5107 = vst.msk [vmem:[%s10716_s7 + $0x1c0] sm:$0xff] %vm185_vm2, %v4972_v62 }
 0x7cc   :  { %v4976_v19 = vpop.permute.xlu0 %4975 }
 0x7cd   :  { %5109 = vst.msk [vmem:[%s10716_s7 + $0x1d0] sm:$0xff] %vm185_vm2, %v4976_v19 }
 0x7d0   :  { %v4980_v12 = vpop.permute.xlu0 %4979 }
 0x7d1   :  { %5111 = vst.msk [vmem:[%s10716_s7 + $0x1e0] sm:$0xff] %vm185_vm2, %v4980_v12  ;;  %v5497_v12 = vld [vmem:[#allocation3 + $0x8] sm:$0xff] }
 0x7d4   :  { %v4984_v58 = vpop.permute.xlu0 %4983 }
 0x7d5   :  { %5113 = vst.msk [vmem:[%s10716_s7 + $0x1f0] sm:$0xff] %vm185_vm2, %v4984_v58  ;;  %v5498_v58 = vld [vmem:[#allocation3 + $0x10] sm:$0xff] }
 0x7f4   :  { %v6213_v26 = vpop.f32.mrb[104].mxu1 }
 0x7f5   :  { %v6214_v24 = vpop.f32.mrb[105].mxu1 }
 0x7f6   :  { %v6215_v45 = vadd.f32 %v6214_v24, %v6213_v26  ;;  %v6216_v42 = vpop.f32.mrb[106].mxu1  ;;  %v6015_v26 = vld [vmem:[%s10709_s6 + $0x8] ss:$0 sm:$0xff] }
 0x7f7   :  { %v6217_v23 = vpop.f32.mrb[107].mxu1 }
 0x7f8   :  { %v5447_v60 = vadd.f32 %v6215_v45, %v10551_v13  ;;  %v6218_v57 = vadd.f32 %v6217_v23, %v6216_v42  ;;  %v5118_v13 = vld [vmem:[#allocation4 + $0x18] sm:$0xff] }
 0x7fa   :  { %v5477_v27 = vadd.f32 %v5447_v60, %v5115_v32  ;;  %v5450_v28 = vadd.f32 %v6218_v57, %v10553_v18 }
 0x7fc   :  { %5485 = vst.msk [vmem:[#allocation4] sm:$0xff] %vm185_vm2, %v5477_v27  ;;  %v5478_v30 = vadd.f32 %v5450_v28, %v5116_v39  ;;  %v6219_v25 = vpop.f32.mrb[108].mxu1 }
 0x7fd   :  { %v6220_v56 = vpop.f32.mrb[109].mxu1 }
 0x7fe   :  { %5486 = vst.msk [vmem:[#allocation4 + $0x8] sm:$0xff] %vm185_vm2, %v5478_v30  ;;  %v6221_v21 = vadd.f32 %v6220_v56, %v6219_v25  ;;  %v6222_v48 = vpop.f32.mrb[110].mxu1 }
 0x7ff   :  { %v6223_v49 = vpop.f32.mrb[111].mxu1 }
 0x800   :  { %v5455_v31 = vadd.f32 %v6221_v21, %v10571_v51  ;;  %v6224_v59 = vadd.f32 %v6223_v49, %v6222_v48 }
 0x802   :  { %v5479_v6 = vadd.f32 %v5455_v31, %v5117_v20  ;;  %v5458_v11 = vadd.f32 %v6224_v59, %v10573_v53  ;;  %v5120_v53 = vld [vmem:[#allocation4 + $0x28] sm:$0xff] }
 0x803   :  { %v5504_v29 = vld [vmem:[#allocation4] sm:$0xff] }
 0x804   :  { %5487 = vst.msk [vmem:[#allocation4 + $0x10] sm:$0xff] %vm185_vm2, %v5479_v6  ;;  %v5480_v18 = vadd.f32 %v5458_v11, %v5118_v13  ;;  %v6225_v52 = vpop.f32.mrb[112].mxu1 }
 0x805   :  { %v6226_v40 = vpop.f32.mrb[113].mxu1  ;;  %v5505_v15 = vld [vmem:[#allocation4 + $0x8] sm:$0xff] }
 0x806   :  { %5488 = vst.msk [vmem:[#allocation4 + $0x18] sm:$0xff] %vm185_vm2, %v5480_v18  ;;  %v6227_v7 = vadd.f32 %v6226_v40, %v6225_v52  ;;  %v6228_v4 = vpop.f32.mrb[114].mxu1  ;;  %v5512_v33 = vpack.c.bf16 %v5505_v15, %v5504_v29 }
 0x807   :  { %v6229_v36 = vpop.f32.mrb[115].mxu1 }
 0x808   :  { %v5463_v51 = vadd.f32 %v6227_v7, %v10583_v5  ;;  %v6230_v37 = vadd.f32 %v6229_v36, %v6228_v4  ;;  %6531 = vmatprep.mubr.msk.bf16.mxu1 %vm185_vm2, %v5512_v33  ;;  %v5121_v5 = vld [vmem:[#allocation4 + $0x30] sm:$0xff] }
 0x80a   :  { %v5481_v55 = vadd.f32 %v5463_v51, %v5119_v54  ;;  %v5466_v14 = vadd.f32 %v6230_v37, %v10585_v46  ;;  %v5122_v46 = vld [vmem:[#allocation4 + $0x38] sm:$0xff] }
 0x80b   :  { %v5506_v16 = vld [vmem:[#allocation4 + $0x10] sm:$0xff] }
 0x80c   :  { %5489 = vst.msk [vmem:[#allocation4 + $0x20] sm:$0xff] %vm185_vm2, %v5481_v55  ;;  %v5482_v35 = vadd.f32 %v5466_v14, %v5120_v53  ;;  %v6231_v61 = vpop.f32.mrb[116].mxu1 }
 0x80d   :  { %v6232_v10 = vpop.f32.mrb[117].mxu1  ;;  %v5507_v22 = vld [vmem:[#allocation4 + $0x18] sm:$0xff] }
 0x80e   :  { %5490 = vst.msk [vmem:[#allocation4 + $0x28] sm:$0xff] %vm185_vm2, %v5482_v35  ;;  %v6233_v1 = vadd.f32 %v6232_v10, %v6231_v61  ;;  %v6234_v8 = vpop.f32.mrb[118].mxu1  ;;  %v5513_v41 = vpack.c.bf16 %v5507_v22, %v5506_v16 }
 0x80f   :  { %v6235_v43 = vpop.f32.mrb[119].mxu1 }
 0x810   :  { %v5471_v34 = vadd.f32 %v6233_v1, %v10595_v9  ;;  %v6236_v47 = vadd.f32 %v6235_v43, %v6234_v8  ;;  %6532 = vmatmul.mubr.msk.bf16.vlgmr.msra.gmra.mrb[120].mxu1 %vm185_vm2, %v5513_v41 }
 0x811   :  { %6540 = vmatpush3.bf16.msra.mxu1 %v10423_v38 }
 0x812   :  { %v5483_v63 = vadd.f32 %v5471_v34, %v5121_v5  ;;  %v5474_v50 = vadd.f32 %v6236_v47, %v10597_v2  ;;  %6541 = vmatprep.subr.bf16.mxu1 %v10320_v17  ;;  %v5496_v2 = vld [vmem:[#allocation3] sm:$0xff] }
 0x813   :  { %v5508_v0 = vld [vmem:[#allocation4 + $0x20] sm:$0xff] }
 0x814   :  { %5491 = vst.msk [vmem:[#allocation4 + $0x30] sm:$0xff] %vm185_vm2, %v5483_v63  ;;  %v5484_v3 = vadd.f32 %v5474_v50, %v5122_v46 }
 0x815   :  { %v5509_v44 = vld [vmem:[#allocation4 + $0x28] sm:$0xff]  ;;  %6542 = vmatpush3.bf16.msra.mxu1 %v10320_v17  ;;  %v5499_v17 = vld [vmem:[#allocation3 + $0x18] sm:$0xff] }
 0x816   :  { %5492 = vst.msk [vmem:[#allocation4 + $0x38] sm:$0xff] %vm185_vm2, %v5484_v3  ;;  %v5514_v9 = vpack.c.bf16 %v5509_v44, %v5508_v0 }
 0x818   :  { %6535 = vmatprep.mubr.msk.bf16.mxu1 %vm185_vm2, %v5514_v9 }
 0x81b   :  { %v5510_v62 = vld [vmem:[#allocation4 + $0x30] sm:$0xff] }
 0x81d   :  { %v5511_v19 = vld [vmem:[#allocation4 + $0x38] sm:$0xff] }
 0x81e   :  { %v5515_v38 = vpack.c.bf16 %v5511_v19, %v5510_v62 }
 0x820   :  { %6536 = vmatmul.mubr.msk.bf16.gmra.mrb[124].mxu1 %vm185_vm2, %v5515_v38 }
 0x821   :  { %6543 = vmatprep.mubr.msk.bf16.mxu1 %vm185_vm2, %v5496_v2 }
 0x828   :  { %6544 = vmatmul.mubr.msk.bf16.vlgmr.msra.gmra.mrb[120].mxu1 %vm185_vm2, %v5497_v12 }
 0x829   :  { %6547 = vmatprep.mubr.msk.bf16.mxu1 %vm185_vm2, %v5498_v58 }
 0x830   :  { %6548 = vmatmul.mubr.msk.bf16.gmra.mrb[124].mxu1 %vm185_vm2, %v5499_v17 }
 0x8fb   :  { %v6545_v24 = vpop.f32.mrb[120].mxu1 }
 0x8fc   :  { %v5699_v45 = vadd.f32 %v6545_v24, %v6015_v26  ;;  %v5661_v42 = vpop.f32.mrb[121].mxu1 }
 0x8fd   :  { %v5697_v32 = vadd.f32 %v6015_v26, %v5661_v42  ;;  %v6546_v23 = vpop.f32.mrb[122].mxu1 }
 0x8fe   :  { %vm5707_vm7 = vcmp.gt.f32.partialorder %v5699_v45, 0.0  ;;  %v5715_v60 = vmul.f32 0.01, %v5699_v45  ;;  %v5700_v57 = vadd.f32 %v6546_v23, %v6015_v26  ;;  %v5664_v39 = vpop.f32.mrb[123].mxu1 }
 0x8ff   :  { %vm5705_vm8 = vcmp.gt.f32.partialorder %v5697_v32, 0.0  ;;  %v5713_v27 = vmul.f32 0.01, %v5697_v32  ;;  %v5698_v28 = vadd.f32 %v6015_v26, %v5664_v39 }
 0x900   :  { %v5723_v30 = vsel %vm5707_vm7, %v5699_v45, %v5715_v60  ;;  %vm5708_vm9 = vcmp.gt.f32.partialorder %v5700_v57, 0.0  ;;  %v5716_v25 = vmul.f32 0.01, %v5700_v57 }
 0x901   :  { %5731 = vst.msk [vmem:[%s10717_s8 + $0x10] sm:$0xff] %vm185_vm2, %v5723_v30  ;;  %v5721_v56 = vsel %vm5705_vm8, %v5697_v32, %v5713_v27  ;;  %vm5706_vm3 = vcmp.gt.f32.partialorder %v5698_v28, 0.0  ;;  %v5714_v21 = vmul.f32 0.01, %v5698_v28 }
 0x902   :  { %5729 = vst.msk [vmem:[%s10717_s8] sm:$0xff] %vm185_vm2, %v5721_v56  ;;  %v5724_v48 = vsel %vm5708_vm9, %v5700_v57, %v5716_v25 }
 0x903   :  { %5732 = vst.msk [vmem:[%s10717_s8 + $0x18] sm:$0xff] %vm185_vm2, %v5724_v48  ;;  %v5722_v20 = vsel %vm5706_vm3, %v5698_v28, %v5714_v21  ;;  %v6549_v49 = vpop.f32.mrb[124].mxu1 }
 0x904   :  { %5730 = vst.msk [vmem:[%s10717_s8 + $0x8] sm:$0xff] %vm185_vm2, %v5722_v20  ;;  %v5703_v31 = vadd.f32 %v6549_v49, %v6015_v26  ;;  %v5677_v59 = vpop.f32.mrb[125].mxu1 }
 0x905   :  { %v5701_v13 = vadd.f32 %v6015_v26, %v5677_v59  ;;  %v6550_v6 = vpop.f32.mrb[126].mxu1 }
 0x906   :  { %vm5711_vm10 = vcmp.gt.f32.partialorder %v5703_v31, 0.0  ;;  %v5719_v11 = vmul.f32 0.01, %v5703_v31  ;;  %v5704_v18 = vadd.f32 %v6550_v6, %v6015_v26  ;;  %v5680_v52 = vpop.f32.mrb[127].mxu1 }
 0x907   :  { %vm5709_vm11 = vcmp.gt.f32.partialorder %v5701_v13, 0.0  ;;  %v5717_v40 = vmul.f32 0.01, %v5701_v13  ;;  %v5702_v29 = vadd.f32 %v6015_v26, %v5680_v52 }
 0x908   :  { %v5727_v15 = vsel %vm5711_vm10, %v5703_v31, %v5719_v11  ;;  %vm5712_vm12 = vcmp.gt.f32.partialorder %v5704_v18, 0.0  ;;  %v5720_v7 = vmul.f32 0.01, %v5704_v18 }
 0x909   :  { %5735 = vst.msk [vmem:[%s10717_s8 + $0x30] sm:$0xff] %vm185_vm2, %v5727_v15  ;;  %v5725_v4 = vsel %vm5709_vm11, %v5701_v13, %v5717_v40  ;;  %vm5710_vm13 = vcmp.gt.f32.partialorder %v5702_v29, 0.0  ;;  %v5718_v33 = vmul.f32 0.01, %v5702_v29 }
 0x90a   :  { %5733 = vst.msk [vmem:[%s10717_s8 + $0x20] sm:$0xff] %vm185_vm2, %v5725_v4  ;;  %v5728_v54 = vsel %vm5712_vm12, %v5704_v18, %v5720_v7 }
 0x90b   :  { %5736 = vst.msk [vmem:[%s10717_s8 + $0x38] sm:$0xff] %vm185_vm2, %v5728_v54  ;;  %v5726_v36 = vsel %vm5710_vm13, %v5702_v29, %v5718_v33 }
 0x90c   :  { %5734 = vst.msk [vmem:[%s10717_s8 + $0x28] sm:$0xff] %vm185_vm2, %v5726_v36 }

</bundles_post_ra>
